<compile_context>
chip_gen: v7x
topology: tpu7x:2x2x1
jax: 0.10.0
libtpu: 0.0.40
codegen_flags: <defaults>
</compile_context>

<pallas_src>
import functools

import jax
import jax.numpy as jnp
from jax.experimental import pallas as pl
from jax.experimental.pallas import tpu as pltpu


def mdn_kernel(n_g, k, precision,
               x_ref,
               w1_ref, b1_ref,
               w2_ref, b2_ref,
               w3_ref, b3_ref,
               out_ref):
    x = x_ref[...]

    # Fused trunk: both branches live side by side on the (padded) lane axis.
    h = jnp.tanh(
        jnp.dot(x, w1_ref[...], precision=precision,
                preferred_element_type=jnp.float32) + b1_ref[...])
    h = jnp.maximum(
        jnp.dot(h, w2_ref[...], precision=precision,
                preferred_element_type=jnp.float32) + b2_ref[...],
        0.0)

    # Single fused head: columns are [pi (n_g) | mu (k) | sigma (k) | zero-pad].
    # eps is already folded into the sigma bias columns.
    z = (jnp.dot(h, w3_ref[...], precision=precision,
                 preferred_element_type=jnp.float32) + b3_ref[...])

    # Whole-vreg epilogue, no lane slicing: select per lane range.
    lane = jax.lax.broadcasted_iota(jnp.int32, z.shape, 1)
    is_pi = lane < n_g
    is_mu = jnp.logical_and(lane >= n_g, lane < n_g + k)

    # log_softmax over the pi lanes only (masked max / masked sum-of-exp).
    zp = jnp.where(is_pi, z, -jnp.inf)
    m = jnp.max(zp, axis=-1, keepdims=True)
    lse = jnp.log(jnp.sum(jnp.exp(zp - m), axis=-1, keepdims=True))
    pi_val = z - m - lse

    # pi lanes: log-softmax; mu lanes: identity; sigma / padded lanes: exp.
    out_ref[...] = jnp.where(is_pi, pi_val, jnp.where(is_mu, z, jnp.exp(z)))


def pack_mdn_params(params, *, input_size, num_hidden, num_gaussian,
                    output_size, eps):
    """Pack per-branch PyTorch-style params into fused, lane-padded operands."""
    (pw1, pb1, pw2, pb2, pw3, pb3,
     nw1, nb1, nw2, nb2, nw3, nb3) = params
    n_h = num_hidden
    n_g = num_gaussian
    k = n_g * output_size
    f32 = jnp.float32

    h2 = 2 * n_h
    hp = max(128, pl.cdiv(h2, 128) * 128)            # padded fused hidden width
    head = n_g + 2 * k
    op = max(128, pl.cdiv(head, 128) * 128)          # padded fused head width

    # Layer 1: [pi-branch | normal-branch] side by side, zero-padded.
    w1 = jnp.zeros((input_size, hp), f32)
    w1 = w1.at[:, :n_h].set(pw1).at[:, n_h:h2].set(nw1)
    b1 = jnp.zeros((1, hp), f32)
    b1 = b1.at[0, :n_h].set(pb1).at[0, n_h:h2].set(nb1)

    # Layer 2: block-diagonal fused trunk (win at small n_h; see TODO above).
    w2 = jnp.zeros((hp, hp), f32)
    w2 = w2.at[:n_h, :n_h].set(pw2).at[n_h:h2, n_h:h2].set(nw2)
    b2 = jnp.zeros((1, hp), f32)
    b2 = b2.at[0, :n_h].set(pb2).at[0, n_h:h2].set(nb2)

    # Fused head: [pi | mu | sigma | zero-pad]; eps folded into sigma bias.
    w3 = jnp.zeros((hp, op), f32)
    w3 = w3.at[:n_h, :n_g].set(pw3)                         # pi  <- pi hidden
    w3 = w3.at[n_h:h2, n_g:n_g + k].set(nw3[:, :k])         # mu  <- normal hidden
    w3 = w3.at[n_h:h2, n_g + k:n_g + 2 * k].set(nw3[:, k:]) # sig <- normal hidden
    b3 = jnp.zeros((1, op), f32)
    b3 = b3.at[0, :n_g].set(pb3)
    b3 = b3.at[0, n_g:n_g + k].set(nb3[:k])
    b3 = b3.at[0, n_g + k:n_g + 2 * k].set(nb3[k:] + eps)

    return (w1, b1, w2, b2, w3, b3), hp, op


def mdn_forward(x, params, *, num_gaussian, output_size, num_hidden,
                eps=1e-6, batch_tile=512,
                precision=jax.lax.Precision.DEFAULT):
    """MDN forward. x: (B, input_size) float32. Returns (pi, mu, sigma)."""
    B, i_s = x.shape
    n_h = num_hidden
    n_g = num_gaussian
    k = n_g * output_size

    packed, hp, op = pack_mdn_params(
        params, input_size=i_s, num_hidden=n_h, num_gaussian=n_g,
        output_size=output_size, eps=eps)

    # Batch tile: multiple of 8 (f32 sublane), large to amortize per-step
    # overhead, but clamped so the grid has >= 2 steps (v7x megacore sharding
    # + keeps the double-buffer pipeline primed).
    if B <= 8:
        tb = B
    else:
        tb = max(8, (min(batch_tile, B) // 8) * 8)
        if pl.cdiv(B, tb) < 2:
            tb = max(8, -(-(B // 2) // 8) * 8)
    grid = (pl.cdiv(B, tb),)   # ragged tail rows are computed then discarded

    x_spec = pl.BlockSpec((tb, i_s), lambda i: (i, 0))

    def resident(shape):
        # Constant block index => fetched once, kept in VMEM across the grid.
        return pl.BlockSpec(shape, lambda i: (0, 0))

    in_specs = [x_spec] + [resident(p.shape) for p in packed]
    out_specs = pl.BlockSpec((tb, op), lambda i: (i, 0))   # lane-dense output

    # VMEM budget: resident weights (double-buffered by default) + streamed
    # x / output tiles + activation temporaries, with 2x headroom.
    param_bytes = sum(int(p.size) * p.dtype.itemsize for p in packed)
    io_bytes = 2 * tb * (i_s + op) * 4
    act_bytes = 4 * tb * hp * 4
    vmem_limit = int(min(64 * 2 ** 20,
                         max(4 * 2 ** 20,
                             2 * (2 * param_bytes + io_bytes + act_bytes))))

    flops = 2 * B * (i_s * hp + hp * hp + hp * op)
    transcendentals = B * (hp + 2 * op)
    bytes_accessed = (int(x.size) + sum(int(p.size) for p in packed)
                      + B * op) * 4

    out = pl.pallas_call(
        functools.partial(mdn_kernel, n_g, k, precision),
        out_shape=jax.ShapeDtypeStruct((B, op), jnp.float32),
        grid=grid,
        in_specs=in_specs,
        out_specs=out_specs,
        compiler_params=pltpu.CompilerParams(
            dimension_semantics=("parallel",),   # megacore shards the batch
            vmem_limit_bytes=vmem_limit,
        ),
        cost_estimate=pl.CostEstimate(
            flops=flops,
            transcendentals=transcendentals,
            bytes_accessed=bytes_accessed),
    )(x, *packed)

    # Glue: slice the fused lane-dense output and match torch's reshapes.
    pi = out[:, :n_g]
    mu = out[:, n_g:n_g + k].reshape(-1, n_g, output_size)
    sigma = out[:, n_g + k:n_g + 2 * k].reshape(-1, n_g, output_size)
    return pi, mu, sigma


# ----------------------------------------------------------------------------
# Parameter init (nn.Linear-style, weights stored transposed as (in, out)) and
# a pure-JAX reference of the PyTorch forward for the correctness check.
# ----------------------------------------------------------------------------
def init_linear(key, fan_in, fan_out):
    kw, kb = jax.random.split(key)
    bound = 1.0 / jnp.sqrt(fan_in)
    w = jax.random.uniform(kw, (fan_in, fan_out), jnp.float32, -bound, bound)
    b = jax.random.uniform(kb, (fan_out,), jnp.float32, -bound, bound)
    return w, b


def init_mdn_params(key, input_size, output_size, num_gaussian, num_hidden):
    keys = jax.random.split(key, 6)
    # pi branch: i_s -> n_h -> n_h -> n_g
    pw1, pb1 = init_linear(keys[0], input_size, num_hidden)
    pw2, pb2 = init_linear(keys[1], num_hidden, num_hidden)
    pw3, pb3 = init_linear(keys[2], num_hidden, num_gaussian)
    # normal branch: i_s -> n_h -> n_h -> 2 * (o_s * n_g)
    nw1, nb1 = init_linear(keys[3], input_size, num_hidden)
    nw2, nb2 = init_linear(keys[4], num_hidden, num_hidden)
    nw3, nb3 = init_linear(keys[5], num_hidden, 2 * output_size * num_gaussian)
    return (pw1, pb1, pw2, pb2, pw3, pb3, nw1, nb1, nw2, nb2, nw3, nb3)


def mdn_reference(x, params, *, num_gaussian, output_size, eps=1e-6):
    (pw1, pb1, pw2, pb2, pw3, pb3,
     nw1, nb1, nw2, nb2, nw3, nb3) = params
    k = num_gaussian * output_size
    h = jnp.tanh(x @ pw1 + pb1)
    h = jnp.maximum(h @ pw2 + pb2, 0.0)
    pi = jax.nn.log_softmax(h @ pw3 + pb3, axis=-1)
    g = jnp.tanh(x @ nw1 + nb1)
    g = jnp.maximum(g @ nw2 + nb2, 0.0)
    ms = g @ nw3 + nb3
    mu = ms[..., :k]
    sigma = jnp.exp(ms[..., k:] + eps)
    return (pi,
            mu.reshape(-1, num_gaussian, output_size),
            sigma.reshape(-1, num_gaussian, output_size))


if __name__ == "__main__":
    # The harness reference runs at full f32 precision; the kernel's dot
    # precision is pinned explicitly (HIGHEST here so the 1e-4 check is tight;
    # production would pass DEFAULT / bf16 weights instead).
    jax.config.update("jax_default_matmul_precision", "highest")

    # Small, module-consistent feature sizes; B spans 4 grid tiles of 512 rows
    # so the batch axis actually pipelines / shards across TensorCores.
    B = 2048
    input_size = 16
    output_size = 3
    num_gaussian = 4
    num_hidden = 32

    root = jax.random.PRNGKey(0)
    kx, kp = jax.random.split(root)
    x = jax.random.normal(kx, (B, input_size), jnp.float32)
    params = init_mdn_params(kp, input_size, output_size, num_gaussian, num_hidden)

    pi, mu, sigma = mdn_forward(
        x, params, num_gaussian=num_gaussian, output_size=output_size,
        num_hidden=num_hidden, eps=1e-6, batch_tile=512,
        precision=jax.lax.Precision.HIGHEST)
    jax.block_until_ready((pi, mu, sigma))

    assert pi.shape == (B, num_gaussian)
    assert mu.shape == (B, num_gaussian, output_size)
    assert sigma.shape == (B, num_gaussian, output_size)

    # Numerical check against the pure-JAX reference of the PyTorch forward.
    pi_r, mu_r, sigma_r = mdn_reference(
        x, params, num_gaussian=num_gaussian, output_size=output_size, eps=1e-6)
    assert jnp.allclose(pi, pi_r, atol=1e-4, rtol=1e-4)
    assert jnp.allclose(mu, mu_r, atol=1e-4, rtol=1e-4)
    assert jnp.allclose(sigma, sigma_r, atol=1e-4, rtol=1e-4)

    # pi rows are log-probabilities; sigma strictly positive.
    assert jnp.allclose(jnp.exp(pi).sum(-1), 1.0, atol=1e-5)
    assert bool(jnp.all(sigma > 0))

    print("KERNEL_OK")
</pallas_src>

<mosaic_0001>
module attributes {stable_mosaic.version = 11 : i64} {
  func.func @mdn_kernel(%arg0: i32, %arg1: memref<512x16xf32, #tpu.memory_space<vmem>>, %arg2: memref<16x128xf32, #tpu.memory_space<vmem>>, %arg3: memref<1x128xf32, #tpu.memory_space<vmem>>, %arg4: memref<128x128xf32, #tpu.memory_space<vmem>>, %arg5: memref<1x128xf32, #tpu.memory_space<vmem>>, %arg6: memref<128x128xf32, #tpu.memory_space<vmem>>, %arg7: memref<1x128xf32, #tpu.memory_space<vmem>>, %arg8: memref<512x128xf32, #tpu.memory_space<vmem>>) attributes {dimension_semantics = [#tpu.dimension_semantics<parallel>], iteration_bounds = array<i64: 4>, scalar_prefetch = 0 : i64, scratch_operands = 0 : i64, tpu.core_type = #tpu.core_type<tc>, window_params = [{transform_indices = @transform_0, window_bounds = array<i64: 512, 16>}, {pipeline_mode = #tpu.pipeline_mode<synchronous>, transform_indices = @transform_1, window_bounds = array<i64: 16, 128>}, {pipeline_mode = #tpu.pipeline_mode<synchronous>, transform_indices = @transform_2, window_bounds = array<i64: 1, 128>}, {pipeline_mode = #tpu.pipeline_mode<synchronous>, transform_indices = @transform_3, window_bounds = array<i64: 128, 128>}, {pipeline_mode = #tpu.pipeline_mode<synchronous>, transform_indices = @transform_4, window_bounds = array<i64: 1, 128>}, {pipeline_mode = #tpu.pipeline_mode<synchronous>, transform_indices = @transform_5, window_bounds = array<i64: 128, 128>}, {pipeline_mode = #tpu.pipeline_mode<synchronous>, transform_indices = @transform_6, window_bounds = array<i64: 1, 128>}, {transform_indices = @transform_7, window_bounds = array<i64: 512, 128>}]} {
    %c0 = arith.constant 0 : index
    %c0_0 = arith.constant 0 : index
    %0 = vector.load %arg1[%c0, %c0_0] : memref<512x16xf32, #tpu.memory_space<vmem>>, vector<512x16xf32>
    %c0_1 = arith.constant 0 : index
    %c0_2 = arith.constant 0 : index
    %1 = vector.load %arg2[%c0_1, %c0_2] : memref<16x128xf32, #tpu.memory_space<vmem>>, vector<16x128xf32>
    %cst = arith.constant dense<0.000000e+00> : vector<512x128xf32>
    %2 = tpu.matmul %0, %1, %cst {dimension_numbers = #tpu.dot_dimension_numbers<[1], [0], [0], [1], [0, 0, 1, 1], [], []>, precision = #tpu.contract_precision<fp32>} : vector<512x16xf32>, vector<16x128xf32>, vector<512x128xf32> -> vector<512x128xf32>
    %c0_3 = arith.constant 0 : index
    %c0_4 = arith.constant 0 : index
    %3 = vector.load %arg3[%c0_3, %c0_4] : memref<1x128xf32, #tpu.memory_space<vmem>>, vector<1x128xf32>
    %4 = vector.broadcast %3 : vector<1x128xf32> to vector<512x128xf32>
    %5 = arith.addf %2, %4 : vector<512x128xf32>
    %6 = math.tanh %5 : vector<512x128xf32>
    %c0_5 = arith.constant 0 : index
    %c0_6 = arith.constant 0 : index
    %7 = vector.load %arg4[%c0_5, %c0_6] : memref<128x128xf32, #tpu.memory_space<vmem>>, vector<128x128xf32>
    %cst_7 = arith.constant dense<0.000000e+00> : vector<512x128xf32>
    %8 = tpu.matmul %6, %7, %cst_7 {dimension_numbers = #tpu.dot_dimension_numbers<[1], [0], [0], [1], [0, 0, 1, 1], [], []>, precision = #tpu.contract_precision<fp32>} : vector<512x128xf32>, vector<128x128xf32>, vector<512x128xf32> -> vector<512x128xf32>
    %c0_8 = arith.constant 0 : index
    %c0_9 = arith.constant 0 : index
    %9 = vector.load %arg5[%c0_8, %c0_9] : memref<1x128xf32, #tpu.memory_space<vmem>>, vector<1x128xf32>
    %10 = vector.broadcast %9 : vector<1x128xf32> to vector<512x128xf32>
    %11 = arith.addf %8, %10 : vector<512x128xf32>
    %cst_10 = arith.constant 0.000000e+00 : f32
    %12 = vector.broadcast %cst_10 : f32 to vector<512x128xf32>
    %13 = arith.maximumf %11, %12 : vector<512x128xf32>
    %c0_11 = arith.constant 0 : index
    %c0_12 = arith.constant 0 : index
    %14 = vector.load %arg6[%c0_11, %c0_12] : memref<128x128xf32, #tpu.memory_space<vmem>>, vector<128x128xf32>
    %cst_13 = arith.constant dense<0.000000e+00> : vector<512x128xf32>
    %15 = tpu.matmul %13, %14, %cst_13 {dimension_numbers = #tpu.dot_dimension_numbers<[1], [0], [0], [1], [0, 0, 1, 1], [], []>, precision = #tpu.contract_precision<fp32>} : vector<512x128xf32>, vector<128x128xf32>, vector<512x128xf32> -> vector<512x128xf32>
    %c0_14 = arith.constant 0 : index
    %c0_15 = arith.constant 0 : index
    %16 = vector.load %arg7[%c0_14, %c0_15] : memref<1x128xf32, #tpu.memory_space<vmem>>, vector<1x128xf32>
    %17 = vector.broadcast %16 : vector<1x128xf32> to vector<512x128xf32>
    %18 = arith.addf %15, %17 : vector<512x128xf32>
    %19 = tpu.iota {dimensions = array<i32: 1>} : vector<512x128xi32>
    %c4_i32 = arith.constant 4 : i32
    %20 = vector.broadcast %c4_i32 : i32 to vector<512x128xi32>
    %21 = arith.cmpi slt, %19, %20 : vector<512x128xi32>
    %c4_i32_16 = arith.constant 4 : i32
    %22 = vector.broadcast %c4_i32_16 : i32 to vector<512x128xi32>
    %23 = arith.cmpi sge, %19, %22 : vector<512x128xi32>
    %c16_i32 = arith.constant 16 : i32
    %24 = vector.broadcast %c16_i32 : i32 to vector<512x128xi32>
    %25 = arith.cmpi slt, %19, %24 : vector<512x128xi32>
    %26 = arith.andi %23, %25 : vector<512x128xi1>
    %cst_17 = arith.constant 0xFF800000 : f32
    %27 = vector.broadcast %cst_17 : f32 to vector<512x128xf32>
    %28 = arith.select %21, %18, %27 : vector<512x128xi1>, vector<512x128xf32>
    %cst_18 = arith.constant dense<0xFF800000> : vector<512xf32>
    %29 = vector.multi_reduction <maximumf>, %28, %cst_18 [1] : vector<512x128xf32> to vector<512xf32>
    %30 = vector.shape_cast %29 : vector<512xf32> to vector<512x1xf32>
    %31 = vector.broadcast %30 : vector<512x1xf32> to vector<512x128xf32>
    %32 = arith.subf %28, %31 : vector<512x128xf32>
    %33 = math.exp %32 : vector<512x128xf32>
    %cst_19 = arith.constant dense<0.000000e+00> : vector<512xf32>
    %34 = vector.multi_reduction <add>, %33, %cst_19 [1] : vector<512x128xf32> to vector<512xf32>
    %35 = vector.shape_cast %34 : vector<512xf32> to vector<512x1xf32>
    %36 = math.log %35 : vector<512x1xf32>
    %37 = vector.broadcast %30 : vector<512x1xf32> to vector<512x128xf32>
    %38 = arith.subf %18, %37 : vector<512x128xf32>
    %39 = vector.broadcast %36 : vector<512x1xf32> to vector<512x128xf32>
    %40 = arith.subf %38, %39 : vector<512x128xf32>
    %41 = math.exp %18 : vector<512x128xf32>
    %42 = arith.select %26, %18, %41 : vector<512x128xi1>, vector<512x128xf32>
    %43 = arith.select %21, %40, %42 : vector<512x128xi1>, vector<512x128xf32>
    %c0_20 = arith.constant 0 : index
    %c0_21 = arith.constant 0 : index
    %44 = vector.load %arg8[%c0_20, %c0_21] : memref<512x128xf32, #tpu.memory_space<vmem>>, vector<512x128xf32>
    tpu.vector_store %arg8[%c0_20, %c0_21], %43 {strides = array<i32>} : memref<512x128xf32, #tpu.memory_space<vmem>>, vector<512x128xf32>,
    return
  }
  func.func @transform_0(%arg0: i32) -> (i32, i32) {
    %c0_i32 = arith.constant 0 : i32
    %c0_i32_0 = arith.constant 0 : i32
    return %arg0, %c0_i32 : i32, i32
  }
  func.func @transform_1(%arg0: i32) -> (i32, i32) {
    %c0_i32 = arith.constant 0 : i32
    %c0_i32_0 = arith.constant 0 : i32
    %c0_i32_1 = arith.constant 0 : i32
    return %c0_i32, %c0_i32_0 : i32, i32
  }
  func.func @transform_2(%arg0: i32) -> (i32, i32) {
    %c0_i32 = arith.constant 0 : i32
    %c0_i32_0 = arith.constant 0 : i32
    %c0_i32_1 = arith.constant 0 : i32
    return %c0_i32, %c0_i32_0 : i32, i32
  }
  func.func @transform_3(%arg0: i32) -> (i32, i32) {
    %c0_i32 = arith.constant 0 : i32
    %c0_i32_0 = arith.constant 0 : i32
    %c0_i32_1 = arith.constant 0 : i32
    return %c0_i32, %c0_i32_0 : i32, i32
  }
  func.func @transform_4(%arg0: i32) -> (i32, i32) {
    %c0_i32 = arith.constant 0 : i32
    %c0_i32_0 = arith.constant 0 : i32
    %c0_i32_1 = arith.constant 0 : i32
    return %c0_i32, %c0_i32_0 : i32, i32
  }
  func.func @transform_5(%arg0: i32) -> (i32, i32) {
    %c0_i32 = arith.constant 0 : i32
    %c0_i32_0 = arith.constant 0 : i32
    %c0_i32_1 = arith.constant 0 : i32
    return %c0_i32, %c0_i32_0 : i32, i32
  }
  func.func @transform_6(%arg0: i32) -> (i32, i32) {
    %c0_i32 = arith.constant 0 : i32
    %c0_i32_0 = arith.constant 0 : i32
    %c0_i32_1 = arith.constant 0 : i32
    return %c0_i32, %c0_i32_0 : i32, i32
  }
  func.func @transform_7(%arg0: i32) -> (i32, i32) {
    %c0_i32 = arith.constant 0 : i32
    %c0_i32_0 = arith.constant 0 : i32
    return %arg0, %c0_i32 : i32, i32
  }
}

</mosaic_0001>

<bundles_post_ra>
// kernel: tpu_custom_call.1
= control target key start
LH: loop header
LB: loop body
LE: loop exit
PB: predicated region body
PF: predicated region fallthrough
CT: control target
= control target key end

     0   :  { %12 = vsyncpa [#allocation3], 0  ;;  %s22953_s0 = inlined_call_operand.vmem [shape: f32[2048,16], index: 0, kind: input, shape index: {}]   ;;  %s22954_s1 = inlined_call_operand.vmem [shape: f32[16,128], index: 1, kind: input, shape index: {}]   ;;  %s22955_s2 = inlined_call_operand.vmem [shape: f32[1,128], index: 2, kind: input, shape index: {}]   ;;  %s22956_s3 = inlined_call_operand.vmem [shape: f32[128,128], index: 3, kind: input, shape index: {}]   ;;  %s22957_s4 = inlined_call_operand.vmem [shape: f32[1,128], index: 4, kind: input, shape index: {}]   ;;  %s22958_s5 = inlined_call_operand.vmem [shape: f32[128,128], index: 5, kind: input, shape index: {}]   ;;  %s22959_s6 = inlined_call_operand.vmem [shape: f32[1,128], index: 6, kind: input, shape index: {}]   ;;  %s22960_s7 = inlined_call_operand.hbm [shape: f32[2048,128], index: 7, kind: output, shape index: {}]  }
   0x1   :  { %14 = vsyncpa [#allocation3 + $0x1], 0  ;;  %s17488_s24 = smov 0   ;;  %s17490_s25 = smov 0  }
   0x2   :  { %s17492_s26 = smov 0   ;;  %s17494_s27 = smov 0  }
   0x3 LB: > { %s17509_s28 = sadd.s32 4294967295, %s17443_s27   ;;  %s11758_s29 = sadd.s32 4294967294, %s17443_s27   ;;  %s17443_s27 = sphi %s17494_s27, %s25353_s27   ;;  %s17439_s26 = sphi %s17492_s26, %s25352_s26   ;;  %s17435_s25 = sphi %s17490_s25, %s25351_s25   ;;  %s17431_s24 = sphi %s17488_s24, %s25350_s24  }
   0x4   : > { %s17513_s30 = sadd.s32 1, %s17443_s27   ;;  %s179_s8 = sadd.s32 1, %s17439_s26 }
   0x5   : > { %s176_s9 = ssub.s32 %s17443_s27, %s17513_s30  ;;  %p189_p0 = scmp.ne.s32.totalorder %s17439_s26, %s17435_s25 }
   0x6   : > { %p177_p1 = scmp.eq.s32.totalorder %s176_s9, 0  ;;  %p190_p2 = scmp.eq.s32.totalorder %s17509_s28, 3 }
   0x7   : > { %p195_p3 = scmp.ne.s32.totalorder %s17435_s25, %s17431_s24  ;;  %p196_p4 = scmp.eq.s32.totalorder %s11758_s29, 3 }
   0x8   : > { %s17524_s10 = scalar_select %p177_p1, %s17439_s26, %s179_s8  }
   0x9   : > { %p17526_p5 = por %p190_p2, %p189_p0  ;;  %p17530_p6 = por %p196_p4, %p195_p3 }
   0xa   : > { %p11761_p7 = scmp.ge.s32.totalorder %s17443_s27, 1  ;;  %p241_p8 = scmp.lt.s32.totalorder %s17443_s27, 5 }
   0xc   : > { %p242_p9 = pnand %p11761_p7, %p241_p8 }
   0xe   : > { %245 = sbr.rel (%p242_p9) target bundleno = 2722 (0xaa2), region = 48 }
  0x15   : > { %v344_v0 = vld [vmem:[%s22954_s1] sm:$0xff]  ;;  %v345_v1 = vld [vmem:[%s22954_s1 + $0x8] sm:$0xff]  ;;  %s11763_s17 = sshll.u32 %s17509_s28, 6  ;;  %vm353_vm0 = vcmask 130048   ;;  %s270_s9 = sand.u32 1, %s17435_s25  }
  0x16   : > { %v547_v2 = vand.u32 4294901760, %v344_v0  ;;  %v550_v3 = vand.u32 4294901760, %v345_v1  ;;  %p274_p10 = scmp.lt.s32.totalorder %s11763_s17, 255  ;;  %s11762_s13 = sshll.u32 %s270_s9, 9 }
  0x17   : > { %s22222_s14 = scalar_lea.vmem [#allocation2], %s11762_s13  ;;  %s11773_s15 = sshll.u32 %s17509_s28, 13 }
  0x18   : > { %v17543_v4 = vpack.c.bf16 %v550_v3, %v547_v2  ;;  %s25355_s17 = smov (!%p274_p10, %s11763_s17), 255  ;;  %v17545_v5 = vsub.f32 %v344_v0, %v547_v2  ;;  %v17547_v6 = vsub.f32 %v345_v1, %v550_v3  ;;  %s11696_s16 = sshll.u32 %s22222_s14, 4  ;;  %s22899_s16 = int_to_ptr.vmem [resolvable:$true] %s11696_s16 }
  0x19   : > { %s11764_s18 = sshll.u32 %s25355_s17, 3  ;;  %s22912_s19 = scalar_lea.sflag [#allocation3], %s270_s9 }
  0x1a   : > { %15279 = vmatprep.subr.bf16.mxu0 %v17543_v4  ;;  %15267 = vmatprep.subr.bf16.mxu1 %v17543_v4  ;;  %v1256_v7 = vand.u32 4294901760, %v17545_v5  ;;  %v1263_v8 = vand.u32 4294901760, %v17547_v6  ;;  %s17557_s21 = scalar_lea.vmem %s22953_s0, %s11764_s18  ;;  %s22897_s18 = scalar_lea.hbm %s22960_s7, %s11773_s15 }
  0x1b   : > { %15281 = vmatpush3.bf16.msra.mxu0 %v17543_v4  ;;  %15269 = vmatpush3.bf16.msra.mxu1 %v17543_v4  ;;  %v280_v9 = vld [vmem:[%s17557_s21] sm:$0xff]  ;;  %v281_v10 = vld [vmem:[%s17557_s21 + $0x8] sm:$0xff]  ;;  %v282_v13 = vld [vmem:[%s17557_s21 + $0x10] sm:$0xff]  ;;  %s17381_s20 = scalar_lea.vmem %s22899_s16, 8192 }
  0x1c   : > { %v1257_v11 = vsub.f32 %v17545_v5, %v1256_v7  ;;  %v1264_v12 = vsub.f32 %v17547_v6, %v1263_v8  ;;  %v15282_v14 = vpack.c.bf16 %v1263_v8, %v1256_v7  ;;  %v355_v15 = vsel %vm353_vm0, %v280_v9, 0  ;;  %v283_v18 = vld [vmem:[%s17557_s21 + $0x18] sm:$0xff]  ;;  %v284_v19 = vld [vmem:[%s17557_s21 + $0x20] sm:$0xff]  ;;  %v285_v20 = vld [vmem:[%s17557_s21 + $0x28] sm:$0xff]  ;;  %p17382_p11 = scmp.ne.s32.totalorder %s22899_s16, %s17381_s20 }
  0x1d   : > { %v358_v16 = vsel %vm353_vm0, %v281_v10, 0  ;;  %v361_v17 = vsel %vm353_vm0, %v282_v13, 0  ;;  %v17571_v21 = vand.u32 4294901760, %v355_v15  ;;  %v286_v25 = vld [vmem:[%s17557_s21 + $0x30] sm:$0xff]  ;;  %v364_v27 = vsel %vm353_vm0, %v283_v18, 0  ;;  %v287_v34 = vld [vmem:[%s17557_s21 + $0x38] sm:$0xff] }
  0x1e   : > { %v17573_v22 = vand.u32 4294901760, %v358_v16  ;;  %v1258_v23 = vand.u32 4294901760, %v1257_v11  ;;  %v1265_v24 = vand.u32 4294901760, %v1264_v12  ;;  %15283 = vmatprep.subr.bf16.mxu0 %v15282_v14  ;;  %v17576_v26 = vand.u32 4294901760, %v361_v17  ;;  %v288_v55 = vld [vmem:[%s17557_s21 + $0x40] sm:$0xff]  ;;  %v289_v56 = vld [vmem:[%s17557_s21 + $0x48] sm:$0xff]  ;;  %p17383_p12 = pnand %p17382_p11, %p17526_p5 }
  0x1f   : > { %v367_v28 = vsel %vm353_vm0, %v284_v19, 0  ;;  %v370_v29 = vsel %vm353_vm0, %v285_v20, 0  ;;  %v17582_v30 = vsub.f32 %v355_v15, %v17571_v21  ;;  %v17587_v33 = vand.u32 4294901760, %v364_v27  ;;  %v290_v1 = vld [vmem:[%s17557_s21 + $0x50] sm:$0xff]  ;;  %v291_v2 = vld [vmem:[%s17557_s21 + $0x58] sm:$0xff]  ;;  %v292_v9 = vld [vmem:[%s17557_s21 + $0x60] sm:$0xff] }
  0x20   : > { %v17585_v31 = vsub.f32 %v358_v16, %v17573_v22  ;;  %v15270_v32 = vpack.c.bf16 %v1265_v24, %v1258_v23  ;;  %v17591_v35 = vsub.f32 %v361_v17, %v17576_v26  ;;  %v17593_v36 = vand.u32 4294901760, %v367_v28  ;;  %v294_v15 = vld [vmem:[%s17557_s21 + $0x70] sm:$0xff]  ;;  %p17384_p13 = pneg %p17383_p12 }
  0x21   : > { %24012 = vst [vmem:[#allocation5_spill] sm:$0xff] %v17582_v30  ;;  %v17595_v37 = vand.u32 4294901760, %v370_v29  ;;  %v373_v38 = vsel %vm353_vm0, %v286_v25, 0  ;;  %v615_v39 = vand.u32 4294901760, %v17582_v30  ;;  %v17601_v41 = vsub.f32 %v364_v27, %v17587_v33 }
  0x22   : > { %24013 = vst [vmem:[#allocation6_spill] sm:$0xff] %v17585_v31  ;;  %24014 = vst [vmem:[#allocation7_spill] sm:$0xff] %v17591_v35  ;;  %v625_v40 = vand.u32 4294901760, %v17585_v31  ;;  %15271 = vmatprep.subr.bf16.mxu1 %v15270_v32  ;;  %v17603_v42 = vand.u32 4294901760, %v373_v38  ;;  %v635_v43 = vand.u32 4294901760, %v17591_v35  ;;  %v17607_v44 = vsub.f32 %v367_v28, %v17593_v36 }
  0x23   : > { %24015 = vst [vmem:[#allocation8_spill] sm:$0xff] %v17601_v41  ;;  %v17610_v45 = vsub.f32 %v370_v29, %v17595_v37  ;;  %v376_v46 = vsel %vm353_vm0, %v287_v34, 0  ;;  %13434 = vmatprep.mubr.f32.mxu0 %v615_v39  ;;  %v616_v47 = vsub.f32 %v17582_v30, %v615_v39  ;;  %v645_v49 = vand.u32 4294901760, %v17601_v41  ;;  %v295_v34 = vld [vmem:[%s17557_s21 + $0x78] sm:$0xff]  ;;  %v317_v30 = vld [vmem:[%s17557_s21 + $0x128] sm:$0xff] }
  0x24   : > { %24016 = vst [vmem:[#allocation9_spill] sm:$0xff] %v17607_v44  ;;  %v626_v48 = vsub.f32 %v17585_v31, %v625_v40  ;;  %v17617_v50 = vsub.f32 %v373_v38, %v17603_v42  ;;  %13435 = vmatmul.mubr.f32.vlgmr.msra.gmra.mrb[0].mxu0 %v625_v40  ;;  %v636_v51 = vsub.f32 %v17591_v35, %v635_v43  ;;  %v655_v52 = vand.u32 4294901760, %v17607_v44 }
  0x25   : > { %24017 = vst [vmem:[#allocation10_spill] sm:$0xff] %v17610_v45  ;;  %v665_v53 = vand.u32 4294901760, %v17610_v45  ;;  %v17622_v54 = vand.u32 4294901760, %v376_v46  ;;  %v617_v57 = vand.u32 4294901760, %v616_v47  ;;  %13437 = vmatprep.mubr.f32.mxu0 %v635_v43  ;;  %15285 = vmatpush3.bf16.msra.mxu0 %v15282_v14  ;;  %v646_v59 = vsub.f32 %v17601_v41, %v645_v49  ;;  %v293_v14 = vld [vmem:[%s17557_s21 + $0x68] sm:$0xff] }
  0x26   : > { %24018 = vst [vmem:[#allocation11_spill] sm:$0xff] %v17617_v50  ;;  %v627_v58 = vand.u32 4294901760, %v626_v48  ;;  %v675_v60 = vand.u32 4294901760, %v17617_v50  ;;  %v637_v61 = vand.u32 4294901760, %v636_v51  ;;  %v656_v62 = vsub.f32 %v17607_v44, %v655_v52  ;;  %15287 = vmatprep.subr.bf16.mxu0 %v17543_v4 }
  0x27   : > { %v666_v63 = vsub.f32 %v17610_v45, %v665_v53  ;;  %v17631_v0 = vsub.f32 %v376_v46, %v17622_v54  ;;  %13134 = vmatprep.mubr.f32.mxu1 %v617_v57  ;;  %v379_v7 = vsel %vm353_vm0, %v288_v55, 0  ;;  %v382_v8 = vsel %vm353_vm0, %v289_v56, 0 }
  0x28   : > { %v676_v3 = vsub.f32 %v17617_v50, %v675_v60  ;;  %13135 = vmatmul.mubr.f32.vlgmr.msra.gmra.mrb[0].mxu1 %v627_v58  ;;  %13438 = vmatmul.mubr.f32.gmra.mrb[2].mxu0 %v645_v49  ;;  %v647_v10 = vand.u32 4294901760, %v646_v59  ;;  %v657_v11 = vand.u32 4294901760, %v656_v62  ;;  %v17641_v13 = vand.u32 4294901760, %v379_v7  ;;  %v296_v59 = vld [vmem:[%s17557_s21 + $0x80] sm:$0xff] }
  0x29   : > { %24019 = vst [vmem:[#allocation12_spill] sm:$0xff] %v17631_v0  ;;  %v685_v12 = vand.u32 4294901760, %v17631_v0  ;;  %15273 = vmatpush3.bf16.msra.mxu1 %v15270_v32  ;;  %13137 = vmatprep.mubr.f32.mxu1 %v637_v61  ;;  %v667_v16 = vand.u32 4294901760, %v666_v63  ;;  %v17645_v17 = vand.u32 4294901760, %v382_v8  ;;  %v385_v18 = vsel %vm353_vm0, %v290_v1, 0 }
  0x2a   : > { %v388_v19 = vsel %vm353_vm0, %v291_v2, 0  ;;  %13440 = vmatprep.mubr.f32.mxu0 %v655_v52  ;;  %v677_v20 = vand.u32 4294901760, %v676_v3  ;;  %v17650_v23 = vsub.f32 %v379_v7, %v17641_v13  ;;  %v17652_v24 = vand.u32 4294901760, %v385_v18  ;;  %v297_v3 = vld [vmem:[%s17557_s21 + $0x88] sm:$0xff]  ;;  %v298_v7 = vld [vmem:[%s17557_s21 + $0x90] sm:$0xff] }
  0x2b   : > { %v17654_v25 = vand.u32 4294901760, %v388_v19  ;;  %v17657_v27 = vsub.f32 %v382_v8, %v17645_v17  ;;  %v391_v28 = vsel %vm353_vm0, %v292_v9, 0  ;;  %v394_v29 = vsel %vm353_vm0, %v293_v14, 0  ;;  %v299_v8 = vld [vmem:[%s17557_s21 + $0x98] sm:$0xff] }
  0x2c   : > { %24020 = vst [vmem:[#allocation13_spill] sm:$0xff] %v17650_v23  ;;  %v397_v32 = vsel %vm353_vm0, %v294_v15, 0  ;;  %13138 = vmatmul.mubr.f32.gmra.mrb[2].mxu1 %v647_v10  ;;  %13441 = vmatmul.mubr.f32.gmra.mrb[4].mxu0 %v665_v53  ;;  %v695_v38 = vand.u32 4294901760, %v17650_v23  ;;  %v686_v39 = vsub.f32 %v17631_v0, %v685_v12  ;;  %v17666_v40 = vsub.f32 %v385_v18, %v17652_v24 }
  0x2d   : > { %24021 = vst [vmem:[#allocation14_spill] sm:$0xff] %v17657_v27  ;;  %v17669_v43 = vsub.f32 %v388_v19, %v17654_v25  ;;  %13140 = vmatprep.mubr.f32.mxu1 %v657_v11  ;;  %13443 = vmatprep.mubr.f32.mxu0 %v675_v60  ;;  %v705_v46 = vand.u32 4294901760, %v17657_v27  ;;  %v17672_v47 = vand.u32 4294901760, %v391_v28  ;;  %v17674_v48 = vand.u32 4294901760, %v394_v29 }
  0x2e   : > { %24022 = vst [vmem:[#allocation15_spill] sm:$0xff] %v17666_v40  ;;  %v17676_v49 = vand.u32 4294901760, %v397_v32  ;;  %v696_v51 = vsub.f32 %v17650_v23, %v695_v38  ;;  %v715_v52 = vand.u32 4294901760, %v17666_v40  ;;  %v400_v55 = vsel %vm353_vm0, %v295_v34, 0 }
  0x2f   : > { %24023 = vst [vmem:[#allocation16_spill] sm:$0xff] %v17669_v43  ;;  %v725_v53 = vand.u32 4294901760, %v17669_v43  ;;  %v17683_v56 = vsub.f32 %v391_v28, %v17672_v47  ;;  %v17686_v57 = vsub.f32 %v394_v29, %v17674_v48  ;;  %v687_v60 = vand.u32 4294901760, %v686_v39  ;;  %v300_v28 = vld [vmem:[%s17557_s21 + $0xa0] sm:$0xff]  ;;  %v302_v39 = vld [vmem:[%s17557_s21 + $0xb0] sm:$0xff] }
  0x30   : > { %v17689_v58 = vsub.f32 %v397_v32, %v17676_v49  ;;  %13141 = vmatmul.mubr.f32.gmra.mrb[4].mxu1 %v667_v16  ;;  %13444 = vmatmul.mubr.f32.gmra.mrb[6].mxu0 %v685_v12  ;;  %v706_v61 = vsub.f32 %v17657_v27, %v705_v46  ;;  %v17693_v62 = vand.u32 4294901760, %v400_v55  ;;  %v697_v63 = vand.u32 4294901760, %v696_v51 }
  0x31   : > { %24024 = vst [vmem:[#allocation17_spill] sm:$0xff] %v17683_v56  ;;  %24025 = vst [vmem:[#allocation18_spill] sm:$0xff] %v17686_v57  ;;  %13143 = vmatprep.mubr.f32.mxu1 %v677_v20  ;;  %13446 = vmatprep.mubr.f32.mxu0 %v695_v38  ;;  %v716_v1 = vsub.f32 %v17666_v40, %v715_v52  ;;  %v735_v2 = vand.u32 4294901760, %v17683_v56  ;;  %v726_v9 = vsub.f32 %v17669_v43, %v725_v53  ;;  %v301_v38 = vld [vmem:[%s17557_s21 + $0xa8] sm:$0xff] }
  0x32   : > { %24026 = vst [vmem:[#allocation19_spill] sm:$0xff] %v17689_v58  ;;  %v745_v10 = vand.u32 4294901760, %v17686_v57  ;;  %v403_v11 = vsel %vm353_vm0, %v296_v59, 0  ;;  %v755_v12 = vand.u32 4294901760, %v17689_v58  ;;  %v17705_v14 = vsub.f32 %v400_v55, %v17693_v62 }
  0x33   : > { %v17707_v15 = vand.u32 4294901760, %v403_v11  ;;  %v707_v16 = vand.u32 4294901760, %v706_v61  ;;  %v406_v18 = vsel %vm353_vm0, %v297_v3, 0  ;;  %v409_v19 = vsel %vm353_vm0, %v298_v7, 0 }
  0x34   : > { %24027 = vst [vmem:[#allocation20_spill] sm:$0xff] %v17705_v14  ;;  %13144 = vmatmul.mubr.f32.gmra.mrb[6].mxu1 %v687_v60  ;;  %13447 = vmatmul.mubr.f32.gmra.mrb[8].mxu0 %v705_v46  ;;  %v412_v20 = vsel %vm353_vm0, %v299_v8, 0  ;;  %v717_v29 = vand.u32 4294901760, %v716_v1  ;;  %v736_v32 = vsub.f32 %v17683_v56, %v735_v2  ;;  %v727_v51 = vand.u32 4294901760, %v726_v9 }
  0x35   : > { %13146 = vmatprep.mubr.f32.mxu1 %v697_v63  ;;  %13449 = vmatprep.mubr.f32.mxu0 %v715_v52  ;;  %v17715_v34 = vsub.f32 %v403_v11, %v17707_v15  ;;  %v746_v46 = vsub.f32 %v17686_v57, %v745_v10  ;;  %v17720_v55 = vand.u32 4294901760, %v406_v18  ;;  %v17722_v59 = vand.u32 4294901760, %v409_v19 }
  0x36   : > { %v765_v60 = vand.u32 4294901760, %v17705_v14  ;;  %v756_v52 = vsub.f32 %v17689_v58, %v755_v12  ;;  %v17726_v61 = vand.u32 4294901760, %v412_v20  ;;  %v415_v63 = vsel %vm353_vm0, %v300_v28, 0  ;;  %v303_v28 = vld [vmem:[%s17557_s21 + $0xb8] sm:$0xff] }
  0x37   : > { %24028 = vst [vmem:[#allocation21_spill] sm:$0xff] %v17715_v34  ;;  %v775_v1 = vand.u32 4294901760, %v17715_v34  ;;  %v17731_v3 = vsub.f32 %v406_v18, %v17720_v55  ;;  %v418_v7 = vsel %vm353_vm0, %v301_v38, 0  ;;  %v421_v8 = vsel %vm353_vm0, %v302_v39, 0 }
  0x38   : > { %13147 = vmatmul.mubr.f32.gmra.mrb[8].mxu1 %v707_v16  ;;  %13450 = vmatmul.mubr.f32.gmra.mrb[10].mxu0 %v725_v53  ;;  %v737_v9 = vand.u32 4294901760, %v736_v32  ;;  %v17736_v11 = vsub.f32 %v409_v19, %v17722_v59  ;;  %v17738_v58 = vand.u32 4294901760, %v415_v63  ;;  %v304_v16 = vld [vmem:[%s17557_s21 + $0xc0] sm:$0xff]  ;;  %v17744_v18 = vsub.f32 %v412_v20, %v17726_v61 }
  0x39   : > { %24029 = vst [vmem:[#allocation22_spill] sm:$0xff] %v17731_v3  ;;  %13149 = vmatprep.mubr.f32.mxu1 %v717_v29  ;;  %13452 = vmatprep.mubr.f32.mxu0 %v735_v2  ;;  %v785_v53 = vand.u32 4294901760, %v17731_v3  ;;  %v17746_v57 = vand.u32 4294901760, %v418_v7  ;;  %v17748_v38 = vand.u32 4294901760, %v421_v8  ;;  %v747_v2 = vand.u32 4294901760, %v746_v46 }
  0x3a   : > { %24030 = vst [vmem:[#allocation23_spill] sm:$0xff] %v17736_v11  ;;  %24031 = vst [vmem:[#allocation24_spill] sm:$0xff] %v17744_v18  ;;  %v757_v19 = vand.u32 4294901760, %v756_v52  ;;  %v766_v29 = vsub.f32 %v17705_v14, %v765_v60  ;;  %v776_v32 = vsub.f32 %v17715_v34, %v775_v1  ;;  %v795_v39 = vand.u32 4294901760, %v17736_v11 }
  0x3b   : > { %v17754_v20 = vsub.f32 %v415_v63, %v17738_v58  ;;  %v424_v56 = vsel %vm353_vm0, %v303_v28, 0  ;;  %v427_v43 = vsel %vm353_vm0, %v304_v16, 0  ;;  %v805_v46 = vand.u32 4294901760, %v17744_v18 }
  0x3c   : > { %13150 = vmatmul.mubr.f32.gmra.mrb[10].mxu1 %v727_v51  ;;  %13453 = vmatmul.mubr.f32.gmra.mrb[12].mxu0 %v745_v10  ;;  %v305_v51 = vld [vmem:[%s17557_s21 + $0xc8] sm:$0xff]  ;;  %v786_v10 = vsub.f32 %v17731_v3, %v785_v53  ;;  %v17762_v52 = vsub.f32 %v418_v7, %v17746_v57  ;;  %v767_v63 = vand.u32 4294901760, %v766_v29  ;;  %v17768_v28 = vand.u32 4294901760, %v424_v56 }
  0x3d   : > { %13152 = vmatprep.mubr.f32.mxu1 %v737_v9  ;;  %13455 = vmatprep.mubr.f32.mxu0 %v755_v12  ;;  %24032 = vst [vmem:[#allocation25_spill] sm:$0xff] %v17754_v20  ;;  %v17765_v12 = vsub.f32 %v421_v8, %v17748_v38  ;;  %v306_v9 = vld [vmem:[%s17557_s21 + $0xd0] sm:$0xff]  ;;  %v17770_v16 = vand.u32 4294901760, %v427_v43  ;;  %v777_v3 = vand.u32 4294901760, %v776_v32  ;;  %v796_v34 = vsub.f32 %v17736_v11, %v795_v39  ;;  %v307_v8 = vld [vmem:[%s17557_s21 + $0xd8] sm:$0xff] }
  0x3e   : > { %24033 = vst [vmem:[#allocation26_spill] sm:$0xff] %v17762_v52  ;;  %v815_v7 = vand.u32 4294901760, %v17754_v20  ;;  %v430_v14 = vsel %vm353_vm0, %v305_v51, 0  ;;  %v433_v40 = vsel %vm353_vm0, %v306_v9, 0  ;;  %v825_v29 = vand.u32 4294901760, %v17762_v52 }
  0x3f   : > { %24034 = vst [vmem:[#allocation27_spill] sm:$0xff] %v17765_v12  ;;  %v835_v27 = vand.u32 4294901760, %v17765_v12  ;;  %v17785_v32 = vsub.f32 %v427_v43, %v17770_v16  ;;  %v17787_v51 = vand.u32 4294901760, %v430_v14  ;;  %v797_v9 = vand.u32 4294901760, %v796_v34 }
  0x40   : > { %13153 = vmatmul.mubr.f32.gmra.mrb[12].mxu1 %v747_v2  ;;  %13456 = vmatmul.mubr.f32.gmra.mrb[14].mxu0 %v765_v60  ;;  %v787_v2 = vand.u32 4294901760, %v786_v10  ;;  %v806_v60 = vsub.f32 %v17744_v18, %v805_v46  ;;  %v436_v10 = vsel %vm353_vm0, %v307_v8, 0  ;;  %v816_v18 = vsub.f32 %v17754_v20, %v815_v7  ;;  %v310_v8 = vld [vmem:[%s17557_s21 + $0xf0] sm:$0xff]  ;;  %v311_v20 = vld [vmem:[%s17557_s21 + $0xf8] sm:$0xff] }
  0x41   : > { %13155 = vmatprep.mubr.f32.mxu1 %v757_v19  ;;  %13458 = vmatprep.mubr.f32.mxu0 %v775_v1  ;;  %v308_v19 = vld [vmem:[%s17557_s21 + $0xe0] sm:$0xff]  ;;  %v17782_v1 = vsub.f32 %v424_v56, %v17768_v28  ;;  %24036 = vst [vmem:[#allocation29_spill] sm:$0xff] %v17785_v32  ;;  %v17791_v11 = vand.u32 4294901760, %v433_v40  ;;  %v826_v56 = vsub.f32 %v17762_v52, %v825_v29  ;;  %v17797_v0 = vand.u32 4294901760, %v436_v10 }
  0x42   : > { %v807_v23 = vand.u32 4294901760, %v806_v60  ;;  %v836_v43 = vsub.f32 %v17765_v12, %v835_v27 }
  0x43   : > { %24035 = vst [vmem:[#allocation28_spill] sm:$0xff] %v17782_v1  ;;  %v845_v34 = vand.u32 4294901760, %v17782_v1  ;;  %v17807_v12 = vsub.f32 %v433_v40, %v17791_v11  ;;  %v827_v50 = vand.u32 4294901760, %v826_v56 }
  0x44   : > { %13156 = vmatmul.mubr.f32.gmra.mrb[14].mxu1 %v767_v63  ;;  %13459 = vmatmul.mubr.f32.gmra.mrb[16].mxu0 %v785_v53  ;;  %v309_v63 = vld [vmem:[%s17557_s21 + $0xe8] sm:$0xff]  ;;  %v439_v53 = vsel %vm353_vm0, %v308_v19, 0  ;;  %v817_v19 = vand.u32 4294901760, %v816_v18  ;;  %v837_v45 = vand.u32 4294901760, %v836_v43 }
  0x45   : > { %13158 = vmatprep.mubr.f32.mxu1 %v777_v3  ;;  %13461 = vmatprep.mubr.f32.mxu0 %v795_v39  ;;  %v855_v3 = vand.u32 4294901760, %v17785_v32  ;;  %v17803_v39 = vsub.f32 %v430_v14, %v17787_v51  ;;  %v442_v60 = vsel %vm353_vm0, %v309_v63, 0  ;;  %24038 = vst [vmem:[#allocation31_spill] sm:$0xff] %v17807_v12  ;;  %v17809_v52 = vand.u32 4294901760, %v439_v53 }
  0x46   : > { %v17815_v14 = vsub.f32 %v436_v10, %v17797_v0  ;;  %v17817_v44 = vand.u32 4294901760, %v442_v60  ;;  %v846_v40 = vsub.f32 %v17782_v1, %v845_v34  ;;  %v875_v63 = vand.u32 4294901760, %v17807_v12 }
  0x47   : > { %24037 = vst [vmem:[#allocation30_spill] sm:$0xff] %v17803_v39  ;;  %v865_v18 = vand.u32 4294901760, %v17803_v39  ;;  %v17825_v10 = vsub.f32 %v439_v53, %v17809_v52 }
  0x48   : > { %13159 = vmatmul.mubr.f32.gmra.mrb[16].mxu1 %v787_v2  ;;  %13462 = vmatmul.mubr.f32.gmra.mrb[18].mxu0 %v805_v46  ;;  %v445_v46 = vsel %vm353_vm0, %v310_v8, 0  ;;  %v312_v2 = vld [vmem:[%s17557_s21 + $0x100] sm:$0xff]  ;;  %24039 = vst [vmem:[#allocation32_spill] sm:$0xff] %v17815_v14  ;;  %v885_v43 = vand.u32 4294901760, %v17815_v14  ;;  %v17833_v8 = vsub.f32 %v442_v60, %v17817_v44 }
  0x49   : > { %13161 = vmatprep.mubr.f32.mxu1 %v797_v9  ;;  %13464 = vmatprep.mubr.f32.mxu0 %v815_v7  ;;  %v856_v7 = vsub.f32 %v17785_v32, %v855_v3  ;;  %v448_v9 = vsel %vm353_vm0, %v311_v20, 0  ;;  %24040 = vst [vmem:[#allocation33_spill] sm:$0xff] %v17825_v10  ;;  %v17827_v56 = vand.u32 4294901760, %v445_v46  ;;  %v314_v20 = vld [vmem:[%s17557_s21 + $0x110] sm:$0xff]  ;;  %v895_v41 = vand.u32 4294901760, %v17825_v10 }
  0x4a   : > { %24042 = vst [vmem:[#allocation35_spill] sm:$0xff] %v17833_v8  ;;  %v17835_v32 = vand.u32 4294901760, %v448_v9 }
  0x4b   : > { %24041 = vst [vmem:[#allocation34_spill] sm:$0xff] %v17827_v56  ;;  %v857_v53 = vand.u32 4294901760, %v856_v7  ;;  %v17844_v60 = vsub.f32 %v445_v46, %v17827_v56  ;;  %v905_v7 = vand.u32 4294901760, %v17833_v8 }
  0x4c   : > { %13162 = vmatmul.mubr.f32.gmra.mrb[18].mxu1 %v807_v23  ;;  %13465 = vmatmul.mubr.f32.gmra.mrb[20].mxu0 %v825_v29  ;;  %v451_v23 = vsel %vm353_vm0, %v312_v2, 0  ;;  %v313_v29 = vld [vmem:[%s17557_s21 + $0x108] sm:$0xff]  ;;  %24043 = vst [vmem:[#allocation36_spill] sm:$0xff] %v17835_v32  ;;  %v876_v2 = vsub.f32 %v17807_v12, %v875_v63 }
  0x4d   : > { %13164 = vmatprep.mubr.f32.mxu1 %v817_v19  ;;  %13467 = vmatprep.mubr.f32.mxu0 %v835_v27  ;;  %v847_v27 = vand.u32 4294901760, %v846_v40  ;;  %v866_v19 = vsub.f32 %v17803_v39, %v865_v18  ;;  %v17839_v1 = vand.u32 4294901760, %v451_v23  ;;  %24045 = vst [vmem:[#allocation38_spill] sm:$0xff] %v17844_v60  ;;  %v454_v35 = vsel %vm353_vm0, %v313_v29, 0 }
  0x4e   : > { %v886_v40 = vsub.f32 %v17815_v14, %v885_v43  ;;  %v17858_v29 = vand.u32 4294901760, %v454_v35  ;;  %v877_v14 = vand.u32 4294901760, %v876_v2  ;;  %v896_v39 = vsub.f32 %v17825_v10, %v895_v41 }
  0x4f   : > { %24044 = vst [vmem:[#allocation37_spill] sm:$0xff] %v17839_v1  ;;  %v867_v12 = vand.u32 4294901760, %v866_v19  ;;  %v17856_v46 = vsub.f32 %v451_v23, %v17839_v1  ;;  %v915_v31 = vand.u32 4294901760, %v17844_v60  ;;  %v906_v23 = vsub.f32 %v17833_v8, %v905_v7 }
  0x50   : > { %13165 = vmatmul.mubr.f32.gmra.mrb[20].mxu1 %v827_v50  ;;  %13468 = vmatmul.mubr.f32.gmra.mrb[22].mxu0 %v845_v34  ;;  %v315_v50 = vld [vmem:[%s17557_s21 + $0x118] sm:$0xff]  ;;  %v457_v34 = vsel %vm353_vm0, %v314_v20, 0  ;;  %24048 = vst [vmem:[#allocation41_spill] sm:$0xff] %v17858_v29  ;;  %v887_v19 = vand.u32 4294901760, %v886_v40  ;;  %v466_v2 = vsel %vm353_vm0, %v317_v30, 0  ;;  %v897_v40 = vand.u32 4294901760, %v896_v39 }
  0x51   : > { %13167 = vmatprep.mubr.f32.mxu1 %v837_v45  ;;  %13470 = vmatprep.mubr.f32.mxu0 %v855_v3  ;;  %v17852_v45 = vsub.f32 %v448_v9, %v17835_v32  ;;  %v316_v3 = vld [vmem:[%s17557_s21 + $0x120] sm:$0xff]  ;;  %24047 = vst [vmem:[#allocation40_spill] sm:$0xff] %v17856_v46  ;;  %v460_v20 = vsel %vm353_vm0, %v315_v50, 0  ;;  %v17863_v9 = vand.u32 4294901760, %v457_v34  ;;  %v916_v8 = vsub.f32 %v17844_v60, %v915_v31 }
  0x52   : > { %v17870_v50 = vand.u32 4294901760, %v460_v20 }
  0x53   : > { %24046 = vst [vmem:[#allocation39_spill] sm:$0xff] %v17852_v45  ;;  %24049 = vst [vmem:[#allocation42_spill] sm:$0xff] %v17863_v9  ;;  %v925_v1 = vand.u32 4294901760, %v17852_v45  ;;  %v17880_v10 = vsub.f32 %v457_v34, %v17863_v9 }
  0x54   : > { %13168 = vmatmul.mubr.f32.gmra.mrb[22].mxu1 %v847_v27  ;;  %13471 = vmatmul.mubr.f32.gmra.mrb[24].mxu0 %v865_v18  ;;  %v318_v27 = vld [vmem:[%s17557_s21 + $0x130] sm:$0xff]  ;;  %v463_v18 = vsel %vm353_vm0, %v316_v3, 0  ;;  %24050 = vst [vmem:[#allocation43_spill] sm:$0xff] %v17870_v50  ;;  %v17886_v32 = vsub.f32 %v460_v20, %v17870_v50  ;;  %v917_v20 = vand.u32 4294901760, %v916_v8 }
  0x55   : > { %13170 = vmatprep.mubr.f32.mxu1 %v857_v53  ;;  %13473 = vmatprep.mubr.f32.mxu0 %v875_v63  ;;  %v935_v63 = vand.u32 4294901760, %v17856_v46  ;;  %v17874_v53 = vsub.f32 %v454_v35, %v17858_v29  ;;  %v469_v3 = vsel %vm353_vm0, %v318_v27, 0  ;;  %24052 = vst [vmem:[#allocation45_spill] sm:$0xff] %v17880_v10  ;;  %v17888_v35 = vand.u32 4294901760, %v466_v2  ;;  %v320_v27 = vld [vmem:[%s17557_s21 + $0x140] sm:$0xff]  ;;  %v322_v8 = vld [vmem:[%s17557_s21 + $0x150] sm:$0xff] }
  0x56   : > { %24054 = vst [vmem:[#allocation47_spill] sm:$0xff] %v17886_v32  ;;  %v17890_v30 = vand.u32 4294901760, %v469_v3  ;;  %v926_v39 = vsub.f32 %v17852_v45, %v925_v1  ;;  %v955_v60 = vand.u32 4294901760, %v17880_v10  ;;  %v965_v45 = vand.u32 4294901760, %v17886_v32 }
  0x57   : > { %24051 = vst [vmem:[#allocation44_spill] sm:$0xff] %v17874_v53  ;;  %24055 = vst [vmem:[#allocation48_spill] sm:$0xff] %v17888_v35  ;;  %v936_v34 = vsub.f32 %v17856_v46, %v935_v63  ;;  %v17905_v9 = vsub.f32 %v466_v2, %v17888_v35 }
  0x58   : > { %13171 = vmatmul.mubr.f32.gmra.mrb[24].mxu1 %v867_v12  ;;  %13474 = vmatmul.mubr.f32.gmra.mrb[26].mxu0 %v885_v43  ;;  %v17882_v12 = vand.u32 4294901760, %v463_v18  ;;  %v319_v43 = vld [vmem:[%s17557_s21 + $0x138] sm:$0xff]  ;;  %24056 = vst [vmem:[#allocation49_spill] sm:$0xff] %v17890_v30 }
  0x59   : > { %13173 = vmatprep.mubr.f32.mxu1 %v877_v14  ;;  %13476 = vmatprep.mubr.f32.mxu0 %v895_v41  ;;  %v907_v41 = vand.u32 4294901760, %v906_v23  ;;  %v945_v14 = vand.u32 4294901760, %v17874_v53  ;;  %v321_v23 = vld [vmem:[%s17557_s21 + $0x148] sm:$0xff]  ;;  %24058 = vst [vmem:[#allocation51_spill] sm:$0xff] %v17905_v9 }
  0x5a   : > { %24053 = vst [vmem:[#allocation46_spill] sm:$0xff] %v17882_v12  ;;  %v17898_v50 = vsub.f32 %v463_v18, %v17882_v12  ;;  %v937_v18 = vand.u32 4294901760, %v936_v34  ;;  %v956_v12 = vsub.f32 %v17880_v10, %v955_v60 }
  0x5b   : > { %v946_v46 = vsub.f32 %v17874_v53, %v945_v14 }
  0x5c   : > { %13174 = vmatmul.mubr.f32.gmra.mrb[26].mxu1 %v887_v19  ;;  %13477 = vmatmul.mubr.f32.gmra.mrb[28].mxu0 %v905_v7  ;;  %24057 = vst [vmem:[#allocation50_spill] sm:$0xff] %v17898_v50  ;;  %v472_v19 = vsel %vm353_vm0, %v319_v43, 0  ;;  %v475_v7 = vsel %vm353_vm0, %v320_v27, 0  ;;  %v323_v27 = vld [vmem:[%s17557_s21 + $0x158] sm:$0xff]  ;;  %v975_v2 = vand.u32 4294901760, %v17898_v50 }
  0x5d   : > { %13176 = vmatprep.mubr.f32.mxu1 %v897_v40  ;;  %13479 = vmatprep.mubr.f32.mxu0 %v915_v31  ;;  %v17908_v31 = vsub.f32 %v469_v3, %v17890_v30  ;;  %v927_v40 = vand.u32 4294901760, %v926_v39  ;;  %v17912_v43 = vand.u32 4294901760, %v472_v19  ;;  %v17917_v35 = vand.u32 4294901760, %v475_v7  ;;  %v324_v30 = vld [vmem:[%s17557_s21 + $0x160] sm:$0xff] }
  0x5e   : > { %v478_v3 = vsel %vm353_vm0, %v321_v23, 0  ;;  %v985_v39 = vand.u32 4294901760, %v17905_v9  ;;  %v976_v53 = vsub.f32 %v17898_v50, %v975_v2 }
  0x5f   : > { %24059 = vst [vmem:[#allocation52_spill] sm:$0xff] %v17908_v31  ;;  %24060 = vst [vmem:[#allocation53_spill] sm:$0xff] %v17912_v43  ;;  %v995_v34 = vand.u32 4294901760, %v17908_v31  ;;  %v17927_v10 = vsub.f32 %v472_v19, %v17912_v43  ;;  %v17929_v23 = vand.u32 4294901760, %v478_v3  ;;  %v17934_v29 = vsub.f32 %v475_v7, %v17917_v35 }
  0x60   : > { %13177 = vmatmul.mubr.f32.gmra.mrb[28].mxu1 %v907_v41  ;;  %13480 = vmatmul.mubr.f32.gmra.mrb[30].mxu0 %v925_v1  ;;  %24061 = vst [vmem:[#allocation54_spill] sm:$0xff] %v17917_v35  ;;  %v481_v1 = vsel %vm353_vm0, %v322_v8, 0  ;;  %v966_v41 = vsub.f32 %v17886_v32, %v965_v45  ;;  %v487_v8 = vsel %vm353_vm0, %v324_v30, 0  ;;  %v957_v32 = vand.u32 4294901760, %v956_v12  ;;  %v334_v35 = vld [vmem:[%s17557_s21 + $0x1b0] sm:$0xff] }
  0x61   : > { %13179 = vmatprep.mubr.f32.mxu1 %v917_v20  ;;  %13482 = vmatprep.mubr.f32.mxu0 %v935_v63  ;;  %v484_v63 = vsel %vm353_vm0, %v323_v27, 0  ;;  %v947_v20 = vand.u32 4294901760, %v946_v46  ;;  %24062 = vst [vmem:[#allocation55_spill] sm:$0xff] %v17927_v10  ;;  %24063 = vst [vmem:[#allocation56_spill] sm:$0xff] %v17929_v23  ;;  %v17936_v56 = vand.u32 4294901760, %v481_v1  ;;  %v986_v27 = vsub.f32 %v17905_v9, %v985_v39 }
  0x62   : > { %24064 = vst [vmem:[#allocation57_spill] sm:$0xff] %v17934_v29  ;;  %v17940_v46 = vand.u32 4294901760, %v484_v63  ;;  %v967_v19 = vand.u32 4294901760, %v966_v41  ;;  %v17943_v43 = vand.u32 4294901760, %v487_v8  ;;  %v17947_v12 = vsub.f32 %v478_v3, %v17929_v23  ;;  %v331_v23 = vld [vmem:[%s17557_s21 + $0x198] sm:$0xff] }
  0x63   : > { %24065 = vst [vmem:[#allocation58_spill] sm:$0xff] %v17936_v56  ;;  %v996_v41 = vsub.f32 %v17908_v31, %v995_v34  ;;  %v1015_v9 = vand.u32 4294901760, %v17934_v29 }
  0x64   : > { %13180 = vmatmul.mubr.f32.gmra.mrb[30].mxu1 %v927_v40  ;;  %13483 = vmatmul.mubr.f32.gmra.mrb[32].mxu0 %v945_v14  ;;  %v325_v40 = vld [vmem:[%s17557_s21 + $0x168] sm:$0xff]  ;;  %v326_v14 = vld [vmem:[%s17557_s21 + $0x170] sm:$0xff]  ;;  %24066 = vst [vmem:[#allocation59_spill] sm:$0xff] %v17940_v46  ;;  %24067 = vst [vmem:[#allocation60_spill] sm:$0xff] %v17943_v43  ;;  %v17958_v50 = vsub.f32 %v484_v63, %v17940_v46  ;;  %v17961_v3 = vsub.f32 %v487_v8, %v17943_v43 }
  0x65   : > { %13182 = vmatprep.mubr.f32.mxu1 %v937_v18  ;;  %13485 = vmatprep.mubr.f32.mxu0 %v955_v60  ;;  %v1005_v60 = vand.u32 4294901760, %v17927_v10  ;;  %24068 = vst [vmem:[#allocation61_spill] sm:$0xff] %v17947_v12  ;;  %v490_v30 = vsel %vm353_vm0, %v325_v40, 0  ;;  %v493_v7 = vsel %vm353_vm0, %v326_v14, 0  ;;  %v977_v18 = vand.u32 4294901760, %v976_v53  ;;  %v328_v53 = vld [vmem:[%s17557_s21 + $0x180] sm:$0xff] }
  0x66   : > { %24070 = vst [vmem:[#allocation63_spill] sm:$0xff] %v17958_v50  ;;  %24071 = vst [vmem:[#allocation64_spill] sm:$0xff] %v17961_v3  ;;  %v17963_v40 = vand.u32 4294901760, %v490_v30  ;;  %v1025_v14 = vand.u32 4294901760, %v17947_v12  ;;  %v997_v8 = vand.u32 4294901760, %v996_v41  ;;  %v1016_v31 = vsub.f32 %v17934_v29, %v1015_v9 }
  0x67   : > { %v1045_v46 = vand.u32 4294901760, %v17958_v50 }
  0x68   : > { %13183 = vmatmul.mubr.f32.gmra.mrb[32].mxu1 %v947_v20  ;;  %13486 = vmatmul.mubr.f32.gmra.mrb[34].mxu0 %v965_v45  ;;  %v17954_v20 = vsub.f32 %v481_v1, %v17936_v56  ;;  %v327_v45 = vld [vmem:[%s17557_s21 + $0x178] sm:$0xff]  ;;  %24072 = vst [vmem:[#allocation65_spill] sm:$0xff] %v17963_v40  ;;  %v1006_v1 = vsub.f32 %v17927_v10, %v1005_v60 }
  0x69   : > { %13185 = vmatprep.mubr.f32.mxu1 %v957_v32  ;;  %13488 = vmatprep.mubr.f32.mxu0 %v975_v2  ;;  %v17965_v32 = vand.u32 4294901760, %v493_v7  ;;  %v987_v2 = vand.u32 4294901760, %v986_v27  ;;  %v496_v63 = vsel %vm353_vm0, %v327_v45, 0  ;;  %v1055_v27 = vand.u32 4294901760, %v17961_v3 }
  0x6a   : > { %24069 = vst [vmem:[#allocation62_spill] sm:$0xff] %v17954_v20  ;;  %v1035_v43 = vand.u32 4294901760, %v17954_v20  ;;  %v17978_v10 = vsub.f32 %v490_v30, %v17963_v40  ;;  %v1007_v41 = vand.u32 4294901760, %v1006_v1  ;;  %v1026_v29 = vsub.f32 %v17947_v12, %v1025_v14  ;;  %v332_v1 = vld [vmem:[%s17557_s21 + $0x1a0] sm:$0xff]  ;;  %v333_v12 = vld [vmem:[%s17557_s21 + $0x1a8] sm:$0xff] }
  0x6b   : > { %24073 = vst [vmem:[#allocation66_spill] sm:$0xff] %v17965_v32  ;;  %v17981_v45 = vsub.f32 %v493_v7, %v17965_v32  ;;  %v1046_v7 = vsub.f32 %v17958_v50, %v1045_v46 }
  0x6c   : > { %13186 = vmatmul.mubr.f32.gmra.mrb[34].mxu1 %v967_v19  ;;  %13489 = vmatmul.mubr.f32.gmra.mrb[36].mxu0 %v985_v39  ;;  %v499_v19 = vsel %vm353_vm0, %v328_v53, 0  ;;  %v329_v39 = vld [vmem:[%s17557_s21 + $0x188] sm:$0xff]  ;;  %24074 = vst [vmem:[#allocation67_spill] sm:$0xff] %v17978_v10  ;;  %v1017_v53 = vand.u32 4294901760, %v1016_v31  ;;  %v1036_v56 = vsub.f32 %v17954_v20, %v1035_v43 }
  0x6d   : > { %13188 = vmatprep.mubr.f32.mxu1 %v977_v18  ;;  %13491 = vmatprep.mubr.f32.mxu0 %v995_v34  ;;  %24075 = vst [vmem:[#allocation68_spill] sm:$0xff] %v17981_v45  ;;  %v17983_v34 = vand.u32 4294901760, %v496_v63  ;;  %v330_v18 = vld [vmem:[%s17557_s21 + $0x190] sm:$0xff]  ;;  %v17988_v30 = vand.u32 4294901760, %v499_v19  ;;  %v502_v40 = vsel %vm353_vm0, %v329_v39, 0 }
  0x6e   : > { %v505_v32 = vsel %vm353_vm0, %v330_v18, 0  ;;  %v18001_v39 = vand.u32 4294901760, %v502_v40  ;;  %v1037_v18 = vand.u32 4294901760, %v1036_v56 }
  0x6f   : > { %24076 = vst [vmem:[#allocation69_spill] sm:$0xff] %v17983_v34  ;;  %v17998_v31 = vsub.f32 %v496_v63, %v17983_v34  ;;  %v18004_v50 = vsub.f32 %v499_v19, %v17988_v30  ;;  %v18006_v20 = vand.u32 4294901760, %v505_v32  ;;  %v1047_v63 = vand.u32 4294901760, %v1046_v7 }
  0x70   : > { %13189 = vmatmul.mubr.f32.gmra.mrb[36].mxu1 %v987_v2  ;;  %13492 = vmatmul.mubr.f32.gmra.mrb[38].mxu0 %v1005_v60  ;;  %v1065_v60 = vand.u32 4294901760, %v17978_v10  ;;  %v1056_v2 = vsub.f32 %v17961_v3, %v1055_v27  ;;  %v508_v3 = vsel %vm353_vm0, %v331_v23, 0  ;;  %v511_v34 = vsel %vm353_vm0, %v332_v1, 0 }
  0x71   : > { %13191 = vmatprep.mubr.f32.mxu1 %v997_v8  ;;  %13494 = vmatprep.mubr.f32.mxu0 %v1015_v9  ;;  %v1075_v9 = vand.u32 4294901760, %v17981_v45  ;;  %24077 = vst [vmem:[#allocation70_spill] sm:$0xff] %v17998_v31  ;;  %v1027_v8 = vand.u32 4294901760, %v1026_v29  ;;  %24078 = vst [vmem:[#allocation71_spill] sm:$0xff] %v18004_v50  ;;  %v18016_v19 = vsub.f32 %v502_v40, %v18001_v39  ;;  %v18018_v23 = vand.u32 4294901760, %v508_v3  ;;  %v336_v40 = vld [vmem:[%s17557_s21 + $0x1c0] sm:$0xff] }
  0x72   : > { %24079 = vst [vmem:[#allocation72_spill] sm:$0xff] %v18006_v20  ;;  %v1066_v29 = vsub.f32 %v17978_v10, %v1065_v60  ;;  %v1095_v7 = vand.u32 4294901760, %v18004_v50  ;;  %v18026_v1 = vand.u32 4294901760, %v511_v34 }
  0x73   : > { %v1076_v56 = vsub.f32 %v17981_v45, %v1075_v9  ;;  %24080 = vst [vmem:[#allocation73_spill] sm:$0xff] %v18016_v19  ;;  %24081 = vst [vmem:[#allocation74_spill] sm:$0xff] %v18018_v23 }
  0x74   : > { %13192 = vmatmul.mubr.f32.gmra.mrb[38].mxu1 %v1007_v41  ;;  %13495 = vmatmul.mubr.f32.gmra.mrb[40].mxu0 %v1025_v14  ;;  %v1057_v14 = vand.u32 4294901760, %v1056_v2  ;;  %v514_v41 = vsel %vm353_vm0, %v333_v12, 0  ;;  %v18024_v2 = vsub.f32 %v505_v32, %v18006_v20  ;;  %24083 = vst [vmem:[#allocation76_spill] sm:$0xff] %v18026_v1  ;;  %v1067_v45 = vand.u32 4294901760, %v1066_v29 }
  0x75   : > { %13194 = vmatprep.mubr.f32.mxu1 %v1017_v53  ;;  %13497 = vmatprep.mubr.f32.mxu0 %v1035_v43  ;;  %v1085_v43 = vand.u32 4294901760, %v17998_v31  ;;  %v517_v53 = vsel %vm353_vm0, %v334_v35, 0  ;;  %v1077_v10 = vand.u32 4294901760, %v1076_v56  ;;  %v18034_v12 = vand.u32 4294901760, %v514_v41 }
  0x76   : > { %24082 = vst [vmem:[#allocation75_spill] sm:$0xff] %v18024_v2  ;;  %v18036_v35 = vand.u32 4294901760, %v517_v53  ;;  %v1115_v29 = vand.u32 4294901760, %v18024_v2  ;;  %v18048_v56 = vsub.f32 %v511_v34, %v18026_v1 }
  0x77   : > { %24084 = vst [vmem:[#allocation77_spill] sm:$0xff] %v18034_v12  ;;  %v1086_v32 = vsub.f32 %v17998_v31, %v1085_v43  ;;  %v18053_v31 = vsub.f32 %v514_v41, %v18034_v12 }
  0x78   : > { %13195 = vmatmul.mubr.f32.gmra.mrb[40].mxu1 %v1027_v8  ;;  %13498 = vmatmul.mubr.f32.gmra.mrb[42].mxu0 %v1045_v46  ;;  %v335_v8 = vld [vmem:[%s17557_s21 + $0x1b8] sm:$0xff]  ;;  %v18031_v46 = vpack.c.bf16 %v17547_v6, %v17545_v5  ;;  %24085 = vst [vmem:[#allocation78_spill] sm:$0xff] %v18036_v35  ;;  %v18042_v5 = vsub.f32 %v508_v3, %v18018_v23  ;;  %24087 = vst [vmem:[#allocation80_spill] sm:$0xff] %v18048_v56 }
  0x79   : > { %13197 = vmatprep.mubr.f32.mxu1 %v1037_v18  ;;  %13500 = vmatprep.mubr.f32.mxu0 %v1055_v27  ;;  %v1105_v27 = vand.u32 4294901760, %v18016_v19  ;;  %v520_v6 = vsel %vm353_vm0, %v335_v8, 0  ;;  %v1096_v18 = vsub.f32 %v18004_v50, %v1095_v7  ;;  %24088 = vst [vmem:[#allocation81_spill] sm:$0xff] %v18053_v31  ;;  %v18056_v3 = vsub.f32 %v517_v53, %v18036_v35 }
  0x7a   : > { %15275 = vmatprep.subr.bf16.mxu1 %v18031_v46  ;;  %24086 = vst [vmem:[#allocation79_spill] sm:$0xff] %v18042_v5  ;;  %v18058_v8 = vand.u32 4294901760, %v520_v6  ;;  %v1125_v50 = vand.u32 4294901760, %v18042_v5  ;;  %v1116_v53 = vsub.f32 %v18024_v2, %v1115_v29  ;;  %v1135_v35 = vand.u32 4294901760, %v18048_v56 }
  0x7b   : > { %24089 = vst [vmem:[#allocation82_spill] sm:$0xff] %v18056_v3  ;;  %v1106_v34 = vsub.f32 %v18016_v19, %v1105_v27  ;;  %v1097_v41 = vand.u32 4294901760, %v1096_v18  ;;  %v1155_v19 = vand.u32 4294901760, %v18056_v3 }
  0x7c   : > { %13198 = vmatmul.mubr.f32.gmra.mrb[42].mxu1 %v1047_v63  ;;  %13501 = vmatmul.mubr.f32.gmra.mrb[44].mxu0 %v1065_v60  ;;  %v523_v60 = vsel %vm353_vm0, %v336_v40, 0  ;;  %v337_v63 = vld [vmem:[%s17557_s21 + $0x1c8] sm:$0xff]  ;;  %24090 = vst [vmem:[#allocation83_spill] sm:$0xff] %v18058_v8  ;;  %v18073_v1 = vsub.f32 %v520_v6, %v18058_v8  ;;  %v1126_v18 = vsub.f32 %v18042_v5, %v1125_v50  ;;  %v1117_v2 = vand.u32 4294901760, %v1116_v53 }
  0x7d   : > { %13200 = vmatprep.mubr.f32.mxu1 %v1057_v14  ;;  %13503 = vmatprep.mubr.f32.mxu0 %v1075_v9  ;;  %v338_v9 = vld [vmem:[%s17557_s21 + $0x1d0] sm:$0xff]  ;;  %v1087_v14 = vand.u32 4294901760, %v1086_v32  ;;  %v18063_v40 = vand.u32 4294901760, %v523_v60  ;;  %v526_v12 = vsel %vm353_vm0, %v337_v63, 0  ;;  %v1145_v32 = vand.u32 4294901760, %v18053_v31 }
  0x7e   : > { %24092 = vst [vmem:[#allocation85_spill] sm:$0xff] %v18073_v1  ;;  %v1136_v23 = vsub.f32 %v18048_v56, %v1135_v35  ;;  %v1165_v5 = vand.u32 4294901760, %v18073_v1 }
  0x7f   : > { %24091 = vst [vmem:[#allocation84_spill] sm:$0xff] %v18063_v40  ;;  %v18078_v63 = vsub.f32 %v523_v60, %v18063_v40  ;;  %v1156_v60 = vsub.f32 %v18056_v3, %v1155_v19  ;;  %v342_v40 = vld [vmem:[%s17557_s21 + $0x1f0] sm:$0xff] }
  0x80   : > { %13201 = vmatmul.mubr.f32.gmra.mrb[44].mxu1 %v1067_v45  ;;  %13504 = vmatmul.mubr.f32.gmra.mrb[46].mxu0 %v1085_v43  ;;  %v529_v45 = vsel %vm353_vm0, %v338_v9, 0  ;;  %v339_v43 = vld [vmem:[%s17557_s21 + $0x1d8] sm:$0xff]  ;;  %v18080_v9 = vand.u32 4294901760, %v526_v12 }
  0x81   : > { %13203 = vmatprep.mubr.f32.mxu1 %v1077_v10  ;;  %13506 = vmatprep.mubr.f32.mxu0 %v1095_v7  ;;  %v340_v10 = vld [vmem:[%s17557_s21 + $0x1e0] sm:$0xff]  ;;  %v1107_v7 = vand.u32 4294901760, %v1106_v34  ;;  %24093 = vst [vmem:[#allocation86_spill] sm:$0xff] %v18078_v63  ;;  %v18083_v20 = vand.u32 4294901760, %v529_v45  ;;  %v532_v6 = vsel %vm353_vm0, %v339_v43, 0  ;;  %v1146_v34 = vsub.f32 %v18053_v31, %v1145_v32 }
  0x82   : > { %v18094_v53 = vsub.f32 %v526_v12, %v18080_v9  ;;  %v18096_v43 = vand.u32 4294901760, %v532_v6  ;;  %v1157_v8 = vand.u32 4294901760, %v1156_v60  ;;  %v1166_v12 = vsub.f32 %v18073_v1, %v1165_v5 }
  0x83   : > { %v18099_v31 = vsub.f32 %v529_v45, %v18083_v20 }
  0x84   : > { %13204 = vmatmul.mubr.f32.gmra.mrb[46].mxu1 %v1087_v14  ;;  %13507 = vmatmul.mubr.f32.gmra.mrb[48].mxu0 %v1105_v27  ;;  %v535_v27 = vsel %vm353_vm0, %v340_v10, 0  ;;  %v341_v14 = vld [vmem:[%s17557_s21 + $0x1e8] sm:$0xff]  ;;  %24094 = vst [vmem:[#allocation87_spill] sm:$0xff] %v18094_v53  ;;  %v1137_v10 = vand.u32 4294901760, %v1136_v23  ;;  %v1167_v60 = vand.u32 4294901760, %v1166_v12 }
  0x85   : > { %13206 = vmatprep.mubr.f32.mxu1 %v1097_v41  ;;  %13509 = vmatprep.mubr.f32.mxu0 %v1115_v29  ;;  %v1127_v29 = vand.u32 4294901760, %v1126_v18  ;;  %v1175_v41 = vand.u32 4294901760, %v18078_v63  ;;  %24095 = vst [vmem:[#allocation88_spill] sm:$0xff] %v18099_v31  ;;  %v18101_v56 = vand.u32 4294901760, %v535_v27  ;;  %v538_v3 = vsel %vm353_vm0, %v341_v14, 0 }
  0x86   : > { %v1147_v18 = vand.u32 4294901760, %v1146_v34  ;;  %v18112_v45 = vand.u32 4294901760, %v538_v3 }
  0x87   : > { %24096 = vst [vmem:[#allocation89_spill] sm:$0xff] %v18101_v56  ;;  %v1176_v23 = vsub.f32 %v18078_v63, %v1175_v41  ;;  %v18116_v14 = vsub.f32 %v535_v27, %v18101_v56 }
  0x88   : > { %13207 = vmatmul.mubr.f32.gmra.mrb[48].mxu1 %v1107_v7  ;;  %13510 = vmatmul.mubr.f32.gmra.mrb[50].mxu0 %v1125_v50  ;;  %v541_v50 = vsel %vm353_vm0, %v342_v40, 0  ;;  %v343_v7 = vld [vmem:[%s17557_s21 + $0x1f8] sm:$0xff]  ;;  %24098 = vst [vmem:[#allocation91_spill] sm:$0xff] %v18112_v45  ;;  %v1195_v40 = vand.u32 4294901760, %v18099_v31  ;;  %v18124_v63 = vsub.f32 %v538_v3, %v18112_v45  ;;  %s17445_s21 = smov [#allocation2]  }
  0x89   : > { %13209 = vmatprep.mubr.f32.mxu1 %v1117_v2  ;;  %13512 = vmatprep.mubr.f32.mxu0 %v1135_v35  ;;  %v1185_v2 = vand.u32 4294901760, %v18094_v53  ;;  %v18110_v35 = vsub.f32 %v532_v6, %v18096_v43  ;;  %24099 = vst [vmem:[#allocation92_spill] sm:$0xff] %v18116_v14  ;;  %v18118_v34 = vand.u32 4294901760, %v541_v50  ;;  %v1177_v27 = vand.u32 4294901760, %v1176_v23  ;;  %s17385_s22 = sshll.u32 %s17445_s21, 4  ;;  %s17386_s22 = int_to_ptr.vmem [resolvable:$false] %s17385_s22 }
  0x8a   : > { %24101 = vst [vmem:[#allocation94_spill] sm:$0xff] %v18124_v63  ;;  %v1215_v1 = vand.u32 4294901760, %v18116_v14  ;;  %v1225_v3 = vand.u32 4294901760, %v18124_v63  ;;  %s17387_s23 = scalar_lea.vmem %s17386_s22, 16384  ;;  %p17388_p0 = scmp.lt.s32.totalorder %s22899_s16, %s17386_s22 }
  0x8b   : > { %24097 = vst [vmem:[#allocation90_spill] sm:$0xff] %v18110_v35  ;;  %24100 = vst [vmem:[#allocation93_spill] sm:$0xff] %v18118_v34  ;;  %v1205_v6 = vand.u32 4294901760, %v18110_v35  ;;  %p17389_p1 = scmp.lt.s32.totalorder %s17387_s23, %s17381_s20 }
  0x8c   : > { %13210 = vmatmul.mubr.f32.gmra.mrb[50].mxu1 %v1127_v29  ;;  %13513 = vmatmul.mubr.f32.gmra.mrb[52].mxu0 %v1145_v32  ;;  %v544_v32 = vsel %vm353_vm0, %v343_v7, 0  ;;  %v1186_v29 = vsub.f32 %v18094_v53, %v1185_v2  ;;  %v18131_v7 = vsub.f32 %v541_v50, %v18118_v34  ;;  %v24129_v53 = vld [vmem:[#allocation84_spill] sm:$0xff] }
  0x8d   : > { %13212 = vmatprep.mubr.f32.mxu1 %v1137_v10  ;;  %13515 = vmatprep.mubr.f32.mxu0 %v1155_v19  ;;  %v18126_v19 = vand.u32 4294901760, %v544_v32  ;;  %v1196_v10 = vsub.f32 %v18099_v31, %v1195_v40  ;;  %v24128_v31 = vld [vmem:[#allocation83_spill] sm:$0xff]  ;;  %p17390_p2 = por %p17389_p1, %p17388_p0 }
  0x8e   : > { %24103 = vst [vmem:[#allocation96_spill] sm:$0xff] %v18131_v7  ;;  %v1235_v23 = vand.u32 4294901760, %v18131_v7 }
  0x8f   : > { %24102 = vst [vmem:[#allocation95_spill] sm:$0xff] %v18126_v19  ;;  %v18136_v12 = vsub.f32 %v544_v32, %v18126_v19  ;;  %p17391_p3 = pnand %p17390_p2, %p17384_p13 }
  0x90   : > { %13213 = vmatmul.mubr.f32.gmra.mrb[52].mxu1 %v1147_v18  ;;  %13516 = vmatmul.mubr.f32.gmra.mrb[54].mxu0 %v1165_v5  ;;  %v1187_v5 = vand.u32 4294901760, %v1186_v29  ;;  %v1206_v18 = vsub.f32 %v18110_v35, %v1205_v6  ;;  %v1236_v32 = vsub.f32 %v18131_v7, %v1235_v23  ;;  %v24124_v7 = vld [vmem:[#allocation74_spill] sm:$0xff] }
  0x91   : > { %13215 = vmatprep.mubr.f32.mxu1 %v1157_v8  ;;  %13518 = vmatprep.mubr.f32.mxu0 %v1175_v41  ;;  %24104 = vst [vmem:[#allocation97_spill] sm:$0xff] %v18136_v12  ;;  %v1197_v8 = vand.u32 4294901760, %v1196_v10  ;;  %v1216_v41 = vsub.f32 %v18116_v14, %v1215_v1  ;;  %v24126_v14 = vld [vmem:[#allocation77_spill] sm:$0xff]  ;;  %v24127_v35 = vld [vmem:[#allocation78_spill] sm:$0xff] }
  0x92   : > { %v1207_v50 = vand.u32 4294901760, %v1206_v18  ;;  %v1237_v10 = vand.u32 4294901760, %v1236_v32  ;;  %v24109_v18 = vld [vmem:[#allocation42_spill] sm:$0xff]  ;;  %v24118_v32 = vld [vmem:[#allocation59_spill] sm:$0xff] }
  0x93   : > { %v1217_v29 = vand.u32 4294901760, %v1216_v41  ;;  %v24112_v41 = vld [vmem:[#allocation48_spill] sm:$0xff] }
  0x94   : > { %13216 = vmatmul.mubr.f32.gmra.mrb[54].mxu1 %v1167_v60  ;;  %13519 = vmatmul.mubr.f32.gmra.mrb[56].mxu0 %v1185_v2  ;;  %v1226_v2 = vsub.f32 %v18124_v63, %v1225_v3  ;;  %v1245_v60 = vand.u32 4294901760, %v18136_v12  ;;  %v24125_v63 = vld [vmem:[#allocation76_spill] sm:$0xff] }
  0x95   : > { %13218 = vmatprep.mubr.f32.mxu1 %v1177_v27  ;;  %13521 = vmatprep.mubr.f32.mxu0 %v1195_v40 }
  0x96   : > { %v1227_v40 = vand.u32 4294901760, %v1226_v2  ;;  %v1246_v27 = vsub.f32 %v18136_v12, %v1245_v60  ;;  %v24115_v2 = vld [vmem:[#allocation54_spill] sm:$0xff]  ;;  %v24123_v12 = vld [vmem:[#allocation72_spill] sm:$0xff] }
  0x98   : > { %13219 = vmatmul.mubr.f32.gmra.mrb[56].mxu1 %v1187_v5  ;;  %13522 = vmatmul.mubr.f32.gmra.mrb[58].mxu0 %v1205_v6  ;;  %v1247_v6 = vand.u32 4294901760, %v1246_v27  ;;  %v24108_v5 = vld [vmem:[#allocation41_spill] sm:$0xff] }
  0x99   : > { %13221 = vmatprep.mubr.f32.mxu1 %v1197_v8  ;;  %13524 = vmatprep.mubr.f32.mxu0 %v1215_v1  ;;  %v24106_v1 = vld [vmem:[#allocation36_spill] sm:$0xff]  ;;  %v24111_v8 = vld [vmem:[#allocation46_spill] sm:$0xff]  ;;  %v24120_v27 = vld [vmem:[#allocation65_spill] sm:$0xff] }
  0x9c   : > { %13222 = vmatmul.mubr.f32.gmra.mrb[58].mxu1 %v1207_v50  ;;  %13525 = vmatmul.mubr.f32.gmra.mrb[60].mxu0 %v1225_v3  ;;  %v24110_v3 = vld [vmem:[#allocation43_spill] sm:$0xff]  ;;  %v24114_v50 = vld [vmem:[#allocation53_spill] sm:$0xff] }
  0x9d   : > { %13224 = vmatprep.mubr.f32.mxu1 %v1217_v29  ;;  %13527 = vmatprep.mubr.f32.mxu0 %v1235_v23  ;;  %v24113_v23 = vld [vmem:[#allocation49_spill] sm:$0xff]  ;;  %v24117_v29 = vld [vmem:[#allocation58_spill] sm:$0xff] }
  0xa0   : > { %13225 = vmatmul.mubr.f32.gmra.mrb[60].mxu1 %v1227_v40  ;;  %13528 = vmatmul.mubr.f32.gmra.mrb[62].mxu0 %v1245_v60  ;;  %v24116_v60 = vld [vmem:[#allocation56_spill] sm:$0xff] }
  0xa1   : > { %13227 = vmatprep.mubr.f32.mxu1 %v1237_v10  ;;  %13534 = vmatprep.mubr.f32.mxu0 %v17571_v21  ;;  %v24119_v40 = vld [vmem:[#allocation60_spill] sm:$0xff]  ;;  %v24121_v10 = vld [vmem:[#allocation66_spill] sm:$0xff] }
  0xa4   : > { %13228 = vmatmul.mubr.f32.gmra.mrb[62].mxu1 %v1247_v6  ;;  %13535 = vmatmul.mubr.f32.vlgmr.msra.gmra.mrb[0].mxu0 %v17573_v22  ;;  %v24122_v6 = vld [vmem:[#allocation69_spill] sm:$0xff] }
  0xa5   : > { %13234 = vmatprep.mubr.f32.mxu1 %v17571_v21  ;;  %13537 = vmatprep.mubr.f32.mxu0 %v17576_v26 }
  0xa6   : > { %15289 = vmatpush3.bf16.msra.mxu0 %v17543_v4  ;;  %v24105_v4 = vld [vmem:[#allocation34_spill] sm:$0xff] }
  0xa8   : > { %13235 = vmatmul.mubr.f32.vlgmr.msra.gmra.mrb[0].mxu1 %v17573_v22  ;;  %13538 = vmatmul.mubr.f32.gmra.mrb[2].mxu0 %v17587_v33 }
  0xa9   : > { %15277 = vmatpush3.bf16.msra.mxu1 %v18031_v46  ;;  %13237 = vmatprep.mubr.f32.mxu1 %v17576_v26  ;;  %v24107_v46 = vld [vmem:[#allocation37_spill] sm:$0xff] }
  0xaa   : > { %13540 = vmatprep.mubr.f32.mxu0 %v17593_v36 }
  0xac   : > { %13238 = vmatmul.mubr.f32.gmra.mrb[2].mxu1 %v17587_v33  ;;  %13541 = vmatmul.mubr.f32.gmra.mrb[4].mxu0 %v17595_v37 }
  0xad   : > { %13240 = vmatprep.mubr.f32.mxu1 %v17593_v36  ;;  %13543 = vmatprep.mubr.f32.mxu0 %v17603_v42 }
  0xb0   : > { %13241 = vmatmul.mubr.f32.gmra.mrb[4].mxu1 %v17595_v37  ;;  %13544 = vmatmul.mubr.f32.gmra.mrb[6].mxu0 %v17622_v54 }
  0xb1   : > { %13243 = vmatprep.mubr.f32.mxu1 %v17603_v42  ;;  %13546 = vmatprep.mubr.f32.mxu0 %v17641_v13 }
  0xb4   : > { %13244 = vmatmul.mubr.f32.gmra.mrb[6].mxu1 %v17622_v54  ;;  %13547 = vmatmul.mubr.f32.gmra.mrb[8].mxu0 %v17645_v17 }
  0xb5   : > { %13246 = vmatprep.mubr.f32.mxu1 %v17641_v13  ;;  %13549 = vmatprep.mubr.f32.mxu0 %v17652_v24 }
  0xb8   : > { %13247 = vmatmul.mubr.f32.gmra.mrb[8].mxu1 %v17645_v17  ;;  %13550 = vmatmul.mubr.f32.gmra.mrb[10].mxu0 %v17654_v25 }
  0xb9   : > { %13249 = vmatprep.mubr.f32.mxu1 %v17652_v24  ;;  %13552 = vmatprep.mubr.f32.mxu0 %v17672_v47 }
  0xbc   : > { %13250 = vmatmul.mubr.f32.gmra.mrb[10].mxu1 %v17654_v25  ;;  %13553 = vmatmul.mubr.f32.gmra.mrb[12].mxu0 %v17674_v48 }
  0xbd   : > { %13252 = vmatprep.mubr.f32.mxu1 %v17672_v47  ;;  %13555 = vmatprep.mubr.f32.mxu0 %v17676_v49 }
  0xc0   : > { %13253 = vmatmul.mubr.f32.gmra.mrb[12].mxu1 %v17674_v48  ;;  %13556 = vmatmul.mubr.f32.gmra.mrb[14].mxu0 %v17693_v62 }
  0xc1   : > { %13255 = vmatprep.mubr.f32.mxu1 %v17676_v49  ;;  %13558 = vmatprep.mubr.f32.mxu0 %v17707_v15 }
  0xc4   : > { %13256 = vmatmul.mubr.f32.gmra.mrb[14].mxu1 %v17693_v62  ;;  %13559 = vmatmul.mubr.f32.gmra.mrb[16].mxu0 %v17720_v55 }
  0xc5   : > { %13258 = vmatprep.mubr.f32.mxu1 %v17707_v15  ;;  %13561 = vmatprep.mubr.f32.mxu0 %v17722_v59 }
  0xc8   : > { %13259 = vmatmul.mubr.f32.gmra.mrb[16].mxu1 %v17720_v55  ;;  %13562 = vmatmul.mubr.f32.gmra.mrb[18].mxu0 %v17726_v61 }
  0xc9   : > { %13261 = vmatprep.mubr.f32.mxu1 %v17722_v59  ;;  %13564 = vmatprep.mubr.f32.mxu0 %v17738_v58 }
  0xcc   : > { %13262 = vmatmul.mubr.f32.gmra.mrb[18].mxu1 %v17726_v61  ;;  %13565 = vmatmul.mubr.f32.gmra.mrb[20].mxu0 %v17746_v57 }
  0xcd   : > { %13264 = vmatprep.mubr.f32.mxu1 %v17738_v58  ;;  %13567 = vmatprep.mubr.f32.mxu0 %v17748_v38 }
  0xd0   : > { %13265 = vmatmul.mubr.f32.gmra.mrb[20].mxu1 %v17746_v57  ;;  %13568 = vmatmul.mubr.f32.gmra.mrb[22].mxu0 %v17768_v28 }
  0xd1   : > { %13267 = vmatprep.mubr.f32.mxu1 %v17748_v38  ;;  %13570 = vmatprep.mubr.f32.mxu0 %v17770_v16 }
  0xd4   : > { %13268 = vmatmul.mubr.f32.gmra.mrb[22].mxu1 %v17768_v28  ;;  %13571 = vmatmul.mubr.f32.gmra.mrb[24].mxu0 %v17787_v51 }
  0xd5   : > { %13270 = vmatprep.mubr.f32.mxu1 %v17770_v16  ;;  %13573 = vmatprep.mubr.f32.mxu0 %v17791_v11 }
  0xd8   : > { %13271 = vmatmul.mubr.f32.gmra.mrb[24].mxu1 %v17787_v51  ;;  %13574 = vmatmul.mubr.f32.gmra.mrb[26].mxu0 %v17797_v0 }
  0xd9   : > { %13273 = vmatprep.mubr.f32.mxu1 %v17791_v11  ;;  %13576 = vmatprep.mubr.f32.mxu0 %v17809_v52 }
  0xdc   : > { %13274 = vmatmul.mubr.f32.gmra.mrb[26].mxu1 %v17797_v0  ;;  %13577 = vmatmul.mubr.f32.gmra.mrb[28].mxu0 %v17817_v44 }
  0xdd   : > { %13276 = vmatprep.mubr.f32.mxu1 %v17809_v52  ;;  %13579 = vmatprep.mubr.f32.mxu0 %v24105_v4 }
  0xe0   : > { %13277 = vmatmul.mubr.f32.gmra.mrb[28].mxu1 %v17817_v44  ;;  %13580 = vmatmul.mubr.f32.gmra.mrb[30].mxu0 %v24106_v1 }
  0xe1   : > { %13279 = vmatprep.mubr.f32.mxu1 %v24105_v4  ;;  %13582 = vmatprep.mubr.f32.mxu0 %v24107_v46 }
  0xe4   : > { %13280 = vmatmul.mubr.f32.gmra.mrb[30].mxu1 %v24106_v1  ;;  %13583 = vmatmul.mubr.f32.gmra.mrb[32].mxu0 %v24108_v5 }
  0xe5   : > { %13282 = vmatprep.mubr.f32.mxu1 %v24107_v46  ;;  %13585 = vmatprep.mubr.f32.mxu0 %v24109_v18 }
  0xe8   : > { %13283 = vmatmul.mubr.f32.gmra.mrb[32].mxu1 %v24108_v5  ;;  %13586 = vmatmul.mubr.f32.gmra.mrb[34].mxu0 %v24110_v3 }
  0xe9   : > { %13285 = vmatprep.mubr.f32.mxu1 %v24109_v18  ;;  %13588 = vmatprep.mubr.f32.mxu0 %v24111_v8 }
  0xec   : > { %13286 = vmatmul.mubr.f32.gmra.mrb[34].mxu1 %v24110_v3  ;;  %13589 = vmatmul.mubr.f32.gmra.mrb[36].mxu0 %v24112_v41 }
  0xed   : > { %13288 = vmatprep.mubr.f32.mxu1 %v24111_v8  ;;  %13591 = vmatprep.mubr.f32.mxu0 %v24113_v23 }
  0xf0   : > { %13289 = vmatmul.mubr.f32.gmra.mrb[36].mxu1 %v24112_v41  ;;  %13592 = vmatmul.mubr.f32.gmra.mrb[38].mxu0 %v24114_v50 }
  0xf1   : > { %13291 = vmatprep.mubr.f32.mxu1 %v24113_v23  ;;  %13594 = vmatprep.mubr.f32.mxu0 %v24115_v2 }
  0xf4   : > { %13292 = vmatmul.mubr.f32.gmra.mrb[38].mxu1 %v24114_v50  ;;  %13595 = vmatmul.mubr.f32.gmra.mrb[40].mxu0 %v24116_v60 }
  0xf5   : > { %13294 = vmatprep.mubr.f32.mxu1 %v24115_v2  ;;  %13597 = vmatprep.mubr.f32.mxu0 %v24117_v29 }
  0xf8   : > { %13295 = vmatmul.mubr.f32.gmra.mrb[40].mxu1 %v24116_v60  ;;  %13598 = vmatmul.mubr.f32.gmra.mrb[42].mxu0 %v24118_v32 }
  0xf9   : > { %13297 = vmatprep.mubr.f32.mxu1 %v24117_v29  ;;  %13600 = vmatprep.mubr.f32.mxu0 %v24119_v40 }
  0xfc   : > { %13298 = vmatmul.mubr.f32.gmra.mrb[42].mxu1 %v24118_v32  ;;  %13601 = vmatmul.mubr.f32.gmra.mrb[44].mxu0 %v24120_v27 }
  0xfd   : > { %13300 = vmatprep.mubr.f32.mxu1 %v24119_v40  ;;  %13603 = vmatprep.mubr.f32.mxu0 %v24121_v10 }
 0x100   : > { %13301 = vmatmul.mubr.f32.gmra.mrb[44].mxu1 %v24120_v27  ;;  %13604 = vmatmul.mubr.f32.gmra.mrb[46].mxu0 %v24122_v6 }
 0x101   : > { %13303 = vmatprep.mubr.f32.mxu1 %v24121_v10  ;;  %13606 = vmatprep.mubr.f32.mxu0 %v17988_v30 }
 0x104   : > { %13304 = vmatmul.mubr.f32.gmra.mrb[46].mxu1 %v24122_v6  ;;  %13607 = vmatmul.mubr.f32.gmra.mrb[48].mxu0 %v18001_v39 }
 0x105   : > { %13306 = vmatprep.mubr.f32.mxu1 %v17988_v30  ;;  %13609 = vmatprep.mubr.f32.mxu0 %v24123_v12 }
 0x108   : > { %13307 = vmatmul.mubr.f32.gmra.mrb[48].mxu1 %v18001_v39  ;;  %13610 = vmatmul.mubr.f32.gmra.mrb[50].mxu0 %v24124_v7 }
 0x109   : > { %13309 = vmatprep.mubr.f32.mxu1 %v24123_v12  ;;  %13612 = vmatprep.mubr.f32.mxu0 %v24125_v63 }
 0x10c   : > { %13310 = vmatmul.mubr.f32.gmra.mrb[50].mxu1 %v24124_v7  ;;  %13613 = vmatmul.mubr.f32.gmra.mrb[52].mxu0 %v24126_v14  ;;  %v18263_v7 = vld [vmem:[%s22956_s3] sm:$0xff] }
 0x10d   : > { %13312 = vmatprep.mubr.f32.mxu1 %v24125_v63  ;;  %13615 = vmatprep.mubr.f32.mxu0 %v24127_v35  ;;  %24130 = vst [vmem:[#allocation34_spill] sm:$0xff] %v18263_v7  ;;  %v18268_v63 = vld [vmem:[%s22956_s3 + $0x8] sm:$0xff] }
 0x10e   : > { %24131 = vst [vmem:[#allocation36_spill] sm:$0xff] %v18268_v63 }
 0x110   : > { %13313 = vmatmul.mubr.f32.gmra.mrb[52].mxu1 %v24126_v14  ;;  %13616 = vmatmul.mubr.f32.gmra.mrb[54].mxu0 %v24128_v31 }
 0x111   : > { %13315 = vmatprep.mubr.f32.mxu1 %v24127_v35  ;;  %13618 = vmatprep.mubr.f32.mxu0 %v24129_v53  ;;  %v23081_v35 = vand.u32 4294901760, %v18263_v7 }
 0x114   : > { %13316 = vmatmul.mubr.f32.gmra.mrb[54].mxu1 %v24128_v31  ;;  %13619 = vmatmul.mubr.f32.gmra.mrb[56].mxu0 %v18080_v9  ;;  %v23080_v31 = vand.u32 4294901760, %v18268_v63  ;;  %v18308_v63 = vld [vmem:[%s22956_s3 + $0x20] sm:$0xff] }
 0x115   : > { %13318 = vmatprep.mubr.f32.mxu1 %v24129_v53  ;;  %13621 = vmatprep.mubr.f32.mxu0 %v18083_v20 }
 0x116   : > { %v18278_v14 = vpack.c.bf16 %v23080_v31, %v23081_v35  ;;  %v18298_v31 = vld [vmem:[%s22956_s3 + $0x10] sm:$0xff]  ;;  %v18303_v35 = vld [vmem:[%s22956_s3 + $0x18] sm:$0xff] }
 0x117   : > { %24133 = vst [vmem:[#allocation41_spill] sm:$0xff] %v18298_v31  ;;  %24134 = vst [vmem:[#allocation42_spill] sm:$0xff] %v18303_v35  ;;  %v23092_v7 = vand.u32 4294901760, %v18303_v35  ;;  %v24140_v35 = vld [vmem:[#allocation8_spill] sm:$0xff] }
 0x118   : > { %24132 = vst [vmem:[#allocation37_spill] sm:$0xff] %v18278_v14  ;;  %13319 = vmatmul.mubr.f32.gmra.mrb[56].mxu1 %v18080_v9  ;;  %13622 = vmatmul.mubr.f32.gmra.mrb[58].mxu0 %v18096_v43 }
 0x119   : > { %13321 = vmatprep.mubr.f32.mxu1 %v18083_v20  ;;  %13624 = vmatprep.mubr.f32.mxu0 %v18101_v56 }
 0x11a   : > { %15291 = vmatprep.subr.bf16.mxu1 %v18278_v14 }
 0x11c   : > { %13322 = vmatmul.mubr.f32.gmra.mrb[58].mxu1 %v18096_v43  ;;  %13625 = vmatmul.mubr.f32.gmra.mrb[60].mxu0 %v18112_v45 }
 0x11d   : > { %13324 = vmatprep.mubr.f32.mxu1 %v18101_v56  ;;  %13627 = vmatprep.mubr.f32.mxu0 %v18118_v34  ;;  %v18332_v56 = vld [vmem:[%s22956_s3 + $0x30] sm:$0xff] }
 0x120   : > { %13325 = vmatmul.mubr.f32.gmra.mrb[60].mxu1 %v18112_v45  ;;  %13628 = vmatmul.mubr.f32.gmra.mrb[62].mxu0 %v18126_v19  ;;  %v23097_v45 = vand.u32 4294901760, %v18308_v63 }
 0x121   : > { %13327 = vmatprep.mubr.f32.mxu1 %v18118_v34  ;;  %13634 = vmatprep.mubr.f32.mxu0 %v17571_v21  ;;  %v24135_v21 = vld [vmem:[#allocation5_spill] sm:$0xff] }
 0x124   : > { %13328 = vmatmul.mubr.f32.gmra.mrb[62].mxu1 %v18126_v19  ;;  %13635 = vmatmul.mubr.f32.vlgmr.msra.gmra.mrb[0].mxu0 %v17573_v22  ;;  %v23093_v22 = vand.u32 4294901760, %v18298_v31  ;;  %v18317_v19 = vld [vmem:[%s22956_s3 + $0x28] sm:$0xff]  ;;  %v18337_v31 = vld [vmem:[%s22956_s3 + $0x38] sm:$0xff] }
 0x125   : > { %13334 = vmatprep.mubr.f32.mxu1 %v24135_v21  ;;  %13637 = vmatprep.mubr.f32.mxu0 %v17576_v26  ;;  %v23096_v21 = vand.u32 4294901760, %v18317_v19  ;;  %v24137_v26 = vld [vmem:[#allocation6_spill] sm:$0xff] }
 0x126   : > { %v18323_v34 = vpack.c.bf16 %v23092_v7, %v23093_v22  ;;  %v24138_v7 = vld [vmem:[#allocation7_spill] sm:$0xff]  ;;  %v23100_v22 = vand.u32 4294901760, %v18337_v31 }
 0x128   : > { %24136 = vst [vmem:[#allocation43_spill] sm:$0xff] %v18323_v34  ;;  %13335 = vmatmul.mubr.f32.vlgmr.msra.gmra.mrb[0].mxu1 %v24137_v26  ;;  %13638 = vmatmul.mubr.f32.gmra.mrb[2].mxu0 %v17587_v33  ;;  %v18347_v33 = vpack.c.bf16 %v23096_v21, %v23097_v45  ;;  %v23101_v26 = vand.u32 4294901760, %v18332_v56  ;;  %v24141_v21 = vld [vmem:[#allocation9_spill] sm:$0xff] }
 0x129   : > { %13337 = vmatprep.mubr.f32.mxu1 %v24138_v7  ;;  %13640 = vmatprep.mubr.f32.mxu0 %v17593_v36  ;;  %v18356_v36 = vld [vmem:[%s22956_s3 + $0x40] sm:$0xff]  ;;  %v18361_v7 = vld [vmem:[%s22956_s3 + $0x48] sm:$0xff] }
 0x12a   : > { %15293 = vmatpush3.bf16.msra.mxu1 %v18278_v14  ;;  %24139 = vst [vmem:[#allocation46_spill] sm:$0xff] %v18347_v33  ;;  %v23104_v45 = vand.u32 4294901760, %v18361_v7  ;;  %v24143_v14 = vld [vmem:[#allocation10_spill] sm:$0xff] }
 0x12b   : > { %15295 = vmatprep.subr.bf16.mxu1 %v18323_v34 }
 0x12c   : > { %13338 = vmatmul.mubr.f32.gmra.mrb[2].mxu1 %v24140_v35  ;;  %13641 = vmatmul.mubr.f32.gmra.mrb[4].mxu0 %v17595_v37  ;;  %v18371_v37 = vpack.c.bf16 %v23100_v22, %v23101_v26  ;;  %v23105_v35 = vand.u32 4294901760, %v18356_v36  ;;  %v24144_v22 = vld [vmem:[#allocation11_spill] sm:$0xff] }
 0x12d   : > { %13340 = vmatprep.mubr.f32.mxu1 %v24141_v21  ;;  %13643 = vmatprep.mubr.f32.mxu0 %v17603_v42  ;;  %v18380_v42 = vld [vmem:[%s22956_s3 + $0x50] sm:$0xff]  ;;  %v18385_v21 = vld [vmem:[%s22956_s3 + $0x58] sm:$0xff] }
 0x12e   : > { %15297 = vmatpush3.bf16.msra.mxu1 %v18323_v34  ;;  %24142 = vst [vmem:[#allocation48_spill] sm:$0xff] %v18371_v37  ;;  %v23108_v26 = vand.u32 4294901760, %v18385_v21  ;;  %v24146_v34 = vld [vmem:[#allocation12_spill] sm:$0xff] }
 0x12f   : > { %15299 = vmatprep.subr.bf16.mxu1 %v18347_v33 }
 0x130   : > { %13341 = vmatmul.mubr.f32.gmra.mrb[4].mxu1 %v24143_v14  ;;  %13644 = vmatmul.mubr.f32.gmra.mrb[6].mxu0 %v17622_v54  ;;  %v18395_v54 = vpack.c.bf16 %v23104_v45, %v23105_v35  ;;  %v3832_v14 = vand.u32 4294901760, %v18380_v42  ;;  %v24147_v45 = vld [vmem:[#allocation13_spill] sm:$0xff] }
 0x131   : > { %13343 = vmatprep.mubr.f32.mxu1 %v24144_v22  ;;  %13646 = vmatprep.mubr.f32.mxu0 %v17641_v13  ;;  %v18404_v13 = vld [vmem:[%s22956_s3 + $0x60] sm:$0xff]  ;;  %v18409_v22 = vld [vmem:[%s22956_s3 + $0x68] sm:$0xff] }
 0x132   : > { %15301 = vmatpush3.bf16.msra.mxu1 %v18347_v33  ;;  %24145 = vst [vmem:[#allocation49_spill] sm:$0xff] %v18395_v54  ;;  %v3841_v35 = vand.u32 4294901760, %v18409_v22  ;;  %v24149_v33 = vld [vmem:[#allocation14_spill] sm:$0xff] }
 0x133   : > { %15303 = vmatprep.subr.bf16.mxu1 %v18371_v37 }
 0x134   : > { %13344 = vmatmul.mubr.f32.gmra.mrb[6].mxu1 %v24146_v34  ;;  %13647 = vmatmul.mubr.f32.gmra.mrb[8].mxu0 %v17645_v17  ;;  %v18419_v17 = vpack.c.bf16 %v23108_v26, %v3832_v14  ;;  %v3838_v34 = vand.u32 4294901760, %v18404_v13  ;;  %v24152_v26 = vld [vmem:[#allocation16_spill] sm:$0xff] }
 0x135   : > { %13346 = vmatprep.mubr.f32.mxu1 %v24147_v45  ;;  %13649 = vmatprep.mubr.f32.mxu0 %v17652_v24  ;;  %v24150_v45 = vld [vmem:[#allocation15_spill] sm:$0xff] }
 0x136   : > { %15305 = vmatpush3.bf16.msra.mxu1 %v18371_v37  ;;  %24148 = vst [vmem:[#allocation53_spill] sm:$0xff] %v18419_v17  ;;  %v18433_v24 = vpack.c.bf16 %v3841_v35, %v3838_v34 }
 0x137   : > { %15307 = vmatprep.subr.bf16.mxu1 %v18395_v54 }
 0x138   : > { %13347 = vmatmul.mubr.f32.gmra.mrb[8].mxu1 %v24149_v33  ;;  %13650 = vmatmul.mubr.f32.gmra.mrb[10].mxu0 %v17654_v25  ;;  %24151 = vst [vmem:[#allocation54_spill] sm:$0xff] %v18433_v24  ;;  %v24153_v33 = vld [vmem:[#allocation17_spill] sm:$0xff]  ;;  %v24154_v25 = vld [vmem:[#allocation18_spill] sm:$0xff] }
 0x139   : > { %13349 = vmatprep.mubr.f32.mxu1 %v24150_v45  ;;  %13652 = vmatprep.mubr.f32.mxu0 %v17672_v47  ;;  %v24155_v47 = vld [vmem:[#allocation19_spill] sm:$0xff] }
 0x13a   : > { %15309 = vmatpush3.bf16.msra.mxu1 %v18395_v54  ;;  %v24159_v45 = vld [vmem:[#allocation23_spill] sm:$0xff] }
 0x13b   : > { %15311 = vmatprep.subr.bf16.mxu1 %v18419_v17 }
 0x13c   : > { %13350 = vmatmul.mubr.f32.gmra.mrb[10].mxu1 %v24152_v26  ;;  %13653 = vmatmul.mubr.f32.gmra.mrb[12].mxu0 %v17674_v48  ;;  %v24156_v26 = vld [vmem:[#allocation20_spill] sm:$0xff]  ;;  %v24157_v48 = vld [vmem:[#allocation21_spill] sm:$0xff] }
 0x13d   : > { %13352 = vmatprep.mubr.f32.mxu1 %v24153_v33  ;;  %13655 = vmatprep.mubr.f32.mxu0 %v17676_v49  ;;  %v24158_v49 = vld [vmem:[#allocation22_spill] sm:$0xff] }
 0x13e   : > { %15313 = vmatpush3.bf16.msra.mxu1 %v18419_v17  ;;  %v24191_v33 = vld [vmem:[#allocation74_spill] sm:$0xff] }
 0x13f   : > { %15315 = vmatprep.subr.bf16.mxu1 %v18433_v24 }
 0x140   : > { %13353 = vmatmul.mubr.f32.gmra.mrb[12].mxu1 %v24154_v25  ;;  %13656 = vmatmul.mubr.f32.gmra.mrb[14].mxu0 %v17693_v62  ;;  %v24160_v62 = vld [vmem:[#allocation24_spill] sm:$0xff] }
 0x141   : > { %13355 = vmatprep.mubr.f32.mxu1 %v24155_v47  ;;  %13658 = vmatprep.mubr.f32.mxu0 %v17707_v15  ;;  %v24161_v15 = vld [vmem:[#allocation25_spill] sm:$0xff]  ;;  %v24193_v25 = vld [vmem:[#allocation76_spill] sm:$0xff] }
 0x142   : > { %15317 = vmatpush3.bf16.msra.mxu1 %v18433_v24  ;;  %v24195_v47 = vld [vmem:[#allocation77_spill] sm:$0xff] }
 0x144   : > { %13356 = vmatmul.mubr.f32.gmra.mrb[14].mxu1 %v24156_v26  ;;  %13659 = vmatmul.mubr.f32.gmra.mrb[16].mxu0 %v17720_v55  ;;  %v24162_v55 = vld [vmem:[#allocation26_spill] sm:$0xff] }
 0x145   : > { %13358 = vmatprep.mubr.f32.mxu1 %v24157_v48  ;;  %13661 = vmatprep.mubr.f32.mxu0 %v17722_v59  ;;  %v24163_v59 = vld [vmem:[#allocation27_spill] sm:$0xff]  ;;  %v24197_v26 = vld [vmem:[#allocation78_spill] sm:$0xff] }
 0x148   : > { %13359 = vmatmul.mubr.f32.gmra.mrb[16].mxu1 %v24158_v49  ;;  %13662 = vmatmul.mubr.f32.gmra.mrb[18].mxu0 %v17726_v61  ;;  %v24164_v61 = vld [vmem:[#allocation28_spill] sm:$0xff] }
 0x149   : > { %13361 = vmatprep.mubr.f32.mxu1 %v24159_v45  ;;  %13664 = vmatprep.mubr.f32.mxu0 %v17738_v58  ;;  %v24165_v58 = vld [vmem:[#allocation29_spill] sm:$0xff] }
 0x14a   : > { %v24198_v45 = vld [vmem:[#allocation81_spill] sm:$0xff] }
 0x14c   : > { %13362 = vmatmul.mubr.f32.gmra.mrb[18].mxu1 %v24160_v62  ;;  %13665 = vmatmul.mubr.f32.gmra.mrb[20].mxu0 %v17746_v57  ;;  %v24166_v57 = vld [vmem:[#allocation30_spill] sm:$0xff]  ;;  %v24199_v62 = vld [vmem:[#allocation83_spill] sm:$0xff] }
 0x14d   : > { %13364 = vmatprep.mubr.f32.mxu1 %v24161_v15  ;;  %13667 = vmatprep.mubr.f32.mxu0 %v17748_v38  ;;  %v24167_v38 = vld [vmem:[#allocation31_spill] sm:$0xff]  ;;  %v24200_v15 = vld [vmem:[#allocation82_spill] sm:$0xff] }
 0x150   : > { %13365 = vmatmul.mubr.f32.gmra.mrb[20].mxu1 %v24162_v55  ;;  %13668 = vmatmul.mubr.f32.gmra.mrb[22].mxu0 %v17768_v28  ;;  %v24168_v28 = vld [vmem:[#allocation32_spill] sm:$0xff] }
 0x151   : > { %13367 = vmatprep.mubr.f32.mxu1 %v24163_v59  ;;  %13670 = vmatprep.mubr.f32.mxu0 %v17770_v16  ;;  %v24169_v16 = vld [vmem:[#allocation33_spill] sm:$0xff] }
 0x152   : > { %v24202_v59 = vld [vmem:[#allocation85_spill] sm:$0xff] }
 0x154   : > { %13368 = vmatmul.mubr.f32.gmra.mrb[22].mxu1 %v24164_v61  ;;  %13671 = vmatmul.mubr.f32.gmra.mrb[24].mxu0 %v17787_v51  ;;  %v24170_v51 = vld [vmem:[#allocation35_spill] sm:$0xff]  ;;  %v24203_v61 = vld [vmem:[#allocation86_spill] sm:$0xff] }
 0x155   : > { %13370 = vmatprep.mubr.f32.mxu1 %v24165_v58  ;;  %13673 = vmatprep.mubr.f32.mxu0 %v17791_v11  ;;  %v24171_v11 = vld [vmem:[#allocation38_spill] sm:$0xff]  ;;  %v24204_v58 = vld [vmem:[#allocation87_spill] sm:$0xff] }
 0x158   : > { %13371 = vmatmul.mubr.f32.gmra.mrb[24].mxu1 %v24166_v57  ;;  %13674 = vmatmul.mubr.f32.gmra.mrb[26].mxu0 %v17797_v0  ;;  %v24172_v0 = vld [vmem:[#allocation39_spill] sm:$0xff]  ;;  %v24206_v57 = vld [vmem:[#allocation89_spill] sm:$0xff] }
 0x159   : > { %13373 = vmatprep.mubr.f32.mxu1 %v24167_v38  ;;  %13676 = vmatprep.mubr.f32.mxu0 %v17809_v52  ;;  %v24173_v52 = vld [vmem:[#allocation40_spill] sm:$0xff]  ;;  %v24207_v38 = vld [vmem:[#allocation90_spill] sm:$0xff] }
 0x15c   : > { %13374 = vmatmul.mubr.f32.gmra.mrb[26].mxu1 %v24168_v28  ;;  %13677 = vmatmul.mubr.f32.gmra.mrb[28].mxu0 %v17817_v44  ;;  %v24174_v44 = vld [vmem:[#allocation44_spill] sm:$0xff]  ;;  %v24208_v28 = vld [vmem:[#allocation91_spill] sm:$0xff] }
 0x15d   : > { %13376 = vmatprep.mubr.f32.mxu1 %v24169_v16  ;;  %13679 = vmatprep.mubr.f32.mxu0 %v24105_v4  ;;  %v24175_v4 = vld [vmem:[#allocation45_spill] sm:$0xff]  ;;  %v24209_v16 = vld [vmem:[#allocation92_spill] sm:$0xff] }
 0x160   : > { %13377 = vmatmul.mubr.f32.gmra.mrb[28].mxu1 %v24170_v51  ;;  %13680 = vmatmul.mubr.f32.gmra.mrb[30].mxu0 %v24106_v1  ;;  %v24176_v1 = vld [vmem:[#allocation47_spill] sm:$0xff]  ;;  %v24211_v51 = vld [vmem:[#allocation94_spill] sm:$0xff] }
 0x161   : > { %13379 = vmatprep.mubr.f32.mxu1 %v24171_v11  ;;  %13682 = vmatprep.mubr.f32.mxu0 %v24107_v46  ;;  %v24177_v46 = vld [vmem:[#allocation50_spill] sm:$0xff]  ;;  %v24213_v11 = vld [vmem:[#allocation96_spill] sm:$0xff] }
 0x164   : > { %13380 = vmatmul.mubr.f32.gmra.mrb[30].mxu1 %v24172_v0  ;;  %13683 = vmatmul.mubr.f32.gmra.mrb[32].mxu0 %v24108_v5  ;;  %v24178_v5 = vld [vmem:[#allocation51_spill] sm:$0xff]  ;;  %v24214_v0 = vld [vmem:[#allocation97_spill] sm:$0xff] }
 0x165   : > { %13382 = vmatprep.mubr.f32.mxu1 %v24173_v52  ;;  %13685 = vmatprep.mubr.f32.mxu0 %v24109_v18  ;;  %v24179_v18 = vld [vmem:[#allocation52_spill] sm:$0xff] }
 0x168   : > { %13383 = vmatmul.mubr.f32.gmra.mrb[32].mxu1 %v24174_v44  ;;  %13686 = vmatmul.mubr.f32.gmra.mrb[34].mxu0 %v24110_v3  ;;  %v24180_v3 = vld [vmem:[#allocation55_spill] sm:$0xff] }
 0x169   : > { %13385 = vmatprep.mubr.f32.mxu1 %v24175_v4  ;;  %13688 = vmatprep.mubr.f32.mxu0 %v24111_v8  ;;  %v24181_v8 = vld [vmem:[#allocation57_spill] sm:$0xff]  ;;  %v24218_v4 = vld [vmem:[#allocation36_spill] sm:$0xff] }
 0x16c   : > { %13386 = vmatmul.mubr.f32.gmra.mrb[34].mxu1 %v24176_v1  ;;  %13689 = vmatmul.mubr.f32.gmra.mrb[36].mxu0 %v24112_v41  ;;  %v24182_v41 = vld [vmem:[#allocation61_spill] sm:$0xff]  ;;  %v24219_v1 = vand.u32 4294901760, %v24218_v4 }
 0x16d   : > { %13388 = vmatprep.mubr.f32.mxu1 %v24177_v46  ;;  %13691 = vmatprep.mubr.f32.mxu0 %v24113_v23  ;;  %v24183_v23 = vld [vmem:[#allocation62_spill] sm:$0xff] }
 0x16e   : > { %v18570_v46 = vsub.f32 %v24218_v4, %v24219_v1 }
 0x170   : > { %13389 = vmatmul.mubr.f32.gmra.mrb[36].mxu1 %v24178_v5  ;;  %13692 = vmatmul.mubr.f32.gmra.mrb[38].mxu0 %v24114_v50  ;;  %v24184_v50 = vld [vmem:[#allocation63_spill] sm:$0xff]  ;;  %24220 = vst [vmem:[#allocation59_spill] sm:$0xff] %v18570_v46 }
 0x171   : > { %13391 = vmatprep.mubr.f32.mxu1 %v24179_v18  ;;  %13694 = vmatprep.mubr.f32.mxu0 %v24115_v2  ;;  %v24185_v2 = vld [vmem:[#allocation64_spill] sm:$0xff]  ;;  %v23125_v18 = vand.u32 4294901760, %v18570_v46 }
 0x174   : > { %13392 = vmatmul.mubr.f32.gmra.mrb[38].mxu1 %v24180_v3  ;;  %13695 = vmatmul.mubr.f32.gmra.mrb[40].mxu0 %v24116_v60  ;;  %v24186_v60 = vld [vmem:[#allocation67_spill] sm:$0xff] }
 0x175   : > { %13394 = vmatprep.mubr.f32.mxu1 %v24181_v8  ;;  %13697 = vmatprep.mubr.f32.mxu0 %v24117_v29  ;;  %v24187_v29 = vld [vmem:[#allocation68_spill] sm:$0xff]  ;;  %v4533_v8 = vsub.f32 %v18570_v46, %v23125_v18 }
 0x178   : > { %13395 = vmatmul.mubr.f32.gmra.mrb[40].mxu1 %v24182_v41  ;;  %13698 = vmatmul.mubr.f32.gmra.mrb[42].mxu0 %v24118_v32  ;;  %v24188_v32 = vld [vmem:[#allocation70_spill] sm:$0xff] }
 0x179   : > { %13397 = vmatprep.mubr.f32.mxu1 %v24183_v23  ;;  %13700 = vmatprep.mubr.f32.mxu0 %v24119_v40  ;;  %v24189_v40 = vld [vmem:[#allocation71_spill] sm:$0xff]  ;;  %v4534_v23 = vand.u32 4294901760, %v4533_v8 }
 0x17c   : > { %13398 = vmatmul.mubr.f32.gmra.mrb[42].mxu1 %v24184_v50  ;;  %13701 = vmatmul.mubr.f32.gmra.mrb[44].mxu0 %v24120_v27  ;;  %v24190_v27 = vld [vmem:[#allocation73_spill] sm:$0xff] }
 0x17d   : > { %13400 = vmatprep.mubr.f32.mxu1 %v24185_v2  ;;  %13703 = vmatprep.mubr.f32.mxu0 %v24121_v10  ;;  %v24192_v10 = vld [vmem:[#allocation75_spill] sm:$0xff]  ;;  %v24221_v2 = vld [vmem:[#allocation41_spill] sm:$0xff] }
 0x180   : > { %13401 = vmatmul.mubr.f32.gmra.mrb[44].mxu1 %v24186_v60  ;;  %13704 = vmatmul.mubr.f32.gmra.mrb[46].mxu0 %v24122_v6  ;;  %v24194_v6 = vld [vmem:[#allocation79_spill] sm:$0xff]  ;;  %v24222_v60 = vand.u32 4294901760, %v24221_v2 }
 0x181   : > { %13403 = vmatprep.mubr.f32.mxu1 %v24187_v29  ;;  %13706 = vmatprep.mubr.f32.mxu0 %v17988_v30  ;;  %v24196_v30 = vld [vmem:[#allocation80_spill] sm:$0xff] }
 0x182   : > { %v18586_v29 = vsub.f32 %v24221_v2, %v24222_v60 }
 0x184   : > { %13404 = vmatmul.mubr.f32.gmra.mrb[46].mxu1 %v24188_v32  ;;  %13707 = vmatmul.mubr.f32.gmra.mrb[48].mxu0 %v18001_v39  ;;  %v18525_v39 = vld [vmem:[%s22956_s3 + $0x70] sm:$0xff]  ;;  %v24223_v32 = vld [vmem:[#allocation42_spill] sm:$0xff] }
 0x185   : > { %13406 = vmatprep.mubr.f32.mxu1 %v24189_v40  ;;  %13709 = vmatprep.mubr.f32.mxu0 %v24123_v12  ;;  %v18530_v12 = vld [vmem:[%s22956_s3 + $0x78] sm:$0xff]  ;;  %v3844_v48 = vand.u32 4294901760, %v18525_v39  ;;  %v24224_v40 = vand.u32 4294901760, %v24223_v32 }
 0x186   : > { %v3847_v49 = vand.u32 4294901760, %v18530_v12 }
 0x188   : > { %13407 = vmatmul.mubr.f32.gmra.mrb[48].mxu1 %v24190_v27  ;;  %13710 = vmatmul.mubr.f32.gmra.mrb[50].mxu0 %v24191_v33  ;;  %v18542_v55 = vpack.c.bf16 %v3847_v49, %v3844_v48  ;;  %v18591_v27 = vsub.f32 %v24223_v32, %v24224_v40  ;;  %v24225_v33 = vand.u32 4294901760, %v18308_v63 }
 0x189   : > { %13409 = vmatprep.mubr.f32.mxu1 %v24192_v10  ;;  %13712 = vmatprep.mubr.f32.mxu0 %v24193_v25  ;;  %v24226_v25 = vand.u32 4294901760, %v18317_v19 }
 0x18a   : > { %24201 = vst [vmem:[#allocation56_spill] sm:$0xff] %v18542_v55  ;;  %15319 = vmatprep.subr.bf16.mxu1 %v18542_v55  ;;  %v18596_v10 = vsub.f32 %v18308_v63, %v24225_v33 }
 0x18b   : > { %15321 = vmatpush3.bf16.msra.mxu1 %v18542_v55 }
 0x18c   : > { %13410 = vmatmul.mubr.f32.gmra.mrb[50].mxu1 %v24194_v6  ;;  %13713 = vmatmul.mubr.f32.gmra.mrb[52].mxu0 %v24195_v47  ;;  %v18601_v6 = vsub.f32 %v18317_v19, %v24226_v25  ;;  %v23123_v47 = vand.u32 4294901760, %v18586_v29 }
 0x18d   : > { %13412 = vmatprep.mubr.f32.mxu1 %v24196_v30  ;;  %13715 = vmatprep.mubr.f32.mxu0 %v24197_v26  ;;  %v23122_v30 = vand.u32 4294901760, %v18591_v27  ;;  %v23120_v26 = vand.u32 4294901760, %v18596_v10 }
 0x18e   : > { %v4540_v63 = vsub.f32 %v18586_v29, %v23123_v47 }
 0x18f   : > { %v4547_v19 = vsub.f32 %v18591_v27, %v23122_v30 }
 0x190   : > { %13413 = vmatmul.mubr.f32.gmra.mrb[52].mxu1 %v24198_v45  ;;  %13716 = vmatmul.mubr.f32.gmra.mrb[54].mxu0 %v24199_v62  ;;  %v23119_v45 = vand.u32 4294901760, %v18601_v6  ;;  %v4541_v1 = vand.u32 4294901760, %v4540_v63 }
 0x191   : > { %13415 = vmatprep.mubr.f32.mxu1 %v24200_v15  ;;  %13718 = vmatprep.mubr.f32.mxu0 %v24129_v53  ;;  %v24205_v53 = vld [vmem:[#allocation88_spill] sm:$0xff]  ;;  %v4548_v8 = vand.u32 4294901760, %v4547_v19 }
 0x194   : > { %13416 = vmatmul.mubr.f32.gmra.mrb[54].mxu1 %v24202_v59  ;;  %13719 = vmatmul.mubr.f32.gmra.mrb[56].mxu0 %v18080_v9  ;;  %v24210_v9 = vld [vmem:[#allocation93_spill] sm:$0xff] }
 0x195   : > { %13418 = vmatprep.mubr.f32.mxu1 %v24203_v61  ;;  %13721 = vmatprep.mubr.f32.mxu0 %v18083_v20  ;;  %v24212_v20 = vld [vmem:[#allocation95_spill] sm:$0xff]  ;;  %v18613_v59 = vld [vmem:[%s22955_s2] ss:$0 sm:$0xff]  ;;  %v24227_v61 = vand.u32 4294901760, %v18332_v56 }
 0x198   : > { %13419 = vmatmul.mubr.f32.gmra.mrb[56].mxu1 %v24204_v58  ;;  %13722 = vmatmul.mubr.f32.gmra.mrb[58].mxu0 %v18096_v43  ;;  %v24215_v43 = vld [vmem:[#allocation34_spill] sm:$0xff]  ;;  %v18621_v58 = vsub.f32 %v18332_v56, %v24227_v61 }
 0x199   : > { %13421 = vmatprep.mubr.f32.mxu1 %v24205_v53  ;;  %13724 = vmatprep.mubr.f32.mxu0 %v24206_v57  ;;  %v24216_v52 = vand.u32 4294901760, %v24215_v43  ;;  %v24228_v53 = vand.u32 4294901760, %v18337_v31 }
 0x19b   : > { %v18565_v44 = vsub.f32 %v24215_v43, %v24216_v52  ;;  %v18626_v57 = vsub.f32 %v18337_v31, %v24228_v53 }
 0x19c   : > { %13422 = vmatmul.mubr.f32.gmra.mrb[58].mxu1 %v24207_v38  ;;  %13725 = vmatmul.mubr.f32.gmra.mrb[60].mxu0 %v24208_v28  ;;  %v4554_v38 = vsub.f32 %v18596_v10, %v23120_v26  ;;  %v4561_v28 = vsub.f32 %v18601_v6, %v23119_v45 }
 0x19d   : > { %13424 = vmatprep.mubr.f32.mxu1 %v24209_v16  ;;  %13727 = vmatprep.mubr.f32.mxu0 %v24210_v9  ;;  %24217 = vst [vmem:[#allocation58_spill] sm:$0xff] %v18565_v44  ;;  %v23126_v5 = vand.u32 4294901760, %v18565_v44  ;;  %v24229_v16 = vand.u32 4294901760, %v18356_v36 }
 0x19f   : > { %v4526_v3 = vsub.f32 %v18565_v44, %v23126_v5  ;;  %v18637_v9 = vsub.f32 %v18356_v36, %v24229_v16 }
 0x1a0   : > { %13425 = vmatmul.mubr.f32.gmra.mrb[60].mxu1 %v24211_v51  ;;  %13728 = vmatmul.mubr.f32.gmra.mrb[62].mxu0 %v24212_v20  ;;  %v24230_v20 = vand.u32 4294901760, %v18361_v7 }
 0x1a1   : > { %13427 = vmatprep.mubr.f32.mxu1 %v24213_v11  ;;  %v4527_v41 = vand.u32 4294901760, %v4526_v3  ;;  %v18647_v11 = vsub.f32 %v18380_v42, %v3832_v14  ;;  %v4555_v42 = vand.u32 4294901760, %v4554_v38  ;;  %v4562_v14 = vand.u32 4294901760, %v4561_v28 }
 0x1a2   : > { %v18642_v31 = vsub.f32 %v18361_v7, %v24230_v20  ;;  %v23118_v7 = vand.u32 4294901760, %v18621_v58  ;;  %v23116_v2 = vand.u32 4294901760, %v18637_v9  ;;  %v18670_v28 = vpack.c.bf16 %v4548_v8, %v4541_v1 }
 0x1a3   : > { %v18580_v50 = vpack.c.bf16 %v4534_v23, %v4527_v41  ;;  %v23117_v41 = vand.u32 4294901760, %v18626_v57  ;;  %v23110_v33 = vand.u32 4294901760, %v18647_v11  ;;  %v18672_v16 = vpack.c.bf16 %v4562_v14, %v4555_v42 }
 0x1a4   : > { %13428 = vmatmul.mubr.f32.gmra.mrb[62].mxu1 %v24214_v0  ;;  %v24231_v0 = vand.u32 4294901760, %v18385_v21  ;;  %v23111_v40 = vand.u32 4294901760, %v18642_v31  ;;  %v18695_v42 = vsub.f32 %v18409_v22, %v3841_v35 }
 0x1a5   : > { %15323 = vmatprep.subr.bf16.mxu1 %v18580_v50  ;;  %v4575_v53 = vsub.f32 %v18626_v57, %v23117_v41 }
 0x1a6   : > { %v18652_v43 = vsub.f32 %v18385_v21, %v24231_v0 }
 0x1a8   : > { %v23109_v25 = vand.u32 4294901760, %v18652_v43 }
 0x1f7   : > { %v13636_v62 = vpop.f32.mrb[0].mxu0 }
 0x1f8   : > { %v3332_v15 = vpop.f32.mrb[1].mxu0 }
 0x1fb   : > { %v13336_v56 = vpop.f32.mrb[0].mxu1  ;;  %v13639_v51 = vpop.f32.mrb[2].mxu0 }
 0x1fc   : > { %v15674_v36 = vadd.f32 %v13336_v56, %v18613_v59  ;;  %v1784_v52 = vpop.f32.mrb[1].mxu1  ;;  %v3344_v4 = vpop.f32.mrb[3].mxu0  ;;  %v4582_v56 = vsub.f32 %v18637_v9, %v23116_v2 }
 0x1fd   : > { %v15676_v3 = vadd.f32 %v18613_v59, %v1784_v52  ;;  %v4589_v52 = vsub.f32 %v18642_v31, %v23111_v40 }
 0x1fe   : > { %v15675_v23 = vadd.f32 %v15674_v36, %v13636_v62 }
 0x1ff   : > { %v15677_v60 = vadd.f32 %v15676_v3, %v3332_v15  ;;  %v13339_v21 = vpop.f32.mrb[2].mxu1  ;;  %v13642_v32 = vpop.f32.mrb[4].mxu0  ;;  %v4568_v15 = vsub.f32 %v18621_v58, %v23118_v7  ;;  %v4596_v3 = vsub.f32 %v18647_v11, %v23110_v33 }
 0x200   : > { %16867 = vtanh.f32 %v15675_v23  ;;  %v15678_v63 = vadd.f32 %v13339_v21, %v18613_v59  ;;  %v1798_v19 = vpop.f32.mrb[3].mxu1  ;;  %v3356_v61 = vpop.f32.mrb[5].mxu0  ;;  %v4576_v21 = vand.u32 4294901760, %v4575_v53  ;;  %v18711_v53 = vsub.f32 %v18525_v39, %v3844_v48 }
 0x201   : > { %16869 = vtanh.f32 %v15677_v60  ;;  %v15680_v62 = vadd.f32 %v18613_v59, %v1798_v19  ;;  %v4569_v60 = vand.u32 4294901760, %v4568_v15  ;;  %v4583_v19 = vand.u32 4294901760, %v4582_v56 }
 0x202   : > { %v15679_v38 = vadd.f32 %v15678_v63, %v13639_v51  ;;  %v4603_v51 = vsub.f32 %v18652_v43, %v23109_v25  ;;  %v4597_v33 = vand.u32 4294901760, %v4596_v3  ;;  %v23113_v39 = vand.u32 4294901760, %v18711_v53 }
 0x203   : > { %v15681_v20 = vadd.f32 %v15680_v62, %v3344_v4  ;;  %v13342_v0 = vpop.f32.mrb[4].mxu1  ;;  %v13645_v36 = vpop.f32.mrb[6].mxu0  ;;  %v18690_v4 = vsub.f32 %v18404_v13, %v3838_v34  ;;  %v4590_v34 = vand.u32 4294901760, %v4589_v52  ;;  %v18718_v3 = vpack.c.bf16 %v4576_v21, %v4569_v60 }
 0x204   : > { %16871 = vtanh.f32 %v15679_v38  ;;  %v15682_v1 = vadd.f32 %v13342_v0, %v18613_v59  ;;  %v1812_v8 = vpop.f32.mrb[5].mxu1  ;;  %v3368_v23 = vpop.f32.mrb[7].mxu0  ;;  %v23112_v38 = vand.u32 4294901760, %v18695_v42  ;;  %v4604_v40 = vand.u32 4294901760, %v4603_v51 }
 0x205   : > { %16873 = vtanh.f32 %v15681_v20  ;;  %v15684_v14 = vadd.f32 %v18613_v59, %v1812_v8  ;;  %v23115_v62 = vand.u32 4294901760, %v18690_v4  ;;  %v18727_v60 = vpack.c.bf16 %v4590_v34, %v4583_v19 }
 0x206   : > { %v15683_v63 = vadd.f32 %v15682_v1, %v13642_v32  ;;  %v4617_v15 = vsub.f32 %v18695_v42, %v23112_v38  ;;  %v18743_v19 = vsub.f32 %v18711_v53, %v23113_v39 }
 0x207   : > { %v15685_v0 = vadd.f32 %v15684_v14, %v3356_v61  ;;  %v13345_v25 = vpop.f32.mrb[6].mxu1  ;;  %v13648_v13 = vpop.f32.mrb[8].mxu0  ;;  %v4610_v32 = vsub.f32 %v18690_v4, %v23115_v62 }
 0x208   : > { %16875 = vtanh.f32 %v15683_v63  ;;  %v15686_v35 = vadd.f32 %v13345_v25, %v18613_v59  ;;  %v1826_v22 = vpop.f32.mrb[7].mxu1  ;;  %v3380_v20 = vpop.f32.mrb[9].mxu0  ;;  %v18716_v25 = vsub.f32 %v18530_v12, %v3847_v49  ;;  %v4618_v1 = vand.u32 4294901760, %v4617_v15 }
 0x209   : > { %16877 = vtanh.f32 %v15685_v0  ;;  %v15688_v61 = vadd.f32 %v18613_v59, %v1826_v22  ;;  %v4611_v51 = vand.u32 4294901760, %v4610_v32 }
 0x20a   : > { %v16868_v56 = vpop.eup %16867  ;;  %v15687_v52 = vadd.f32 %v15686_v35, %v13645_v36  ;;  %v23114_v48 = vand.u32 4294901760, %v18716_v25  ;;  %v18733_v35 = vpack.c.bf16 %v4604_v40, %v4597_v33 }
 0x20b   : > { %v16870_v8 = vpop.eup %16869  ;;  %v18720_v14 = vand.u32 4294901760, %v16868_v56  ;;  %v15689_v63 = vadd.f32 %v15688_v61, %v3368_v23  ;;  %v13348_v0 = vpop.f32.mrb[8].mxu1 }
 0x20c   : > { %v13651_v22 = vpop.f32.mrb[10].mxu0  ;;  %v18724_v38 = vand.u32 4294901760, %v16870_v8  ;;  %16879 = vtanh.f32 %v15687_v52  ;;  %v15690_v12 = vadd.f32 %v13348_v0, %v18613_v59  ;;  %v1840_v49 = vpop.f32.mrb[9].mxu1  ;;  %v18738_v52 = vpack.c.bf16 %v4618_v1, %v4611_v51 }
 0x20d   : > { %24232 = vst [vmem:[#allocation60_spill] sm:$0xff] %v18720_v14  ;;  %v3392_v36 = vpop.f32.mrb[11].mxu0  ;;  %v18730_v21 = vsub.f32 %v16868_v56, %v18720_v14  ;;  %16881 = vtanh.f32 %v15689_v63  ;;  %v15692_v23 = vadd.f32 %v18613_v59, %v1840_v49  ;;  %v18751_v33 = vsub.f32 %v18716_v25, %v23114_v48 }
 0x20e   : > { %24233 = vst [vmem:[#allocation65_spill] sm:$0xff] %v18724_v38  ;;  %v16872_v32 = vpop.eup %16871  ;;  %v15691_v15 = vadd.f32 %v15690_v12, %v13648_v13  ;;  %v18736_v61 = vsub.f32 %v16870_v8, %v18724_v38 }
 0x20f   : > { %24234 = vst [vmem:[#allocation66_spill] sm:$0xff] %v18730_v21  ;;  %v16874_v34 = vpop.eup %16873  ;;  %v18745_v56 = vand.u32 4294901760, %v16872_v32  ;;  %v15693_v63 = vadd.f32 %v15692_v23, %v3380_v20  ;;  %v13351_v0 = vpop.f32.mrb[10].mxu1  ;;  %v23121_v40 = vand.u32 4294901760, %v18730_v21 }
 0x210   : > { %24235 = vst [vmem:[#allocation69_spill] sm:$0xff] %v18736_v61  ;;  %v13654_v49 = vpop.f32.mrb[12].mxu0  ;;  %v18753_v13 = vand.u32 4294901760, %v16874_v34  ;;  %16883 = vtanh.f32 %v15691_v15  ;;  %v15694_v51 = vadd.f32 %v13351_v0, %v18613_v59  ;;  %v1854_v1 = vpop.f32.mrb[11].mxu1  ;;  %v23124_v12 = vand.u32 4294901760, %v18736_v61 }
 0x211   : > { %24236 = vst [vmem:[#allocation72_spill] sm:$0xff] %v18745_v56  ;;  %v3404_v8 = vpop.f32.mrb[13].mxu0  ;;  %16885 = vtanh.f32 %v15693_v63  ;;  %v15696_v20 = vadd.f32 %v18613_v59, %v1854_v1  ;;  %v3895_v23 = vsub.f32 %v18730_v21, %v23121_v40  ;;  %v18762_v39 = vsub.f32 %v16872_v32, %v18745_v56 }
 0x212   : > { %24237 = vst [vmem:[#allocation84_spill] sm:$0xff] %v18753_v13  ;;  %v16876_v48 = vpop.eup %16875  ;;  %v15695_v62 = vadd.f32 %v15694_v51, %v13651_v22  ;;  %v3885_v15 = vsub.f32 %v18736_v61, %v23124_v12  ;;  %v18768_v0 = vsub.f32 %v16874_v34, %v18753_v13  ;;  %v4625_v63 = vand.u32 4294901760, %v18743_v19 }
 0x213   : > { %24238 = vst [vmem:[#allocation5_spill] sm:$0xff] %v18762_v39  ;;  %v16878_v2 = vpop.eup %16877  ;;  %v18771_v1 = vand.u32 4294901760, %v16876_v48  ;;  %v15697_v41 = vadd.f32 %v15696_v20, %v3392_v36  ;;  %v13354_v7 = vpop.f32.mrb[12].mxu1  ;;  %v3896_v26 = vand.u32 4294901760, %v3895_v23  ;;  %v23127_v32 = vand.u32 4294901760, %v18762_v39 }
 0x214   : > { %24239 = vst [vmem:[#allocation6_spill] sm:$0xff] %v18768_v0  ;;  %v13657_v45 = vpop.f32.mrb[14].mxu0  ;;  %v18774_v40 = vand.u32 4294901760, %v16878_v2  ;;  %16887 = vtanh.f32 %v15695_v62  ;;  %v15698_v22 = vadd.f32 %v13354_v7, %v18613_v59  ;;  %v1868_v51 = vpop.f32.mrb[13].mxu1  ;;  %v3886_v34 = vand.u32 4294901760, %v3885_v15 }
 0x215   : > { %24240 = vst [vmem:[#allocation7_spill] sm:$0xff] %v18771_v1  ;;  %v3416_v30 = vpop.f32.mrb[15].mxu0  ;;  %16889 = vtanh.f32 %v15697_v41  ;;  %v15700_v19 = vadd.f32 %v18613_v59, %v1868_v51  ;;  %v23128_v47 = vand.u32 4294901760, %v18768_v0  ;;  %v3915_v36 = vsub.f32 %v18762_v39, %v23127_v32 }
 0x216   : > { %24241 = vst [vmem:[#allocation8_spill] sm:$0xff] %v18774_v40  ;;  %v16880_v20 = vpop.eup %16879  ;;  %v15699_v23 = vadd.f32 %v15698_v22, %v13654_v49  ;;  %13762 = vmatprep.mubr.f32.mxu1 %v3886_v34  ;;  %v18783_v12 = vsub.f32 %v16878_v2, %v18774_v40  ;;  %v18786_v7 = vsub.f32 %v16876_v48, %v18771_v1  ;;  %v4632_v62 = vand.u32 4294901760, %v18751_v33 }
 0x217   : > { %v16882_v41 = vpop.eup %16881  ;;  %v18789_v15 = vand.u32 4294901760, %v16880_v20  ;;  %v15701_v51 = vadd.f32 %v15700_v19, %v3404_v8  ;;  %v13357_v18 = vpop.f32.mrb[14].mxu1  ;;  %13763 = vmatmul.mubr.f32.vlgmr.msra.gmra.mrb[64].mxu1 %v3896_v26  ;;  %v3905_v49 = vsub.f32 %v18768_v0, %v23128_v47  ;;  %v3916_v22 = vand.u32 4294901760, %v3915_v36 }
 0x218   : > { %24242 = vst [vmem:[#allocation9_spill] sm:$0xff] %v18783_v12  ;;  %24243 = vst [vmem:[#allocation10_spill] sm:$0xff] %v18786_v7  ;;  %v13660_v5 = vpop.f32.mrb[16].mxu0  ;;  %v18794_v34 = vand.u32 4294901760, %v16882_v41  ;;  %16891 = vtanh.f32 %v15699_v23  ;;  %v15702_v2 = vadd.f32 %v13357_v18, %v18613_v59  ;;  %15325 = vmatpush3.bf16.msra.mxu1 %v18580_v50  ;;  %v1882_v48 = vpop.f32.mrb[15].mxu1  ;;  %v23133_v32 = vand.u32 4294901760, %v18783_v12 }
 0x219   : > { %24244 = vst [vmem:[#allocation11_spill] sm:$0xff] %v18789_v15  ;;  %v3428_v33 = vpop.f32.mrb[17].mxu0  ;;  %16893 = vtanh.f32 %v15701_v51  ;;  %v15704_v8 = vadd.f32 %v18613_v59, %v1882_v48  ;;  %v3906_v26 = vand.u32 4294901760, %v3905_v49  ;;  %15327 = vmatprep.subr.bf16.mxu1 %v18670_v28  ;;  %v18809_v23 = vsub.f32 %v16880_v20, %v18789_v15 }
 0x21a   : > { %24245 = vst [vmem:[#allocation12_spill] sm:$0xff] %v18794_v34  ;;  %v16884_v36 = vpop.eup %16883  ;;  %v15703_v47 = vadd.f32 %v15702_v2, %v13657_v45  ;;  %v3925_v18 = vsub.f32 %v18783_v12, %v23133_v32  ;;  %v18806_v50 = vsub.f32 %v16882_v41, %v18794_v34  ;;  %v24249_v24 = vand.u32 4294901760, %v18786_v7 }
 0x21b   : > { %24247 = vst [vmem:[#allocation14_spill] sm:$0xff] %v18809_v23  ;;  %v16886_v51 = vpop.eup %16885  ;;  %v18811_v55 = vand.u32 4294901760, %v16884_v36  ;;  %v15705_v49 = vadd.f32 %v15704_v8, %v3416_v30  ;;  %13765 = vmatprep.mubr.f32.mxu1 %v3906_v26  ;;  %v13360_v48 = vpop.f32.mrb[16].mxu1  ;;  %v18816_v2 = vpack.c.bf16 %v4632_v62, %v4625_v63  ;;  %v23145_v62 = vand.u32 4294901760, %v18809_v23 }
 0x21c   : > { %24246 = vst [vmem:[#allocation13_spill] sm:$0xff] %v18806_v50  ;;  %v13663_v19 = vpop.f32.mrb[18].mxu0  ;;  %v3935_v45 = vsub.f32 %v18786_v7, %v24249_v24  ;;  %v18818_v32 = vand.u32 4294901760, %v16886_v51  ;;  %16895 = vtanh.f32 %v15703_v47  ;;  %v15706_v41 = vadd.f32 %v13360_v48, %v18613_v59  ;;  %13766 = vmatmul.mubr.f32.gmra.mrb[66].mxu1 %v3916_v22  ;;  %v1896_v20 = vpop.f32.mrb[17].mxu1 }
 0x21d   : > { %24248 = vst [vmem:[#allocation15_spill] sm:$0xff] %v18811_v55  ;;  %v3440_v17 = vpop.f32.mrb[19].mxu0  ;;  %v3926_v54 = vand.u32 4294901760, %v3925_v18  ;;  %16897 = vtanh.f32 %v15705_v49  ;;  %v15708_v30 = vadd.f32 %v18613_v59, %v1896_v20  ;;  %v23138_v26 = vand.u32 4294901760, %v18806_v50  ;;  %15329 = vmatpush3.bf16.msra.mxu1 %v18670_v28 }
 0x21e   : > { %24250 = vst [vmem:[#allocation16_spill] sm:$0xff] %v18818_v32  ;;  %v3936_v8 = vand.u32 4294901760, %v3935_v45  ;;  %v16888_v24 = vpop.eup %16887  ;;  %v15707_v63 = vadd.f32 %v15706_v41, %v13660_v5  ;;  %v18826_v47 = vsub.f32 %v16886_v51, %v18818_v32  ;;  %v18829_v22 = vsub.f32 %v16884_v36, %v18811_v55  ;;  %15331 = vmatprep.subr.bf16.mxu1 %v18672_v16 }
 0x21f   : > { %13768 = vmatprep.mubr.f32.mxu1 %v3926_v54  ;;  %v16890_v18 = vpop.eup %16889  ;;  %v18832_v49 = vand.u32 4294901760, %v16888_v24  ;;  %v15709_v48 = vadd.f32 %v15708_v30, %v3428_v33  ;;  %v13363_v45 = vpop.f32.mrb[18].mxu1  ;;  %v3945_v54 = vsub.f32 %v18806_v50, %v23138_v26  ;;  %v18839_v5 = vpack.c.bf16 %v18570_v46, %v18565_v44 }
 0x220   : > { %24251 = vst [vmem:[#allocation17_spill] sm:$0xff] %v18826_v47  ;;  %24252 = vst [vmem:[#allocation18_spill] sm:$0xff] %v18829_v22  ;;  %v13666_v20 = vpop.f32.mrb[20].mxu0  ;;  %v18841_v28 = vand.u32 4294901760, %v16890_v18  ;;  %16899 = vtanh.f32 %v15707_v63  ;;  %v15710_v36 = vadd.f32 %v13363_v45, %v18613_v59  ;;  %13769 = vmatmul.mubr.f32.gmra.mrb[68].mxu1 %v3936_v8  ;;  %v1910_v51 = vpop.f32.mrb[19].mxu1  ;;  %v3955_v33 = vsub.f32 %v18809_v23, %v23145_v62 }
 0x221   : > { %24253 = vst [vmem:[#allocation19_spill] sm:$0xff] %v18832_v49  ;;  %v3452_v41 = vpop.f32.mrb[21].mxu0  ;;  %16901 = vtanh.f32 %v15709_v48  ;;  %v15712_v30 = vadd.f32 %v18613_v59, %v1910_v51  ;;  %v3946_v26 = vand.u32 4294901760, %v3945_v54  ;;  %v23148_v37 = vand.u32 4294901760, %v18826_v47  ;;  %15333 = vmatpush3.bf16.msra.mxu1 %v18672_v16 }
 0x222   : > { %24254 = vst [vmem:[#allocation20_spill] sm:$0xff] %v18841_v28  ;;  %v16892_v46 = vpop.eup %16891  ;;  %v15711_v44 = vadd.f32 %v15710_v36, %v13663_v19  ;;  %v3956_v63 = vand.u32 4294901760, %v3955_v33  ;;  %v18852_v8 = vsub.f32 %v16890_v18, %v18841_v28  ;;  %15335 = vmatprep.subr.bf16.mxu1 %v18718_v3  ;;  %v18861_v19 = vsub.f32 %v16888_v24, %v18832_v49 }
 0x223   : > { %v16894_v50 = vpop.eup %16893  ;;  %v18855_v62 = vand.u32 4294901760, %v16892_v46  ;;  %v15713_v48 = vadd.f32 %v15712_v30, %v3440_v17  ;;  %13771 = vmatprep.mubr.f32.mxu1 %v3946_v26  ;;  %v13366_v54 = vpop.f32.mrb[20].mxu1  ;;  %v3965_v16 = vsub.f32 %v18826_v47, %v23148_v37  ;;  %v24259_v17 = vand.u32 4294901760, %v18829_v22 }
 0x224   : > { %24255 = vst [vmem:[#allocation21_spill] sm:$0xff] %v18852_v8  ;;  %v13669_v51 = vpop.f32.mrb[22].mxu0  ;;  %24257 = vst [vmem:[#allocation23_spill] sm:$0xff] %v18861_v19  ;;  %v18863_v36 = vand.u32 4294901760, %v16894_v50  ;;  %16903 = vtanh.f32 %v15711_v44  ;;  %v15714_v18 = vadd.f32 %v13366_v54, %v18613_v59  ;;  %13772 = vmatmul.mubr.f32.gmra.mrb[70].mxu1 %v3956_v63  ;;  %v1924_v33 = vpop.f32.mrb[21].mxu1  ;;  %v23155_v37 = vand.u32 4294901760, %v18852_v8 }
 0x225   : > { %24256 = vst [vmem:[#allocation22_spill] sm:$0xff] %v18855_v62  ;;  %v3464_v45 = vpop.f32.mrb[23].mxu0  ;;  %v3975_v26 = vsub.f32 %v18829_v22, %v24259_v17  ;;  %16905 = vtanh.f32 %v15713_v48  ;;  %v15716_v30 = vadd.f32 %v18613_v59, %v1924_v33  ;;  %v3966_v23 = vand.u32 4294901760, %v3965_v16  ;;  %15337 = vmatpush3.bf16.msra.mxu1 %v18718_v3 }
 0x226   : > { %24258 = vst [vmem:[#allocation24_spill] sm:$0xff] %v18863_v36  ;;  %v16896_v24 = vpop.eup %16895  ;;  %v15715_v47 = vadd.f32 %v15714_v18, %v13666_v20  ;;  %v18874_v63 = vsub.f32 %v16894_v50, %v18863_v36  ;;  %15339 = vmatprep.subr.bf16.mxu1 %v18727_v60  ;;  %v3985_v3 = vsub.f32 %v18852_v8, %v23155_v37 }
 0x227   : > { %v3976_v44 = vand.u32 4294901760, %v3975_v26  ;;  %v16898_v7 = vpop.eup %16897  ;;  %v18877_v17 = vand.u32 4294901760, %v16896_v24  ;;  %v15717_v48 = vadd.f32 %v15716_v30, %v3452_v41  ;;  %13774 = vmatprep.mubr.f32.mxu1 %v3966_v23  ;;  %v13369_v16 = vpop.f32.mrb[22].mxu1  ;;  %v18883_v20 = vsub.f32 %v16892_v46, %v18855_v62 }
 0x228   : > { %24260 = vst [vmem:[#allocation25_spill] sm:$0xff] %v18874_v63  ;;  %v13672_v33 = vpop.f32.mrb[24].mxu0  ;;  %v18885_v18 = vand.u32 4294901760, %v16898_v7  ;;  %16907 = vtanh.f32 %v15715_v47  ;;  %v15718_v50 = vadd.f32 %v13369_v16, %v18613_v59  ;;  %v1938_v26 = vpop.f32.mrb[23].mxu1  ;;  %v24264_v41 = vand.u32 4294901760, %v18861_v19 }
 0x229   : > { %24261 = vst [vmem:[#allocation26_spill] sm:$0xff] %v18877_v17  ;;  %24262 = vst [vmem:[#allocation27_spill] sm:$0xff] %v18883_v20  ;;  %13775 = vmatmul.mubr.f32.gmra.mrb[72].mxu1 %v3976_v44  ;;  %v3476_v54 = vpop.f32.mrb[25].mxu0  ;;  %16909 = vtanh.f32 %v15717_v48  ;;  %v15720_v30 = vadd.f32 %v18613_v59, %v1938_v26  ;;  %v3986_v22 = vand.u32 4294901760, %v3985_v3  ;;  %v23162_v37 = vand.u32 4294901760, %v18874_v63 }
 0x22a   : > { %24263 = vst [vmem:[#allocation28_spill] sm:$0xff] %v18885_v18  ;;  %v3995_v23 = vsub.f32 %v18861_v19, %v24264_v41  ;;  %15341 = vmatpush3.bf16.msra.mxu1 %v18727_v60  ;;  %v16900_v46 = vpop.eup %16899  ;;  %v15719_v8 = vadd.f32 %v15718_v50, %v13669_v51  ;;  %v18896_v44 = vsub.f32 %v16898_v7, %v18885_v18 }
 0x22b   : > { %15343 = vmatprep.subr.bf16.mxu1 %v18733_v35  ;;  %v16902_v12 = vpop.eup %16901  ;;  %v18899_v41 = vand.u32 4294901760, %v16900_v46  ;;  %v15721_v48 = vadd.f32 %v15720_v30, %v3464_v45  ;;  %13777 = vmatprep.mubr.f32.mxu1 %v3986_v22  ;;  %v13372_v3 = vpop.f32.mrb[24].mxu1  ;;  %v4005_v60 = vsub.f32 %v18874_v63, %v23162_v37  ;;  %v18905_v51 = vsub.f32 %v16896_v24, %v18877_v17 }
 0x22c   : > { %v3996_v47 = vand.u32 4294901760, %v3995_v23  ;;  %24265 = vst [vmem:[#allocation29_spill] sm:$0xff] %v18896_v44  ;;  %v13675_v26 = vpop.f32.mrb[26].mxu0  ;;  %v18907_v50 = vand.u32 4294901760, %v16902_v12  ;;  %16911 = vtanh.f32 %v15719_v8  ;;  %v15722_v7 = vadd.f32 %v13372_v3, %v18613_v59  ;;  %v1952_v23 = vpop.f32.mrb[25].mxu1 }
 0x22d   : > { %24266 = vst [vmem:[#allocation30_spill] sm:$0xff] %v18899_v41  ;;  %24267 = vst [vmem:[#allocation31_spill] sm:$0xff] %v18905_v51  ;;  %v3488_v16 = vpop.f32.mrb[27].mxu0  ;;  %v24269_v45 = vand.u32 4294901760, %v18883_v20  ;;  %16913 = vtanh.f32 %v15721_v48  ;;  %v15724_v30 = vadd.f32 %v18613_v59, %v1952_v23  ;;  %v4006_v19 = vand.u32 4294901760, %v4005_v60 }
 0x22e   : > { %24268 = vst [vmem:[#allocation32_spill] sm:$0xff] %v18907_v50  ;;  %13778 = vmatmul.mubr.f32.gmra.mrb[74].mxu1 %v3996_v47  ;;  %v23169_v37 = vand.u32 4294901760, %v18896_v44  ;;  %v16904_v24 = vpop.eup %16903  ;;  %v15723_v63 = vadd.f32 %v15722_v7, %v13672_v33  ;;  %v18918_v47 = vsub.f32 %v16902_v12, %v18907_v50  ;;  %v18927_v33 = vsub.f32 %v16900_v46, %v18899_v41 }
 0x22f   : > { %v4015_v22 = vsub.f32 %v18883_v20, %v24269_v45  ;;  %15345 = vmatpush3.bf16.msra.mxu1 %v18733_v35  ;;  %v16906_v39 = vpop.eup %16905  ;;  %v18921_v45 = vand.u32 4294901760, %v16904_v24  ;;  %v15725_v48 = vadd.f32 %v15724_v30, %v3476_v54  ;;  %13780 = vmatprep.mubr.f32.mxu1 %v4006_v19  ;;  %v13375_v60 = vpop.f32.mrb[26].mxu1  ;;  %v24274_v54 = vand.u32 4294901760, %v18905_v51 }
 0x230   : > { %24270 = vst [vmem:[#allocation33_spill] sm:$0xff] %v18918_v47  ;;  %15347 = vmatprep.subr.bf16.mxu1 %v18738_v52  ;;  %v13678_v23 = vpop.f32.mrb[28].mxu0  ;;  %v4025_v35 = vsub.f32 %v18896_v44, %v23169_v37  ;;  %24272 = vst [vmem:[#allocation38_spill] sm:$0xff] %v18927_v33  ;;  %v18929_v7 = vand.u32 4294901760, %v16906_v39  ;;  %16915 = vtanh.f32 %v15723_v63  ;;  %v15726_v12 = vadd.f32 %v13375_v60, %v18613_v59 }
 0x231   : > { %v4016_v8 = vand.u32 4294901760, %v4015_v22  ;;  %24271 = vst [vmem:[#allocation35_spill] sm:$0xff] %v18921_v45  ;;  %v1966_v22 = vpop.f32.mrb[27].mxu1  ;;  %v3500_v3 = vpop.f32.mrb[29].mxu0  ;;  %v4035_v19 = vsub.f32 %v18905_v51, %v24274_v54  ;;  %16917 = vtanh.f32 %v15725_v48  ;;  %v23176_v37 = vand.u32 4294901760, %v18918_v47 }
 0x232   : > { %24273 = vst [vmem:[#allocation39_spill] sm:$0xff] %v18929_v7  ;;  %v15728_v30 = vadd.f32 %v18613_v59, %v1966_v22  ;;  %v4026_v20 = vand.u32 4294901760, %v4025_v35  ;;  %v16908_v46 = vpop.eup %16907  ;;  %v15727_v44 = vadd.f32 %v15726_v12, %v13675_v26  ;;  %v18949_v26 = vsub.f32 %v16904_v24, %v18921_v45 }
 0x233   : > { %13781 = vmatmul.mubr.f32.gmra.mrb[76].mxu1 %v4016_v8  ;;  %v4036_v63 = vand.u32 4294901760, %v4035_v19  ;;  %v18940_v8 = vsub.f32 %v16906_v39, %v18929_v7  ;;  %v16910_v0 = vpop.eup %16909  ;;  %v18943_v54 = vand.u32 4294901760, %v16908_v46  ;;  %v13378_v35 = vpop.f32.mrb[28].mxu1 }
 0x234   : > { %15349 = vmatpush3.bf16.msra.mxu1 %v18738_v52  ;;  %v15729_v48 = vadd.f32 %v15728_v30, %v3488_v16  ;;  %13783 = vmatprep.mubr.f32.mxu1 %v4026_v20  ;;  %v13681_v22 = vpop.f32.mrb[30].mxu0  ;;  %v4045_v52 = vsub.f32 %v18918_v47, %v23176_v37  ;;  %24277 = vst [vmem:[#allocation45_spill] sm:$0xff] %v18949_v26  ;;  %v18951_v12 = vand.u32 4294901760, %v16910_v0  ;;  %16919 = vtanh.f32 %v15727_v44  ;;  %v1980_v19 = vpop.f32.mrb[29].mxu1 }
 0x235   : > { %24275 = vst [vmem:[#allocation40_spill] sm:$0xff] %v18940_v8  ;;  %15351 = vmatprep.subr.bf16.mxu1 %v18816_v2  ;;  %24276 = vst [vmem:[#allocation44_spill] sm:$0xff] %v18943_v54  ;;  %v15730_v39 = vadd.f32 %v13378_v35, %v18613_v59  ;;  %v3512_v60 = vpop.f32.mrb[31].mxu0  ;;  %v24279_v16 = vand.u32 4294901760, %v18927_v33  ;;  %v15732_v30 = vadd.f32 %v18613_v59, %v1980_v19  ;;  %v23183_v37 = vand.u32 4294901760, %v18940_v8 }
 0x236   : > { %24278 = vst [vmem:[#allocation47_spill] sm:$0xff] %v18951_v12  ;;  %16921 = vtanh.f32 %v15729_v48  ;;  %v4046_v51 = vand.u32 4294901760, %v4045_v52  ;;  %v16912_v24 = vpop.eup %16911 }
 0x237   : > { %13784 = vmatmul.mubr.f32.gmra.mrb[78].mxu1 %v4036_v63  ;;  %v4055_v20 = vsub.f32 %v18927_v33, %v24279_v16  ;;  %v15731_v47 = vadd.f32 %v15730_v39, %v13678_v23  ;;  %v18962_v63 = vsub.f32 %v16910_v0, %v18951_v12  ;;  %v16914_v21 = vpop.eup %16913  ;;  %v18965_v16 = vand.u32 4294901760, %v16912_v24  ;;  %v13381_v52 = vpop.f32.mrb[30].mxu1 }
 0x238   : > { %15353 = vmatpush3.bf16.msra.mxu1 %v18816_v2  ;;  %v15733_v48 = vadd.f32 %v15732_v30, %v3500_v3  ;;  %13786 = vmatprep.mubr.f32.mxu1 %v4046_v51  ;;  %v13684_v19 = vpop.f32.mrb[32].mxu0  ;;  %v4065_v2 = vsub.f32 %v18940_v8, %v23183_v37  ;;  %v18971_v23 = vsub.f32 %v16908_v46, %v18943_v54  ;;  %v18973_v39 = vand.u32 4294901760, %v16914_v21 }
 0x239   : > { %v4056_v44 = vand.u32 4294901760, %v4055_v20  ;;  %24280 = vst [vmem:[#allocation50_spill] sm:$0xff] %v18962_v63  ;;  %15355 = vmatprep.subr.bf16.mxu1 %v18839_v5  ;;  %24281 = vst [vmem:[#allocation51_spill] sm:$0xff] %v18965_v16  ;;  %16923 = vtanh.f32 %v15731_v47  ;;  %v15734_v0 = vadd.f32 %v13381_v52, %v18613_v59  ;;  %v1994_v20 = vpop.f32.mrb[31].mxu1  ;;  %v3524_v35 = vpop.f32.mrb[33].mxu0  ;;  %v24284_v3 = vand.u32 4294901760, %v18949_v26 }
 0x23a   : > { %24282 = vst [vmem:[#allocation52_spill] sm:$0xff] %v18971_v23  ;;  %24283 = vst [vmem:[#allocation55_spill] sm:$0xff] %v18973_v39  ;;  %16925 = vtanh.f32 %v15733_v48  ;;  %v15736_v30 = vadd.f32 %v18613_v59, %v1994_v20  ;;  %v4066_v33 = vand.u32 4294901760, %v4065_v2  ;;  %v23192_v37 = vand.u32 4294901760, %v18962_v63  ;;  %v16916_v46 = vpop.eup %16915 }
 0x23b   : > { %13787 = vmatmul.mubr.f32.gmra.mrb[80].mxu1 %v4056_v44  ;;  %v4075_v51 = vsub.f32 %v18949_v26, %v24284_v3  ;;  %v15735_v8 = vadd.f32 %v15734_v0, %v13681_v22  ;;  %v23201_v47 = vand.u32 4294901760, %v18971_v23  ;;  %v18983_v52 = vsub.f32 %v16914_v21, %v18973_v39  ;;  %v16918_v44 = vpop.eup %16917  ;;  %v13384_v3 = vpop.f32.mrb[32].mxu1 }
 0x23c   : > { %v18985_v54 = vand.u32 4294901760, %v16916_v46  ;;  %v15737_v12 = vadd.f32 %v15736_v30, %v3512_v60  ;;  %13789 = vmatprep.mubr.f32.mxu1 %v4066_v33  ;;  %v13687_v48 = vpop.f32.mrb[34].mxu0  ;;  %v4085_v2 = vsub.f32 %v18962_v63, %v23192_v37  ;;  %v18991_v20 = vsub.f32 %v16912_v24, %v18965_v16  ;;  %v2008_v0 = vpop.f32.mrb[33].mxu1 }
 0x23d   : > { %v4076_v61 = vand.u32 4294901760, %v4075_v51  ;;  %24285 = vst [vmem:[#allocation57_spill] sm:$0xff] %v18983_v52  ;;  %v18993_v22 = vand.u32 4294901760, %v16918_v44  ;;  %16927 = vtanh.f32 %v15735_v8  ;;  %v15738_v21 = vadd.f32 %v13384_v3, %v18613_v59  ;;  %v3536_v51 = vpop.f32.mrb[35].mxu0 }
 0x23e   : > { %24286 = vst [vmem:[#allocation61_spill] sm:$0xff] %v18985_v54  ;;  %24287 = vst [vmem:[#allocation62_spill] sm:$0xff] %v18991_v20  ;;  %v4095_v33 = vsub.f32 %v18971_v23, %v23201_v47  ;;  %16929 = vtanh.f32 %v15737_v12  ;;  %v15740_v60 = vadd.f32 %v18613_v59, %v2008_v0  ;;  %v4086_v30 = vand.u32 4294901760, %v4085_v2  ;;  %v16920_v24 = vpop.eup %16919 }
 0x23f   : > { %24288 = vst [vmem:[#allocation63_spill] sm:$0xff] %v18993_v22  ;;  %13790 = vmatmul.mubr.f32.gmra.mrb[82].mxu1 %v4076_v61  ;;  %v23202_v37 = vand.u32 4294901760, %v18983_v52  ;;  %v15739_v63 = vadd.f32 %v15738_v21, %v13684_v19  ;;  %v23211_v8 = vand.u32 4294901760, %v18991_v20  ;;  %v19003_v3 = vsub.f32 %v16918_v44, %v18993_v22  ;;  %v13387_v47 = vpop.f32.mrb[34].mxu1  ;;  %v13690_v12 = vpop.f32.mrb[36].mxu0 }
 0x240   : > { %v4096_v26 = vand.u32 4294901760, %v4095_v33  ;;  %v16922_v61 = vpop.eup %16921  ;;  %v19005_v16 = vand.u32 4294901760, %v16920_v24  ;;  %v15741_v39 = vadd.f32 %v15740_v60, %v3524_v35  ;;  %13792 = vmatprep.mubr.f32.mxu1 %v4086_v30  ;;  %v19011_v0 = vsub.f32 %v16916_v46, %v18985_v54  ;;  %v2022_v21 = vpop.f32.mrb[35].mxu1 }
 0x241   : > { %24289 = vst [vmem:[#allocation64_spill] sm:$0xff] %v19003_v3  ;;  %v4105_v2 = vsub.f32 %v18983_v52, %v23202_v37  ;;  %v19013_v19 = vand.u32 4294901760, %v16922_v61  ;;  %16931 = vtanh.f32 %v15739_v63  ;;  %v15742_v44 = vadd.f32 %v13387_v47, %v18613_v59  ;;  %v3548_v33 = vpop.f32.mrb[37].mxu0 }
 0x242   : > { %24290 = vst [vmem:[#allocation67_spill] sm:$0xff] %v19005_v16  ;;  %24291 = vst [vmem:[#allocation68_spill] sm:$0xff] %v19011_v0  ;;  %v4115_v35 = vsub.f32 %v18991_v20, %v23211_v8  ;;  %16933 = vtanh.f32 %v15741_v39  ;;  %v15744_v60 = vadd.f32 %v18613_v59, %v2022_v21  ;;  %v23212_v37 = vand.u32 4294901760, %v19003_v3 }
 0x243   : > { %24292 = vst [vmem:[#allocation70_spill] sm:$0xff] %v19013_v19  ;;  %13793 = vmatmul.mubr.f32.gmra.mrb[84].mxu1 %v4096_v26  ;;  %v4106_v30 = vand.u32 4294901760, %v4105_v2  ;;  %v16924_v46 = vpop.eup %16923  ;;  %v15743_v52 = vadd.f32 %v15742_v44, %v13687_v48  ;;  %v23221_v63 = vand.u32 4294901760, %v19011_v0  ;;  %v19023_v47 = vsub.f32 %v16922_v61, %v19013_v19  ;;  %v13390_v8 = vpop.f32.mrb[36].mxu1 }
 0x244   : > { %v4116_v23 = vand.u32 4294901760, %v4115_v35  ;;  %v16926_v26 = vpop.eup %16925  ;;  %v19025_v54 = vand.u32 4294901760, %v16924_v46  ;;  %v15745_v22 = vadd.f32 %v15744_v60, %v3536_v51  ;;  %v13693_v39 = vpop.f32.mrb[38].mxu0  ;;  %v4125_v2 = vsub.f32 %v19003_v3, %v23212_v37 }
 0x245   : > { %24293 = vst [vmem:[#allocation71_spill] sm:$0xff] %v19023_v47  ;;  %13795 = vmatprep.mubr.f32.mxu1 %v4106_v30  ;;  %v19031_v21 = vsub.f32 %v16920_v24, %v19005_v16  ;;  %v19033_v48 = vand.u32 4294901760, %v16926_v26  ;;  %16935 = vtanh.f32 %v15743_v52  ;;  %v15746_v61 = vadd.f32 %v13390_v8, %v18613_v59  ;;  %v2036_v44 = vpop.f32.mrb[37].mxu1  ;;  %v3560_v35 = vpop.f32.mrb[39].mxu0 }
 0x246   : > { %24294 = vst [vmem:[#allocation73_spill] sm:$0xff] %v19025_v54  ;;  %v4135_v51 = vsub.f32 %v19011_v0, %v23221_v63  ;;  %16937 = vtanh.f32 %v15745_v22  ;;  %v15748_v60 = vadd.f32 %v18613_v59, %v2036_v44  ;;  %v4126_v30 = vand.u32 4294901760, %v4125_v2 }
 0x247   : > { %24295 = vst [vmem:[#allocation74_spill] sm:$0xff] %v19031_v21  ;;  %24296 = vst [vmem:[#allocation75_spill] sm:$0xff] %v19033_v48  ;;  %13796 = vmatmul.mubr.f32.gmra.mrb[86].mxu1 %v4116_v23  ;;  %v23222_v37 = vand.u32 4294901760, %v19023_v47  ;;  %v16928_v24 = vpop.eup %16927  ;;  %v15747_v3 = vadd.f32 %v15746_v61, %v13690_v12  ;;  %v23231_v52 = vand.u32 4294901760, %v19031_v21  ;;  %v19043_v8 = vsub.f32 %v16926_v26, %v19033_v48  ;;  %v13393_v63 = vpop.f32.mrb[38].mxu1 }
 0x248   : > { %v4136_v20 = vand.u32 4294901760, %v4135_v51  ;;  %v16930_v23 = vpop.eup %16929  ;;  %v19045_v16 = vand.u32 4294901760, %v16928_v24  ;;  %v15749_v19 = vadd.f32 %v15748_v60, %v3548_v33  ;;  %13798 = vmatprep.mubr.f32.mxu1 %v4126_v30  ;;  %v13696_v22 = vpop.f32.mrb[40].mxu0  ;;  %v19051_v44 = vsub.f32 %v16924_v46, %v19025_v54 }
 0x249   : > { %24297 = vst [vmem:[#allocation76_spill] sm:$0xff] %v19043_v8  ;;  %v4145_v2 = vsub.f32 %v19023_v47, %v23222_v37  ;;  %v19053_v12 = vand.u32 4294901760, %v16930_v23  ;;  %16939 = vtanh.f32 %v15747_v3  ;;  %v15750_v26 = vadd.f32 %v13393_v63, %v18613_v59  ;;  %v2050_v61 = vpop.f32.mrb[39].mxu1  ;;  %v3572_v51 = vpop.f32.mrb[41].mxu0 }
 0x24a   : > { %24298 = vst [vmem:[#allocation79_spill] sm:$0xff] %v19045_v16  ;;  %24299 = vst [vmem:[#allocation77_spill] sm:$0xff] %v19051_v44  ;;  %v4155_v33 = vsub.f32 %v19031_v21, %v23231_v52  ;;  %16941 = vtanh.f32 %v15749_v19  ;;  %v15752_v60 = vadd.f32 %v18613_v59, %v2050_v61  ;;  %v23232_v37 = vand.u32 4294901760, %v19043_v8 }
 0x24b   : > { %24300 = vst [vmem:[#allocation80_spill] sm:$0xff] %v19053_v12  ;;  %13799 = vmatmul.mubr.f32.gmra.mrb[88].mxu1 %v4136_v20  ;;  %v4146_v30 = vand.u32 4294901760, %v4145_v2  ;;  %v16932_v46 = vpop.eup %16931  ;;  %v15751_v47 = vadd.f32 %v15750_v26, %v13693_v39  ;;  %v23241_v3 = vand.u32 4294901760, %v19051_v44  ;;  %v19063_v63 = vsub.f32 %v16930_v23, %v19053_v12  ;;  %v13396_v52 = vpop.f32.mrb[40].mxu1 }
 0x24c   : > { %v4156_v0 = vand.u32 4294901760, %v4155_v33  ;;  %v16934_v20 = vpop.eup %16933  ;;  %v19065_v54 = vand.u32 4294901760, %v16932_v46  ;;  %v15753_v48 = vadd.f32 %v15752_v60, %v3560_v35  ;;  %v13699_v19 = vpop.f32.mrb[42].mxu0  ;;  %v4165_v2 = vsub.f32 %v19043_v8, %v23232_v37 }
 0x24d   : > { %24301 = vst [vmem:[#allocation78_spill] sm:$0xff] %v19063_v63  ;;  %13801 = vmatprep.mubr.f32.mxu1 %v4146_v30  ;;  %v19071_v61 = vsub.f32 %v16928_v24, %v19045_v16  ;;  %v19073_v39 = vand.u32 4294901760, %v16934_v20  ;;  %16943 = vtanh.f32 %v15751_v47  ;;  %v15754_v23 = vadd.f32 %v13396_v52, %v18613_v59  ;;  %v2064_v26 = vpop.f32.mrb[41].mxu1  ;;  %v3584_v33 = vpop.f32.mrb[43].mxu0 }
 0x24e   : > { %24302 = vst [vmem:[#allocation81_spill] sm:$0xff] %v19065_v54  ;;  %v4175_v35 = vsub.f32 %v19051_v44, %v23241_v3  ;;  %16945 = vtanh.f32 %v15753_v48  ;;  %v15756_v60 = vadd.f32 %v18613_v59, %v2064_v26  ;;  %v4166_v30 = vand.u32 4294901760, %v4165_v2 }
 0x24f   : > { %24303 = vst [vmem:[#allocation83_spill] sm:$0xff] %v19071_v61  ;;  %24304 = vst [vmem:[#allocation82_spill] sm:$0xff] %v19073_v39  ;;  %13802 = vmatmul.mubr.f32.gmra.mrb[90].mxu1 %v4156_v0  ;;  %v23242_v37 = vand.u32 4294901760, %v19063_v63  ;;  %v16936_v24 = vpop.eup %16935  ;;  %v15755_v8 = vadd.f32 %v15754_v23, %v13696_v22  ;;  %v23245_v47 = vand.u32 4294901760, %v19071_v61  ;;  %v19083_v52 = vsub.f32 %v16934_v20, %v19073_v39  ;;  %v13399_v3 = vpop.f32.mrb[42].mxu1 }
 0x250   : > { %v4176_v21 = vand.u32 4294901760, %v4175_v35  ;;  %v16938_v0 = vpop.eup %16937  ;;  %v19085_v16 = vand.u32 4294901760, %v16936_v24  ;;  %v15757_v12 = vadd.f32 %v15756_v60, %v3572_v51  ;;  %13804 = vmatprep.mubr.f32.mxu1 %v4166_v30  ;;  %v13702_v48 = vpop.f32.mrb[44].mxu0  ;;  %v19091_v26 = vsub.f32 %v16932_v46, %v19065_v54  ;;  %v19102_v60 = vld [vmem:[%s22955_s2] ss:$0 sm:$0xff] }
 0x251   : > { %24305 = vst [vmem:[#allocation85_spill] sm:$0xff] %v19083_v52  ;;  %v4185_v2 = vsub.f32 %v19063_v63, %v23242_v37  ;;  %v19093_v22 = vand.u32 4294901760, %v16938_v0  ;;  %16947 = vtanh.f32 %v15755_v8  ;;  %v15758_v20 = vadd.f32 %v13399_v3, %v18613_v59  ;;  %v2078_v23 = vpop.f32.mrb[43].mxu1  ;;  %v3596_v35 = vpop.f32.mrb[45].mxu0 }
 0x252   : > { %24306 = vst [vmem:[#allocation86_spill] sm:$0xff] %v19085_v16  ;;  %24307 = vst [vmem:[#allocation87_spill] sm:$0xff] %v19091_v26  ;;  %v4195_v51 = vsub.f32 %v19071_v61, %v23245_v47  ;;  %16949 = vtanh.f32 %v15757_v12  ;;  %v15760_v46 = vadd.f32 %v19102_v60, %v2078_v23  ;;  %v23252_v8 = vand.u32 4294901760, %v19083_v52 }
 0x253   : > { %24308 = vst [vmem:[#allocation88_spill] sm:$0xff] %v19093_v22  ;;  %13805 = vmatmul.mubr.f32.gmra.mrb[92].mxu1 %v4176_v21  ;;  %v4186_v30 = vand.u32 4294901760, %v4185_v2  ;;  %v16940_v37 = vpop.eup %16939  ;;  %v15759_v59 = vadd.f32 %v15758_v20, %v13699_v19  ;;  %v23261_v3 = vand.u32 4294901760, %v19091_v26  ;;  %v19108_v63 = vsub.f32 %v16938_v0, %v19093_v22  ;;  %v13402_v44 = vpop.f32.mrb[44].mxu1 }
 0x254   : > { %v4196_v21 = vand.u32 4294901760, %v4195_v51  ;;  %v16942_v47 = vpop.eup %16941  ;;  %v19110_v12 = vand.u32 4294901760, %v16940_v37  ;;  %v15761_v61 = vadd.f32 %v15760_v46, %v3584_v33  ;;  %v13705_v54 = vpop.f32.mrb[46].mxu0  ;;  %v4205_v2 = vsub.f32 %v19083_v52, %v23252_v8 }
 0x255   : > { %24309 = vst [vmem:[#allocation89_spill] sm:$0xff] %v19108_v63  ;;  %13807 = vmatprep.mubr.f32.mxu1 %v4186_v30  ;;  %v19116_v23 = vsub.f32 %v16936_v24, %v19085_v16  ;;  %v19118_v19 = vand.u32 4294901760, %v16942_v47  ;;  %16951 = vtanh.f32 %v15759_v59  ;;  %v15762_v0 = vadd.f32 %v19102_v60, %v13402_v44  ;;  %v2092_v20 = vpop.f32.mrb[45].mxu1  ;;  %v3608_v51 = vpop.f32.mrb[47].mxu0 }
 0x256   : > { %24310 = vst [vmem:[#allocation90_spill] sm:$0xff] %v19110_v12  ;;  %v4215_v33 = vsub.f32 %v19091_v26, %v23261_v3  ;;  %16953 = vtanh.f32 %v15761_v61  ;;  %v15764_v46 = vadd.f32 %v19102_v60, %v2092_v20  ;;  %v4206_v30 = vand.u32 4294901760, %v4205_v2 }
 0x257   : > { %24311 = vst [vmem:[#allocation91_spill] sm:$0xff] %v19116_v23  ;;  %24312 = vst [vmem:[#allocation92_spill] sm:$0xff] %v19118_v19  ;;  %13808 = vmatmul.mubr.f32.gmra.mrb[94].mxu1 %v4196_v21  ;;  %v23262_v8 = vand.u32 4294901760, %v19108_v63  ;;  %v16944_v24 = vpop.eup %16943  ;;  %v15763_v52 = vadd.f32 %v15762_v0, %v13702_v48  ;;  %v23271_v59 = vand.u32 4294901760, %v19116_v23  ;;  %v19128_v44 = vsub.f32 %v16942_v47, %v19118_v19  ;;  %v13405_v3 = vpop.f32.mrb[46].mxu1 }
 0x258   : > { %v4216_v16 = vand.u32 4294901760, %v4215_v33  ;;  %v16946_v21 = vpop.eup %16945  ;;  %v19130_v22 = vand.u32 4294901760, %v16944_v24  ;;  %v15765_v39 = vadd.f32 %v15764_v46, %v3596_v35  ;;  %13810 = vmatprep.mubr.f32.mxu1 %v4206_v30  ;;  %v13708_v61 = vpop.f32.mrb[48].mxu0  ;;  %v19136_v20 = vsub.f32 %v16940_v37, %v19110_v12 }
 0x259   : > { %24313 = vst [vmem:[#allocation93_spill] sm:$0xff] %v19128_v44  ;;  %v4225_v2 = vsub.f32 %v19108_v63, %v23262_v8  ;;  %v19138_v48 = vand.u32 4294901760, %v16946_v21  ;;  %16955 = vtanh.f32 %v15763_v52  ;;  %v15766_v47 = vadd.f32 %v19102_v60, %v13405_v3  ;;  %v2106_v0 = vpop.f32.mrb[47].mxu1  ;;  %v3620_v33 = vpop.f32.mrb[49].mxu0 }
 0x25a   : > { %24314 = vst [vmem:[#allocation94_spill] sm:$0xff] %v19130_v22  ;;  %24315 = vst [vmem:[#allocation95_spill] sm:$0xff] %v19136_v20  ;;  %v4235_v35 = vsub.f32 %v19116_v23, %v23271_v59  ;;  %16957 = vtanh.f32 %v15765_v39  ;;  %v15768_v46 = vadd.f32 %v19102_v60, %v2106_v0  ;;  %v23272_v8 = vand.u32 4294901760, %v19128_v44 }
 0x25b   : > { %24316 = vst [vmem:[#allocation96_spill] sm:$0xff] %v19138_v48  ;;  %13811 = vmatmul.mubr.f32.gmra.mrb[96].mxu1 %v4216_v16  ;;  %v4226_v30 = vand.u32 4294901760, %v4225_v2  ;;  %v16948_v37 = vpop.eup %16947  ;;  %v15767_v63 = vadd.f32 %v15766_v47, %v13705_v54  ;;  %v23281_v52 = vand.u32 4294901760, %v19136_v20  ;;  %v19148_v3 = vsub.f32 %v16946_v21, %v19138_v48  ;;  %v13408_v59 = vpop.f32.mrb[48].mxu1 }
 0x25c   : > { %v4236_v26 = vand.u32 4294901760, %v4235_v35  ;;  %v16950_v16 = vpop.eup %16949  ;;  %v19150_v12 = vand.u32 4294901760, %v16948_v37  ;;  %v15769_v19 = vadd.f32 %v15768_v46, %v3608_v51  ;;  %v13711_v39 = vpop.f32.mrb[50].mxu0  ;;  %v4245_v2 = vsub.f32 %v19128_v44, %v23272_v8 }
 0x25d   : > { %24317 = vst [vmem:[#allocation97_spill] sm:$0xff] %v19148_v3  ;;  %13813 = vmatprep.mubr.f32.mxu1 %v4226_v30  ;;  %v19156_v0 = vsub.f32 %v16944_v24, %v19130_v22  ;;  %v19158_v54 = vand.u32 4294901760, %v16950_v16  ;;  %16959 = vtanh.f32 %v15767_v63  ;;  %v15770_v21 = vadd.f32 %v19102_v60, %v13408_v59  ;;  %v2120_v47 = vpop.f32.mrb[49].mxu1  ;;  %v3632_v35 = vpop.f32.mrb[51].mxu0 }
 0x25e   : > { %24318 = vst [vmem:[#allocation34_spill] sm:$0xff] %v19150_v12  ;;  %v4255_v51 = vsub.f32 %v19136_v20, %v23281_v52  ;;  %16961 = vtanh.f32 %v15769_v19  ;;  %v15772_v46 = vadd.f32 %v19102_v60, %v2120_v47  ;;  %v4246_v30 = vand.u32 4294901760, %v4245_v2 }
 0x25f   : > { %24319 = vst [vmem:[#allocation36_spill] sm:$0xff] %v19156_v0  ;;  %24320 = vst [vmem:[#allocation41_spill] sm:$0xff] %v19158_v54  ;;  %13814 = vmatmul.mubr.f32.gmra.mrb[98].mxu1 %v4236_v26  ;;  %v23282_v8 = vand.u32 4294901760, %v19148_v3  ;;  %v16952_v24 = vpop.eup %16951  ;;  %v15771_v44 = vadd.f32 %v15770_v21, %v13708_v61  ;;  %v23291_v63 = vand.u32 4294901760, %v19156_v0  ;;  %v19168_v59 = vsub.f32 %v16950_v16, %v19158_v54  ;;  %v13411_v52 = vpop.f32.mrb[50].mxu1 }
 0x260   : > { %v4256_v23 = vand.u32 4294901760, %v4255_v51  ;;  %v16954_v26 = vpop.eup %16953  ;;  %v19170_v22 = vand.u32 4294901760, %v16952_v24  ;;  %v15773_v48 = vadd.f32 %v15772_v46, %v3620_v33  ;;  %13816 = vmatprep.mubr.f32.mxu1 %v4246_v30  ;;  %v13714_v19 = vpop.f32.mrb[52].mxu0  ;;  %v19176_v47 = vsub.f32 %v16948_v37, %v19150_v12 }
 0x261   : > { %24321 = vst [vmem:[#allocation42_spill] sm:$0xff] %v19168_v59  ;;  %v4265_v2 = vsub.f32 %v19148_v3, %v23282_v8  ;;  %v19178_v61 = vand.u32 4294901760, %v16954_v26  ;;  %16963 = vtanh.f32 %v15771_v44  ;;  %v15774_v16 = vadd.f32 %v19102_v60, %v13411_v52  ;;  %v2134_v21 = vpop.f32.mrb[51].mxu1  ;;  %v3644_v51 = vpop.f32.mrb[53].mxu0 }
 0x262   : > { %24322 = vst [vmem:[#allocation98_spill] sm:$0xff] %v19170_v22  ;;  %24323 = vst [vmem:[#allocation99_spill] sm:$0xff] %v19176_v47  ;;  %v4275_v33 = vsub.f32 %v19156_v0, %v23291_v63  ;;  %16965 = vtanh.f32 %v15773_v48  ;;  %v15776_v46 = vadd.f32 %v19102_v60, %v2134_v21  ;;  %v23292_v8 = vand.u32 4294901760, %v19168_v59 }
 0x263   : > { %24324 = vst [vmem:[#allocation100_spill] sm:$0xff] %v19178_v61  ;;  %13817 = vmatmul.mubr.f32.gmra.mrb[100].mxu1 %v4256_v23  ;;  %v4266_v30 = vand.u32 4294901760, %v4265_v2  ;;  %v16956_v37 = vpop.eup %16955  ;;  %v15775_v3 = vadd.f32 %v15774_v16, %v13711_v39  ;;  %v23301_v44 = vand.u32 4294901760, %v19176_v47  ;;  %v19188_v52 = vsub.f32 %v16954_v26, %v19178_v61  ;;  %v13414_v63 = vpop.f32.mrb[52].mxu1 }
 0x264   : > { %v4276_v20 = vand.u32 4294901760, %v4275_v33  ;;  %v16958_v23 = vpop.eup %16957  ;;  %v19190_v12 = vand.u32 4294901760, %v16956_v37  ;;  %v15777_v54 = vadd.f32 %v15776_v46, %v3632_v35  ;;  %v13717_v48 = vpop.f32.mrb[54].mxu0  ;;  %v4285_v2 = vsub.f32 %v19168_v59, %v23292_v8 }
 0x265   : > { %24325 = vst [vmem:[#allocation101_spill] sm:$0xff] %v19188_v52  ;;  %13819 = vmatprep.mubr.f32.mxu1 %v4266_v30  ;;  %v19196_v21 = vsub.f32 %v16952_v24, %v19170_v22  ;;  %v19198_v39 = vand.u32 4294901760, %v16958_v23  ;;  %16967 = vtanh.f32 %v15775_v3  ;;  %v15778_v26 = vadd.f32 %v19102_v60, %v13414_v63  ;;  %v2148_v16 = vpop.f32.mrb[53].mxu1  ;;  %v3656_v33 = vpop.f32.mrb[55].mxu0 }
 0x266   : > { %24326 = vst [vmem:[#allocation102_spill] sm:$0xff] %v19190_v12  ;;  %v4295_v35 = vsub.f32 %v19176_v47, %v23301_v44  ;;  %16969 = vtanh.f32 %v15777_v54  ;;  %v15780_v46 = vadd.f32 %v19102_v60, %v2148_v16  ;;  %v4286_v30 = vand.u32 4294901760, %v4285_v2 }
 0x267   : > { %24327 = vst [vmem:[#allocation103_spill] sm:$0xff] %v19196_v21  ;;  %24328 = vst [vmem:[#allocation104_spill] sm:$0xff] %v19198_v39  ;;  %13820 = vmatmul.mubr.f32.gmra.mrb[102].mxu1 %v4276_v20  ;;  %v23302_v8 = vand.u32 4294901760, %v19188_v52  ;;  %v16960_v24 = vpop.eup %16959  ;;  %v15779_v59 = vadd.f32 %v15778_v26, %v13714_v19  ;;  %v23311_v3 = vand.u32 4294901760, %v19196_v21  ;;  %v19208_v63 = vsub.f32 %v16958_v23, %v19198_v39  ;;  %v13417_v44 = vpop.f32.mrb[54].mxu1 }
 0x268   : > { %v4296_v0 = vand.u32 4294901760, %v4295_v35  ;;  %v16962_v20 = vpop.eup %16961  ;;  %v19210_v22 = vand.u32 4294901760, %v16960_v24  ;;  %v15781_v61 = vadd.f32 %v15780_v46, %v3644_v51  ;;  %13822 = vmatprep.mubr.f32.mxu1 %v4286_v30  ;;  %v13720_v54 = vpop.f32.mrb[56].mxu0  ;;  %v19216_v16 = vsub.f32 %v16956_v37, %v19190_v12 }
 0x269   : > { %24329 = vst [vmem:[#allocation105_spill] sm:$0xff] %v19208_v63  ;;  %v4305_v2 = vsub.f32 %v19188_v52, %v23302_v8  ;;  %v19218_v19 = vand.u32 4294901760, %v16962_v20  ;;  %16971 = vtanh.f32 %v15779_v59  ;;  %v15782_v23 = vadd.f32 %v19102_v60, %v13417_v44  ;;  %v2162_v26 = vpop.f32.mrb[55].mxu1  ;;  %v3668_v35 = vpop.f32.mrb[57].mxu0 }
 0x26a   : > { %24330 = vst [vmem:[#allocation106_spill] sm:$0xff] %v19210_v22  ;;  %24331 = vst [vmem:[#allocation107_spill] sm:$0xff] %v19216_v16  ;;  %v4315_v51 = vsub.f32 %v19196_v21, %v23311_v3  ;;  %16973 = vtanh.f32 %v15781_v61  ;;  %v15784_v46 = vadd.f32 %v19102_v60, %v2162_v26  ;;  %v23312_v8 = vand.u32 4294901760, %v19208_v63 }
 0x26b   : > { %24332 = vst [vmem:[#allocation108_spill] sm:$0xff] %v19218_v19  ;;  %13823 = vmatmul.mubr.f32.gmra.mrb[104].mxu1 %v4296_v0  ;;  %v4306_v30 = vand.u32 4294901760, %v4305_v2  ;;  %v16964_v37 = vpop.eup %16963  ;;  %v15783_v52 = vadd.f32 %v15782_v23, %v13717_v48  ;;  %v23321_v59 = vand.u32 4294901760, %v19216_v16  ;;  %v19228_v44 = vsub.f32 %v16962_v20, %v19218_v19  ;;  %v13420_v3 = vpop.f32.mrb[56].mxu1 }
 0x26c   : > { %v4316_v47 = vand.u32 4294901760, %v4315_v51  ;;  %v16966_v0 = vpop.eup %16965  ;;  %v19230_v12 = vand.u32 4294901760, %v16964_v37  ;;  %v15785_v39 = vadd.f32 %v15784_v46, %v3656_v33  ;;  %v13723_v61 = vpop.f32.mrb[58].mxu0  ;;  %v4325_v2 = vsub.f32 %v19208_v63, %v23312_v8 }
 0x26d   : > { %24333 = vst [vmem:[#allocation109_spill] sm:$0xff] %v19228_v44  ;;  %13825 = vmatprep.mubr.f32.mxu1 %v4306_v30  ;;  %v19236_v26 = vsub.f32 %v16960_v24, %v19210_v22  ;;  %v19238_v48 = vand.u32 4294901760, %v16966_v0  ;;  %16975 = vtanh.f32 %v15783_v52  ;;  %v15786_v20 = vadd.f32 %v19102_v60, %v13420_v3  ;;  %v2176_v23 = vpop.f32.mrb[57].mxu1  ;;  %v3680_v51 = vpop.f32.mrb[59].mxu0 }
 0x26e   : > { %24334 = vst [vmem:[#allocation110_spill] sm:$0xff] %v19230_v12  ;;  %v4335_v33 = vsub.f32 %v19216_v16, %v23321_v59  ;;  %16977 = vtanh.f32 %v15785_v39  ;;  %v15788_v46 = vadd.f32 %v19102_v60, %v2176_v23  ;;  %v4326_v30 = vand.u32 4294901760, %v4325_v2 }
 0x26f   : > { %24335 = vst [vmem:[#allocation111_spill] sm:$0xff] %v19236_v26  ;;  %24336 = vst [vmem:[#allocation112_spill] sm:$0xff] %v19238_v48  ;;  %13826 = vmatmul.mubr.f32.gmra.mrb[106].mxu1 %v4316_v47  ;;  %v23322_v8 = vand.u32 4294901760, %v19228_v44  ;;  %v16968_v24 = vpop.eup %16967  ;;  %v15787_v63 = vadd.f32 %v15786_v20, %v13720_v54  ;;  %v23331_v52 = vand.u32 4294901760, %v19236_v26  ;;  %v19248_v3 = vsub.f32 %v16966_v0, %v19238_v48  ;;  %v13423_v59 = vpop.f32.mrb[58].mxu1 }
 0x270   : > { %v4336_v21 = vand.u32 4294901760, %v4335_v33  ;;  %v16970_v47 = vpop.eup %16969  ;;  %v19250_v22 = vand.u32 4294901760, %v16968_v24  ;;  %v15789_v19 = vadd.f32 %v15788_v46, %v3668_v35  ;;  %13828 = vmatprep.mubr.f32.mxu1 %v4326_v30  ;;  %v13726_v39 = vpop.f32.mrb[60].mxu0  ;;  %v19256_v23 = vsub.f32 %v16964_v37, %v19230_v12 }
 0x271   : > { %24337 = vst [vmem:[#allocation113_spill] sm:$0xff] %v19248_v3  ;;  %v4345_v2 = vsub.f32 %v19228_v44, %v23322_v8  ;;  %v19258_v54 = vand.u32 4294901760, %v16970_v47  ;;  %16979 = vtanh.f32 %v15787_v63  ;;  %v15790_v0 = vadd.f32 %v19102_v60, %v13423_v59  ;;  %v2190_v20 = vpop.f32.mrb[59].mxu1  ;;  %v3692_v33 = vpop.f32.mrb[61].mxu0 }
 0x272   : > { %24338 = vst [vmem:[#allocation114_spill] sm:$0xff] %v19250_v22  ;;  %24339 = vst [vmem:[#allocation115_spill] sm:$0xff] %v19256_v23  ;;  %v4355_v35 = vsub.f32 %v19236_v26, %v23331_v52  ;;  %16981 = vtanh.f32 %v15789_v19  ;;  %v15792_v46 = vadd.f32 %v19102_v60, %v2190_v20  ;;  %v23332_v8 = vand.u32 4294901760, %v19248_v3 }
 0x273   : > { %24340 = vst [vmem:[#allocation116_spill] sm:$0xff] %v19258_v54  ;;  %13829 = vmatmul.mubr.f32.gmra.mrb[108].mxu1 %v4336_v21  ;;  %v4346_v30 = vand.u32 4294901760, %v4345_v2  ;;  %v16972_v37 = vpop.eup %16971  ;;  %v15791_v44 = vadd.f32 %v15790_v0, %v13723_v61  ;;  %v23341_v63 = vand.u32 4294901760, %v19256_v23  ;;  %v19268_v59 = vsub.f32 %v16970_v47, %v19258_v54  ;;  %v13426_v52 = vpop.f32.mrb[60].mxu1 }
 0x274   : > { %v4356_v16 = vand.u32 4294901760, %v4355_v35  ;;  %v16974_v21 = vpop.eup %16973  ;;  %v19270_v12 = vand.u32 4294901760, %v16972_v37  ;;  %v15793_v48 = vadd.f32 %v15792_v46, %v3680_v51  ;;  %v13729_v19 = vpop.f32.mrb[62].mxu0  ;;  %v4365_v2 = vsub.f32 %v19248_v3, %v23332_v8 }
 0x275   : > { %24341 = vst [vmem:[#allocation117_spill] sm:$0xff] %v19268_v59  ;;  %13831 = vmatprep.mubr.f32.mxu1 %v4346_v30  ;;  %v19276_v20 = vsub.f32 %v16968_v24, %v19250_v22  ;;  %v19278_v61 = vand.u32 4294901760, %v16974_v21  ;;  %16983 = vtanh.f32 %v15791_v44  ;;  %v15794_v47 = vadd.f32 %v19102_v60, %v13426_v52  ;;  %v2204_v0 = vpop.f32.mrb[61].mxu1  ;;  %v3704_v35 = vpop.f32.mrb[63].mxu0 }
 0x276   : > { %24342 = vst [vmem:[#allocation118_spill] sm:$0xff] %v19270_v12  ;;  %v4375_v51 = vsub.f32 %v19256_v23, %v23341_v63  ;;  %16985 = vtanh.f32 %v15793_v48  ;;  %v15796_v46 = vadd.f32 %v19102_v60, %v2204_v0  ;;  %v4366_v30 = vand.u32 4294901760, %v4365_v2 }
 0x277   : > { %24343 = vst [vmem:[#allocation119_spill] sm:$0xff] %v19278_v61  ;;  %13832 = vmatmul.mubr.f32.gmra.mrb[110].mxu1 %v4356_v16  ;;  %v23342_v8 = vand.u32 4294901760, %v19268_v59  ;;  %v16976_v24 = vpop.eup %16975  ;;  %v15795_v3 = vadd.f32 %v15794_v47, %v13726_v39  ;;  %v23351_v44 = vand.u32 4294901760, %v19276_v20  ;;  %v19288_v52 = vsub.f32 %v16974_v21, %v19278_v61  ;;  %v13429_v63 = vpop.f32.mrb[62].mxu1 }
 0x278   : > { %v4376_v26 = vand.u32 4294901760, %v4375_v51  ;;  %v16978_v16 = vpop.eup %16977  ;;  %v19290_v22 = vand.u32 4294901760, %v16976_v24  ;;  %v15797_v54 = vadd.f32 %v15796_v46, %v3692_v33  ;;  %13834 = vmatprep.mubr.f32.mxu1 %v4366_v30  ;;  %v19296_v2 = vsub.f32 %v16972_v37, %v19270_v12  ;;  %v2218_v21 = vpop.f32.mrb[63].mxu1 }
 0x279   : > { %v4385_v48 = vsub.f32 %v19268_v59, %v23342_v8  ;;  %v19298_v39 = vand.u32 4294901760, %v16978_v16  ;;  %16987 = vtanh.f32 %v15795_v3  ;;  %v15798_v47 = vadd.f32 %v19102_v60, %v13429_v63 }
 0x27a   : > { %24344 = vst [vmem:[#allocation120_spill] sm:$0xff] %v19290_v22  ;;  %24345 = vst [vmem:[#allocation121_spill] sm:$0xff] %v19296_v2  ;;  %v4395_v33 = vsub.f32 %v19276_v20, %v23351_v44  ;;  %16989 = vtanh.f32 %v15797_v54  ;;  %v15800_v0 = vadd.f32 %v19102_v60, %v2218_v21  ;;  %v23349_v46 = vand.u32 4294901760, %v19288_v52 }
 0x27b   : > { %24346 = vst [vmem:[#allocation122_spill] sm:$0xff] %v19298_v39  ;;  %13835 = vmatmul.mubr.f32.gmra.mrb[112].mxu1 %v4376_v26  ;;  %v4386_v51 = vand.u32 4294901760, %v4385_v48  ;;  %v16980_v30 = vpop.eup %16979  ;;  %v15799_v37 = vadd.f32 %v15798_v47, %v13729_v19  ;;  %v23347_v59 = vand.u32 4294901760, %v19296_v2  ;;  %v19308_v3 = vsub.f32 %v16978_v16, %v19298_v39 }
 0x27c   : > { %v4396_v8 = vand.u32 4294901760, %v4395_v33  ;;  %v16982_v26 = vpop.eup %16981  ;;  %v19310_v63 = vand.u32 4294901760, %v16980_v30  ;;  %v15801_v23 = vadd.f32 %v15800_v0, %v3704_v35  ;;  %v4405_v60 = vsub.f32 %v19288_v52, %v23349_v46 }
 0x27d   : > { %24347 = vst [vmem:[#allocation123_spill] sm:$0xff] %v19308_v3  ;;  %13837 = vmatprep.mubr.f32.mxu1 %v4386_v51  ;;  %v19316_v54 = vsub.f32 %v16976_v24, %v19290_v22  ;;  %v19318_v48 = vand.u32 4294901760, %v16982_v26  ;;  %16991 = vtanh.f32 %v15799_v37  ;;  %v4415_v19 = vsub.f32 %v19296_v2, %v23347_v59 }
 0x27e   : > { %24348 = vst [vmem:[#allocation124_spill] sm:$0xff] %v19310_v63  ;;  %v23348_v16 = vand.u32 4294901760, %v19308_v3  ;;  %16993 = vtanh.f32 %v15801_v23  ;;  %v4406_v35 = vand.u32 4294901760, %v4405_v60  ;;  %v19326_v21 = vsub.f32 %v16980_v30, %v19310_v63 }
 0x27f   : > { %24349 = vst [vmem:[#allocation125_spill] sm:$0xff] %v19316_v54  ;;  %24350 = vst [vmem:[#allocation126_spill] sm:$0xff] %v19318_v48  ;;  %13838 = vmatmul.mubr.f32.gmra.mrb[114].mxu1 %v4396_v8  ;;  %v23350_v47 = vand.u32 4294901760, %v19316_v54  ;;  %v16984_v33 = vpop.eup %16983  ;;  %v4416_v24 = vand.u32 4294901760, %v4415_v19  ;;  %v19332_v8 = vsub.f32 %v16982_v26, %v19318_v48 }
 0x280   : > { %24351 = vst [vmem:[#allocation127_spill] sm:$0xff] %v19326_v21  ;;  %v4425_v0 = vsub.f32 %v19308_v3, %v23348_v16  ;;  %v16986_v51 = vpop.eup %16985  ;;  %v19334_v37 = vand.u32 4294901760, %v16984_v33  ;;  %13840 = vmatprep.mubr.f32.mxu1 %v4406_v35  ;;  %v23357_v30 = vand.u32 4294901760, %v19326_v21 }
 0x281   : > { %24352 = vst [vmem:[#allocation128_spill] sm:$0xff] %v19332_v8  ;;  %v4435_v23 = vsub.f32 %v19316_v54, %v23350_v47  ;;  %v19340_v60 = vand.u32 4294901760, %v16986_v51  ;;  %v23354_v59 = vand.u32 4294901760, %v19332_v8 }
 0x282   : > { %24353 = vst [vmem:[#allocation129_spill] sm:$0xff] %v19334_v37  ;;  %v4426_v19 = vand.u32 4294901760, %v4425_v0  ;;  %v19344_v16 = vsub.f32 %v16984_v33, %v19334_v37  ;;  %v4455_v47 = vsub.f32 %v19326_v21, %v23357_v30 }
 0x283   : > { %24354 = vst [vmem:[#allocation130_spill] sm:$0xff] %v19340_v60  ;;  %13841 = vmatmul.mubr.f32.gmra.mrb[116].mxu1 %v4416_v24  ;;  %v16988_v26 = vpop.eup %16987  ;;  %v4436_v46 = vand.u32 4294901760, %v4435_v23  ;;  %v4445_v35 = vsub.f32 %v19332_v8, %v23354_v59  ;;  %v19353_v44 = vsub.f32 %v16986_v51, %v19340_v60 }
 0x284   : > { %24355 = vst [vmem:[#allocation131_spill] sm:$0xff] %v19344_v16  ;;  %13843 = vmatprep.mubr.f32.mxu1 %v4426_v19  ;;  %v16990_v24 = vpop.eup %16989  ;;  %v19355_v0 = vand.u32 4294901760, %v16988_v26  ;;  %v23367_v33 = vand.u32 4294901760, %v19344_v16  ;;  %v4456_v30 = vand.u32 4294901760, %v4455_v47 }
 0x285   : > { %24356 = vst [vmem:[#allocation132_spill] sm:$0xff] %v19353_v44  ;;  %v19358_v54 = vand.u32 4294901760, %v16990_v24  ;;  %v4446_v23 = vand.u32 4294901760, %v4445_v35  ;;  %v23364_v19 = vand.u32 4294901760, %v19353_v44 }
 0x286   : > { %24357 = vst [vmem:[#allocation133_spill] sm:$0xff] %v19355_v0  ;;  %v19362_v59 = vsub.f32 %v16988_v26, %v19355_v0  ;;  %v4475_v21 = vsub.f32 %v19344_v16, %v23367_v33 }
 0x287   : > { %24358 = vst [vmem:[#allocation134_spill] sm:$0xff] %v19358_v54  ;;  %13844 = vmatmul.mubr.f32.gmra.mrb[118].mxu1 %v4436_v46  ;;  %v16992_v8 = vpop.eup %16991  ;;  %v4465_v51 = vsub.f32 %v19353_v44, %v23364_v19  ;;  %v19371_v3 = vsub.f32 %v16990_v24, %v19358_v54 }
 0x288   : > { %24359 = vst [vmem:[#allocation135_spill] sm:$0xff] %v19362_v59  ;;  %13846 = vmatprep.mubr.f32.mxu1 %v4446_v23  ;;  %v16994_v46 = vpop.eup %16993  ;;  %v19373_v35 = vand.u32 4294901760, %v16992_v8  ;;  %v23371_v26 = vand.u32 4294901760, %v19362_v59  ;;  %v4476_v44 = vand.u32 4294901760, %v4475_v21 }
 0x289   : > { %24360 = vst [vmem:[#allocation136_spill] sm:$0xff] %v19371_v3  ;;  %v19376_v2 = vand.u32 4294901760, %v16994_v46  ;;  %v4466_v47 = vand.u32 4294901760, %v4465_v51  ;;  %v23370_v23 = vand.u32 4294901760, %v19371_v3 }
 0x28a   : > { %24361 = vst [vmem:[#allocation137_spill] sm:$0xff] %v19373_v35  ;;  %v19380_v19 = vsub.f32 %v16992_v8, %v19373_v35  ;;  %v4495_v33 = vsub.f32 %v19362_v59, %v23371_v26 }
 0x28b   : > { %24362 = vst [vmem:[#allocation138_spill] sm:$0xff] %v19376_v2  ;;  %13847 = vmatmul.mubr.f32.gmra.mrb[120].mxu1 %v4456_v30  ;;  %v4485_v24 = vsub.f32 %v19371_v3, %v23370_v23  ;;  %v19389_v16 = vsub.f32 %v16994_v46, %v19376_v2 }
 0x28c   : > { %24363 = vst [vmem:[#allocation139_spill] sm:$0xff] %v19380_v19  ;;  %13849 = vmatprep.mubr.f32.mxu1 %v4466_v47  ;;  %v23372_v30 = vand.u32 4294901760, %v19380_v19  ;;  %v4496_v47 = vand.u32 4294901760, %v4495_v33  ;;  %v15362_v33 = vpack.c.bf16 %v18601_v6, %v18596_v10 }
 0x28d   : > { %24364 = vst [vmem:[#allocation140_spill] sm:$0xff] %v19389_v16  ;;  %v4486_v51 = vand.u32 4294901760, %v4485_v24  ;;  %v23373_v8 = vand.u32 4294901760, %v19389_v16  ;;  %v15378_v24 = vpack.c.bf16 %v18695_v42, %v18690_v4 }
 0x28e   : > { %v4515_v23 = vsub.f32 %v19380_v19, %v23372_v30  ;;  %v24375_v30 = vld [vmem:[#allocation73_spill] sm:$0xff] }
 0x28f   : > { %13850 = vmatmul.mubr.f32.gmra.mrb[122].mxu1 %v4476_v44  ;;  %v4505_v21 = vsub.f32 %v19389_v16, %v23373_v8  ;;  %v15358_v44 = vpack.c.bf16 %v18591_v27, %v18586_v29  ;;  %v24376_v8 = vld [vmem:[#allocation80_spill] sm:$0xff] }
 0x290   : > { %13852 = vmatprep.mubr.f32.mxu1 %v4486_v51  ;;  %v4516_v46 = vand.u32 4294901760, %v4515_v23  ;;  %v15374_v23 = vpack.c.bf16 %v18652_v43, %v18647_v11  ;;  %v15382_v51 = vpack.c.bf16 %v18716_v25, %v18711_v53 }
 0x291   : > { %v4506_v26 = vand.u32 4294901760, %v4505_v21  ;;  %v24366_v21 = vld [vmem:[#allocation47_spill] sm:$0xff] }
 0x293   : > { %13853 = vmatmul.mubr.f32.gmra.mrb[124].mxu1 %v4496_v47  ;;  %v24365_v47 = vld [vmem:[#allocation37_spill] sm:$0xff] }
 0x294   : > { %13855 = vmatprep.mubr.f32.mxu1 %v4506_v26  ;;  %v15366_v26 = vpack.c.bf16 %v18626_v57, %v18621_v58 }
 0x297   : > { %13856 = vmatmul.mubr.f32.gmra.mrb[126].mxu1 %v4516_v46  ;;  %v24367_v46 = vld [vmem:[#allocation44_spill] sm:$0xff] }
 0x298   : > { %13890 = vmatprep.mubr.f32.mxu1 %v18724_v38  ;;  %v24450_v38 = vld [vmem:[#allocation99_spill] sm:$0xff] }
 0x29b   : > { %13891 = vmatmul.mubr.f32.vlgmr.msra.gmra.mrb[64].mxu1 %v18720_v14  ;;  %v24449_v14 = vld [vmem:[#allocation42_spill] sm:$0xff] }
 0x29c   : > { %15357 = vmatpush3.bf16.msra.mxu1 %v18839_v5  ;;  %13893 = vmatprep.mubr.f32.mxu1 %v18753_v13  ;;  %v15370_v5 = vpack.c.bf16 %v18642_v31, %v18637_v9  ;;  %v24448_v13 = vld [vmem:[#allocation36_spill] sm:$0xff] }
 0x29d   : > { %15359 = vmatprep.subr.bf16.mxu1 %v15358_v44 }
 0x29f   : > { %13894 = vmatmul.mubr.f32.gmra.mrb[66].mxu1 %v18745_v56  ;;  %v24446_v56 = vld [vmem:[#allocation95_spill] sm:$0xff] }
 0x2a0   : > { %13896 = vmatprep.mubr.f32.mxu1 %v18774_v40  ;;  %15361 = vmatpush3.bf16.msra.mxu1 %v15358_v44  ;;  %v24368_v44 = vld [vmem:[#allocation55_spill] sm:$0xff]  ;;  %v24445_v40 = vld [vmem:[#allocation93_spill] sm:$0xff] }
 0x2a1   : > { %15363 = vmatprep.subr.bf16.mxu1 %v15362_v33 }
 0x2a3   : > { %13897 = vmatmul.mubr.f32.gmra.mrb[68].mxu1 %v18771_v1  ;;  %v24443_v1 = vld [vmem:[#allocation89_spill] sm:$0xff] }
 0x2a4   : > { %13899 = vmatprep.mubr.f32.mxu1 %v18794_v34  ;;  %15365 = vmatpush3.bf16.msra.mxu1 %v15362_v33  ;;  %v24369_v33 = vld [vmem:[#allocation51_spill] sm:$0xff] }
 0x2a5   : > { %15367 = vmatprep.subr.bf16.mxu1 %v15366_v26  ;;  %v24442_v34 = vld [vmem:[#allocation87_spill] sm:$0xff] }
 0x2a7   : > { %13900 = vmatmul.mubr.f32.gmra.mrb[70].mxu1 %v18789_v15  ;;  %v24440_v15 = vld [vmem:[#allocation83_spill] sm:$0xff] }
 0x2a8   : > { %13902 = vmatprep.mubr.f32.mxu1 %v18818_v32  ;;  %15369 = vmatpush3.bf16.msra.mxu1 %v15366_v26  ;;  %v24370_v26 = vld [vmem:[#allocation63_spill] sm:$0xff]  ;;  %v24439_v32 = vld [vmem:[#allocation78_spill] sm:$0xff] }
 0x2a9   : > { %15371 = vmatprep.subr.bf16.mxu1 %v15370_v5 }
 0x2ab   : > { %13903 = vmatmul.mubr.f32.gmra.mrb[72].mxu1 %v18811_v55  ;;  %v24437_v55 = vld [vmem:[#allocation76_spill] sm:$0xff] }
 0x2ac   : > { %13905 = vmatprep.mubr.f32.mxu1 %v18841_v28  ;;  %15373 = vmatpush3.bf16.msra.mxu1 %v15370_v5  ;;  %v24371_v5 = vld [vmem:[#allocation61_spill] sm:$0xff]  ;;  %v24436_v28 = vld [vmem:[#allocation74_spill] sm:$0xff] }
 0x2ad   : > { %15375 = vmatprep.subr.bf16.mxu1 %v15374_v23 }
 0x2af   : > { %13906 = vmatmul.mubr.f32.gmra.mrb[74].mxu1 %v18832_v49  ;;  %v24428_v49 = vld [vmem:[#allocation45_spill] sm:$0xff] }
 0x2b0   : > { %13908 = vmatprep.mubr.f32.mxu1 %v18863_v36  ;;  %15377 = vmatpush3.bf16.msra.mxu1 %v15374_v23  ;;  %v24372_v23 = vld [vmem:[#allocation70_spill] sm:$0xff]  ;;  %v24427_v36 = vld [vmem:[#allocation40_spill] sm:$0xff] }
 0x2b1   : > { %15379 = vmatprep.subr.bf16.mxu1 %v15378_v24 }
 0x2b3   : > { %13909 = vmatmul.mubr.f32.gmra.mrb[76].mxu1 %v18855_v62  ;;  %v24426_v62 = vld [vmem:[#allocation38_spill] sm:$0xff] }
 0x2b4   : > { %13911 = vmatprep.mubr.f32.mxu1 %v18885_v18  ;;  %15381 = vmatpush3.bf16.msra.mxu1 %v15378_v24  ;;  %v24373_v24 = vld [vmem:[#allocation67_spill] sm:$0xff]  ;;  %v24425_v18 = vld [vmem:[#allocation33_spill] sm:$0xff] }
 0x2b5   : > { %15383 = vmatprep.subr.bf16.mxu1 %v15382_v51 }
 0x2b7   : > { %13912 = vmatmul.mubr.f32.gmra.mrb[78].mxu1 %v18877_v17  ;;  %v24424_v17 = vld [vmem:[#allocation31_spill] sm:$0xff] }
 0x2b8   : > { %13914 = vmatprep.mubr.f32.mxu1 %v18907_v50  ;;  %15385 = vmatpush3.bf16.msra.mxu1 %v15382_v51  ;;  %v24374_v51 = vld [vmem:[#allocation75_spill] sm:$0xff] }
 0x2b9   : > { %15387 = vmatprep.subr.bf16.mxu1 %v24365_v47 }
 0x2bb   : > { %13915 = vmatmul.mubr.f32.gmra.mrb[80].mxu1 %v18899_v41 }
 0x2bc   : > { %13917 = vmatprep.mubr.f32.mxu1 %v18929_v7  ;;  %v24422_v7 = vld [vmem:[#allocation59_spill] sm:$0xff] }
 0x2bd   : > { %v24423_v41 = vand.u32 4294901760, %v24422_v7  ;;  %v24434_v7 = vld [vmem:[#allocation68_spill] sm:$0xff] }
 0x2bf   : > { %13918 = vmatmul.mubr.f32.gmra.mrb[82].mxu1 %v18921_v45 }
 0x2c0   : > { %13920 = vmatprep.mubr.f32.mxu1 %v24366_v21  ;;  %v24377_v21 = vld [vmem:[#allocation79_spill] sm:$0xff] }
 0x2c3   : > { %13921 = vmatmul.mubr.f32.gmra.mrb[84].mxu1 %v24367_v46  ;;  %v24378_v46 = vld [vmem:[#allocation82_spill] sm:$0xff] }
 0x2c4   : > { %13923 = vmatprep.mubr.f32.mxu1 %v24368_v44  ;;  %v24379_v44 = vld [vmem:[#allocation81_spill] sm:$0xff] }
 0x2c7   : > { %13924 = vmatmul.mubr.f32.gmra.mrb[86].mxu1 %v24369_v33  ;;  %v24380_v33 = vld [vmem:[#allocation88_spill] sm:$0xff] }
 0x2c8   : > { %13926 = vmatprep.mubr.f32.mxu1 %v24370_v26  ;;  %v24381_v26 = vld [vmem:[#allocation86_spill] sm:$0xff] }
 0x2cb   : > { %13927 = vmatmul.mubr.f32.gmra.mrb[88].mxu1 %v24371_v5  ;;  %v24382_v5 = vld [vmem:[#allocation92_spill] sm:$0xff] }
 0x2cc   : > { %13929 = vmatprep.mubr.f32.mxu1 %v24372_v23  ;;  %v24383_v23 = vld [vmem:[#allocation90_spill] sm:$0xff] }
 0x2cf   : > { %13930 = vmatmul.mubr.f32.gmra.mrb[90].mxu1 %v24373_v24  ;;  %v24384_v24 = vld [vmem:[#allocation96_spill] sm:$0xff] }
 0x2d0   : > { %13932 = vmatprep.mubr.f32.mxu1 %v24374_v51  ;;  %v24385_v51 = vld [vmem:[#allocation94_spill] sm:$0xff] }
 0x2d3   : > { %13933 = vmatmul.mubr.f32.gmra.mrb[92].mxu1 %v24375_v30  ;;  %v24386_v30 = vld [vmem:[#allocation41_spill] sm:$0xff] }
 0x2d4   : > { %13935 = vmatprep.mubr.f32.mxu1 %v24376_v8  ;;  %v24387_v8 = vld [vmem:[#allocation34_spill] sm:$0xff] }
 0x2d7   : > { %13936 = vmatmul.mubr.f32.gmra.mrb[94].mxu1 %v24377_v21  ;;  %v24388_v21 = vld [vmem:[#allocation100_spill] sm:$0xff] }
 0x2d8   : > { %13938 = vmatprep.mubr.f32.mxu1 %v24378_v46  ;;  %v24389_v46 = vld [vmem:[#allocation98_spill] sm:$0xff] }
 0x2db   : > { %13939 = vmatmul.mubr.f32.gmra.mrb[96].mxu1 %v24379_v44  ;;  %v24390_v44 = vld [vmem:[#allocation104_spill] sm:$0xff] }
 0x2dc   : > { %13941 = vmatprep.mubr.f32.mxu1 %v24380_v33  ;;  %v24391_v33 = vld [vmem:[#allocation102_spill] sm:$0xff] }
 0x2df   : > { %13942 = vmatmul.mubr.f32.gmra.mrb[98].mxu1 %v24381_v26  ;;  %v24392_v26 = vld [vmem:[#allocation108_spill] sm:$0xff] }
 0x2e0   : > { %13944 = vmatprep.mubr.f32.mxu1 %v24382_v5  ;;  %v24393_v5 = vld [vmem:[#allocation106_spill] sm:$0xff] }
 0x2e3   : > { %13945 = vmatmul.mubr.f32.gmra.mrb[100].mxu1 %v24383_v23  ;;  %v24394_v23 = vld [vmem:[#allocation112_spill] sm:$0xff] }
 0x2e4   : > { %13947 = vmatprep.mubr.f32.mxu1 %v24384_v24  ;;  %v24395_v24 = vld [vmem:[#allocation110_spill] sm:$0xff] }
 0x2e7   : > { %13948 = vmatmul.mubr.f32.gmra.mrb[102].mxu1 %v24385_v51  ;;  %v24396_v51 = vld [vmem:[#allocation116_spill] sm:$0xff] }
 0x2e8   : > { %13950 = vmatprep.mubr.f32.mxu1 %v24386_v30  ;;  %v24397_v30 = vld [vmem:[#allocation114_spill] sm:$0xff] }
 0x2eb   : > { %13951 = vmatmul.mubr.f32.gmra.mrb[104].mxu1 %v24387_v8  ;;  %v24420_v8 = vld [vmem:[#allocation58_spill] sm:$0xff] }
 0x2ec   : > { %13953 = vmatprep.mubr.f32.mxu1 %v24388_v21  ;;  %v24419_v21 = vld [vmem:[#allocation56_spill] sm:$0xff]  ;;  %v24421_v45 = vand.u32 4294901760, %v24420_v8  ;;  %v24431_v8 = vld [vmem:[#allocation57_spill] sm:$0xff] }
 0x2ee   : > { %v15418_v50 = vpack.c.bf16 %v24423_v41, %v24421_v45  ;;  %v24432_v41 = vld [vmem:[#allocation62_spill] sm:$0xff]  ;;  %v24433_v45 = vld [vmem:[#allocation64_spill] sm:$0xff] }
 0x2ef   : > { %13954 = vmatmul.mubr.f32.gmra.mrb[106].mxu1 %v24389_v46  ;;  %v24418_v46 = vld [vmem:[#allocation29_spill] sm:$0xff] }
 0x2f0   : > { %13956 = vmatprep.mubr.f32.mxu1 %v24390_v44  ;;  %v24417_v44 = vld [vmem:[#allocation27_spill] sm:$0xff] }
 0x2f3   : > { %13957 = vmatmul.mubr.f32.gmra.mrb[108].mxu1 %v24391_v33  ;;  %v24416_v33 = vld [vmem:[#allocation54_spill] sm:$0xff] }
 0x2f4   : > { %13959 = vmatprep.mubr.f32.mxu1 %v24392_v26  ;;  %v24415_v26 = vld [vmem:[#allocation25_spill] sm:$0xff] }
 0x2f7   : > { %13960 = vmatmul.mubr.f32.gmra.mrb[110].mxu1 %v24393_v5  ;;  %v24414_v5 = vld [vmem:[#allocation23_spill] sm:$0xff] }
 0x2f8   : > { %13962 = vmatprep.mubr.f32.mxu1 %v24394_v23  ;;  %v24413_v23 = vld [vmem:[#allocation53_spill] sm:$0xff] }
 0x2fb   : > { %13963 = vmatmul.mubr.f32.gmra.mrb[112].mxu1 %v24395_v24  ;;  %v24412_v24 = vld [vmem:[#allocation21_spill] sm:$0xff] }
 0x2fc   : > { %13965 = vmatprep.mubr.f32.mxu1 %v24396_v51  ;;  %v24411_v51 = vld [vmem:[#allocation18_spill] sm:$0xff] }
 0x2ff   : > { %13966 = vmatmul.mubr.f32.gmra.mrb[114].mxu1 %v24397_v30  ;;  %v24410_v30 = vld [vmem:[#allocation49_spill] sm:$0xff] }
 0x300   : > { %13968 = vmatprep.mubr.f32.mxu1 %v19278_v61  ;;  %v24409_v61 = vld [vmem:[#allocation17_spill] sm:$0xff] }
 0x303   : > { %13969 = vmatmul.mubr.f32.gmra.mrb[116].mxu1 %v19270_v12  ;;  %v24398_v12 = vld [vmem:[#allocation69_spill] sm:$0xff] }
 0x304   : > { %13971 = vmatprep.mubr.f32.mxu1 %v19298_v39  ;;  %v24399_v39 = vld [vmem:[#allocation66_spill] sm:$0xff] }
 0x307   : > { %13972 = vmatmul.mubr.f32.gmra.mrb[118].mxu1 %v19290_v22  ;;  %v24408_v22 = vld [vmem:[#allocation14_spill] sm:$0xff] }
 0x308   : > { %13974 = vmatprep.mubr.f32.mxu1 %v19318_v48  ;;  %v24400_v48 = vld [vmem:[#allocation6_spill] sm:$0xff] }
 0x30b   : > { %13975 = vmatmul.mubr.f32.gmra.mrb[120].mxu1 %v19310_v63  ;;  %v24401_v63 = vld [vmem:[#allocation43_spill] sm:$0xff] }
 0x30c   : > { %13977 = vmatprep.mubr.f32.mxu1 %v19340_v60  ;;  %v24402_v60 = vld [vmem:[#allocation5_spill] sm:$0xff] }
 0x30f   : > { %13978 = vmatmul.mubr.f32.gmra.mrb[122].mxu1 %v19334_v37  ;;  %v24403_v37 = vld [vmem:[#allocation9_spill] sm:$0xff] }
 0x310   : > { %13980 = vmatprep.mubr.f32.mxu1 %v19358_v54  ;;  %v24407_v54 = vld [vmem:[#allocation48_spill] sm:$0xff] }
 0x313   : > { %13981 = vmatmul.mubr.f32.gmra.mrb[124].mxu1 %v19355_v0  ;;  %v24404_v0 = vld [vmem:[#allocation46_spill] sm:$0xff] }
 0x314   : > { %13983 = vmatprep.mubr.f32.mxu1 %v19376_v2  ;;  %v24405_v2 = vld [vmem:[#allocation10_spill] sm:$0xff] }
 0x317   : > { %13984 = vmatmul.mubr.f32.gmra.mrb[126].mxu1 %v19373_v35  ;;  %v24406_v35 = vld [vmem:[#allocation13_spill] sm:$0xff] }
 0x318   : > { %14018 = vmatprep.mubr.f32.mxu1 %v24398_v12 }
 0x31b   : > { %14019 = vmatmul.mubr.f32.vlgmr.msra.gmra.mrb[64].mxu1 %v24399_v39 }
 0x31c   : > { %15389 = vmatpush3.bf16.msra.mxu1 %v24365_v47  ;;  %14021 = vmatprep.mubr.f32.mxu1 %v24400_v48 }
 0x31d   : > { %15391 = vmatprep.subr.bf16.mxu1 %v24401_v63 }
 0x31f   : > { %14022 = vmatmul.mubr.f32.gmra.mrb[66].mxu1 %v24402_v60 }
 0x320   : > { %14024 = vmatprep.mubr.f32.mxu1 %v24403_v37  ;;  %15393 = vmatpush3.bf16.msra.mxu1 %v24401_v63  ;;  %v24447_v63 = vld [vmem:[#allocation97_spill] sm:$0xff] }
 0x321   : > { %15395 = vmatprep.subr.bf16.mxu1 %v24404_v0 }
 0x323   : > { %14025 = vmatmul.mubr.f32.gmra.mrb[68].mxu1 %v24405_v2 }
 0x324   : > { %14027 = vmatprep.mubr.f32.mxu1 %v24406_v35  ;;  %15397 = vmatpush3.bf16.msra.mxu1 %v24404_v0  ;;  %v24444_v0 = vld [vmem:[#allocation91_spill] sm:$0xff] }
 0x325   : > { %15399 = vmatprep.subr.bf16.mxu1 %v24407_v54 }
 0x327   : > { %14028 = vmatmul.mubr.f32.gmra.mrb[70].mxu1 %v24408_v22 }
 0x328   : > { %14030 = vmatprep.mubr.f32.mxu1 %v24409_v61  ;;  %15401 = vmatpush3.bf16.msra.mxu1 %v24407_v54  ;;  %v24441_v54 = vld [vmem:[#allocation85_spill] sm:$0xff] }
 0x329   : > { %15403 = vmatprep.subr.bf16.mxu1 %v24410_v30 }
 0x32b   : > { %14031 = vmatmul.mubr.f32.gmra.mrb[72].mxu1 %v24411_v51 }
 0x32c   : > { %14033 = vmatprep.mubr.f32.mxu1 %v24412_v24  ;;  %15405 = vmatpush3.bf16.msra.mxu1 %v24410_v30  ;;  %v24438_v30 = vld [vmem:[#allocation77_spill] sm:$0xff] }
 0x32d   : > { %15407 = vmatprep.subr.bf16.mxu1 %v24413_v23 }
 0x32f   : > { %14034 = vmatmul.mubr.f32.gmra.mrb[74].mxu1 %v24414_v5 }
 0x330   : > { %14036 = vmatprep.mubr.f32.mxu1 %v24415_v26  ;;  %15409 = vmatpush3.bf16.msra.mxu1 %v24413_v23  ;;  %v24430_v23 = vld [vmem:[#allocation52_spill] sm:$0xff] }
 0x331   : > { %15411 = vmatprep.subr.bf16.mxu1 %v24416_v33 }
 0x333   : > { %14037 = vmatmul.mubr.f32.gmra.mrb[76].mxu1 %v24417_v44 }
 0x334   : > { %14039 = vmatprep.mubr.f32.mxu1 %v24418_v46  ;;  %15413 = vmatpush3.bf16.msra.mxu1 %v24416_v33  ;;  %v24429_v33 = vld [vmem:[#allocation50_spill] sm:$0xff] }
 0x335   : > { %15415 = vmatprep.subr.bf16.mxu1 %v24419_v21 }
 0x337   : > { %14040 = vmatmul.mubr.f32.gmra.mrb[78].mxu1 %v24424_v17 }
 0x338   : > { %14042 = vmatprep.mubr.f32.mxu1 %v24425_v18  ;;  %15417 = vmatpush3.bf16.msra.mxu1 %v24419_v21  ;;  %v24435_v21 = vld [vmem:[#allocation71_spill] sm:$0xff] }
 0x339   : > { %15419 = vmatprep.subr.bf16.mxu1 %v15418_v50 }
 0x33b   : > { %14043 = vmatmul.mubr.f32.gmra.mrb[80].mxu1 %v24426_v62 }
 0x33c   : > { %14045 = vmatprep.mubr.f32.mxu1 %v24427_v36 }
 0x33f   : > { %14046 = vmatmul.mubr.f32.gmra.mrb[82].mxu1 %v24428_v49 }
 0x340   : > { %14048 = vmatprep.mubr.f32.mxu1 %v24429_v33 }
 0x343   : > { %14049 = vmatmul.mubr.f32.gmra.mrb[84].mxu1 %v24430_v23 }
 0x344   : > { %14051 = vmatprep.mubr.f32.mxu1 %v24431_v8 }
 0x347   : > { %14052 = vmatmul.mubr.f32.gmra.mrb[86].mxu1 %v24432_v41 }
 0x348   : > { %14054 = vmatprep.mubr.f32.mxu1 %v24433_v45 }
 0x34b   : > { %14055 = vmatmul.mubr.f32.gmra.mrb[88].mxu1 %v24434_v7 }
 0x34c   : > { %14057 = vmatprep.mubr.f32.mxu1 %v24435_v21 }
 0x34f   : > { %14058 = vmatmul.mubr.f32.gmra.mrb[90].mxu1 %v24436_v28 }
 0x350   : > { %14060 = vmatprep.mubr.f32.mxu1 %v24437_v55 }
 0x353   : > { %14061 = vmatmul.mubr.f32.gmra.mrb[92].mxu1 %v24438_v30 }
 0x354   : > { %14063 = vmatprep.mubr.f32.mxu1 %v24439_v32 }
 0x357   : > { %14064 = vmatmul.mubr.f32.gmra.mrb[94].mxu1 %v24440_v15  ;;  %v24451_v15 = vld [vmem:[#allocation101_spill] sm:$0xff] }
 0x358   : > { %14066 = vmatprep.mubr.f32.mxu1 %v24441_v54  ;;  %v24452_v54 = vld [vmem:[#allocation103_spill] sm:$0xff] }
 0x35b   : > { %14067 = vmatmul.mubr.f32.gmra.mrb[96].mxu1 %v24442_v34  ;;  %v24453_v34 = vld [vmem:[#allocation105_spill] sm:$0xff] }
 0x35c   : > { %14069 = vmatprep.mubr.f32.mxu1 %v24443_v1  ;;  %v24454_v1 = vld [vmem:[#allocation107_spill] sm:$0xff] }
 0x35f   : > { %14070 = vmatmul.mubr.f32.gmra.mrb[98].mxu1 %v24444_v0  ;;  %v24455_v0 = vld [vmem:[#allocation109_spill] sm:$0xff] }
 0x360   : > { %14072 = vmatprep.mubr.f32.mxu1 %v24445_v40  ;;  %v24456_v40 = vld [vmem:[#allocation111_spill] sm:$0xff] }
 0x363   : > { %14073 = vmatmul.mubr.f32.gmra.mrb[100].mxu1 %v24446_v56  ;;  %v24457_v56 = vld [vmem:[#allocation113_spill] sm:$0xff] }
 0x364   : > { %14075 = vmatprep.mubr.f32.mxu1 %v24447_v63  ;;  %v24458_v63 = vld [vmem:[#allocation115_spill] sm:$0xff] }
 0x367   : > { %14076 = vmatmul.mubr.f32.gmra.mrb[102].mxu1 %v24448_v13  ;;  %v24459_v13 = vld [vmem:[#allocation117_spill] sm:$0xff] }
 0x368   : > { %14078 = vmatprep.mubr.f32.mxu1 %v24449_v14 }
 0x36b   : > { %14079 = vmatmul.mubr.f32.gmra.mrb[104].mxu1 %v24450_v38 }
 0x36c   : > { %14081 = vmatprep.mubr.f32.mxu1 %v24451_v15  ;;  %v24460_v15 = vld [vmem:[#allocation121_spill] sm:$0xff] }
 0x36f   : > { %14082 = vmatmul.mubr.f32.gmra.mrb[106].mxu1 %v24452_v54  ;;  %v24461_v54 = vld [vmem:[#allocation123_spill] sm:$0xff] }
 0x370   : > { %14084 = vmatprep.mubr.f32.mxu1 %v24453_v34  ;;  %v24462_v34 = vld [vmem:[#allocation125_spill] sm:$0xff] }
 0x373   : > { %14085 = vmatmul.mubr.f32.gmra.mrb[108].mxu1 %v24454_v1  ;;  %v24463_v1 = vld [vmem:[#allocation128_spill] sm:$0xff] }
 0x374   : > { %14087 = vmatprep.mubr.f32.mxu1 %v24455_v0  ;;  %v24464_v0 = vld [vmem:[#allocation127_spill] sm:$0xff] }
 0x377   : > { %14088 = vmatmul.mubr.f32.gmra.mrb[110].mxu1 %v24456_v40  ;;  %v24465_v40 = vld [vmem:[#allocation132_spill] sm:$0xff] }
 0x378   : > { %14090 = vmatprep.mubr.f32.mxu1 %v24457_v56  ;;  %v24466_v56 = vld [vmem:[#allocation131_spill] sm:$0xff] }
 0x37b   : > { %14091 = vmatmul.mubr.f32.gmra.mrb[112].mxu1 %v24458_v63 }
 0x37c   : > { %14093 = vmatprep.mubr.f32.mxu1 %v24459_v13 }
 0x37f   : > { %14094 = vmatmul.mubr.f32.gmra.mrb[114].mxu1 %v19276_v20 }
 0x380   : > { %14096 = vmatprep.mubr.f32.mxu1 %v19288_v52 }
 0x383   : > { %14097 = vmatmul.mubr.f32.gmra.mrb[116].mxu1 %v24460_v15 }
 0x384   : > { %14099 = vmatprep.mubr.f32.mxu1 %v24461_v54  ;;  %v24467_v54 = vand.u32 4294901760, %v24398_v12  ;;  %v24474_v12 = vand.u32 4294901760, %v24402_v60  ;;  %v24494_v60 = vand.u32 4294901760, %v24417_v44  ;;  %v24508_v44 = vand.u32 4294901760, %v24436_v28  ;;  %v24518_v28 = vld [vmem:[#allocation89_spill] sm:$0xff] }
 0x387   : > { %14100 = vmatmul.mubr.f32.gmra.mrb[118].mxu1 %v24462_v34  ;;  %v24468_v34 = vand.u32 4294901760, %v18586_v29  ;;  %v24475_v29 = vand.u32 4294901760, %v24403_v37 }
 0x388   : > { %14102 = vmatprep.mubr.f32.mxu1 %v24463_v1  ;;  %v24469_v1 = vand.u32 4294901760, %v18591_v27  ;;  %v24476_v27 = vand.u32 4294901760, %v18621_v58  ;;  %v24483_v58 = vand.u32 4294901760, %v24409_v61 }
 0x38b   : > { %14103 = vmatmul.mubr.f32.gmra.mrb[120].mxu1 %v24464_v0  ;;  %v15422_v0 = vpack.c.bf16 %v24469_v1, %v24468_v34  ;;  %v24478_v34 = vand.u32 4294901760, %v24405_v2  ;;  %v24485_v2 = vand.u32 4294901760, %v18652_v43  ;;  %v24492_v43 = vand.u32 4294901760, %v18711_v53 }
 0x38c   : > { %14105 = vmatprep.mubr.f32.mxu1 %v24465_v40  ;;  %v24470_v40 = vand.u32 4294901760, %v24399_v39  ;;  %v24498_v53 = vand.u32 4294901760, %v24426_v62  ;;  %v24505_v62 = vand.u32 4294901760, %v24433_v45  ;;  %v24519_v45 = vand.u32 4294901760, %v24518_v28  ;;  %v24582_v28 = vld [vmem:[#allocation49_spill] sm:$0xff] }
 0x38f   : > { %14106 = vmatmul.mubr.f32.gmra.mrb[122].mxu1 %v24466_v56 }
 0x390   : > { %14108 = vmatprep.mubr.f32.mxu1 %v19371_v3  ;;  %v24471_v3 = vand.u32 4294901760, %v24400_v48  ;;  %v24490_v48 = vand.u32 4294901760, %v24414_v5  ;;  %v24511_v5 = vand.u32 4294901760, %v24439_v32  ;;  %v24524_v32 = vld [vmem:[#allocation95_spill] sm:$0xff] }
 0x393   : > { %14109 = vmatmul.mubr.f32.gmra.mrb[124].mxu1 %v19362_v59 }
 0x394   : > { %14111 = vmatprep.mubr.f32.mxu1 %v19389_v16  ;;  %v24472_v16 = vand.u32 4294901760, %v18596_v10  ;;  %v24479_v10 = vand.u32 4294901760, %v24406_v35  ;;  %v24501_v35 = vand.u32 4294901760, %v24429_v33  ;;  %v24509_v33 = vand.u32 4294901760, %v24437_v55  ;;  %v24520_v55 = vld [vmem:[#allocation91_spill] sm:$0xff] }
 0x397   : > { %14112 = vmatmul.mubr.f32.gmra.mrb[126].mxu1 %v19380_v19  ;;  %v24473_v19 = vand.u32 4294901760, %v18601_v6  ;;  %v24480_v6 = vand.u32 4294901760, %v18637_v9  ;;  %v24487_v9 = vand.u32 4294901760, %v24412_v24 }
 0x398   : > { %14146 = vmatprep.mubr.f32.mxu1 %v24467_v54 }
 0x399   : > { %v15426_v59 = vpack.c.bf16 %v24473_v19, %v24472_v16  ;;  %v24493_v16 = vand.u32 4294901760, %v18716_v25  ;;  %v24499_v25 = vand.u32 4294901760, %v24427_v36  ;;  %v24500_v19 = vand.u32 4294901760, %v24428_v49 }
 0x39a   : > { %v24506_v36 = vand.u32 4294901760, %v24434_v7  ;;  %v24507_v49 = vand.u32 4294901760, %v24435_v21  ;;  %v24516_v21 = vld [vmem:[#allocation87_spill] sm:$0xff]  ;;  %v24521_v7 = vand.u32 4294901760, %v24520_v55  ;;  %v24584_v55 = vld [vmem:[#allocation20_spill] sm:$0xff] }
 0x39b   : > { %14147 = vmatmul.mubr.f32.vlgmr.msra.gmra.mrb[64].mxu1 %v24470_v40  ;;  %v24477_v40 = vand.u32 4294901760, %v18626_v57  ;;  %v24484_v57 = vand.u32 4294901760, %v18647_v11  ;;  %v24491_v11 = vand.u32 4294901760, %v24415_v26  ;;  %v15446_v37 = vpack.c.bf16 %v24493_v16, %v24492_v43 }
 0x39c   : > { %15421 = vmatpush3.bf16.msra.mxu1 %v15418_v50  ;;  %14149 = vmatprep.mubr.f32.mxu1 %v24471_v3  ;;  %v24481_v50 = vand.u32 4294901760, %v18642_v31  ;;  %v24482_v3 = vand.u32 4294901760, %v24408_v22  ;;  %v24488_v31 = vand.u32 4294901760, %v18690_v4  ;;  %v24489_v22 = vand.u32 4294901760, %v18695_v42 }
 0x39d   : > { %15423 = vmatprep.subr.bf16.mxu1 %v15422_v0  ;;  %v15430_v1 = vpack.c.bf16 %v24477_v40, %v24476_v27  ;;  %v15438_v54 = vpack.c.bf16 %v24485_v2, %v24484_v57  ;;  %v24495_v4 = vand.u32 4294901760, %v24418_v46  ;;  %v24496_v42 = vand.u32 4294901760, %v24424_v17  ;;  %v24526_v27 = vld [vmem:[#allocation97_spill] sm:$0xff] }
 0x39e   : > { %v15434_v39 = vpack.c.bf16 %v24481_v50, %v24480_v6  ;;  %v15442_v61 = vpack.c.bf16 %v24489_v22, %v24488_v31  ;;  %v24502_v17 = vand.u32 4294901760, %v24430_v23  ;;  %v24504_v46 = vand.u32 4294901760, %v24432_v41  ;;  %v24512_v23 = vld [vmem:[#allocation83_spill] sm:$0xff]  ;;  %v24532_v50 = vld [vmem:[#allocation101_spill] sm:$0xff] }
 0x39f   : > { %14150 = vmatmul.mubr.f32.gmra.mrb[66].mxu1 %v24474_v12  ;;  %v24510_v26 = vand.u32 4294901760, %v24438_v30  ;;  %v24513_v24 = vand.u32 4294901760, %v24512_v23  ;;  %v24517_v41 = vand.u32 4294901760, %v24516_v21  ;;  %v24522_v30 = vld [vmem:[#allocation93_spill] sm:$0xff]  ;;  %v24527_v40 = vand.u32 4294901760, %v24526_v27  ;;  %v24575_v23 = vld [vmem:[#allocation8_spill] sm:$0xff] }
 0x3a0   : > { %14152 = vmatprep.mubr.f32.mxu1 %v24475_v29  ;;  %15425 = vmatpush3.bf16.msra.mxu1 %v15422_v0  ;;  %v24497_v0 = vand.u32 4294901760, %v24425_v18  ;;  %v24503_v18 = vand.u32 4294901760, %v24431_v8  ;;  %v24523_v12 = vand.u32 4294901760, %v24522_v30  ;;  %v24525_v29 = vand.u32 4294901760, %v24524_v32  ;;  %v24536_v57 = vld [vmem:[#allocation105_spill] sm:$0xff]  ;;  %v24579_v21 = vld [vmem:[#allocation48_spill] sm:$0xff] }
 0x3a1   : > { %15427 = vmatprep.subr.bf16.mxu1 %v15426_v59  ;;  %v24531_v6 = vand.u32 4294901760, %v24450_v38  ;;  %v24537_v2 = vand.u32 4294901760, %v24536_v57  ;;  %v24544_v38 = vld [vmem:[#allocation113_spill] sm:$0xff]  ;;  %v24548_v43 = vand.u32 4294901760, %v19276_v20  ;;  %v24549_v16 = vand.u32 4294901760, %v19288_v52  ;;  %v24559_v20 = vld [vmem:[#allocation132_spill] sm:$0xff] }
 0x3a2   : > { %v24561_v52 = vand.u32 4294901760, %v24466_v56  ;;  %v24572_v56 = vld [vmem:[#allocation84_spill] sm:$0xff]  ;;  %v24586_v30 = vld [vmem:[#allocation19_spill] sm:$0xff]  ;;  %v24588_v32 = vld [vmem:[#allocation54_spill] sm:$0xff] }
 0x3a3   : > { %14153 = vmatmul.mubr.f32.gmra.mrb[68].mxu1 %v24478_v34  ;;  %v24590_v27 = vld [vmem:[#allocation28_spill] sm:$0xff]  ;;  %v24600_v57 = vld [vmem:[#allocation51_spill] sm:$0xff] }
 0x3a4   : > { %14155 = vmatprep.mubr.f32.mxu1 %v24479_v10  ;;  %15429 = vmatpush3.bf16.msra.mxu1 %v15426_v59  ;;  %v24486_v59 = vand.u32 4294901760, %v24411_v51  ;;  %v24514_v51 = vld [vmem:[#allocation85_spill] sm:$0xff]  ;;  %v24530_v10 = vand.u32 4294901760, %v24449_v14  ;;  %v24542_v14 = vld [vmem:[#allocation111_spill] sm:$0xff] }
 0x3a5   : > { %15431 = vmatprep.subr.bf16.mxu1 %v15430_v1  ;;  %v24515_v8 = vand.u32 4294901760, %v24514_v51  ;;  %v24543_v22 = vand.u32 4294901760, %v24542_v14  ;;  %v24577_v51 = vld [vmem:[#allocation7_spill] sm:$0xff]  ;;  %v24606_v14 = vld [vmem:[#allocation73_spill] sm:$0xff] }
 0x3a7   : > { %14156 = vmatmul.mubr.f32.gmra.mrb[70].mxu1 %v24482_v3  ;;  %v24534_v3 = vld [vmem:[#allocation103_spill] sm:$0xff] }
 0x3a8   : > { %14158 = vmatprep.mubr.f32.mxu1 %v24483_v58  ;;  %15433 = vmatpush3.bf16.msra.mxu1 %v15430_v1  ;;  %v24528_v1 = vld [vmem:[#allocation36_spill] sm:$0xff]  ;;  %v24535_v58 = vand.u32 4294901760, %v24534_v3 }
 0x3a9   : > { %15435 = vmatprep.subr.bf16.mxu1 %v15434_v39  ;;  %v24529_v34 = vand.u32 4294901760, %v24528_v1  ;;  %v24592_v1 = vld [vmem:[#allocation26_spill] sm:$0xff]  ;;  %v24598_v3 = vld [vmem:[#allocation44_spill] sm:$0xff] }
 0x3ab   : > { %14159 = vmatmul.mubr.f32.gmra.mrb[72].mxu1 %v24486_v59 }
 0x3ac   : > { %14161 = vmatprep.mubr.f32.mxu1 %v24487_v9  ;;  %15437 = vmatpush3.bf16.msra.mxu1 %v15434_v39  ;;  %v24533_v39 = vand.u32 4294901760, %v24532_v50  ;;  %v24540_v9 = vld [vmem:[#allocation109_spill] sm:$0xff]  ;;  %v24596_v50 = vld [vmem:[#allocation35_spill] sm:$0xff] }
 0x3ad   : > { %15439 = vmatprep.subr.bf16.mxu1 %v15438_v54  ;;  %v24541_v31 = vand.u32 4294901760, %v24540_v9  ;;  %v24604_v9 = vld [vmem:[#allocation67_spill] sm:$0xff] }
 0x3af   : > { %14162 = vmatmul.mubr.f32.gmra.mrb[74].mxu1 %v24490_v48  ;;  %v24546_v48 = vand.u32 4294901760, %v24458_v63  ;;  %v24555_v63 = vld [vmem:[#allocation128_spill] sm:$0xff] }
 0x3b0   : > { %14164 = vmatprep.mubr.f32.mxu1 %v24491_v11  ;;  %15441 = vmatpush3.bf16.msra.mxu1 %v15438_v54  ;;  %v24538_v54 = vld [vmem:[#allocation107_spill] sm:$0xff]  ;;  %v24547_v11 = vand.u32 4294901760, %v24459_v13 }
 0x3b1   : > { %15443 = vmatprep.subr.bf16.mxu1 %v15442_v61  ;;  %v24539_v59 = vand.u32 4294901760, %v24538_v54  ;;  %v24557_v13 = vld [vmem:[#allocation127_spill] sm:$0xff]  ;;  %v24602_v54 = vld [vmem:[#allocation61_spill] sm:$0xff] }
 0x3b3   : > { %14165 = vmatmul.mubr.f32.gmra.mrb[76].mxu1 %v24494_v60  ;;  %v24551_v60 = vld [vmem:[#allocation123_spill] sm:$0xff] }
 0x3b4   : > { %14167 = vmatprep.mubr.f32.mxu1 %v24495_v4  ;;  %15445 = vmatpush3.bf16.msra.mxu1 %v15442_v61  ;;  %v24545_v61 = vand.u32 4294901760, %v24544_v38  ;;  %v24552_v4 = vand.u32 4294901760, %v24551_v60  ;;  %v24608_v38 = vld [vmem:[#allocation79_spill] sm:$0xff]  ;;  %v24615_v60 = vld [vmem:[#allocation96_spill] sm:$0xff] }
 0x3b5   : > { %15447 = vmatprep.subr.bf16.mxu1 %v15446_v37 }
 0x3b7   : > { %14168 = vmatmul.mubr.f32.gmra.mrb[78].mxu1 %v24496_v42  ;;  %v24553_v42 = vld [vmem:[#allocation125_spill] sm:$0xff] }
 0x3b8   : > { %14170 = vmatprep.mubr.f32.mxu1 %v24497_v0  ;;  %15449 = vmatpush3.bf16.msra.mxu1 %v15446_v37  ;;  %v24550_v37 = vand.u32 4294901760, %v24460_v15  ;;  %v24554_v0 = vand.u32 4294901760, %v24553_v42  ;;  %v24562_v15 = vld [vmem:[#allocation136_spill] sm:$0xff]  ;;  %v24617_v42 = vld [vmem:[#allocation41_spill] sm:$0xff] }
 0x3b9   : > { %15451 = vmatprep.subr.bf16.mxu1 %v24365_v47 }
 0x3bb   : > { %14171 = vmatmul.mubr.f32.gmra.mrb[80].mxu1 %v24498_v53  ;;  %v24556_v53 = vand.u32 4294901760, %v24555_v63  ;;  %v24619_v63 = vld [vmem:[#allocation100_spill] sm:$0xff] }
 0x3bc   : > { %14173 = vmatprep.mubr.f32.mxu1 %v24499_v25  ;;  %v24558_v25 = vand.u32 4294901760, %v24557_v13  ;;  %v24621_v13 = vld [vmem:[#allocation104_spill] sm:$0xff] }
 0x3bf   : > { %14174 = vmatmul.mubr.f32.gmra.mrb[82].mxu1 %v24500_v19  ;;  %v24560_v19 = vand.u32 4294901760, %v24559_v20  ;;  %v24623_v20 = vld [vmem:[#allocation108_spill] sm:$0xff] }
 0x3c0   : > { %14176 = vmatprep.mubr.f32.mxu1 %v24501_v35  ;;  %v24563_v35 = vand.u32 4294901760, %v24562_v15  ;;  %v24626_v15 = vld [vmem:[#allocation110_spill] sm:$0xff] }
 0x3c3   : > { %14177 = vmatmul.mubr.f32.gmra.mrb[84].mxu1 %v24502_v17  ;;  %v24564_v17 = vld [vmem:[#allocation135_spill] sm:$0xff] }
 0x3c4   : > { %14179 = vmatprep.mubr.f32.mxu1 %v24503_v18  ;;  %v24565_v18 = vand.u32 4294901760, %v24564_v17  ;;  %v19788_v17 = vld [vmem:[%s22958_s5] sm:$0xff] }
 0x3c5   : > { %24628 = vst [vmem:[#allocation37_spill] sm:$0xff] %v19788_v17 }
 0x3c7   : > { %14180 = vmatmul.mubr.f32.gmra.mrb[86].mxu1 %v24504_v46  ;;  %v24566_v46 = vld [vmem:[#allocation140_spill] sm:$0xff] }
 0x3c8   : > { %14182 = vmatprep.mubr.f32.mxu1 %v24505_v62  ;;  %v24567_v62 = vand.u32 4294901760, %v24566_v46  ;;  %v23450_v46 = vand.u32 4294901760, %v19788_v17  ;;  %v24645_v17 = vld [vmem:[#allocation138_spill] sm:$0xff] }
 0x3cb   : > { %14183 = vmatmul.mubr.f32.gmra.mrb[88].mxu1 %v24506_v36  ;;  %v24568_v36 = vld [vmem:[#allocation139_spill] sm:$0xff] }
 0x3cc   : > { %14185 = vmatprep.mubr.f32.mxu1 %v24507_v49  ;;  %v24569_v49 = vand.u32 4294901760, %v24568_v36  ;;  %v24630_v36 = vld [vmem:[#allocation114_spill] sm:$0xff] }
 0x3cf   : > { %14186 = vmatmul.mubr.f32.gmra.mrb[90].mxu1 %v24508_v44  ;;  %v24570_v44 = vld [vmem:[#allocation65_spill] sm:$0xff] }
 0x3d0   : > { %14188 = vmatprep.mubr.f32.mxu1 %v24509_v33  ;;  %v24571_v33 = vld [vmem:[#allocation60_spill] sm:$0xff] }
 0x3d3   : > { %14189 = vmatmul.mubr.f32.gmra.mrb[92].mxu1 %v24510_v26  ;;  %v24573_v26 = vld [vmem:[#allocation43_spill] sm:$0xff] }
 0x3d4   : > { %14191 = vmatprep.mubr.f32.mxu1 %v24511_v5  ;;  %v24574_v5 = vld [vmem:[#allocation72_spill] sm:$0xff] }
 0x3d7   : > { %14192 = vmatmul.mubr.f32.gmra.mrb[94].mxu1 %v24513_v24  ;;  %v24576_v24 = vld [vmem:[#allocation46_spill] sm:$0xff] }
 0x3d8   : > { %14194 = vmatprep.mubr.f32.mxu1 %v24515_v8  ;;  %v24578_v8 = vld [vmem:[#allocation12_spill] sm:$0xff] }
 0x3db   : > { %14195 = vmatmul.mubr.f32.gmra.mrb[96].mxu1 %v24517_v41  ;;  %v24581_v41 = vld [vmem:[#allocation16_spill] sm:$0xff] }
 0x3dc   : > { %14197 = vmatprep.mubr.f32.mxu1 %v24519_v45  ;;  %v24583_v45 = vld [vmem:[#allocation15_spill] sm:$0xff] }
 0x3df   : > { %14198 = vmatmul.mubr.f32.gmra.mrb[98].mxu1 %v24521_v7  ;;  %v24585_v7 = vld [vmem:[#allocation53_spill] sm:$0xff] }
 0x3e0   : > { %14200 = vmatprep.mubr.f32.mxu1 %v24523_v12  ;;  %v24587_v12 = vld [vmem:[#allocation24_spill] sm:$0xff] }
 0x3e3   : > { %14201 = vmatmul.mubr.f32.gmra.mrb[100].mxu1 %v24525_v29  ;;  %v24589_v29 = vld [vmem:[#allocation22_spill] sm:$0xff] }
 0x3e4   : > { %14203 = vmatprep.mubr.f32.mxu1 %v24527_v40  ;;  %v24591_v40 = vld [vmem:[#allocation56_spill] sm:$0xff] }
 0x3e7   : > { %14204 = vmatmul.mubr.f32.gmra.mrb[102].mxu1 %v24529_v34  ;;  %v24593_v34 = vld [vmem:[#allocation32_spill] sm:$0xff] }
 0x3e8   : > { %14206 = vmatprep.mubr.f32.mxu1 %v24530_v10  ;;  %v24594_v10 = vld [vmem:[#allocation30_spill] sm:$0xff] }
 0x3eb   : > { %14207 = vmatmul.mubr.f32.gmra.mrb[104].mxu1 %v24531_v6  ;;  %v24595_v6 = vld [vmem:[#allocation39_spill] sm:$0xff] }
 0x3ec   : > { %14209 = vmatprep.mubr.f32.mxu1 %v24533_v39  ;;  %v24597_v39 = vld [vmem:[#allocation47_spill] sm:$0xff] }
 0x3ef   : > { %14210 = vmatmul.mubr.f32.gmra.mrb[106].mxu1 %v24535_v58  ;;  %v24599_v58 = vld [vmem:[#allocation55_spill] sm:$0xff] }
 0x3f0   : > { %14212 = vmatprep.mubr.f32.mxu1 %v24537_v2  ;;  %v24601_v2 = vld [vmem:[#allocation63_spill] sm:$0xff] }
 0x3f3   : > { %14213 = vmatmul.mubr.f32.gmra.mrb[108].mxu1 %v24539_v59  ;;  %v24603_v59 = vld [vmem:[#allocation70_spill] sm:$0xff] }
 0x3f4   : > { %14215 = vmatprep.mubr.f32.mxu1 %v24541_v31  ;;  %v24605_v31 = vld [vmem:[#allocation75_spill] sm:$0xff] }
 0x3f7   : > { %14216 = vmatmul.mubr.f32.gmra.mrb[110].mxu1 %v24543_v22  ;;  %v24607_v22 = vld [vmem:[#allocation80_spill] sm:$0xff] }
 0x3f8   : > { %14218 = vmatprep.mubr.f32.mxu1 %v24545_v61  ;;  %v24609_v61 = vld [vmem:[#allocation82_spill] sm:$0xff] }
 0x3fb   : > { %14219 = vmatmul.mubr.f32.gmra.mrb[112].mxu1 %v24546_v48  ;;  %v24610_v48 = vld [vmem:[#allocation81_spill] sm:$0xff] }
 0x3fc   : > { %14221 = vmatprep.mubr.f32.mxu1 %v24547_v11  ;;  %v24611_v11 = vld [vmem:[#allocation88_spill] sm:$0xff] }
 0x3ff   : > { %14222 = vmatmul.mubr.f32.gmra.mrb[114].mxu1 %v24548_v43  ;;  %v24612_v43 = vld [vmem:[#allocation86_spill] sm:$0xff] }
 0x400   : > { %14224 = vmatprep.mubr.f32.mxu1 %v24549_v16  ;;  %v24613_v16 = vld [vmem:[#allocation92_spill] sm:$0xff] }
 0x403   : > { %14225 = vmatmul.mubr.f32.gmra.mrb[116].mxu1 %v24550_v37  ;;  %v24614_v37 = vld [vmem:[#allocation90_spill] sm:$0xff] }
 0x404   : > { %14227 = vmatprep.mubr.f32.mxu1 %v24552_v4  ;;  %v24616_v4 = vld [vmem:[#allocation94_spill] sm:$0xff] }
 0x407   : > { %14228 = vmatmul.mubr.f32.gmra.mrb[118].mxu1 %v24554_v0  ;;  %v24618_v0 = vld [vmem:[#allocation34_spill] sm:$0xff] }
 0x408   : > { %14230 = vmatprep.mubr.f32.mxu1 %v24556_v53  ;;  %v24620_v53 = vld [vmem:[#allocation98_spill] sm:$0xff] }
 0x40b   : > { %14231 = vmatmul.mubr.f32.gmra.mrb[120].mxu1 %v24558_v25  ;;  %v24622_v25 = vld [vmem:[#allocation102_spill] sm:$0xff] }
 0x40c   : > { %14233 = vmatprep.mubr.f32.mxu1 %v24560_v19  ;;  %v24624_v19 = vld [vmem:[#allocation106_spill] sm:$0xff] }
 0x40f   : > { %14234 = vmatmul.mubr.f32.gmra.mrb[122].mxu1 %v24561_v52  ;;  %v24625_v52 = vld [vmem:[#allocation112_spill] sm:$0xff] }
 0x410   : > { %14236 = vmatprep.mubr.f32.mxu1 %v24563_v35  ;;  %v24627_v35 = vld [vmem:[#allocation116_spill] sm:$0xff] }
 0x413   : > { %14237 = vmatmul.mubr.f32.gmra.mrb[124].mxu1 %v24565_v18  ;;  %v19793_v18 = vld [vmem:[%s22958_s5 + $0x8] sm:$0xff] }
 0x414   : > { %14239 = vmatprep.mubr.f32.mxu1 %v24567_v62  ;;  %24629 = vst [vmem:[#allocation69_spill] sm:$0xff] %v19793_v18  ;;  %v23449_v62 = vand.u32 4294901760, %v19793_v18  ;;  %v24641_v18 = vld [vmem:[#allocation129_spill] sm:$0xff] }
 0x417   : > { %14240 = vmatmul.mubr.f32.gmra.mrb[126].mxu1 %v24569_v49  ;;  %v19802_v49 = vpack.c.bf16 %v23449_v62, %v23450_v46  ;;  %v19816_v62 = vld [vmem:[%s22958_s5 + $0x10] sm:$0xff]  ;;  %v19821_v46 = vld [vmem:[%s22958_s5 + $0x18] sm:$0xff] }
 0x418   : > { %14274 = vmatprep.mubr.f32.mxu1 %v24570_v44  ;;  %24639 = vst [vmem:[#allocation6_spill] sm:$0xff] %v19816_v62  ;;  %24640 = vst [vmem:[#allocation5_spill] sm:$0xff] %v19821_v46 }
 0x419   : > { %24631 = vst [vmem:[#allocation66_spill] sm:$0xff] %v19802_v49  ;;  %15483 = vmatprep.subr.bf16.mxu0 %v19802_v49 }
 0x41a   : > { %15485 = vmatpush3.bf16.msra.mxu0 %v19802_v49  ;;  %v23460_v49 = vand.u32 4294901760, %v19816_v62  ;;  %v19841_v62 = vld [vmem:[%s22958_s5 + $0x20] sm:$0xff] }
 0x41b   : > { %14275 = vmatmul.mubr.f32.vlgmr.msra.gmra.mrb[64].mxu1 %v24571_v33  ;;  %24647 = vst [vmem:[#allocation10_spill] sm:$0xff] %v19841_v62 }
 0x41c   : > { %15453 = vmatpush3.bf16.msra.mxu1 %v24365_v47  ;;  %14277 = vmatprep.mubr.f32.mxu1 %v24572_v56  ;;  %v24580_v47 = vld [vmem:[#allocation11_spill] sm:$0xff] }
 0x41d   : > { %15455 = vmatprep.subr.bf16.mxu1 %v24573_v26 }
 0x41f   : > { %14278 = vmatmul.mubr.f32.gmra.mrb[66].mxu1 %v24574_v5 }
 0x420   : > { %14280 = vmatprep.mubr.f32.mxu1 %v24575_v23  ;;  %15457 = vmatpush3.bf16.msra.mxu1 %v24573_v26  ;;  %v24632_v26 = vld [vmem:[#allocation119_spill] sm:$0xff] }
 0x421   : > { %15459 = vmatprep.subr.bf16.mxu1 %v24576_v24 }
 0x423   : > { %14281 = vmatmul.mubr.f32.gmra.mrb[68].mxu1 %v24577_v51 }
 0x424   : > { %14283 = vmatprep.mubr.f32.mxu1 %v24578_v8  ;;  %15461 = vmatpush3.bf16.msra.mxu1 %v24576_v24  ;;  %v24633_v24 = vld [vmem:[#allocation118_spill] sm:$0xff] }
 0x425   : > { %15463 = vmatprep.subr.bf16.mxu1 %v24579_v21 }
 0x427   : > { %14284 = vmatmul.mubr.f32.gmra.mrb[70].mxu1 %v24580_v47 }
 0x428   : > { %14286 = vmatprep.mubr.f32.mxu1 %v24581_v41  ;;  %15465 = vmatpush3.bf16.msra.mxu1 %v24579_v21  ;;  %v24634_v21 = vld [vmem:[#allocation122_spill] sm:$0xff] }
 0x429   : > { %15467 = vmatprep.subr.bf16.mxu1 %v24582_v28 }
 0x42b   : > { %14287 = vmatmul.mubr.f32.gmra.mrb[72].mxu1 %v24583_v45 }
 0x42c   : > { %14289 = vmatprep.mubr.f32.mxu1 %v24584_v55  ;;  %15469 = vmatpush3.bf16.msra.mxu1 %v24582_v28  ;;  %v24635_v28 = vld [vmem:[#allocation120_spill] sm:$0xff] }
 0x42d   : > { %15471 = vmatprep.subr.bf16.mxu1 %v24585_v7 }
 0x42f   : > { %14290 = vmatmul.mubr.f32.gmra.mrb[74].mxu1 %v24586_v30 }
 0x430   : > { %14292 = vmatprep.mubr.f32.mxu1 %v24587_v12  ;;  %15473 = vmatpush3.bf16.msra.mxu1 %v24585_v7  ;;  %v24636_v7 = vld [vmem:[#allocation126_spill] sm:$0xff] }
 0x431   : > { %15475 = vmatprep.subr.bf16.mxu1 %v24588_v32 }
 0x433   : > { %14293 = vmatmul.mubr.f32.gmra.mrb[76].mxu1 %v24589_v29 }
 0x434   : > { %14295 = vmatprep.mubr.f32.mxu1 %v24590_v27  ;;  %15477 = vmatpush3.bf16.msra.mxu1 %v24588_v32  ;;  %v24637_v32 = vld [vmem:[#allocation124_spill] sm:$0xff] }
 0x435   : > { %15479 = vmatprep.subr.bf16.mxu1 %v24591_v40 }
 0x437   : > { %14296 = vmatmul.mubr.f32.gmra.mrb[78].mxu1 %v24592_v1 }
 0x438   : > { %14298 = vmatprep.mubr.f32.mxu1 %v24593_v34  ;;  %15481 = vmatpush3.bf16.msra.mxu1 %v24591_v40  ;;  %v24638_v40 = vld [vmem:[#allocation130_spill] sm:$0xff] }
 0x43b   : > { %14299 = vmatmul.mubr.f32.gmra.mrb[80].mxu1 %v24594_v10 }
 0x43c   : > { %14301 = vmatprep.mubr.f32.mxu1 %v24595_v6 }
 0x43f   : > { %14302 = vmatmul.mubr.f32.gmra.mrb[82].mxu1 %v24596_v50 }
 0x440   : > { %14304 = vmatprep.mubr.f32.mxu1 %v24597_v39 }
 0x443   : > { %14305 = vmatmul.mubr.f32.gmra.mrb[84].mxu1 %v24598_v3 }
 0x444   : > { %14307 = vmatprep.mubr.f32.mxu1 %v24599_v58 }
 0x447   : > { %14308 = vmatmul.mubr.f32.gmra.mrb[86].mxu1 %v24600_v57 }
 0x448   : > { %14310 = vmatprep.mubr.f32.mxu1 %v24601_v2 }
 0x44b   : > { %14311 = vmatmul.mubr.f32.gmra.mrb[88].mxu1 %v24602_v54 }
 0x44c   : > { %14313 = vmatprep.mubr.f32.mxu1 %v24603_v59 }
 0x44f   : > { %14314 = vmatmul.mubr.f32.gmra.mrb[90].mxu1 %v24604_v9 }
 0x450   : > { %14316 = vmatprep.mubr.f32.mxu1 %v24605_v31 }
 0x453   : > { %14317 = vmatmul.mubr.f32.gmra.mrb[92].mxu1 %v24606_v14 }
 0x454   : > { %14319 = vmatprep.mubr.f32.mxu1 %v24607_v22 }
 0x457   : > { %14320 = vmatmul.mubr.f32.gmra.mrb[94].mxu1 %v24608_v38 }
 0x458   : > { %14322 = vmatprep.mubr.f32.mxu1 %v24609_v61 }
 0x45b   : > { %14323 = vmatmul.mubr.f32.gmra.mrb[96].mxu1 %v24610_v48 }
 0x45c   : > { %14325 = vmatprep.mubr.f32.mxu1 %v24611_v11 }
 0x45f   : > { %14326 = vmatmul.mubr.f32.gmra.mrb[98].mxu1 %v24612_v43 }
 0x460   : > { %14328 = vmatprep.mubr.f32.mxu1 %v24613_v16 }
 0x463   : > { %14329 = vmatmul.mubr.f32.gmra.mrb[100].mxu1 %v24614_v37 }
 0x464   : > { %14331 = vmatprep.mubr.f32.mxu1 %v24615_v60 }
 0x467   : > { %14332 = vmatmul.mubr.f32.gmra.mrb[102].mxu1 %v24616_v4 }
 0x468   : > { %14334 = vmatprep.mubr.f32.mxu1 %v24617_v42 }
 0x46b   : > { %14335 = vmatmul.mubr.f32.gmra.mrb[104].mxu1 %v24618_v0 }
 0x46c   : > { %14337 = vmatprep.mubr.f32.mxu1 %v24619_v63 }
 0x46f   : > { %14338 = vmatmul.mubr.f32.gmra.mrb[106].mxu1 %v24620_v53 }
 0x470   : > { %14340 = vmatprep.mubr.f32.mxu1 %v24621_v13 }
 0x473   : > { %14341 = vmatmul.mubr.f32.gmra.mrb[108].mxu1 %v24622_v25 }
 0x474   : > { %14343 = vmatprep.mubr.f32.mxu1 %v24623_v20 }
 0x477   : > { %14344 = vmatmul.mubr.f32.gmra.mrb[110].mxu1 %v24624_v19 }
 0x478   : > { %14346 = vmatprep.mubr.f32.mxu1 %v24625_v52 }
 0x47b   : > { %14347 = vmatmul.mubr.f32.gmra.mrb[112].mxu1 %v24626_v15 }
 0x47c   : > { %14349 = vmatprep.mubr.f32.mxu1 %v24627_v35 }
 0x47f   : > { %14350 = vmatmul.mubr.f32.gmra.mrb[114].mxu1 %v24630_v36 }
 0x480   : > { %14352 = vmatprep.mubr.f32.mxu1 %v24632_v26 }
 0x483   : > { %14353 = vmatmul.mubr.f32.gmra.mrb[116].mxu1 %v24633_v24 }
 0x484   : > { %14355 = vmatprep.mubr.f32.mxu1 %v24634_v21  ;;  %v24646_v21 = vld [vmem:[#allocation137_spill] sm:$0xff] }
 0x487   : > { %14356 = vmatmul.mubr.f32.gmra.mrb[118].mxu1 %v24635_v28  ;;  %v23459_v28 = vand.u32 4294901760, %v19821_v46  ;;  %v24648_v46 = vand.u32 4294901760, %v19841_v62  ;;  %v19891_v62 = vld [vmem:[%s22958_s5 + $0x50] sm:$0xff] }
 0x488   : > { %14358 = vmatprep.mubr.f32.mxu1 %v24636_v7  ;;  %v24644_v7 = vld [vmem:[#allocation133_spill] sm:$0xff] }
 0x48b   : > { %14359 = vmatmul.mubr.f32.gmra.mrb[120].mxu1 %v24637_v32  ;;  %v24643_v32 = vld [vmem:[#allocation134_spill] sm:$0xff] }
 0x48c   : > { %14361 = vmatprep.mubr.f32.mxu1 %v24638_v40  ;;  %v19830_v40 = vpack.c.bf16 %v23459_v28, %v23460_v49  ;;  %v19846_v28 = vld [vmem:[%s22958_s5 + $0x28] sm:$0xff]  ;;  %v19851_v49 = vld [vmem:[%s22958_s5 + $0x30] sm:$0xff] }
 0x48d   : > { %v24651_v26 = vand.u32 4294901760, %v19851_v49 }
 0x48e   : > { %24642 = vst [vmem:[#allocation9_spill] sm:$0xff] %v19830_v40  ;;  %15487 = vmatprep.subr.bf16.mxu0 %v19830_v40 }
 0x48f   : > { %14362 = vmatmul.mubr.f32.gmra.mrb[122].mxu1 %v24641_v18  ;;  %15489 = vmatpush3.bf16.msra.mxu0 %v19830_v40 }
 0x490   : > { %14364 = vmatprep.mubr.f32.mxu1 %v24643_v32  ;;  %v24649_v32 = vand.u32 4294901760, %v19846_v28 }
 0x492   : > { %v19877_v18 = vpack.c.bf16 %v24649_v32, %v24648_v46  ;;  %v19896_v46 = vld [vmem:[%s22958_s5 + $0x58] sm:$0xff] }
 0x493   : > { %14365 = vmatmul.mubr.f32.gmra.mrb[124].mxu1 %v24644_v7  ;;  %v19865_v7 = vld [vmem:[%s22958_s5 + $0x40] sm:$0xff]  ;;  %v7272_v32 = vand.u32 4294901760, %v19896_v46 }
 0x494   : > { %14367 = vmatprep.mubr.f32.mxu1 %v24645_v17  ;;  %24650 = vst [vmem:[#allocation13_spill] sm:$0xff] %v19877_v18  ;;  %v23469_v17 = vand.u32 4294901760, %v19865_v7  ;;  %15491 = vmatprep.subr.bf16.mxu0 %v19877_v18 }
 0x495   : > { %15493 = vmatpush3.bf16.msra.mxu0 %v19877_v18 }
 0x497   : > { %14368 = vmatmul.mubr.f32.gmra.mrb[126].mxu1 %v24646_v21  ;;  %v19859_v21 = vld [vmem:[%s22958_s5 + $0x38] sm:$0xff] }
 0x498   : > { %14402 = vmatprep.mubr.f32.mxu1 %v24570_v44  ;;  %v19870_v44 = vld [vmem:[%s22958_s5 + $0x48] sm:$0xff]  ;;  %v23467_v40 = vand.u32 4294901760, %v19859_v21 }
 0x499   : > { %v23468_v24 = vand.u32 4294901760, %v19870_v44 }
 0x49a   : > { %v19886_v36 = vpack.c.bf16 %v23467_v40, %v24651_v26  ;;  %v7269_v26 = vand.u32 4294901760, %v19891_v62  ;;  %v19919_v40 = vld [vmem:[%s22958_s5 + $0x68] sm:$0xff] }
 0x49b   : > { %14403 = vmatmul.mubr.f32.vlgmr.msra.gmra.mrb[64].mxu1 %v24571_v33  ;;  %v19906_v33 = vpack.c.bf16 %v23468_v24, %v23469_v17  ;;  %v7278_v17 = vand.u32 4294901760, %v19919_v40 }
 0x49c   : > { %24652 = vst [vmem:[#allocation14_spill] sm:$0xff] %v19886_v36  ;;  %14405 = vmatprep.mubr.f32.mxu1 %v24572_v56  ;;  %15495 = vmatprep.subr.bf16.mxu0 %v19886_v36  ;;  %v19914_v56 = vld [vmem:[%s22958_s5 + $0x60] sm:$0xff] }
 0x49d   : > { %24653 = vst [vmem:[#allocation17_spill] sm:$0xff] %v19906_v33  ;;  %15497 = vmatpush3.bf16.msra.mxu0 %v19886_v36  ;;  %v7275_v24 = vand.u32 4294901760, %v19914_v56 }
 0x49e   : > { %15499 = vmatprep.subr.bf16.mxu0 %v19906_v33 }
 0x49f   : > { %14406 = vmatmul.mubr.f32.gmra.mrb[66].mxu1 %v24574_v5  ;;  %v19928_v5 = vpack.c.bf16 %v7272_v32, %v7269_v26 }
 0x4a0   : > { %14408 = vmatprep.mubr.f32.mxu1 %v24575_v23  ;;  %v19940_v23 = vpack.c.bf16 %v7278_v17, %v7275_v24 }
 0x4a1   : > { %24654 = vst [vmem:[#allocation18_spill] sm:$0xff] %v19928_v5  ;;  %15501 = vmatpush3.bf16.msra.mxu0 %v19906_v33 }
 0x4a2   : > { %15503 = vmatprep.subr.bf16.mxu0 %v19928_v5  ;;  %24655 = vst [vmem:[#allocation21_spill] sm:$0xff] %v19940_v23 }
 0x4a3   : > { %14409 = vmatmul.mubr.f32.gmra.mrb[68].mxu1 %v24577_v51  ;;  %v19990_v51 = vld [vmem:[%s22958_s5 + $0x70] sm:$0xff] }
 0x4a4   : > { %14411 = vmatprep.mubr.f32.mxu1 %v24578_v8  ;;  %v19995_v8 = vld [vmem:[%s22958_s5 + $0x78] sm:$0xff] }
 0x4a5   : > { %15505 = vmatpush3.bf16.msra.mxu0 %v19928_v5 }
 0x4a6   : > { %15507 = vmatprep.subr.bf16.mxu0 %v19940_v23 }
 0x4a7   : > { %14412 = vmatmul.mubr.f32.gmra.mrb[70].mxu1 %v24580_v47  ;;  %v7281_v47 = vand.u32 4294901760, %v19990_v51 }
 0x4a8   : > { %14414 = vmatprep.mubr.f32.mxu1 %v24581_v41  ;;  %v7284_v41 = vand.u32 4294901760, %v19995_v8 }
 0x4a9   : > { %15509 = vmatpush3.bf16.msra.mxu0 %v19940_v23 }
 0x4ab   : > { %14415 = vmatmul.mubr.f32.gmra.mrb[72].mxu1 %v24583_v45  ;;  %v20004_v45 = vpack.c.bf16 %v7284_v41, %v7281_v47 }
 0x4ac   : > { %14417 = vmatprep.mubr.f32.mxu1 %v24584_v55  ;;  %v24657_v55 = vld [vmem:[#allocation114_spill] sm:$0xff] }
 0x4ad   : > { %24656 = vst [vmem:[#allocation23_spill] sm:$0xff] %v20004_v45  ;;  %15511 = vmatprep.subr.bf16.mxu0 %v20004_v45 }
 0x4ae   : > { %15513 = vmatpush3.bf16.msra.mxu0 %v20004_v45 }
 0x4af   : > { %14418 = vmatmul.mubr.f32.gmra.mrb[74].mxu1 %v24586_v30  ;;  %v24658_v30 = vld [vmem:[#allocation119_spill] sm:$0xff] }
 0x4b0   : > { %14420 = vmatprep.mubr.f32.mxu1 %v24587_v12  ;;  %v24659_v12 = vld [vmem:[#allocation118_spill] sm:$0xff] }
 0x4b3   : > { %14421 = vmatmul.mubr.f32.gmra.mrb[76].mxu1 %v24589_v29  ;;  %v24660_v29 = vld [vmem:[#allocation122_spill] sm:$0xff] }
 0x4b4   : > { %14423 = vmatprep.mubr.f32.mxu1 %v24590_v27  ;;  %v24661_v27 = vld [vmem:[#allocation37_spill] sm:$0xff] }
 0x4b7   : > { %14424 = vmatmul.mubr.f32.gmra.mrb[78].mxu1 %v24592_v1  ;;  %v24662_v1 = vand.u32 4294901760, %v24661_v27 }
 0x4b8   : > { %14426 = vmatprep.mubr.f32.mxu1 %v24593_v34 }
 0x4b9   : > { %v20016_v34 = vsub.f32 %v24661_v27, %v24662_v1 }
 0x4bb   : > { %14427 = vmatmul.mubr.f32.gmra.mrb[80].mxu1 %v24594_v10  ;;  %24663 = vst [vmem:[#allocation25_spill] sm:$0xff] %v20016_v34  ;;  %v24664_v10 = vld [vmem:[#allocation69_spill] sm:$0xff] }
 0x4bc   : > { %14429 = vmatprep.mubr.f32.mxu1 %v24595_v6  ;;  %v24665_v6 = vand.u32 4294901760, %v24664_v10 }
 0x4bf   : > { %14430 = vmatmul.mubr.f32.gmra.mrb[82].mxu1 %v24596_v50  ;;  %v20021_v50 = vsub.f32 %v24664_v10, %v24665_v6 }
 0x4c0   : > { %14432 = vmatprep.mubr.f32.mxu1 %v24597_v39  ;;  %v24667_v39 = vld [vmem:[#allocation120_spill] sm:$0xff] }
 0x4c1   : > { %24666 = vst [vmem:[#allocation27_spill] sm:$0xff] %v20021_v50 }
 0x4c3   : > { %14433 = vmatmul.mubr.f32.gmra.mrb[84].mxu1 %v24598_v3  ;;  %v23490_v3 = vand.u32 4294901760, %v20016_v34 }
 0x4c4   : > { %14435 = vmatprep.mubr.f32.mxu1 %v24599_v58  ;;  %v23488_v58 = vand.u32 4294901760, %v20021_v50 }
 0x4c7   : > { %14436 = vmatmul.mubr.f32.gmra.mrb[86].mxu1 %v24600_v57  ;;  %v24668_v57 = vld [vmem:[#allocation126_spill] sm:$0xff] }
 0x4c8   : > { %14438 = vmatprep.mubr.f32.mxu1 %v24601_v2  ;;  %v7963_v2 = vsub.f32 %v20016_v34, %v23490_v3 }
 0x4cb   : > { %14439 = vmatmul.mubr.f32.gmra.mrb[88].mxu1 %v24602_v54  ;;  %v7970_v54 = vsub.f32 %v20021_v50, %v23488_v58 }
 0x4cc   : > { %14441 = vmatprep.mubr.f32.mxu1 %v24603_v59  ;;  %v24669_v59 = vld [vmem:[#allocation124_spill] sm:$0xff] }
 0x4cf   : > { %14442 = vmatmul.mubr.f32.gmra.mrb[90].mxu1 %v24604_v9  ;;  %v7964_v9 = vand.u32 4294901760, %v7963_v2 }
 0x4d0   : > { %14444 = vmatprep.mubr.f32.mxu1 %v24605_v31  ;;  %v7971_v31 = vand.u32 4294901760, %v7970_v54 }
 0x4d3   : > { %14445 = vmatmul.mubr.f32.gmra.mrb[92].mxu1 %v24606_v14  ;;  %v24670_v14 = vld [vmem:[#allocation130_spill] sm:$0xff] }
 0x4d4   : > { %14447 = vmatprep.mubr.f32.mxu1 %v24607_v22  ;;  %v20035_v22 = vpack.c.bf16 %v7971_v31, %v7964_v9 }
 0x4d6   : > { %15515 = vmatprep.subr.bf16.mxu0 %v20035_v22 }
 0x4d7   : > { %14448 = vmatmul.mubr.f32.gmra.mrb[94].mxu1 %v24608_v38  ;;  %v24671_v38 = vld [vmem:[#allocation129_spill] sm:$0xff] }
 0x4d8   : > { %14450 = vmatprep.mubr.f32.mxu1 %v24609_v61  ;;  %v24672_v61 = vld [vmem:[#allocation134_spill] sm:$0xff] }
 0x4db   : > { %14451 = vmatmul.mubr.f32.gmra.mrb[96].mxu1 %v24610_v48  ;;  %v24673_v48 = vld [vmem:[#allocation133_spill] sm:$0xff] }
 0x4dc   : > { %14453 = vmatprep.mubr.f32.mxu1 %v24611_v11  ;;  %v24674_v11 = vld [vmem:[#allocation138_spill] sm:$0xff] }
 0x4df   : > { %14454 = vmatmul.mubr.f32.gmra.mrb[98].mxu1 %v24612_v43  ;;  %v24675_v43 = vld [vmem:[#allocation137_spill] sm:$0xff] }
 0x4e0   : > { %14456 = vmatprep.mubr.f32.mxu1 %v24613_v16  ;;  %v24676_v16 = vld [vmem:[#allocation6_spill] sm:$0xff] }
 0x4e3   : > { %14457 = vmatmul.mubr.f32.gmra.mrb[100].mxu1 %v24614_v37  ;;  %v24677_v37 = vand.u32 4294901760, %v24676_v16 }
 0x4e4   : > { %14459 = vmatprep.mubr.f32.mxu1 %v24615_v60 }
 0x4e5   : > { %v20046_v60 = vsub.f32 %v24676_v16, %v24677_v37 }
 0x4e7   : > { %14460 = vmatmul.mubr.f32.gmra.mrb[102].mxu1 %v24616_v4  ;;  %v24678_v4 = vld [vmem:[#allocation5_spill] sm:$0xff] }
 0x4e8   : > { %14462 = vmatprep.mubr.f32.mxu1 %v24617_v42  ;;  %v24679_v42 = vand.u32 4294901760, %v24678_v4 }
 0x4eb   : > { %14463 = vmatmul.mubr.f32.gmra.mrb[104].mxu1 %v24618_v0  ;;  %v20051_v0 = vsub.f32 %v24678_v4, %v24679_v42 }
 0x4ec   : > { %14465 = vmatprep.mubr.f32.mxu1 %v24619_v63  ;;  %v24680_v63 = vld [vmem:[#allocation10_spill] sm:$0xff] }
 0x4ef   : > { %14466 = vmatmul.mubr.f32.gmra.mrb[106].mxu1 %v24620_v53  ;;  %v24681_v53 = vand.u32 4294901760, %v24680_v63 }
 0x4f0   : > { %14468 = vmatprep.mubr.f32.mxu1 %v24621_v13 }
 0x4f1   : > { %v20056_v13 = vsub.f32 %v24680_v63, %v24681_v53 }
 0x4f3   : > { %14469 = vmatmul.mubr.f32.gmra.mrb[108].mxu1 %v24622_v25  ;;  %v24682_v25 = vand.u32 4294901760, %v19846_v28  ;;  %v23479_v27 = vand.u32 4294901760, %v20056_v13 }
 0x4f4   : > { %14471 = vmatprep.mubr.f32.mxu1 %v24623_v20 }
 0x4f5   : > { %v20061_v20 = vsub.f32 %v19846_v28, %v24682_v25  ;;  %v7991_v2 = vsub.f32 %v20056_v13, %v23479_v27 }
 0x4f7   : > { %14472 = vmatmul.mubr.f32.gmra.mrb[110].mxu1 %v24624_v19  ;;  %v24683_v19 = vand.u32 4294901760, %v19851_v49  ;;  %v23478_v1 = vand.u32 4294901760, %v20061_v20  ;;  %v7992_v37 = vand.u32 4294901760, %v7991_v2 }
 0x4f8   : > { %14474 = vmatprep.mubr.f32.mxu1 %v24625_v52 }
 0x4f9   : > { %v20066_v52 = vsub.f32 %v19851_v49, %v24683_v19  ;;  %v23481_v49 = vand.u32 4294901760, %v20051_v0  ;;  %v7998_v54 = vsub.f32 %v20061_v20, %v23478_v1 }
 0x4fb   : > { %14475 = vmatmul.mubr.f32.gmra.mrb[112].mxu1 %v24626_v15  ;;  %v24684_v15 = vand.u32 4294901760, %v19859_v21  ;;  %v7999_v4 = vand.u32 4294901760, %v7998_v54 }
 0x4fc   : > { %14477 = vmatprep.mubr.f32.mxu1 %v24627_v35 }
 0x4fd   : > { %v20071_v35 = vsub.f32 %v19859_v21, %v24684_v15  ;;  %v23477_v21 = vand.u32 4294901760, %v20066_v52 }
 0x4ff   : > { %14478 = vmatmul.mubr.f32.gmra.mrb[114].mxu1 %v24657_v55  ;;  %v24685_v55 = vand.u32 4294901760, %v19865_v7  ;;  %v23476_v10 = vand.u32 4294901760, %v20071_v35  ;;  %v8005_v9 = vsub.f32 %v20066_v52, %v23477_v21 }
 0x500   : > { %14480 = vmatprep.mubr.f32.mxu1 %v24658_v30 }
 0x501   : > { %v20076_v30 = vsub.f32 %v19865_v7, %v24685_v55  ;;  %v8012_v31 = vsub.f32 %v20071_v35, %v23476_v10  ;;  %v8006_v53 = vand.u32 4294901760, %v8005_v9 }
 0x503   : > { %14481 = vmatmul.mubr.f32.gmra.mrb[116].mxu1 %v24659_v12  ;;  %v24686_v12 = vand.u32 4294901760, %v19870_v44  ;;  %v23475_v7 = vand.u32 4294901760, %v20076_v30 }
 0x504   : > { %14483 = vmatprep.mubr.f32.mxu1 %v24660_v29  ;;  %v23482_v29 = vand.u32 4294901760, %v20046_v60 }
 0x505   : > { %v20081_v28 = vsub.f32 %v19870_v44, %v24686_v12 }
 0x506   : > { %v7977_v44 = vsub.f32 %v20046_v60, %v23482_v29 }
 0x507   : > { %14484 = vmatmul.mubr.f32.gmra.mrb[118].mxu1 %v24667_v39  ;;  %v23474_v6 = vand.u32 4294901760, %v20081_v28  ;;  %v7984_v39 = vsub.f32 %v20051_v0, %v23481_v49 }
 0x508   : > { %14486 = vmatprep.mubr.f32.mxu1 %v24668_v57  ;;  %v20100_v57 = vld [vmem:[%s22957_s4] ss:$0 sm:$0xff] }
 0x50b   : > { %14487 = vmatmul.mubr.f32.gmra.mrb[120].mxu1 %v24669_v59  ;;  %v20111_v59 = vsub.f32 %v19891_v62, %v7269_v26  ;;  %v8026_v62 = vsub.f32 %v20081_v28, %v23474_v6  ;;  %v20133_v26 = vsub.f32 %v19914_v56, %v7275_v24  ;;  %v8013_v24 = vand.u32 4294901760, %v8012_v31 }
 0x50c   : > { %14489 = vmatprep.mubr.f32.mxu1 %v24670_v14  ;;  %v20122_v14 = vsub.f32 %v19896_v46, %v7272_v32  ;;  %v7985_v46 = vand.u32 4294901760, %v7984_v39  ;;  %v20139_v32 = vsub.f32 %v19919_v40, %v7278_v17  ;;  %v20154_v31 = vpack.c.bf16 %v7999_v4, %v7992_v37 }
 0x50d   : > { %v23472_v42 = vand.u32 4294901760, %v20111_v59  ;;  %v8027_v55 = vand.u32 4294901760, %v8026_v62  ;;  %v23470_v12 = vand.u32 4294901760, %v20133_v26 }
 0x50e   : > { %v23471_v56 = vand.u32 4294901760, %v20122_v14  ;;  %v23473_v2 = vand.u32 4294901760, %v20139_v32 }
 0x50f   : > { %14490 = vmatmul.mubr.f32.gmra.mrb[122].mxu1 %v24671_v38  ;;  %v8047_v4 = vsub.f32 %v20133_v26, %v23470_v12 }
 0x510   : > { %14492 = vmatprep.mubr.f32.mxu1 %v24672_v61  ;;  %v8019_v61 = vsub.f32 %v20076_v30, %v23475_v7 }
 0x511   : > { %v8048_v7 = vand.u32 4294901760, %v8047_v4 }
 0x512   : > { %v8020_v15 = vand.u32 4294901760, %v8019_v61 }
 0x513   : > { %14493 = vmatmul.mubr.f32.gmra.mrb[124].mxu1 %v24673_v48 }
 0x514   : > { %14495 = vmatprep.mubr.f32.mxu1 %v24674_v11  ;;  %v20170_v37 = vpack.c.bf16 %v8027_v55, %v8020_v15 }
 0x517   : > { %14496 = vmatmul.mubr.f32.gmra.mrb[126].mxu1 %v24675_v43  ;;  %v7978_v43 = vand.u32 4294901760, %v7977_v44 }
 0x519   : > { %v20148_v39 = vpack.c.bf16 %v7985_v46, %v7978_v43 }
 0x56e   : > { %v14404_v38 = vpop.f32.mrb[64].mxu1 }
 0x56f   : > { %v15802_v48 = vadd.f32 %v14404_v38, %v20100_v57  ;;  %v6769_v11 = vpop.f32.mrb[65].mxu1  ;;  %v8033_v38 = vsub.f32 %v20111_v59, %v23472_v42 }
 0x570   : > { %v15803_v16 = vadd.f32 %v20100_v57, %v6769_v11  ;;  %v8040_v11 = vsub.f32 %v20122_v14, %v23471_v56 }
 0x571   : > { %v7152_v63 = vmax.f32 %v15802_v48, 0.0  ;;  %v20162_v48 = vpack.c.bf16 %v8013_v24, %v8006_v53 }
 0x572   : > { %v7151_v25 = vmax.f32 %v15803_v16, 0.0  ;;  %v14407_v19 = vpop.f32.mrb[66].mxu1  ;;  %v8041_v56 = vand.u32 4294901760, %v8040_v11 }
 0x573   : > { %v20145_v44 = vand.u32 4294901760, %v7152_v63  ;;  %v15804_v17 = vadd.f32 %v14407_v19, %v20100_v57  ;;  %v6781_v40 = vpop.f32.mrb[67].mxu1 }
 0x574   : > { %v20151_v54 = vand.u32 4294901760, %v7151_v25  ;;  %v15805_v9 = vadd.f32 %v20100_v57, %v6781_v40  ;;  %v8034_v40 = vand.u32 4294901760, %v8033_v38 }
 0x575   : > { %24687 = vst [vmem:[#allocation29_spill] sm:$0xff] %v20145_v44  ;;  %v20160_v61 = vsub.f32 %v7152_v63, %v20145_v44  ;;  %v7154_v62 = vmax.f32 %v15804_v17, 0.0 }
 0x576   : > { %24688 = vst [vmem:[#allocation58_spill] sm:$0xff] %v20151_v54  ;;  %v20168_v43 = vsub.f32 %v7151_v25, %v20151_v54  ;;  %v7153_v46 = vmax.f32 %v15805_v9, 0.0  ;;  %v14410_v16 = vpop.f32.mrb[68].mxu1  ;;  %v8054_v25 = vsub.f32 %v20139_v32, %v23473_v2 }
 0x577   : > { %24689 = vst [vmem:[#allocation59_spill] sm:$0xff] %v20160_v61  ;;  %v23480_v63 = vand.u32 4294901760, %v20160_v61  ;;  %v20176_v19 = vand.u32 4294901760, %v7154_v62  ;;  %v15806_v53 = vadd.f32 %v14410_v16, %v20100_v57  ;;  %v6793_v24 = vpop.f32.mrb[69].mxu1 }
 0x578   : > { %24690 = vst [vmem:[#allocation31_spill] sm:$0xff] %v20168_v43  ;;  %v20182_v17 = vand.u32 4294901760, %v7153_v46  ;;  %v15807_v15 = vadd.f32 %v20100_v57, %v6793_v24  ;;  %v23484_v55 = vand.u32 4294901760, %v20168_v43  ;;  %v8055_v1 = vand.u32 4294901760, %v8054_v25 }
 0x579   : > { %24691 = vst [vmem:[#allocation33_spill] sm:$0xff] %v20176_v19  ;;  %v7332_v9 = vsub.f32 %v20160_v61, %v23480_v63  ;;  %v20190_v12 = vsub.f32 %v7154_v62, %v20176_v19  ;;  %v7156_v16 = vmax.f32 %v15806_v53, 0.0 }
 0x57a   : > { %24692 = vst [vmem:[#allocation38_spill] sm:$0xff] %v20182_v17  ;;  %v20193_v42 = vsub.f32 %v7153_v46, %v20182_v17  ;;  %v7155_v2 = vmax.f32 %v15807_v15, 0.0  ;;  %v14413_v6 = vpop.f32.mrb[70].mxu1  ;;  %v7322_v24 = vsub.f32 %v20168_v43, %v23484_v55  ;;  %v20224_v55 = vpack.c.bf16 %v8055_v1, %v8048_v7 }
 0x57b   : > { %24693 = vst [vmem:[#allocation40_spill] sm:$0xff] %v20190_v12  ;;  %v20198_v38 = vand.u32 4294901760, %v7156_v16  ;;  %v15808_v10 = vadd.f32 %v14413_v6, %v20100_v57  ;;  %v6805_v21 = vpop.f32.mrb[71].mxu1  ;;  %v23483_v62 = vand.u32 4294901760, %v20190_v12  ;;  %v7333_v27 = vand.u32 4294901760, %v7332_v9 }
 0x57c   : > { %24694 = vst [vmem:[#allocation45_spill] sm:$0xff] %v20193_v42  ;;  %v20202_v53 = vand.u32 4294901760, %v7155_v2  ;;  %v15809_v11 = vadd.f32 %v20100_v57, %v6805_v21  ;;  %v7323_v46 = vand.u32 4294901760, %v7322_v24  ;;  %v23485_v15 = vand.u32 4294901760, %v20193_v42 }
 0x57d   : > { %24695 = vst [vmem:[#allocation50_spill] sm:$0xff] %v20198_v38  ;;  %v20207_v63 = vsub.f32 %v7156_v16, %v20198_v38  ;;  %v7158_v4 = vmax.f32 %v15808_v10, 0.0  ;;  %v7352_v6 = vsub.f32 %v20190_v12, %v23483_v62  ;;  %v20218_v24 = vpack.c.bf16 %v8041_v56, %v8034_v40 }
 0x57e   : > { %24696 = vst [vmem:[#allocation52_spill] sm:$0xff] %v20202_v53  ;;  %v20213_v49 = vsub.f32 %v7155_v2, %v20202_v53  ;;  %v7157_v25 = vmax.f32 %v15809_v11, 0.0  ;;  %v14416_v29 = vpop.f32.mrb[72].mxu1  ;;  %14530 = vmatprep.mubr.f32.mxu0 %v7323_v46  ;;  %v7342_v21 = vsub.f32 %v20193_v42, %v23485_v15 }
 0x57f   : > { %24697 = vst [vmem:[#allocation57_spill] sm:$0xff] %v20207_v63  ;;  %v20220_v9 = vand.u32 4294901760, %v7158_v4  ;;  %v15810_v10 = vadd.f32 %v14416_v29, %v20100_v57  ;;  %v6817_v16 = vpop.f32.mrb[73].mxu1  ;;  %14531 = vmatmul.mubr.f32.vlgmr.msra.gmra.mrb[64].mxu0 %v7333_v27  ;;  %v23486_v62 = vand.u32 4294901760, %v20207_v63  ;;  %v7353_v29 = vand.u32 4294901760, %v7352_v6 }
 0x580   : > { %24698 = vst [vmem:[#allocation62_spill] sm:$0xff] %v20213_v49  ;;  %v20226_v2 = vand.u32 4294901760, %v7157_v25  ;;  %v15811_v11 = vadd.f32 %v20100_v57, %v6817_v16  ;;  %15517 = vmatpush3.bf16.msra.mxu0 %v20035_v22  ;;  %v7343_v46 = vand.u32 4294901760, %v7342_v21  ;;  %v23487_v56 = vand.u32 4294901760, %v20213_v49 }
 0x581   : > { %24699 = vst [vmem:[#allocation64_spill] sm:$0xff] %v20220_v9  ;;  %v20232_v40 = vsub.f32 %v7158_v4, %v20220_v9  ;;  %v7160_v15 = vmax.f32 %v15810_v10, 0.0  ;;  %v7372_v27 = vsub.f32 %v20207_v63, %v23486_v62  ;;  %15519 = vmatprep.subr.bf16.mxu0 %v20148_v39  ;;  %v20247_v4 = vsub.f32 %v19990_v51, %v7281_v47 }
 0x582   : > { %24700 = vst [vmem:[#allocation68_spill] sm:$0xff] %v20226_v2  ;;  %v20239_v1 = vsub.f32 %v7157_v25, %v20226_v2  ;;  %v7159_v7 = vmax.f32 %v15811_v11, 0.0  ;;  %v14419_v16 = vpop.f32.mrb[74].mxu1  ;;  %14533 = vmatprep.mubr.f32.mxu0 %v7343_v46  ;;  %v7362_v22 = vsub.f32 %v20213_v49, %v23487_v56  ;;  %v20256_v11 = vsub.f32 %v19995_v8, %v7284_v41 }
 0x583   : > { %24701 = vst [vmem:[#allocation71_spill] sm:$0xff] %v20232_v40  ;;  %v20249_v6 = vand.u32 4294901760, %v7160_v15  ;;  %v15812_v21 = vadd.f32 %v14419_v16, %v20100_v57  ;;  %v6829_v10 = vpop.f32.mrb[75].mxu1  ;;  %14534 = vmatmul.mubr.f32.gmra.mrb[66].mxu0 %v7353_v29  ;;  %v23489_v25 = vand.u32 4294901760, %v20232_v40  ;;  %v7373_v16 = vand.u32 4294901760, %v7372_v27 }
 0x584   : > { %24702 = vst [vmem:[#allocation74_spill] sm:$0xff] %v20239_v1  ;;  %v20258_v46 = vand.u32 4294901760, %v7159_v7  ;;  %v15813_v62 = vadd.f32 %v20100_v57, %v6829_v10  ;;  %v7363_v56 = vand.u32 4294901760, %v7362_v22  ;;  %v23493_v51 = vand.u32 4294901760, %v20239_v1  ;;  %15521 = vmatpush3.bf16.msra.mxu0 %v20148_v39 }
 0x585   : > { %24703 = vst [vmem:[#allocation76_spill] sm:$0xff] %v20249_v6  ;;  %v20264_v47 = vsub.f32 %v7160_v15, %v20249_v6  ;;  %v7162_v29 = vmax.f32 %v15812_v21, 0.0  ;;  %v7392_v58 = vsub.f32 %v20232_v40, %v23489_v25  ;;  %15523 = vmatprep.subr.bf16.mxu0 %v20154_v31 }
 0x586   : > { %24704 = vst [vmem:[#allocation77_spill] sm:$0xff] %v20258_v46  ;;  %v20271_v8 = vsub.f32 %v7159_v7, %v20258_v46  ;;  %v7161_v41 = vmax.f32 %v15813_v62, 0.0  ;;  %v14422_v22 = vpop.f32.mrb[76].mxu1  ;;  %14536 = vmatprep.mubr.f32.mxu0 %v7363_v56  ;;  %v7382_v39 = vsub.f32 %v20239_v1, %v23493_v51 }
 0x587   : > { %24705 = vst [vmem:[#allocation78_spill] sm:$0xff] %v20264_v47  ;;  %v20277_v21 = vand.u32 4294901760, %v7162_v29  ;;  %v15814_v27 = vadd.f32 %v14422_v22, %v20100_v57  ;;  %v6841_v10 = vpop.f32.mrb[77].mxu1  ;;  %14537 = vmatmul.mubr.f32.gmra.mrb[68].mxu0 %v7373_v16  ;;  %v23494_v25 = vand.u32 4294901760, %v20264_v47  ;;  %v7393_v22 = vand.u32 4294901760, %v7392_v58 }
 0x588   : > { %24706 = vst [vmem:[#allocation42_spill] sm:$0xff] %v20271_v8  ;;  %v20282_v3 = vand.u32 4294901760, %v7161_v41  ;;  %v15815_v62 = vadd.f32 %v20100_v57, %v6841_v10  ;;  %v7383_v56 = vand.u32 4294901760, %v7382_v39  ;;  %v23499_v45 = vand.u32 4294901760, %v20271_v8  ;;  %15525 = vmatpush3.bf16.msra.mxu0 %v20154_v31 }
 0x589   : > { %24707 = vst [vmem:[#allocation99_spill] sm:$0xff] %v20277_v21  ;;  %v20288_v51 = vsub.f32 %v7162_v29, %v20277_v21  ;;  %v7164_v15 = vmax.f32 %v15814_v27, 0.0  ;;  %v7412_v16 = vsub.f32 %v20264_v47, %v23494_v25  ;;  %15527 = vmatprep.subr.bf16.mxu0 %v20162_v48  ;;  %v24711_v29 = vand.u32 4294901760, %v20247_v4 }
 0x58a   : > { %24708 = vst [vmem:[#allocation115_spill] sm:$0xff] %v20282_v3  ;;  %v20295_v7 = vsub.f32 %v7161_v41, %v20282_v3  ;;  %v7163_v10 = vmax.f32 %v15815_v62, 0.0  ;;  %v14425_v39 = vpop.f32.mrb[78].mxu1  ;;  %14539 = vmatprep.mubr.f32.mxu0 %v7383_v56  ;;  %v7402_v31 = vsub.f32 %v20271_v8, %v23499_v45  ;;  %v24713_v62 = vand.u32 4294901760, %v20256_v11 }
 0x58b   : > { %24709 = vst [vmem:[#allocation117_spill] sm:$0xff] %v20288_v51  ;;  %v8061_v58 = vsub.f32 %v20247_v4, %v24711_v29  ;;  %v20303_v27 = vand.u32 4294901760, %v7164_v15  ;;  %v15816_v25 = vadd.f32 %v14425_v39, %v20100_v57  ;;  %v6853_v23 = vpop.f32.mrb[79].mxu1  ;;  %14540 = vmatmul.mubr.f32.gmra.mrb[70].mxu0 %v7393_v22  ;;  %v23508_v41 = vand.u32 4294901760, %v20288_v51 }
 0x58c   : > { %24710 = vst [vmem:[#allocation121_spill] sm:$0xff] %v20295_v7  ;;  %v8068_v56 = vsub.f32 %v20256_v11, %v24713_v62  ;;  %v20310_v5 = vand.u32 4294901760, %v7163_v10  ;;  %v15817_v45 = vadd.f32 %v20100_v57, %v6853_v23  ;;  %v7403_v47 = vand.u32 4294901760, %v7402_v31  ;;  %15529 = vmatpush3.bf16.msra.mxu0 %v20162_v48 }
 0x58d   : > { %24712 = vst [vmem:[#allocation131_spill] sm:$0xff] %v20303_v27  ;;  %v23513_v33 = vand.u32 4294901760, %v20295_v7  ;;  %v20316_v29 = vsub.f32 %v7164_v15, %v20303_v27  ;;  %v7166_v39 = vmax.f32 %v15816_v25, 0.0  ;;  %v7413_v22 = vand.u32 4294901760, %v7412_v16  ;;  %15531 = vmatprep.subr.bf16.mxu0 %v20170_v37 }
 0x58e   : > { %24714 = vst [vmem:[#allocation83_spill] sm:$0xff] %v20310_v5  ;;  %v7432_v8 = vsub.f32 %v20288_v51, %v23508_v41  ;;  %v20323_v62 = vsub.f32 %v7163_v10, %v20310_v5  ;;  %v7165_v23 = vmax.f32 %v15817_v45, 0.0  ;;  %v14428_v31 = vpop.f32.mrb[80].mxu1  ;;  %14542 = vmatprep.mubr.f32.mxu0 %v7403_v47  ;;  %v8062_v15 = vand.u32 4294901760, %v8061_v58 }
 0x58f   : > { %24715 = vst [vmem:[#allocation85_spill] sm:$0xff] %v20316_v29  ;;  %v7422_v48 = vsub.f32 %v20295_v7, %v23513_v33  ;;  %v20328_v40 = vand.u32 4294901760, %v7166_v39  ;;  %v15818_v25 = vadd.f32 %v14428_v31, %v20100_v57  ;;  %v6865_v16 = vpop.f32.mrb[81].mxu1  ;;  %14543 = vmatmul.mubr.f32.gmra.mrb[72].mxu0 %v7413_v22  ;;  %v23516_v41 = vand.u32 4294901760, %v20316_v29 }
 0x590   : > { %24716 = vst [vmem:[#allocation87_spill] sm:$0xff] %v20323_v62  ;;  %v8069_v51 = vand.u32 4294901760, %v8068_v56  ;;  %v20332_v36 = vand.u32 4294901760, %v7165_v23  ;;  %v15819_v45 = vadd.f32 %v20100_v57, %v6865_v16  ;;  %v23519_v47 = vand.u32 4294901760, %v20323_v62  ;;  %15533 = vmatpush3.bf16.msra.mxu0 %v20170_v37 }
 0x591   : > { %24717 = vst [vmem:[#allocation89_spill] sm:$0xff] %v20328_v40  ;;  %v7423_v10 = vand.u32 4294901760, %v7422_v48  ;;  %v20338_v58 = vsub.f32 %v7166_v39, %v20328_v40  ;;  %v7168_v33 = vmax.f32 %v15818_v25, 0.0  ;;  %v7433_v7 = vand.u32 4294901760, %v7432_v8  ;;  %15535 = vmatprep.subr.bf16.mxu0 %v20218_v24 }
 0x592   : > { %24718 = vst [vmem:[#allocation91_spill] sm:$0xff] %v20332_v36  ;;  %v7452_v22 = vsub.f32 %v20316_v29, %v23516_v41  ;;  %v20345_v56 = vsub.f32 %v7165_v23, %v20332_v36  ;;  %v7167_v31 = vmax.f32 %v15819_v45, 0.0  ;;  %v14431_v48 = vpop.f32.mrb[82].mxu1  ;;  %v7442_v37 = vsub.f32 %v20323_v62, %v23519_v47 }
 0x593   : > { %24719 = vst [vmem:[#allocation93_spill] sm:$0xff] %v20338_v58  ;;  %14545 = vmatprep.mubr.f32.mxu0 %v7423_v10  ;;  %v20350_v39 = vand.u32 4294901760, %v7168_v33  ;;  %v15820_v8 = vadd.f32 %v14431_v48, %v20100_v57  ;;  %v6877_v25 = vpop.f32.mrb[83].mxu1  ;;  %v23524_v16 = vand.u32 4294901760, %v20338_v58  ;;  %v15542_v41 = vpack.c.bf16 %v8069_v51, %v8062_v15 }
 0x594   : > { %24720 = vst [vmem:[#allocation95_spill] sm:$0xff] %v20345_v56  ;;  %14546 = vmatmul.mubr.f32.gmra.mrb[74].mxu0 %v7433_v7  ;;  %v20354_v29 = vand.u32 4294901760, %v7167_v31  ;;  %v15821_v23 = vadd.f32 %v20100_v57, %v6877_v25  ;;  %v7443_v45 = vand.u32 4294901760, %v7442_v37  ;;  %v23525_v10 = vand.u32 4294901760, %v20345_v56 }
 0x595   : > { %24721 = vst [vmem:[#allocation97_spill] sm:$0xff] %v20350_v39  ;;  %15537 = vmatpush3.bf16.msra.mxu0 %v20218_v24  ;;  %v20360_v47 = vsub.f32 %v7168_v33, %v20350_v39  ;;  %v7170_v62 = vmax.f32 %v15820_v8, 0.0  ;;  %v7453_v1 = vand.u32 4294901760, %v7452_v22  ;;  %v7472_v7 = vsub.f32 %v20338_v58, %v23524_v16 }
 0x596   : > { %24722 = vst [vmem:[#allocation36_spill] sm:$0xff] %v20354_v29  ;;  %15539 = vmatprep.subr.bf16.mxu0 %v20224_v55  ;;  %v20367_v51 = vsub.f32 %v7167_v31, %v20354_v29  ;;  %v7169_v15 = vmax.f32 %v15821_v23, 0.0  ;;  %v14434_v48 = vpop.f32.mrb[84].mxu1  ;;  %14548 = vmatprep.mubr.f32.mxu0 %v7443_v45  ;;  %v7462_v24 = vsub.f32 %v20345_v56, %v23525_v10 }
 0x597   : > { %24723 = vst [vmem:[#allocation101_spill] sm:$0xff] %v20360_v47  ;;  %v20372_v33 = vand.u32 4294901760, %v7170_v62  ;;  %v15822_v22 = vadd.f32 %v14434_v48, %v20100_v57  ;;  %v6889_v37 = vpop.f32.mrb[85].mxu1  ;;  %v23530_v8 = vand.u32 4294901760, %v20360_v47  ;;  %v20378_v25 = vpack.c.bf16 %v20021_v50, %v20016_v34 }
 0x598   : > { %24724 = vst [vmem:[#allocation103_spill] sm:$0xff] %v20367_v51  ;;  %14549 = vmatmul.mubr.f32.gmra.mrb[76].mxu0 %v7453_v1  ;;  %v20380_v31 = vand.u32 4294901760, %v7169_v15  ;;  %v15823_v23 = vadd.f32 %v20100_v57, %v6889_v37  ;;  %v7463_v45 = vand.u32 4294901760, %v7462_v24  ;;  %v23533_v16 = vand.u32 4294901760, %v20367_v51 }
 0x599   : > { %24725 = vst [vmem:[#allocation105_spill] sm:$0xff] %v20372_v33  ;;  %15541 = vmatpush3.bf16.msra.mxu0 %v20224_v55  ;;  %v20386_v10 = vsub.f32 %v7170_v62, %v20372_v33  ;;  %v7172_v48 = vmax.f32 %v15822_v22, 0.0  ;;  %v7473_v1 = vand.u32 4294901760, %v7472_v7  ;;  %v7492_v58 = vsub.f32 %v20360_v47, %v23530_v8 }
 0x59a   : > { %24726 = vst [vmem:[#allocation107_spill] sm:$0xff] %v20380_v31  ;;  %15543 = vmatprep.subr.bf16.mxu0 %v15542_v41  ;;  %v20392_v50 = vsub.f32 %v7169_v15, %v20380_v31  ;;  %v7171_v34 = vmax.f32 %v15823_v23, 0.0  ;;  %v14437_v37 = vpop.f32.mrb[86].mxu1  ;;  %14551 = vmatprep.mubr.f32.mxu0 %v7463_v45  ;;  %v7482_v55 = vsub.f32 %v20367_v51, %v23533_v16 }
 0x59b   : > { %24727 = vst [vmem:[#allocation109_spill] sm:$0xff] %v20386_v10  ;;  %v20397_v24 = vand.u32 4294901760, %v7172_v48  ;;  %v15824_v62 = vadd.f32 %v14437_v37, %v20100_v57  ;;  %v6901_v7 = vpop.f32.mrb[87].mxu1  ;;  %v23538_v22 = vand.u32 4294901760, %v20386_v10  ;;  %v7493_v51 = vand.u32 4294901760, %v7492_v58 }
 0x59c   : > { %24728 = vst [vmem:[#allocation111_spill] sm:$0xff] %v20392_v50  ;;  %14552 = vmatmul.mubr.f32.gmra.mrb[78].mxu0 %v7473_v1  ;;  %v20401_v8 = vand.u32 4294901760, %v7171_v34  ;;  %v15825_v15 = vadd.f32 %v20100_v57, %v6901_v7  ;;  %v7483_v47 = vand.u32 4294901760, %v7482_v55  ;;  %v23543_v23 = vand.u32 4294901760, %v20392_v50 }
 0x59d   : > { %24729 = vst [vmem:[#allocation113_spill] sm:$0xff] %v20397_v24  ;;  %15545 = vmatpush3.bf16.msra.mxu0 %v15542_v41  ;;  %v20406_v45 = vsub.f32 %v7172_v48, %v20397_v24  ;;  %v7174_v16 = vmax.f32 %v15824_v62, 0.0  ;;  %v7512_v37 = vsub.f32 %v20386_v10, %v23538_v22 }
 0x59e   : > { %24730 = vst [vmem:[#allocation123_spill] sm:$0xff] %v20401_v8  ;;  %15547 = vmatprep.subr.bf16.mxu0 %v20378_v25  ;;  %v20413_v1 = vsub.f32 %v7171_v34, %v20401_v8  ;;  %v7173_v56 = vmax.f32 %v15825_v15, 0.0  ;;  %v14440_v7 = vpop.f32.mrb[88].mxu1  ;;  %14554 = vmatprep.mubr.f32.mxu0 %v7483_v47  ;;  %v7502_v41 = vsub.f32 %v20392_v50, %v23543_v23 }
 0x59f   : > { %24731 = vst [vmem:[#allocation125_spill] sm:$0xff] %v20406_v45  ;;  %v20418_v48 = vand.u32 4294901760, %v7174_v16  ;;  %v15826_v58 = vadd.f32 %v14440_v7, %v20100_v57  ;;  %v6913_v55 = vpop.f32.mrb[89].mxu1  ;;  %v23550_v62 = vand.u32 4294901760, %v20406_v45  ;;  %v7513_v23 = vand.u32 4294901760, %v7512_v37 }
 0x5a0   : > { %24732 = vst [vmem:[#allocation128_spill] sm:$0xff] %v20413_v1  ;;  %14555 = vmatmul.mubr.f32.gmra.mrb[80].mxu0 %v7493_v51  ;;  %v20422_v22 = vand.u32 4294901760, %v7173_v56  ;;  %v15827_v34 = vadd.f32 %v20100_v57, %v6913_v55  ;;  %v7503_v10 = vand.u32 4294901760, %v7502_v41  ;;  %v23553_v15 = vand.u32 4294901760, %v20413_v1 }
 0x5a1   : > { %24733 = vst [vmem:[#allocation127_spill] sm:$0xff] %v20418_v48  ;;  %v20427_v47 = vsub.f32 %v7174_v16, %v20418_v48  ;;  %v7176_v63 = vmax.f32 %v15826_v58, 0.0  ;;  %v7532_v7 = vsub.f32 %v20406_v45, %v23550_v62 }
 0x5a2   : > { %24734 = vst [vmem:[#allocation132_spill] sm:$0xff] %v20422_v22  ;;  %v20433_v51 = vsub.f32 %v7173_v56, %v20422_v22  ;;  %v7175_v50 = vmax.f32 %v15827_v34, 0.0  ;;  %v14443_v18 = vpop.f32.mrb[90].mxu1  ;;  %14557 = vmatprep.mubr.f32.mxu0 %v7503_v10  ;;  %v7522_v41 = vsub.f32 %v20413_v1, %v23553_v15 }
 0x5a3   : > { %24735 = vst [vmem:[#allocation136_spill] sm:$0xff] %v20427_v47  ;;  %v20438_v55 = vand.u32 4294901760, %v7176_v63  ;;  %v15828_v16 = vadd.f32 %v14443_v18, %v20100_v57  ;;  %v6925_v58 = vpop.f32.mrb[91].mxu1  ;;  %v23560_v37 = vand.u32 4294901760, %v20427_v47  ;;  %v7533_v15 = vand.u32 4294901760, %v7532_v7 }
 0x5a4   : > { %24736 = vst [vmem:[#allocation135_spill] sm:$0xff] %v20433_v51  ;;  %14558 = vmatmul.mubr.f32.gmra.mrb[82].mxu0 %v7513_v23  ;;  %v20442_v49 = vand.u32 4294901760, %v7175_v50  ;;  %v15829_v56 = vadd.f32 %v20100_v57, %v6925_v58  ;;  %v7523_v62 = vand.u32 4294901760, %v7522_v41  ;;  %v23563_v34 = vand.u32 4294901760, %v20433_v51 }
 0x5a5   : > { %24737 = vst [vmem:[#allocation140_spill] sm:$0xff] %v20438_v55  ;;  %v20447_v10 = vsub.f32 %v7176_v63, %v20438_v55  ;;  %v7178_v45 = vmax.f32 %v15828_v16, 0.0  ;;  %v7552_v18 = vsub.f32 %v20427_v47, %v23560_v37 }
 0x5a6   : > { %24738 = vst [vmem:[#allocation139_spill] sm:$0xff] %v20442_v49  ;;  %v20453_v23 = vsub.f32 %v7175_v50, %v20442_v49  ;;  %v7177_v1 = vmax.f32 %v15829_v56, 0.0  ;;  %v14446_v12 = vpop.f32.mrb[92].mxu1  ;;  %14560 = vmatprep.mubr.f32.mxu0 %v7523_v62  ;;  %v7542_v41 = vsub.f32 %v20433_v51, %v23563_v34 }
 0x5a7   : > { %24739 = vst [vmem:[#allocation65_spill] sm:$0xff] %v20447_v10  ;;  %v20458_v58 = vand.u32 4294901760, %v7178_v45  ;;  %v15830_v63 = vadd.f32 %v14446_v12, %v20100_v57  ;;  %v6937_v16 = vpop.f32.mrb[93].mxu1  ;;  %v23570_v7 = vand.u32 4294901760, %v20447_v10  ;;  %v7553_v34 = vand.u32 4294901760, %v7552_v18 }
 0x5a8   : > { %24740 = vst [vmem:[#allocation60_spill] sm:$0xff] %v20453_v23  ;;  %14561 = vmatmul.mubr.f32.gmra.mrb[84].mxu0 %v7533_v15  ;;  %v20462_v42 = vand.u32 4294901760, %v7177_v1  ;;  %v15831_v50 = vadd.f32 %v20100_v57, %v6937_v16  ;;  %v7543_v37 = vand.u32 4294901760, %v7542_v41  ;;  %v23573_v56 = vand.u32 4294901760, %v20453_v23 }
 0x5a9   : > { %24741 = vst [vmem:[#allocation84_spill] sm:$0xff] %v20458_v58  ;;  %v20467_v62 = vsub.f32 %v7178_v45, %v20458_v58  ;;  %v7180_v47 = vmax.f32 %v15830_v63, 0.0  ;;  %v7572_v12 = vsub.f32 %v20447_v10, %v23570_v7 }
 0x5aa   : > { %24742 = vst [vmem:[#allocation43_spill] sm:$0xff] %v20462_v42  ;;  %v20473_v15 = vsub.f32 %v7177_v1, %v20462_v42  ;;  %v7179_v51 = vmax.f32 %v15831_v50, 0.0  ;;  %v14449_v61 = vpop.f32.mrb[94].mxu1  ;;  %14563 = vmatprep.mubr.f32.mxu0 %v7543_v37  ;;  %v7562_v41 = vsub.f32 %v20453_v23, %v23573_v56 }
 0x5ab   : > { %24743 = vst [vmem:[#allocation72_spill] sm:$0xff] %v20467_v62  ;;  %v20478_v16 = vand.u32 4294901760, %v7180_v47  ;;  %v15832_v45 = vadd.f32 %v14449_v61, %v20100_v57  ;;  %v6949_v63 = vpop.f32.mrb[95].mxu1  ;;  %v23580_v18 = vand.u32 4294901760, %v20467_v62  ;;  %v7573_v56 = vand.u32 4294901760, %v7572_v12 }
 0x5ac   : > { %24744 = vst [vmem:[#allocation8_spill] sm:$0xff] %v20473_v15  ;;  %14564 = vmatmul.mubr.f32.gmra.mrb[86].mxu0 %v7553_v34  ;;  %v20482_v43 = vand.u32 4294901760, %v7179_v51  ;;  %v15833_v1 = vadd.f32 %v20100_v57, %v6949_v63  ;;  %v7563_v7 = vand.u32 4294901760, %v7562_v41  ;;  %v23583_v50 = vand.u32 4294901760, %v20473_v15 }
 0x5ad   : > { %24745 = vst [vmem:[#allocation46_spill] sm:$0xff] %v20478_v16  ;;  %v20487_v37 = vsub.f32 %v7180_v47, %v20478_v16  ;;  %v7182_v10 = vmax.f32 %v15832_v45, 0.0  ;;  %v7592_v61 = vsub.f32 %v20467_v62, %v23580_v18 }
 0x5ae   : > { %24746 = vst [vmem:[#allocation7_spill] sm:$0xff] %v20482_v43  ;;  %v20493_v34 = vsub.f32 %v7179_v51, %v20482_v43  ;;  %v7181_v23 = vmax.f32 %v15833_v1, 0.0  ;;  %v14452_v58 = vpop.f32.mrb[96].mxu1  ;;  %14566 = vmatprep.mubr.f32.mxu0 %v7563_v7  ;;  %v7582_v41 = vsub.f32 %v20473_v15, %v23583_v50 }
 0x5af   : > { %24747 = vst [vmem:[#allocation12_spill] sm:$0xff] %v20487_v37  ;;  %v20498_v63 = vand.u32 4294901760, %v7182_v10  ;;  %v15834_v47 = vadd.f32 %v14452_v58, %v20100_v57  ;;  %v6961_v45 = vpop.f32.mrb[97].mxu1  ;;  %v23590_v12 = vand.u32 4294901760, %v20487_v37  ;;  %v7593_v50 = vand.u32 4294901760, %v7592_v61 }
 0x5b0   : > { %24748 = vst [vmem:[#allocation48_spill] sm:$0xff] %v20493_v34  ;;  %14567 = vmatmul.mubr.f32.gmra.mrb[88].mxu0 %v7573_v56  ;;  %v20502_v16 = vand.u32 4294901760, %v7181_v23  ;;  %v15835_v51 = vadd.f32 %v20100_v57, %v6961_v45  ;;  %v7583_v18 = vand.u32 4294901760, %v7582_v41  ;;  %v23593_v1 = vand.u32 4294901760, %v20493_v34 }
 0x5b1   : > { %24749 = vst [vmem:[#allocation11_spill] sm:$0xff] %v20498_v63  ;;  %v20507_v7 = vsub.f32 %v7182_v10, %v20498_v63  ;;  %v7184_v62 = vmax.f32 %v15834_v47, 0.0  ;;  %v7612_v58 = vsub.f32 %v20487_v37, %v23590_v12 }
 0x5b2   : > { %24750 = vst [vmem:[#allocation16_spill] sm:$0xff] %v20502_v16  ;;  %v20513_v56 = vsub.f32 %v7181_v23, %v20502_v16  ;;  %v7183_v15 = vmax.f32 %v15835_v51, 0.0  ;;  %v14455_v43 = vpop.f32.mrb[98].mxu1  ;;  %14569 = vmatprep.mubr.f32.mxu0 %v7583_v18  ;;  %v7602_v41 = vsub.f32 %v20493_v34, %v23593_v1 }
 0x5b3   : > { %24751 = vst [vmem:[#allocation49_spill] sm:$0xff] %v20507_v7  ;;  %v20518_v45 = vand.u32 4294901760, %v7184_v62  ;;  %v15836_v10 = vadd.f32 %v14455_v43, %v20100_v57  ;;  %v6973_v47 = vpop.f32.mrb[99].mxu1  ;;  %v23600_v61 = vand.u32 4294901760, %v20507_v7  ;;  %v7613_v1 = vand.u32 4294901760, %v7612_v58 }
 0x5b4   : > { %24752 = vst [vmem:[#allocation15_spill] sm:$0xff] %v20513_v56  ;;  %14570 = vmatmul.mubr.f32.gmra.mrb[90].mxu0 %v7593_v50  ;;  %v20522_v63 = vand.u32 4294901760, %v7183_v15  ;;  %v15837_v23 = vadd.f32 %v20100_v57, %v6973_v47  ;;  %v7603_v12 = vand.u32 4294901760, %v7602_v41  ;;  %v23603_v51 = vand.u32 4294901760, %v20513_v56 }
 0x5b5   : > { %24753 = vst [vmem:[#allocation20_spill] sm:$0xff] %v20518_v45  ;;  %v20527_v18 = vsub.f32 %v7184_v62, %v20518_v45  ;;  %v7186_v37 = vmax.f32 %v15836_v10, 0.0  ;;  %v7632_v43 = vsub.f32 %v20507_v7, %v23600_v61 }
 0x5b6   : > { %24754 = vst [vmem:[#allocation53_spill] sm:$0xff] %v20522_v63  ;;  %v20533_v50 = vsub.f32 %v7183_v15, %v20522_v63  ;;  %v7185_v34 = vmax.f32 %v15837_v23, 0.0  ;;  %v14458_v16 = vpop.f32.mrb[100].mxu1  ;;  %14572 = vmatprep.mubr.f32.mxu0 %v7603_v12  ;;  %v7622_v41 = vsub.f32 %v20513_v56, %v23603_v51 }
 0x5b7   : > { %24755 = vst [vmem:[#allocation19_spill] sm:$0xff] %v20527_v18  ;;  %v20538_v47 = vand.u32 4294901760, %v7186_v37  ;;  %v15838_v62 = vadd.f32 %v14458_v16, %v20100_v57  ;;  %v6985_v10 = vpop.f32.mrb[101].mxu1  ;;  %v23610_v58 = vand.u32 4294901760, %v20527_v18  ;;  %v7633_v51 = vand.u32 4294901760, %v7632_v43 }
 0x5b8   : > { %24756 = vst [vmem:[#allocation24_spill] sm:$0xff] %v20533_v50  ;;  %14573 = vmatmul.mubr.f32.gmra.mrb[92].mxu0 %v7613_v1  ;;  %v20542_v45 = vand.u32 4294901760, %v7185_v34  ;;  %v15839_v15 = vadd.f32 %v20100_v57, %v6985_v10  ;;  %v7623_v61 = vand.u32 4294901760, %v7622_v41  ;;  %v23613_v23 = vand.u32 4294901760, %v20533_v50 }
 0x5b9   : > { %24757 = vst [vmem:[#allocation54_spill] sm:$0xff] %v20538_v47  ;;  %v20547_v12 = vsub.f32 %v7186_v37, %v20538_v47  ;;  %v7188_v7 = vmax.f32 %v15838_v62, 0.0  ;;  %v7652_v16 = vsub.f32 %v20527_v18, %v23610_v58 }
 0x5ba   : > { %24758 = vst [vmem:[#allocation22_spill] sm:$0xff] %v20542_v45  ;;  %v20553_v1 = vsub.f32 %v7185_v34, %v20542_v45  ;;  %v7187_v56 = vmax.f32 %v15839_v15, 0.0  ;;  %v14461_v63 = vpop.f32.mrb[102].mxu1  ;;  %14575 = vmatprep.mubr.f32.mxu0 %v7623_v61  ;;  %v7642_v41 = vsub.f32 %v20533_v50, %v23613_v23 }
 0x5bb   : > { %24759 = vst [vmem:[#allocation28_spill] sm:$0xff] %v20547_v12  ;;  %v20558_v10 = vand.u32 4294901760, %v7188_v7  ;;  %v15840_v37 = vadd.f32 %v14461_v63, %v20100_v57  ;;  %v6997_v62 = vpop.f32.mrb[103].mxu1  ;;  %v23620_v43 = vand.u32 4294901760, %v20547_v12  ;;  %v7653_v23 = vand.u32 4294901760, %v7652_v16 }
 0x5bc   : > { %24760 = vst [vmem:[#allocation56_spill] sm:$0xff] %v20553_v1  ;;  %14576 = vmatmul.mubr.f32.gmra.mrb[94].mxu0 %v7633_v51  ;;  %v20562_v47 = vand.u32 4294901760, %v7187_v56  ;;  %v15841_v34 = vadd.f32 %v20100_v57, %v6997_v62  ;;  %v7643_v58 = vand.u32 4294901760, %v7642_v41  ;;  %v23623_v15 = vand.u32 4294901760, %v20553_v1 }
 0x5bd   : > { %24761 = vst [vmem:[#allocation26_spill] sm:$0xff] %v20558_v10  ;;  %v20567_v61 = vsub.f32 %v7188_v7, %v20558_v10  ;;  %v7190_v18 = vmax.f32 %v15840_v37, 0.0  ;;  %v7672_v63 = vsub.f32 %v20547_v12, %v23620_v43 }
 0x5be   : > { %24762 = vst [vmem:[#allocation32_spill] sm:$0xff] %v20562_v47  ;;  %v20573_v51 = vsub.f32 %v7187_v56, %v20562_v47  ;;  %v7189_v50 = vmax.f32 %v15841_v34, 0.0  ;;  %v14464_v45 = vpop.f32.mrb[104].mxu1  ;;  %14578 = vmatprep.mubr.f32.mxu0 %v7643_v58  ;;  %v7662_v41 = vsub.f32 %v20553_v1, %v23623_v15 }
 0x5bf   : > { %24763 = vst [vmem:[#allocation30_spill] sm:$0xff] %v20567_v61  ;;  %v20578_v62 = vand.u32 4294901760, %v7190_v18  ;;  %v15842_v7 = vadd.f32 %v14464_v45, %v20100_v57  ;;  %v7009_v37 = vpop.f32.mrb[105].mxu1  ;;  %v23630_v16 = vand.u32 4294901760, %v20567_v61  ;;  %v7673_v15 = vand.u32 4294901760, %v7672_v63 }
 0x5c0   : > { %24764 = vst [vmem:[#allocation39_spill] sm:$0xff] %v20573_v51  ;;  %14579 = vmatmul.mubr.f32.gmra.mrb[96].mxu0 %v7653_v23  ;;  %v20582_v10 = vand.u32 4294901760, %v7189_v50  ;;  %v15843_v56 = vadd.f32 %v20100_v57, %v7009_v37  ;;  %v7663_v43 = vand.u32 4294901760, %v7662_v41  ;;  %v23633_v34 = vand.u32 4294901760, %v20573_v51 }
 0x5c1   : > { %24765 = vst [vmem:[#allocation35_spill] sm:$0xff] %v20578_v62  ;;  %v20587_v58 = vsub.f32 %v7190_v18, %v20578_v62  ;;  %v7192_v12 = vmax.f32 %v15842_v7, 0.0  ;;  %v7692_v45 = vsub.f32 %v20567_v61, %v23630_v16 }
 0x5c2   : > { %24766 = vst [vmem:[#allocation47_spill] sm:$0xff] %v20582_v10  ;;  %v20593_v23 = vsub.f32 %v7189_v50, %v20582_v10  ;;  %v7191_v1 = vmax.f32 %v15843_v56, 0.0  ;;  %v14467_v47 = vpop.f32.mrb[106].mxu1  ;;  %14581 = vmatprep.mubr.f32.mxu0 %v7663_v43  ;;  %v7682_v41 = vsub.f32 %v20573_v51, %v23633_v34 }
 0x5c3   : > { %24767 = vst [vmem:[#allocation44_spill] sm:$0xff] %v20587_v58  ;;  %v20598_v37 = vand.u32 4294901760, %v7192_v12  ;;  %v15844_v18 = vadd.f32 %v14467_v47, %v20100_v57  ;;  %v7021_v7 = vpop.f32.mrb[107].mxu1  ;;  %v23640_v63 = vand.u32 4294901760, %v20587_v58  ;;  %v7693_v34 = vand.u32 4294901760, %v7692_v45 }
 0x5c4   : > { %24768 = vst [vmem:[#allocation55_spill] sm:$0xff] %v20593_v23  ;;  %14582 = vmatmul.mubr.f32.gmra.mrb[98].mxu0 %v7673_v15  ;;  %v20602_v62 = vand.u32 4294901760, %v7191_v1  ;;  %v15845_v50 = vadd.f32 %v20100_v57, %v7021_v7  ;;  %v7683_v16 = vand.u32 4294901760, %v7682_v41  ;;  %v23643_v56 = vand.u32 4294901760, %v20593_v23 }
 0x5c5   : > { %24769 = vst [vmem:[#allocation51_spill] sm:$0xff] %v20598_v37  ;;  %v20607_v43 = vsub.f32 %v7192_v12, %v20598_v37  ;;  %v7194_v61 = vmax.f32 %v15844_v18, 0.0  ;;  %v7712_v47 = vsub.f32 %v20587_v58, %v23640_v63 }
 0x5c6   : > { %24770 = vst [vmem:[#allocation63_spill] sm:$0xff] %v20602_v62  ;;  %v20613_v15 = vsub.f32 %v7191_v1, %v20602_v62  ;;  %v7193_v51 = vmax.f32 %v15845_v50, 0.0  ;;  %v14470_v10 = vpop.f32.mrb[108].mxu1  ;;  %14584 = vmatprep.mubr.f32.mxu0 %v7683_v16  ;;  %v7702_v41 = vsub.f32 %v20593_v23, %v23643_v56 }
 0x5c7   : > { %24771 = vst [vmem:[#allocation61_spill] sm:$0xff] %v20607_v43  ;;  %v20618_v7 = vand.u32 4294901760, %v7194_v61  ;;  %v15846_v12 = vadd.f32 %v14470_v10, %v20100_v57  ;;  %v7033_v18 = vpop.f32.mrb[109].mxu1  ;;  %v23650_v45 = vand.u32 4294901760, %v20607_v43  ;;  %v7713_v56 = vand.u32 4294901760, %v7712_v47 }
 0x5c8   : > { %24772 = vst [vmem:[#allocation70_spill] sm:$0xff] %v20613_v15  ;;  %14585 = vmatmul.mubr.f32.gmra.mrb[100].mxu0 %v7693_v34  ;;  %v20622_v37 = vand.u32 4294901760, %v7193_v51  ;;  %v15847_v1 = vadd.f32 %v20100_v57, %v7033_v18  ;;  %v7703_v63 = vand.u32 4294901760, %v7702_v41  ;;  %v23653_v50 = vand.u32 4294901760, %v20613_v15 }
 0x5c9   : > { %24773 = vst [vmem:[#allocation67_spill] sm:$0xff] %v20618_v7  ;;  %v20627_v16 = vsub.f32 %v7194_v61, %v20618_v7  ;;  %v7196_v58 = vmax.f32 %v15846_v12, 0.0  ;;  %v7732_v10 = vsub.f32 %v20607_v43, %v23650_v45 }
 0x5ca   : > { %24774 = vst [vmem:[#allocation75_spill] sm:$0xff] %v20622_v37  ;;  %v20633_v34 = vsub.f32 %v7193_v51, %v20622_v37  ;;  %v7195_v23 = vmax.f32 %v15847_v1, 0.0  ;;  %v14473_v62 = vpop.f32.mrb[110].mxu1  ;;  %14587 = vmatprep.mubr.f32.mxu0 %v7703_v63  ;;  %v7722_v41 = vsub.f32 %v20613_v15, %v23653_v50 }
 0x5cb   : > { %24775 = vst [vmem:[#allocation73_spill] sm:$0xff] %v20627_v16  ;;  %v20638_v18 = vand.u32 4294901760, %v7196_v58  ;;  %v15848_v61 = vadd.f32 %v14473_v62, %v20100_v57  ;;  %v7045_v12 = vpop.f32.mrb[111].mxu1  ;;  %v23660_v47 = vand.u32 4294901760, %v20627_v16  ;;  %v7733_v50 = vand.u32 4294901760, %v7732_v10 }
 0x5cc   : > { %24776 = vst [vmem:[#allocation80_spill] sm:$0xff] %v20633_v34  ;;  %14588 = vmatmul.mubr.f32.gmra.mrb[102].mxu0 %v7713_v56  ;;  %v20642_v7 = vand.u32 4294901760, %v7195_v23  ;;  %v15849_v51 = vadd.f32 %v20100_v57, %v7045_v12  ;;  %v7723_v45 = vand.u32 4294901760, %v7722_v41  ;;  %v23663_v1 = vand.u32 4294901760, %v20633_v34 }
 0x5cd   : > { %24777 = vst [vmem:[#allocation79_spill] sm:$0xff] %v20638_v18  ;;  %v20647_v63 = vsub.f32 %v7196_v58, %v20638_v18  ;;  %v7198_v43 = vmax.f32 %v15848_v61, 0.0  ;;  %v7752_v62 = vsub.f32 %v20627_v16, %v23660_v47 }
 0x5ce   : > { %24778 = vst [vmem:[#allocation82_spill] sm:$0xff] %v20642_v7  ;;  %v20653_v56 = vsub.f32 %v7195_v23, %v20642_v7  ;;  %v7197_v15 = vmax.f32 %v15849_v51, 0.0  ;;  %v14476_v37 = vpop.f32.mrb[112].mxu1  ;;  %14590 = vmatprep.mubr.f32.mxu0 %v7723_v45  ;;  %v7742_v41 = vsub.f32 %v20633_v34, %v23663_v1 }
 0x5cf   : > { %24779 = vst [vmem:[#allocation81_spill] sm:$0xff] %v20647_v63  ;;  %v20658_v12 = vand.u32 4294901760, %v7198_v43  ;;  %v15850_v58 = vadd.f32 %v14476_v37, %v20100_v57  ;;  %v7057_v61 = vpop.f32.mrb[113].mxu1  ;;  %v23670_v10 = vand.u32 4294901760, %v20647_v63  ;;  %v7753_v1 = vand.u32 4294901760, %v7752_v62 }
 0x5d0   : > { %24780 = vst [vmem:[#allocation88_spill] sm:$0xff] %v20653_v56  ;;  %14591 = vmatmul.mubr.f32.gmra.mrb[104].mxu0 %v7733_v50  ;;  %v20662_v18 = vand.u32 4294901760, %v7197_v15  ;;  %v15851_v23 = vadd.f32 %v20100_v57, %v7057_v61  ;;  %v7743_v47 = vand.u32 4294901760, %v7742_v41  ;;  %v23673_v51 = vand.u32 4294901760, %v20653_v56 }
 0x5d1   : > { %24781 = vst [vmem:[#allocation86_spill] sm:$0xff] %v20658_v12  ;;  %v20667_v45 = vsub.f32 %v7198_v43, %v20658_v12  ;;  %v7200_v16 = vmax.f32 %v15850_v58, 0.0  ;;  %v7772_v37 = vsub.f32 %v20647_v63, %v23670_v10 }
 0x5d2   : > { %24782 = vst [vmem:[#allocation92_spill] sm:$0xff] %v20662_v18  ;;  %v20673_v50 = vsub.f32 %v7197_v15, %v20662_v18  ;;  %v7199_v34 = vmax.f32 %v15851_v23, 0.0  ;;  %v14479_v7 = vpop.f32.mrb[114].mxu1  ;;  %14593 = vmatprep.mubr.f32.mxu0 %v7743_v47  ;;  %v7762_v41 = vsub.f32 %v20653_v56, %v23673_v51 }
 0x5d3   : > { %24783 = vst [vmem:[#allocation90_spill] sm:$0xff] %v20667_v45  ;;  %v20678_v61 = vand.u32 4294901760, %v7200_v16  ;;  %v15852_v43 = vadd.f32 %v14479_v7, %v20100_v57  ;;  %v7069_v58 = vpop.f32.mrb[115].mxu1  ;;  %v23680_v62 = vand.u32 4294901760, %v20667_v45  ;;  %v7773_v51 = vand.u32 4294901760, %v7772_v37 }
 0x5d4   : > { %24784 = vst [vmem:[#allocation96_spill] sm:$0xff] %v20673_v50  ;;  %14594 = vmatmul.mubr.f32.gmra.mrb[106].mxu0 %v7753_v1  ;;  %v20682_v12 = vand.u32 4294901760, %v7199_v34  ;;  %v15853_v15 = vadd.f32 %v20100_v57, %v7069_v58  ;;  %v7763_v10 = vand.u32 4294901760, %v7762_v41  ;;  %v23681_v23 = vand.u32 4294901760, %v20673_v50 }
 0x5d5   : > { %24785 = vst [vmem:[#allocation94_spill] sm:$0xff] %v20678_v61  ;;  %v20687_v47 = vsub.f32 %v7200_v16, %v20678_v61  ;;  %v7202_v63 = vmax.f32 %v15852_v43, 0.0  ;;  %v7792_v7 = vsub.f32 %v20667_v45, %v23680_v62 }
 0x5d6   : > { %24786 = vst [vmem:[#allocation41_spill] sm:$0xff] %v20682_v12  ;;  %v20693_v1 = vsub.f32 %v7199_v34, %v20682_v12  ;;  %v7201_v56 = vmax.f32 %v15853_v15, 0.0  ;;  %v14482_v18 = vpop.f32.mrb[116].mxu1  ;;  %14596 = vmatprep.mubr.f32.mxu0 %v7763_v10  ;;  %v7782_v41 = vsub.f32 %v20673_v50, %v23681_v23  ;;  %v20707_v34 = vld [vmem:[%s22957_s4] ss:$0 sm:$0xff] }
 0x5d7   : > { %24787 = vst [vmem:[#allocation34_spill] sm:$0xff] %v20687_v47  ;;  %v20698_v58 = vand.u32 4294901760, %v7202_v63  ;;  %v15854_v16 = vadd.f32 %v14482_v18, %v20100_v57  ;;  %v7081_v43 = vpop.f32.mrb[117].mxu1  ;;  %v23690_v37 = vand.u32 4294901760, %v20687_v47  ;;  %v7793_v18 = vand.u32 4294901760, %v7792_v7 }
 0x5d8   : > { %24788 = vst [vmem:[#allocation100_spill] sm:$0xff] %v20693_v1  ;;  %14597 = vmatmul.mubr.f32.gmra.mrb[108].mxu0 %v7773_v51  ;;  %v20702_v61 = vand.u32 4294901760, %v7201_v56  ;;  %v15855_v10 = vadd.f32 %v20707_v34, %v7081_v43  ;;  %v7783_v15 = vand.u32 4294901760, %v7782_v41  ;;  %v23693_v62 = vand.u32 4294901760, %v20693_v1 }
 0x5d9   : > { %24789 = vst [vmem:[#allocation98_spill] sm:$0xff] %v20698_v58  ;;  %v20712_v23 = vsub.f32 %v7202_v63, %v20698_v58  ;;  %v7204_v57 = vmax.f32 %v15854_v16, 0.0  ;;  %v7812_v51 = vsub.f32 %v20687_v47, %v23690_v37 }
 0x5da   : > { %24790 = vst [vmem:[#allocation104_spill] sm:$0xff] %v20702_v61  ;;  %v20718_v45 = vsub.f32 %v7201_v56, %v20702_v61  ;;  %v7203_v50 = vmax.f32 %v15855_v10, 0.0  ;;  %v14485_v12 = vpop.f32.mrb[118].mxu1  ;;  %14599 = vmatprep.mubr.f32.mxu0 %v7783_v15  ;;  %v7802_v41 = vsub.f32 %v20693_v1, %v23693_v62 }
 0x5db   : > { %24791 = vst [vmem:[#allocation102_spill] sm:$0xff] %v20712_v23  ;;  %v20723_v43 = vand.u32 4294901760, %v7204_v57  ;;  %v15856_v63 = vadd.f32 %v20707_v34, %v14485_v12  ;;  %v7093_v16 = vpop.f32.mrb[119].mxu1  ;;  %v23700_v7 = vand.u32 4294901760, %v20712_v23  ;;  %v7813_v62 = vand.u32 4294901760, %v7812_v51 }
 0x5dc   : > { %24792 = vst [vmem:[#allocation108_spill] sm:$0xff] %v20718_v45  ;;  %14600 = vmatmul.mubr.f32.gmra.mrb[110].mxu0 %v7793_v18  ;;  %v20727_v58 = vand.u32 4294901760, %v7203_v50  ;;  %v15857_v56 = vadd.f32 %v20707_v34, %v7093_v16  ;;  %v7803_v37 = vand.u32 4294901760, %v7802_v41  ;;  %v23703_v10 = vand.u32 4294901760, %v20718_v45 }
 0x5dd   : > { %24793 = vst [vmem:[#allocation106_spill] sm:$0xff] %v20723_v43  ;;  %v20732_v15 = vsub.f32 %v7204_v57, %v20723_v43  ;;  %v7206_v47 = vmax.f32 %v15856_v63, 0.0  ;;  %v7832_v12 = vsub.f32 %v20712_v23, %v23700_v7 }
 0x5de   : > { %24794 = vst [vmem:[#allocation112_spill] sm:$0xff] %v20727_v58  ;;  %v20738_v18 = vsub.f32 %v7203_v50, %v20727_v58  ;;  %v7205_v1 = vmax.f32 %v15857_v56, 0.0  ;;  %v14488_v61 = vpop.f32.mrb[120].mxu1  ;;  %14602 = vmatprep.mubr.f32.mxu0 %v7803_v37  ;;  %v7822_v41 = vsub.f32 %v20718_v45, %v23703_v10 }
 0x5df   : > { %24795 = vst [vmem:[#allocation110_spill] sm:$0xff] %v20732_v15  ;;  %v20743_v16 = vand.u32 4294901760, %v7206_v47  ;;  %v15858_v57 = vadd.f32 %v20707_v34, %v14488_v61  ;;  %v7105_v63 = vpop.f32.mrb[121].mxu1  ;;  %v23710_v51 = vand.u32 4294901760, %v20732_v15  ;;  %v7833_v10 = vand.u32 4294901760, %v7832_v12 }
 0x5e0   : > { %24796 = vst [vmem:[#allocation116_spill] sm:$0xff] %v20738_v18  ;;  %14603 = vmatmul.mubr.f32.gmra.mrb[112].mxu0 %v7813_v62  ;;  %v20747_v43 = vand.u32 4294901760, %v7205_v1  ;;  %v15859_v50 = vadd.f32 %v20707_v34, %v7105_v63  ;;  %v7823_v7 = vand.u32 4294901760, %v7822_v41  ;;  %v23713_v56 = vand.u32 4294901760, %v20738_v18 }
 0x5e1   : > { %24797 = vst [vmem:[#allocation114_spill] sm:$0xff] %v20743_v16  ;;  %v20752_v37 = vsub.f32 %v7206_v47, %v20743_v16  ;;  %v7208_v23 = vmax.f32 %v15858_v57, 0.0  ;;  %v7852_v61 = vsub.f32 %v20732_v15, %v23710_v51 }
 0x5e2   : > { %24798 = vst [vmem:[#allocation119_spill] sm:$0xff] %v20747_v43  ;;  %v20758_v62 = vsub.f32 %v7205_v1, %v20747_v43  ;;  %v7207_v45 = vmax.f32 %v15859_v50, 0.0  ;;  %v14491_v58 = vpop.f32.mrb[122].mxu1  ;;  %14605 = vmatprep.mubr.f32.mxu0 %v7823_v7  ;;  %v7842_v41 = vsub.f32 %v20738_v18, %v23713_v56 }
 0x5e3   : > { %24799 = vst [vmem:[#allocation118_spill] sm:$0xff] %v20752_v37  ;;  %v20763_v63 = vand.u32 4294901760, %v7208_v23  ;;  %v15860_v47 = vadd.f32 %v20707_v34, %v14491_v58  ;;  %v7117_v57 = vpop.f32.mrb[123].mxu1  ;;  %v23720_v12 = vand.u32 4294901760, %v20752_v37  ;;  %v7853_v56 = vand.u32 4294901760, %v7852_v61 }
 0x5e4   : > { %24800 = vst [vmem:[#allocation122_spill] sm:$0xff] %v20758_v62  ;;  %14606 = vmatmul.mubr.f32.gmra.mrb[114].mxu0 %v7833_v10  ;;  %v20767_v16 = vand.u32 4294901760, %v7207_v45  ;;  %v15861_v1 = vadd.f32 %v20707_v34, %v7117_v57  ;;  %v7843_v51 = vand.u32 4294901760, %v7842_v41  ;;  %v23723_v50 = vand.u32 4294901760, %v20758_v62 }
 0x5e5   : > { %24801 = vst [vmem:[#allocation37_spill] sm:$0xff] %v20763_v63  ;;  %v20772_v7 = vsub.f32 %v7208_v23, %v20763_v63  ;;  %v7210_v15 = vmax.f32 %v15860_v47, 0.0  ;;  %v7872_v58 = vsub.f32 %v20752_v37, %v23720_v12 }
 0x5e6   : > { %24802 = vst [vmem:[#allocation69_spill] sm:$0xff] %v20767_v16  ;;  %v20778_v10 = vsub.f32 %v7207_v45, %v20767_v16  ;;  %v7209_v18 = vmax.f32 %v15861_v1, 0.0  ;;  %v14494_v43 = vpop.f32.mrb[124].mxu1  ;;  %14608 = vmatprep.mubr.f32.mxu0 %v7843_v51  ;;  %v7862_v41 = vsub.f32 %v20758_v62, %v23723_v50 }
 0x5e7   : > { %24803 = vst [vmem:[#allocation120_spill] sm:$0xff] %v20772_v7  ;;  %v20783_v57 = vand.u32 4294901760, %v7210_v15  ;;  %v15862_v23 = vadd.f32 %v20707_v34, %v14494_v43  ;;  %v7129_v47 = vpop.f32.mrb[125].mxu1  ;;  %v23730_v61 = vand.u32 4294901760, %v20772_v7  ;;  %v7873_v50 = vand.u32 4294901760, %v7872_v58 }
 0x5e8   : > { %24804 = vst [vmem:[#allocation126_spill] sm:$0xff] %v20778_v10  ;;  %14609 = vmatmul.mubr.f32.gmra.mrb[116].mxu0 %v7853_v56  ;;  %v20787_v63 = vand.u32 4294901760, %v7209_v18  ;;  %v15863_v45 = vadd.f32 %v20707_v34, %v7129_v47  ;;  %v7863_v12 = vand.u32 4294901760, %v7862_v41  ;;  %v23733_v1 = vand.u32 4294901760, %v20778_v10 }
 0x5e9   : > { %24805 = vst [vmem:[#allocation124_spill] sm:$0xff] %v20783_v57  ;;  %v20792_v51 = vsub.f32 %v7210_v15, %v20783_v57  ;;  %v7212_v37 = vmax.f32 %v15862_v23, 0.0  ;;  %v7892_v43 = vsub.f32 %v20772_v7, %v23730_v61 }
 0x5ea   : > { %24806 = vst [vmem:[#allocation130_spill] sm:$0xff] %v20787_v63  ;;  %v20798_v56 = vsub.f32 %v7209_v18, %v20787_v63  ;;  %v7211_v62 = vmax.f32 %v15863_v45, 0.0  ;;  %v14497_v16 = vpop.f32.mrb[126].mxu1  ;;  %14611 = vmatprep.mubr.f32.mxu0 %v7863_v12  ;;  %v7882_v41 = vsub.f32 %v20778_v10, %v23733_v1 }
 0x5eb   : > { %24807 = vst [vmem:[#allocation129_spill] sm:$0xff] %v20792_v51  ;;  %v20803_v47 = vand.u32 4294901760, %v7212_v37  ;;  %v15864_v15 = vadd.f32 %v20707_v34, %v14497_v16  ;;  %v7141_v23 = vpop.f32.mrb[127].mxu1  ;;  %v23736_v58 = vand.u32 4294901760, %v20792_v51  ;;  %v7893_v1 = vand.u32 4294901760, %v7892_v43 }
 0x5ec   : > { %24808 = vst [vmem:[#allocation134_spill] sm:$0xff] %v20798_v56  ;;  %14612 = vmatmul.mubr.f32.gmra.mrb[118].mxu0 %v7873_v50  ;;  %v20807_v57 = vand.u32 4294901760, %v7211_v62  ;;  %v15865_v18 = vadd.f32 %v20707_v34, %v7141_v23  ;;  %v7883_v61 = vand.u32 4294901760, %v7882_v41  ;;  %v23737_v45 = vand.u32 4294901760, %v20798_v56 }
 0x5ed   : > { %24809 = vst [vmem:[#allocation133_spill] sm:$0xff] %v20803_v47  ;;  %v20812_v12 = vsub.f32 %v7212_v37, %v20803_v47  ;;  %v7214_v7 = vmax.f32 %v15864_v15, 0.0  ;;  %v7912_v16 = vsub.f32 %v20792_v51, %v23736_v58 }
 0x5ee   : > { %24810 = vst [vmem:[#allocation138_spill] sm:$0xff] %v20807_v57  ;;  %v20818_v50 = vsub.f32 %v7211_v62, %v20807_v57  ;;  %v7213_v10 = vmax.f32 %v15865_v18, 0.0  ;;  %14614 = vmatprep.mubr.f32.mxu0 %v7883_v61  ;;  %v7902_v34 = vsub.f32 %v20798_v56, %v23737_v45 }
 0x5ef   : > { %24811 = vst [vmem:[#allocation137_spill] sm:$0xff] %v20812_v12  ;;  %v20823_v41 = vand.u32 4294901760, %v7214_v7  ;;  %v23740_v37 = vand.u32 4294901760, %v20812_v12  ;;  %v7913_v62 = vand.u32 4294901760, %v7912_v16 }
 0x5f0   : > { %24812 = vst [vmem:[#allocation6_spill] sm:$0xff] %v20818_v50  ;;  %14615 = vmatmul.mubr.f32.gmra.mrb[120].mxu0 %v7893_v1  ;;  %v20826_v15 = vand.u32 4294901760, %v7213_v10  ;;  %v7903_v43 = vand.u32 4294901760, %v7902_v34  ;;  %v23743_v23 = vand.u32 4294901760, %v20818_v50 }
 0x5f1   : > { %24813 = vst [vmem:[#allocation5_spill] sm:$0xff] %v20823_v41  ;;  %v20830_v58 = vsub.f32 %v7214_v7, %v20823_v41  ;;  %v7932_v61 = vsub.f32 %v20812_v12, %v23740_v37 }
 0x5f2   : > { %24814 = vst [vmem:[#allocation10_spill] sm:$0xff] %v20826_v15  ;;  %v20836_v18 = vsub.f32 %v7213_v10, %v20826_v15  ;;  %14617 = vmatprep.mubr.f32.mxu0 %v7903_v43  ;;  %v7922_v1 = vsub.f32 %v20818_v50, %v23743_v23  ;;  %v24829_v23 = vld [vmem:[#allocation47_spill] sm:$0xff] }
 0x5f3   : > { %24815 = vst [vmem:[#allocation141_spill] sm:$0xff] %v20830_v58  ;;  %v23741_v34 = vand.u32 4294901760, %v20830_v58  ;;  %v7933_v51 = vand.u32 4294901760, %v7932_v61  ;;  %v15570_v61 = vpack.c.bf16 %v20139_v32, %v20133_v26 }
 0x5f4   : > { %24816 = vst [vmem:[#allocation142_spill] sm:$0xff] %v20836_v18  ;;  %14618 = vmatmul.mubr.f32.gmra.mrb[122].mxu0 %v7913_v62  ;;  %v7923_v45 = vand.u32 4294901760, %v7922_v1  ;;  %v23742_v7 = vand.u32 4294901760, %v20836_v18  ;;  %v15550_v62 = vpack.c.bf16 %v20051_v0, %v20046_v60  ;;  %v15574_v1 = vpack.c.bf16 %v20256_v11, %v20247_v4 }
 0x5f5   : > { %v7952_v16 = vsub.f32 %v20830_v58, %v23741_v34  ;;  %v24827_v34 = vld [vmem:[#allocation32_spill] sm:$0xff] }
 0x5f6   : > { %14620 = vmatprep.mubr.f32.mxu0 %v7923_v45  ;;  %v7942_v10 = vsub.f32 %v20836_v18, %v23742_v7  ;;  %v15554_v45 = vpack.c.bf16 %v20061_v20, %v20056_v13  ;;  %v24828_v7 = vld [vmem:[#allocation26_spill] sm:$0xff] }
 0x5f7   : > { %v7953_v37 = vand.u32 4294901760, %v7952_v16  ;;  %v24817_v16 = vld [vmem:[#allocation66_spill] sm:$0xff] }
 0x5f8   : > { %14621 = vmatmul.mubr.f32.gmra.mrb[124].mxu0 %v7933_v51  ;;  %v7943_v43 = vand.u32 4294901760, %v7942_v10  ;;  %v15558_v51 = vpack.c.bf16 %v20071_v35, %v20066_v52  ;;  %v24818_v10 = vld [vmem:[#allocation84_spill] sm:$0xff] }
 0x5fa   : > { %14623 = vmatprep.mubr.f32.mxu0 %v7943_v43  ;;  %v24819_v43 = vld [vmem:[#allocation7_spill] sm:$0xff] }
 0x5fc   : > { %14624 = vmatmul.mubr.f32.gmra.mrb[126].mxu0 %v7953_v37  ;;  %v15566_v37 = vpack.c.bf16 %v20122_v14, %v20111_v59 }
 0x5fd   : > { %14658 = vmatprep.mubr.f32.mxu0 %v20151_v54  ;;  %v24903_v54 = vld [vmem:[#allocation80_spill] sm:$0xff] }
 0x600   : > { %14659 = vmatmul.mubr.f32.vlgmr.msra.gmra.mrb[64].mxu0 %v20145_v44  ;;  %v24902_v44 = vld [vmem:[#allocation61_spill] sm:$0xff] }
 0x601   : > { %15549 = vmatpush3.bf16.msra.mxu0 %v20378_v25  ;;  %14661 = vmatprep.mubr.f32.mxu0 %v20182_v17  ;;  %v15562_v25 = vpack.c.bf16 %v20081_v28, %v20076_v30  ;;  %v24901_v17 = vld [vmem:[#allocation70_spill] sm:$0xff] }
 0x602   : > { %15551 = vmatprep.subr.bf16.mxu0 %v15550_v62 }
 0x604   : > { %14662 = vmatmul.mubr.f32.gmra.mrb[66].mxu0 %v20176_v19  ;;  %v24899_v19 = vld [vmem:[#allocation55_spill] sm:$0xff] }
 0x605   : > { %14664 = vmatprep.mubr.f32.mxu0 %v20202_v53  ;;  %15553 = vmatpush3.bf16.msra.mxu0 %v15550_v62  ;;  %v24820_v62 = vld [vmem:[#allocation46_spill] sm:$0xff] }
 0x606   : > { %15555 = vmatprep.subr.bf16.mxu0 %v15554_v45  ;;  %v24898_v53 = vld [vmem:[#allocation30_spill] sm:$0xff] }
 0x608   : > { %14665 = vmatmul.mubr.f32.gmra.mrb[68].mxu0 %v20198_v38  ;;  %v24896_v38 = vld [vmem:[#allocation28_spill] sm:$0xff] }
 0x609   : > { %14667 = vmatprep.mubr.f32.mxu0 %v20226_v2  ;;  %15557 = vmatpush3.bf16.msra.mxu0 %v15554_v45  ;;  %v24821_v45 = vld [vmem:[#allocation16_spill] sm:$0xff] }
 0x60a   : > { %15559 = vmatprep.subr.bf16.mxu0 %v15558_v51  ;;  %v24895_v2 = vld [vmem:[#allocation56_spill] sm:$0xff] }
 0x60c   : > { %14668 = vmatmul.mubr.f32.gmra.mrb[70].mxu0 %v20220_v9  ;;  %v24893_v9 = vld [vmem:[#allocation24_spill] sm:$0xff] }
 0x60d   : > { %14670 = vmatprep.mubr.f32.mxu0 %v20258_v46  ;;  %15561 = vmatpush3.bf16.msra.mxu0 %v15558_v51  ;;  %v24822_v51 = vld [vmem:[#allocation11_spill] sm:$0xff]  ;;  %v24892_v46 = vld [vmem:[#allocation49_spill] sm:$0xff] }
 0x60e   : > { %15563 = vmatprep.subr.bf16.mxu0 %v15562_v25 }
 0x610   : > { %14671 = vmatmul.mubr.f32.gmra.mrb[72].mxu0 %v20249_v6  ;;  %v24890_v6 = vld [vmem:[#allocation12_spill] sm:$0xff] }
 0x611   : > { %14673 = vmatprep.mubr.f32.mxu0 %v20282_v3  ;;  %15565 = vmatpush3.bf16.msra.mxu0 %v15562_v25  ;;  %v24823_v25 = vld [vmem:[#allocation53_spill] sm:$0xff]  ;;  %v24889_v3 = vld [vmem:[#allocation48_spill] sm:$0xff] }
 0x612   : > { %15567 = vmatprep.subr.bf16.mxu0 %v15566_v37 }
 0x614   : > { %14674 = vmatmul.mubr.f32.gmra.mrb[74].mxu0 %v20277_v21  ;;  %v24882_v21 = vld [vmem:[#allocation125_spill] sm:$0xff] }
 0x615   : > { %14676 = vmatprep.mubr.f32.mxu0 %v20310_v5  ;;  %15569 = vmatpush3.bf16.msra.mxu0 %v15566_v37  ;;  %v24824_v37 = vld [vmem:[#allocation20_spill] sm:$0xff]  ;;  %v24880_v5 = vld [vmem:[#allocation109_spill] sm:$0xff] }
 0x616   : > { %15571 = vmatprep.subr.bf16.mxu0 %v15570_v61 }
 0x618   : > { %14677 = vmatmul.mubr.f32.gmra.mrb[76].mxu0 %v20303_v27  ;;  %v24879_v27 = vld [vmem:[#allocation111_spill] sm:$0xff] }
 0x619   : > { %14679 = vmatprep.mubr.f32.mxu0 %v20332_v36  ;;  %15573 = vmatpush3.bf16.msra.mxu0 %v15570_v61  ;;  %v24825_v61 = vld [vmem:[#allocation22_spill] sm:$0xff]  ;;  %v24878_v36 = vld [vmem:[#allocation101_spill] sm:$0xff] }
 0x61a   : > { %15575 = vmatprep.subr.bf16.mxu0 %v15574_v1 }
 0x61c   : > { %14680 = vmatmul.mubr.f32.gmra.mrb[78].mxu0 %v20328_v40  ;;  %v24877_v40 = vld [vmem:[#allocation103_spill] sm:$0xff] }
 0x61d   : > { %14682 = vmatprep.mubr.f32.mxu0 %v20354_v29  ;;  %15577 = vmatpush3.bf16.msra.mxu0 %v15574_v1  ;;  %v24826_v1 = vld [vmem:[#allocation54_spill] sm:$0xff]  ;;  %v24876_v29 = vld [vmem:[#allocation93_spill] sm:$0xff] }
 0x61e   : > { %15579 = vmatprep.subr.bf16.mxu0 %v24817_v16 }
 0x620   : > { %14683 = vmatmul.mubr.f32.gmra.mrb[80].mxu0 %v20350_v39 }
 0x621   : > { %14685 = vmatprep.mubr.f32.mxu0 %v20380_v31 }
 0x624   : > { %14686 = vmatmul.mubr.f32.gmra.mrb[82].mxu0 %v20372_v33  ;;  %v24874_v33 = vld [vmem:[#allocation27_spill] sm:$0xff] }
 0x625   : > { %14688 = vmatprep.mubr.f32.mxu0 %v20401_v8  ;;  %v24875_v31 = vand.u32 4294901760, %v24874_v33  ;;  %v24884_v33 = vld [vmem:[#allocation136_spill] sm:$0xff] }
 0x628   : > { %14689 = vmatmul.mubr.f32.gmra.mrb[84].mxu0 %v20397_v24  ;;  %v24872_v24 = vld [vmem:[#allocation25_spill] sm:$0xff] }
 0x629   : > { %14691 = vmatprep.mubr.f32.mxu0 %v20422_v22  ;;  %v24871_v22 = vld [vmem:[#allocation23_spill] sm:$0xff]  ;;  %v24873_v8 = vand.u32 4294901760, %v24872_v24 }
 0x62a   : > { %v24883_v24 = vld [vmem:[#allocation135_spill] sm:$0xff] }
 0x62b   : > { %v15610_v39 = vpack.c.bf16 %v24875_v31, %v24873_v8  ;;  %v24885_v8 = vld [vmem:[#allocation60_spill] sm:$0xff]  ;;  %v24886_v31 = vld [vmem:[#allocation65_spill] sm:$0xff] }
 0x62c   : > { %14692 = vmatmul.mubr.f32.gmra.mrb[86].mxu0 %v20418_v48  ;;  %v24870_v48 = vld [vmem:[#allocation95_spill] sm:$0xff] }
 0x62d   : > { %14694 = vmatprep.mubr.f32.mxu0 %v20442_v49  ;;  %v24869_v49 = vld [vmem:[#allocation85_spill] sm:$0xff] }
 0x630   : > { %14695 = vmatmul.mubr.f32.gmra.mrb[88].mxu0 %v20438_v55  ;;  %v24868_v55 = vld [vmem:[#allocation21_spill] sm:$0xff] }
 0x631   : > { %14697 = vmatprep.mubr.f32.mxu0 %v20462_v42  ;;  %v24867_v42 = vld [vmem:[#allocation87_spill] sm:$0xff] }
 0x634   : > { %14698 = vmatmul.mubr.f32.gmra.mrb[90].mxu0 %v24818_v10  ;;  %v24866_v10 = vld [vmem:[#allocation117_spill] sm:$0xff] }
 0x635   : > { %14700 = vmatprep.mubr.f32.mxu0 %v24819_v43  ;;  %v24830_v43 = vld [vmem:[#allocation35_spill] sm:$0xff] }
 0x638   : > { %14701 = vmatmul.mubr.f32.gmra.mrb[92].mxu0 %v24820_v62  ;;  %v24831_v62 = vld [vmem:[#allocation63_spill] sm:$0xff] }
 0x639   : > { %14703 = vmatprep.mubr.f32.mxu0 %v24821_v45  ;;  %v24832_v45 = vld [vmem:[#allocation51_spill] sm:$0xff] }
 0x63c   : > { %14704 = vmatmul.mubr.f32.gmra.mrb[94].mxu0 %v24822_v51  ;;  %v24833_v51 = vld [vmem:[#allocation75_spill] sm:$0xff] }
 0x63d   : > { %14706 = vmatprep.mubr.f32.mxu0 %v24823_v25  ;;  %v24834_v25 = vld [vmem:[#allocation67_spill] sm:$0xff] }
 0x640   : > { %14707 = vmatmul.mubr.f32.gmra.mrb[96].mxu0 %v24824_v37  ;;  %v24835_v37 = vld [vmem:[#allocation82_spill] sm:$0xff] }
 0x641   : > { %14709 = vmatprep.mubr.f32.mxu0 %v24825_v61  ;;  %v24836_v61 = vld [vmem:[#allocation79_spill] sm:$0xff] }
 0x644   : > { %14710 = vmatmul.mubr.f32.gmra.mrb[98].mxu0 %v24826_v1  ;;  %v24837_v1 = vld [vmem:[#allocation92_spill] sm:$0xff] }
 0x645   : > { %14712 = vmatprep.mubr.f32.mxu0 %v24827_v34  ;;  %v24838_v34 = vld [vmem:[#allocation86_spill] sm:$0xff] }
 0x648   : > { %14713 = vmatmul.mubr.f32.gmra.mrb[100].mxu0 %v24828_v7  ;;  %v24839_v7 = vld [vmem:[#allocation41_spill] sm:$0xff] }
 0x649   : > { %14715 = vmatprep.mubr.f32.mxu0 %v24829_v23  ;;  %v24840_v23 = vld [vmem:[#allocation94_spill] sm:$0xff] }
 0x64c   : > { %14716 = vmatmul.mubr.f32.gmra.mrb[102].mxu0 %v24830_v43  ;;  %v24841_v43 = vld [vmem:[#allocation104_spill] sm:$0xff] }
 0x64d   : > { %14718 = vmatprep.mubr.f32.mxu0 %v24831_v62  ;;  %v24842_v62 = vld [vmem:[#allocation98_spill] sm:$0xff] }
 0x650   : > { %14719 = vmatmul.mubr.f32.gmra.mrb[104].mxu0 %v24832_v45  ;;  %v24843_v45 = vld [vmem:[#allocation112_spill] sm:$0xff] }
 0x651   : > { %14721 = vmatprep.mubr.f32.mxu0 %v24833_v51  ;;  %v24844_v51 = vld [vmem:[#allocation106_spill] sm:$0xff] }
 0x654   : > { %14722 = vmatmul.mubr.f32.gmra.mrb[106].mxu0 %v24834_v25  ;;  %v24845_v25 = vld [vmem:[#allocation119_spill] sm:$0xff] }
 0x655   : > { %14724 = vmatprep.mubr.f32.mxu0 %v24835_v37  ;;  %v24846_v37 = vld [vmem:[#allocation114_spill] sm:$0xff] }
 0x658   : > { %14725 = vmatmul.mubr.f32.gmra.mrb[108].mxu0 %v24836_v61  ;;  %v24847_v61 = vld [vmem:[#allocation69_spill] sm:$0xff] }
 0x659   : > { %14727 = vmatprep.mubr.f32.mxu0 %v24837_v1  ;;  %v24848_v1 = vld [vmem:[#allocation37_spill] sm:$0xff] }
 0x65c   : > { %14728 = vmatmul.mubr.f32.gmra.mrb[110].mxu0 %v24838_v34  ;;  %v24865_v34 = vld [vmem:[#allocation18_spill] sm:$0xff] }
 0x65d   : > { %14730 = vmatprep.mubr.f32.mxu0 %v24839_v7  ;;  %v24849_v7 = vld [vmem:[#allocation124_spill] sm:$0xff] }
 0x660   : > { %14731 = vmatmul.mubr.f32.gmra.mrb[112].mxu0 %v24840_v23  ;;  %v24864_v23 = vld [vmem:[#allocation121_spill] sm:$0xff] }
 0x661   : > { %14733 = vmatprep.mubr.f32.mxu0 %v24841_v43  ;;  %v24863_v43 = vld [vmem:[#allocation78_spill] sm:$0xff] }
 0x664   : > { %14734 = vmatmul.mubr.f32.gmra.mrb[114].mxu0 %v24842_v62  ;;  %v24862_v62 = vld [vmem:[#allocation17_spill] sm:$0xff] }
 0x665   : > { %14736 = vmatprep.mubr.f32.mxu0 %v24843_v45  ;;  %v24861_v45 = vld [vmem:[#allocation42_spill] sm:$0xff] }
 0x668   : > { %14737 = vmatmul.mubr.f32.gmra.mrb[116].mxu0 %v24844_v51  ;;  %v24850_v51 = vld [vmem:[#allocation31_spill] sm:$0xff] }
 0x669   : > { %14739 = vmatprep.mubr.f32.mxu0 %v24845_v25  ;;  %v24851_v25 = vld [vmem:[#allocation59_spill] sm:$0xff] }
 0x66c   : > { %14740 = vmatmul.mubr.f32.gmra.mrb[118].mxu0 %v24846_v37  ;;  %v24860_v37 = vld [vmem:[#allocation71_spill] sm:$0xff] }
 0x66d   : > { %14742 = vmatprep.mubr.f32.mxu0 %v24847_v61  ;;  %v24852_v61 = vld [vmem:[#allocation45_spill] sm:$0xff] }
 0x670   : > { %14743 = vmatmul.mubr.f32.gmra.mrb[120].mxu0 %v24848_v1  ;;  %v24853_v1 = vld [vmem:[#allocation9_spill] sm:$0xff] }
 0x671   : > { %14745 = vmatprep.mubr.f32.mxu0 %v20787_v63  ;;  %v24854_v63 = vld [vmem:[#allocation40_spill] sm:$0xff] }
 0x674   : > { %14746 = vmatmul.mubr.f32.gmra.mrb[122].mxu0 %v24849_v7  ;;  %v24855_v7 = vld [vmem:[#allocation62_spill] sm:$0xff] }
 0x675   : > { %14748 = vmatprep.mubr.f32.mxu0 %v20807_v57  ;;  %v24859_v57 = vld [vmem:[#allocation14_spill] sm:$0xff] }
 0x678   : > { %14749 = vmatmul.mubr.f32.gmra.mrb[124].mxu0 %v20803_v47  ;;  %v24856_v47 = vld [vmem:[#allocation13_spill] sm:$0xff] }
 0x679   : > { %14751 = vmatprep.mubr.f32.mxu0 %v20826_v15  ;;  %v24857_v15 = vld [vmem:[#allocation57_spill] sm:$0xff] }
 0x67c   : > { %14752 = vmatmul.mubr.f32.gmra.mrb[126].mxu0 %v20823_v41  ;;  %v24858_v41 = vld [vmem:[#allocation74_spill] sm:$0xff] }
 0x67d   : > { %14786 = vmatprep.mubr.f32.mxu0 %v24850_v51 }
 0x680   : > { %14787 = vmatmul.mubr.f32.vlgmr.msra.gmra.mrb[64].mxu0 %v24851_v25 }
 0x681   : > { %15581 = vmatpush3.bf16.msra.mxu0 %v24817_v16  ;;  %14789 = vmatprep.mubr.f32.mxu0 %v24852_v61 }
 0x682   : > { %15583 = vmatprep.subr.bf16.mxu0 %v24853_v1 }
 0x684   : > { %14790 = vmatmul.mubr.f32.gmra.mrb[66].mxu0 %v24854_v63 }
 0x685   : > { %14792 = vmatprep.mubr.f32.mxu0 %v24855_v7  ;;  %15585 = vmatpush3.bf16.msra.mxu0 %v24853_v1  ;;  %v24900_v1 = vld [vmem:[#allocation44_spill] sm:$0xff] }
 0x686   : > { %15587 = vmatprep.subr.bf16.mxu0 %v24856_v47 }
 0x688   : > { %14793 = vmatmul.mubr.f32.gmra.mrb[68].mxu0 %v24857_v15 }
 0x689   : > { %14795 = vmatprep.mubr.f32.mxu0 %v24858_v41  ;;  %15589 = vmatpush3.bf16.msra.mxu0 %v24856_v47  ;;  %v24897_v47 = vld [vmem:[#allocation39_spill] sm:$0xff] }
 0x68a   : > { %15591 = vmatprep.subr.bf16.mxu0 %v24859_v57 }
 0x68c   : > { %14796 = vmatmul.mubr.f32.gmra.mrb[70].mxu0 %v24860_v37 }
 0x68d   : > { %14798 = vmatprep.mubr.f32.mxu0 %v24861_v45  ;;  %15593 = vmatpush3.bf16.msra.mxu0 %v24859_v57  ;;  %v24894_v57 = vld [vmem:[#allocation19_spill] sm:$0xff] }
 0x68e   : > { %15595 = vmatprep.subr.bf16.mxu0 %v24862_v62 }
 0x690   : > { %14799 = vmatmul.mubr.f32.gmra.mrb[72].mxu0 %v24863_v43 }
 0x691   : > { %14801 = vmatprep.mubr.f32.mxu0 %v24864_v23  ;;  %15597 = vmatpush3.bf16.msra.mxu0 %v24862_v62  ;;  %v24891_v62 = vld [vmem:[#allocation15_spill] sm:$0xff] }
 0x692   : > { %15599 = vmatprep.subr.bf16.mxu0 %v24865_v34 }
 0x694   : > { %14802 = vmatmul.mubr.f32.gmra.mrb[74].mxu0 %v24866_v10 }
 0x695   : > { %14804 = vmatprep.mubr.f32.mxu0 %v24867_v42  ;;  %15601 = vmatpush3.bf16.msra.mxu0 %v24865_v34  ;;  %v24888_v34 = vld [vmem:[#allocation72_spill] sm:$0xff] }
 0x696   : > { %15603 = vmatprep.subr.bf16.mxu0 %v24868_v55 }
 0x698   : > { %14805 = vmatmul.mubr.f32.gmra.mrb[76].mxu0 %v24869_v49 }
 0x699   : > { %14807 = vmatprep.mubr.f32.mxu0 %v24870_v48  ;;  %15605 = vmatpush3.bf16.msra.mxu0 %v24868_v55  ;;  %v24881_v55 = vld [vmem:[#allocation128_spill] sm:$0xff] }
 0x69a   : > { %15607 = vmatprep.subr.bf16.mxu0 %v24871_v22 }
 0x69c   : > { %14808 = vmatmul.mubr.f32.gmra.mrb[78].mxu0 %v24876_v29 }
 0x69d   : > { %14810 = vmatprep.mubr.f32.mxu0 %v24877_v40  ;;  %15609 = vmatpush3.bf16.msra.mxu0 %v24871_v22  ;;  %v24887_v22 = vld [vmem:[#allocation8_spill] sm:$0xff] }
 0x69e   : > { %15611 = vmatprep.subr.bf16.mxu0 %v15610_v39 }
 0x6a0   : > { %14811 = vmatmul.mubr.f32.gmra.mrb[80].mxu0 %v24878_v36 }
 0x6a1   : > { %14813 = vmatprep.mubr.f32.mxu0 %v24879_v27 }
 0x6a4   : > { %14814 = vmatmul.mubr.f32.gmra.mrb[82].mxu0 %v24880_v5 }
 0x6a5   : > { %14816 = vmatprep.mubr.f32.mxu0 %v24881_v55 }
 0x6a8   : > { %14817 = vmatmul.mubr.f32.gmra.mrb[84].mxu0 %v24882_v21 }
 0x6a9   : > { %14819 = vmatprep.mubr.f32.mxu0 %v24883_v24 }
 0x6ac   : > { %14820 = vmatmul.mubr.f32.gmra.mrb[86].mxu0 %v24884_v33 }
 0x6ad   : > { %14822 = vmatprep.mubr.f32.mxu0 %v24885_v8 }
 0x6b0   : > { %14823 = vmatmul.mubr.f32.gmra.mrb[88].mxu0 %v24886_v31 }
 0x6b1   : > { %14825 = vmatprep.mubr.f32.mxu0 %v24887_v22 }
 0x6b4   : > { %14826 = vmatmul.mubr.f32.gmra.mrb[90].mxu0 %v24888_v34 }
 0x6b5   : > { %14828 = vmatprep.mubr.f32.mxu0 %v24889_v3 }
 0x6b8   : > { %14829 = vmatmul.mubr.f32.gmra.mrb[92].mxu0 %v24890_v6 }
 0x6b9   : > { %14831 = vmatprep.mubr.f32.mxu0 %v24891_v62 }
 0x6bc   : > { %14832 = vmatmul.mubr.f32.gmra.mrb[94].mxu0 %v24892_v46 }
 0x6bd   : > { %14834 = vmatprep.mubr.f32.mxu0 %v24893_v9  ;;  %v24904_v9 = vld [vmem:[#allocation73_spill] sm:$0xff] }
 0x6c0   : > { %14835 = vmatmul.mubr.f32.gmra.mrb[96].mxu0 %v24894_v57  ;;  %v24905_v57 = vld [vmem:[#allocation88_spill] sm:$0xff] }
 0x6c1   : > { %14837 = vmatprep.mubr.f32.mxu0 %v24895_v2  ;;  %v24906_v2 = vld [vmem:[#allocation81_spill] sm:$0xff] }
 0x6c4   : > { %14838 = vmatmul.mubr.f32.gmra.mrb[98].mxu0 %v24896_v38  ;;  %v24907_v38 = vld [vmem:[#allocation96_spill] sm:$0xff] }
 0x6c5   : > { %14840 = vmatprep.mubr.f32.mxu0 %v24897_v47  ;;  %v24908_v47 = vld [vmem:[#allocation90_spill] sm:$0xff] }
 0x6c8   : > { %14841 = vmatmul.mubr.f32.gmra.mrb[100].mxu0 %v24898_v53  ;;  %v24909_v53 = vld [vmem:[#allocation100_spill] sm:$0xff] }
 0x6c9   : > { %14843 = vmatprep.mubr.f32.mxu0 %v24899_v19  ;;  %v24910_v19 = vld [vmem:[#allocation34_spill] sm:$0xff] }
 0x6cc   : > { %14844 = vmatmul.mubr.f32.gmra.mrb[102].mxu0 %v24900_v1  ;;  %v24911_v1 = vld [vmem:[#allocation108_spill] sm:$0xff] }
 0x6cd   : > { %14846 = vmatprep.mubr.f32.mxu0 %v24901_v17  ;;  %v24912_v17 = vld [vmem:[#allocation102_spill] sm:$0xff] }
 0x6d0   : > { %14847 = vmatmul.mubr.f32.gmra.mrb[104].mxu0 %v24902_v44  ;;  %v24913_v44 = vld [vmem:[#allocation116_spill] sm:$0xff] }
 0x6d1   : > { %14849 = vmatprep.mubr.f32.mxu0 %v24903_v54  ;;  %v24914_v54 = vld [vmem:[#allocation110_spill] sm:$0xff] }
 0x6d4   : > { %14850 = vmatmul.mubr.f32.gmra.mrb[106].mxu0 %v24904_v9  ;;  %v24915_v9 = vld [vmem:[#allocation122_spill] sm:$0xff] }
 0x6d5   : > { %14852 = vmatprep.mubr.f32.mxu0 %v24905_v57  ;;  %v24916_v57 = vld [vmem:[#allocation118_spill] sm:$0xff] }
 0x6d8   : > { %14853 = vmatmul.mubr.f32.gmra.mrb[108].mxu0 %v24906_v2  ;;  %v24917_v2 = vld [vmem:[#allocation126_spill] sm:$0xff] }
 0x6d9   : > { %14855 = vmatprep.mubr.f32.mxu0 %v24907_v38  ;;  %v24918_v38 = vld [vmem:[#allocation120_spill] sm:$0xff] }
 0x6dc   : > { %14856 = vmatmul.mubr.f32.gmra.mrb[110].mxu0 %v24908_v47 }
 0x6dd   : > { %14858 = vmatprep.mubr.f32.mxu0 %v24909_v53  ;;  %v24919_v53 = vld [vmem:[#allocation129_spill] sm:$0xff] }
 0x6e0   : > { %14859 = vmatmul.mubr.f32.gmra.mrb[112].mxu0 %v24910_v19 }
 0x6e1   : > { %14861 = vmatprep.mubr.f32.mxu0 %v24911_v1 }
 0x6e4   : > { %14862 = vmatmul.mubr.f32.gmra.mrb[114].mxu0 %v24912_v17 }
 0x6e5   : > { %14864 = vmatprep.mubr.f32.mxu0 %v24913_v44 }
 0x6e8   : > { %14865 = vmatmul.mubr.f32.gmra.mrb[116].mxu0 %v24914_v54 }
 0x6e9   : > { %14867 = vmatprep.mubr.f32.mxu0 %v24915_v9  ;;  %v24920_v9 = vand.u32 4294901760, %v24850_v51  ;;  %v24964_v51 = vand.u32 4294901760, %v24891_v62  ;;  %v24976_v62 = vld [vmem:[#allocation30_spill] sm:$0xff] }
 0x6ec   : > { %14868 = vmatmul.mubr.f32.gmra.mrb[118].mxu0 %v24916_v57  ;;  %v24921_v57 = vand.u32 4294901760, %v20046_v60  ;;  %v24928_v60 = vand.u32 4294901760, %v24855_v7 }
 0x6ed   : > { %14870 = vmatprep.mubr.f32.mxu0 %v24917_v2  ;;  %v24922_v2 = vand.u32 4294901760, %v20051_v0  ;;  %v24929_v0 = vand.u32 4294901760, %v20066_v52  ;;  %v24936_v52 = vand.u32 4294901760, %v24861_v45  ;;  %v24963_v45 = vand.u32 4294901760, %v24890_v6  ;;  %v24974_v6 = vld [vmem:[#allocation39_spill] sm:$0xff] }
 0x6f0   : > { %14871 = vmatmul.mubr.f32.gmra.mrb[120].mxu0 %v24918_v38  ;;  %v15614_v38 = vpack.c.bf16 %v24922_v2, %v24921_v57  ;;  %v24930_v2 = vand.u32 4294901760, %v20071_v35  ;;  %v24931_v57 = vand.u32 4294901760, %v24857_v15  ;;  %v24937_v35 = vand.u32 4294901760, %v20111_v59 }
 0x6f1   : > { %14873 = vmatprep.mubr.f32.mxu0 %v20798_v56  ;;  %v24923_v56 = vand.u32 4294901760, %v24851_v25  ;;  %v24944_v59 = vand.u32 4294901760, %v24867_v42  ;;  %v24950_v42 = vand.u32 4294901760, %v24877_v40  ;;  %v24956_v40 = vand.u32 4294901760, %v24883_v24 }
 0x6f2   : > { %v24965_v25 = vand.u32 4294901760, %v24892_v46  ;;  %v24978_v46 = vld [vmem:[#allocation55_spill] sm:$0xff] }
 0x6f4   : > { %14874 = vmatmul.mubr.f32.gmra.mrb[122].mxu0 %v24919_v53 }
 0x6f5   : > { %14876 = vmatprep.mubr.f32.mxu0 %v20818_v50  ;;  %v24924_v50 = vand.u32 4294901760, %v24852_v61 }
 0x6f8   : > { %14877 = vmatmul.mubr.f32.gmra.mrb[124].mxu0 %v20812_v12 }
 0x6f9   : > { %14879 = vmatprep.mubr.f32.mxu0 %v20836_v18  ;;  %v24925_v18 = vand.u32 4294901760, %v20056_v13  ;;  %v24932_v13 = vand.u32 4294901760, %v24858_v41  ;;  %v24942_v41 = vand.u32 4294901760, %v20139_v32  ;;  %v24949_v32 = vand.u32 4294901760, %v24876_v29 }
 0x6fa   : > { %v24955_v29 = vand.u32 4294901760, %v24882_v21  ;;  %v24962_v21 = vand.u32 4294901760, %v24889_v3  ;;  %v24972_v3 = vld [vmem:[#allocation28_spill] sm:$0xff] }
 0x6fc   : > { %14880 = vmatmul.mubr.f32.gmra.mrb[126].mxu0 %v20830_v58  ;;  %v24926_v58 = vand.u32 4294901760, %v20061_v20  ;;  %v24933_v20 = vand.u32 4294901760, %v20076_v30  ;;  %v24940_v30 = vand.u32 4294901760, %v24864_v23  ;;  %v24946_v23 = vand.u32 4294901760, %v20256_v11 }
 0x6fd   : > { %14914 = vmatprep.mubr.f32.mxu0 %v24920_v9  ;;  %v24927_v9 = vand.u32 4294901760, %v24854_v63  ;;  %v24934_v63 = vand.u32 4294901760, %v20081_v28  ;;  %v24941_v28 = vand.u32 4294901760, %v20133_v26  ;;  %v24948_v26 = vand.u32 4294901760, %v24870_v48 }
 0x6fe   : > { %v15618_v12 = vpack.c.bf16 %v24926_v58, %v24925_v18  ;;  %v24938_v58 = vand.u32 4294901760, %v20122_v14  ;;  %v24943_v18 = vand.u32 4294901760, %v24866_v10  ;;  %v24945_v14 = vand.u32 4294901760, %v20247_v4 }
 0x6ff   : > { %v15634_v15 = vpack.c.bf16 %v24942_v41, %v24941_v28  ;;  %v24951_v4 = vand.u32 4294901760, %v24878_v36  ;;  %v24953_v11 = vand.u32 4294901760, %v24880_v5  ;;  %v24954_v48 = vand.u32 4294901760, %v24881_v55 }
 0x700   : > { %14915 = vmatmul.mubr.f32.vlgmr.msra.gmra.mrb[64].mxu0 %v24923_v56  ;;  %v15626_v56 = vpack.c.bf16 %v24934_v63, %v24933_v20  ;;  %v15638_v7 = vpack.c.bf16 %v24946_v23, %v24945_v14  ;;  %v24957_v10 = vand.u32 4294901760, %v24884_v33  ;;  %v24958_v36 = vand.u32 4294901760, %v24885_v8  ;;  %v24986_v63 = vld [vmem:[#allocation80_spill] sm:$0xff] }
 0x701   : > { %15613 = vmatpush3.bf16.msra.mxu0 %v15610_v39  ;;  %14917 = vmatprep.mubr.f32.mxu0 %v24924_v50  ;;  %v15622_v39 = vpack.c.bf16 %v24930_v2, %v24929_v0  ;;  %v15630_v50 = vpack.c.bf16 %v24938_v58, %v24937_v35  ;;  %v24960_v5 = vand.u32 4294901760, %v24887_v22  ;;  %v24961_v55 = vand.u32 4294901760, %v24888_v34  ;;  %v24968_v22 = vld [vmem:[#allocation19_spill] sm:$0xff]  ;;  %v24970_v34 = vld [vmem:[#allocation56_spill] sm:$0xff] }
 0x702   : > { %15615 = vmatprep.subr.bf16.mxu0 %v15614_v38  ;;  %v24969_v24 = vand.u32 4294901760, %v24968_v22  ;;  %v24971_v33 = vand.u32 4294901760, %v24970_v34  ;;  %v24973_v8 = vand.u32 4294901760, %v24972_v3  ;;  %v24980_v0 = vld [vmem:[#allocation44_spill] sm:$0xff]  ;;  %v24996_v41 = vand.u32 4294901760, %v24908_v47  ;;  %v25004_v47 = vld [vmem:[#allocation122_spill] sm:$0xff] }
 0x703   : > { %v24981_v2 = vand.u32 4294901760, %v24980_v0  ;;  %v24990_v35 = vld [vmem:[#allocation88_spill] sm:$0xff]  ;;  %v25000_v14 = vand.u32 4294901760, %v24911_v1  ;;  %v25001_v23 = vand.u32 4294901760, %v24912_v17  ;;  %v25012_v17 = vld [vmem:[#allocation134_spill] sm:$0xff]  ;;  %v25034_v34 = vld [vmem:[#allocation77_spill] sm:$0xff] }
 0x704   : > { %14918 = vmatmul.mubr.f32.gmra.mrb[66].mxu0 %v24927_v9  ;;  %v24977_v9 = vand.u32 4294901760, %v24976_v62  ;;  %v24991_v58 = vand.u32 4294901760, %v24990_v35  ;;  %v25010_v1 = vld [vmem:[#allocation120_spill] sm:$0xff]  ;;  %v25040_v62 = vld [vmem:[#allocation83_spill] sm:$0xff] }
 0x705   : > { %14920 = vmatprep.mubr.f32.mxu0 %v24928_v60  ;;  %15617 = vmatpush3.bf16.msra.mxu0 %v15614_v38  ;;  %v24935_v38 = vand.u32 4294901760, %v24860_v37  ;;  %v24966_v37 = vld [vmem:[#allocation24_spill] sm:$0xff]  ;;  %v24979_v60 = vand.u32 4294901760, %v24978_v46  ;;  %v25042_v46 = vld [vmem:[#allocation131_spill] sm:$0xff] }
 0x706   : > { %15619 = vmatprep.subr.bf16.mxu0 %v15618_v12  ;;  %v24967_v61 = vand.u32 4294901760, %v24966_v37  ;;  %v25029_v37 = vld [vmem:[#allocation13_spill] sm:$0xff]  ;;  %v25031_v22 = vld [vmem:[#allocation68_spill] sm:$0xff]  ;;  %v25044_v0 = vld [vmem:[#allocation23_spill] sm:$0xff] }
 0x707   : > { %v25036_v3 = vld [vmem:[#allocation76_spill] sm:$0xff]  ;;  %v25054_v35 = vld [vmem:[#allocation139_spill] sm:$0xff] }
 0x708   : > { %14921 = vmatmul.mubr.f32.gmra.mrb[68].mxu0 %v24931_v57 }
 0x709   : > { %14923 = vmatprep.mubr.f32.mxu0 %v24932_v13  ;;  %15621 = vmatpush3.bf16.msra.mxu0 %v15618_v12  ;;  %v24939_v12 = vand.u32 4294901760, %v24863_v43  ;;  %v24947_v43 = vand.u32 4294901760, %v24869_v49  ;;  %v24952_v49 = vand.u32 4294901760, %v24879_v27  ;;  %v24959_v27 = vand.u32 4294901760, %v24886_v31  ;;  %v24984_v13 = vld [vmem:[#allocation61_spill] sm:$0xff] }
 0x70a   : > { %15623 = vmatprep.subr.bf16.mxu0 %v15622_v39  ;;  %v24975_v31 = vand.u32 4294901760, %v24974_v6  ;;  %v24985_v20 = vand.u32 4294901760, %v24984_v13  ;;  %v25038_v6 = vld [vmem:[#allocation18_spill] sm:$0xff]  ;;  %v25048_v13 = vld [vmem:[#allocation107_spill] sm:$0xff] }
 0x70c   : > { %14924 = vmatmul.mubr.f32.gmra.mrb[70].mxu0 %v24935_v38  ;;  %v24988_v38 = vld [vmem:[#allocation73_spill] sm:$0xff] }
 0x70d   : > { %14926 = vmatprep.mubr.f32.mxu0 %v24936_v52  ;;  %15625 = vmatpush3.bf16.msra.mxu0 %v15622_v39  ;;  %v24982_v39 = vld [vmem:[#allocation70_spill] sm:$0xff]  ;;  %v24989_v52 = vand.u32 4294901760, %v24988_v38  ;;  %v25052_v38 = vld [vmem:[#allocation132_spill] sm:$0xff] }
 0x70e   : > { %15627 = vmatprep.subr.bf16.mxu0 %v15626_v56  ;;  %v24983_v57 = vand.u32 4294901760, %v24982_v39  ;;  %v25046_v39 = vld [vmem:[#allocation36_spill] sm:$0xff] }
 0x710   : > { %14927 = vmatmul.mubr.f32.gmra.mrb[72].mxu0 %v24939_v12 }
 0x711   : > { %14929 = vmatprep.mubr.f32.mxu0 %v24940_v30  ;;  %15629 = vmatpush3.bf16.msra.mxu0 %v15626_v56  ;;  %v24987_v56 = vand.u32 4294901760, %v24986_v63  ;;  %v24994_v30 = vld [vmem:[#allocation96_spill] sm:$0xff]  ;;  %v25050_v63 = vld [vmem:[#allocation123_spill] sm:$0xff] }
 0x712   : > { %15631 = vmatprep.subr.bf16.mxu0 %v15630_v50  ;;  %v24995_v28 = vand.u32 4294901760, %v24994_v30  ;;  %v25058_v30 = vld [vmem:[#allocation7_spill] sm:$0xff] }
 0x714   : > { %14930 = vmatmul.mubr.f32.gmra.mrb[74].mxu0 %v24943_v18 }
 0x715   : > { %14932 = vmatprep.mubr.f32.mxu0 %v24944_v59  ;;  %15633 = vmatpush3.bf16.msra.mxu0 %v15630_v50  ;;  %v24992_v50 = vld [vmem:[#allocation81_spill] sm:$0xff]  ;;  %v24999_v59 = vand.u32 4294901760, %v24910_v19  ;;  %v25008_v19 = vld [vmem:[#allocation126_spill] sm:$0xff] }
 0x716   : > { %15635 = vmatprep.subr.bf16.mxu0 %v15634_v15  ;;  %v24993_v12 = vand.u32 4294901760, %v24992_v50  ;;  %v25056_v50 = vld [vmem:[#allocation43_spill] sm:$0xff] }
 0x718   : > { %14933 = vmatmul.mubr.f32.gmra.mrb[76].mxu0 %v24947_v43  ;;  %v25003_v43 = vand.u32 4294901760, %v24914_v54  ;;  %v25015_v54 = vld [vmem:[#allocation6_spill] sm:$0xff] }
 0x719   : > { %14935 = vmatprep.mubr.f32.mxu0 %v24948_v26  ;;  %15637 = vmatpush3.bf16.msra.mxu0 %v15634_v15  ;;  %v24997_v15 = vld [vmem:[#allocation100_spill] sm:$0xff]  ;;  %v25005_v26 = vand.u32 4294901760, %v25004_v47  ;;  %v25068_v47 = vld [vmem:[#allocation47_spill] sm:$0xff] }
 0x71a   : > { %15639 = vmatprep.subr.bf16.mxu0 %v15638_v7  ;;  %v24998_v18 = vand.u32 4294901760, %v24997_v15  ;;  %v25061_v15 = vld [vmem:[#allocation11_spill] sm:$0xff] }
 0x71c   : > { %14936 = vmatmul.mubr.f32.gmra.mrb[78].mxu0 %v24949_v32  ;;  %v25006_v32 = vld [vmem:[#allocation118_spill] sm:$0xff] }
 0x71d   : > { %14938 = vmatprep.mubr.f32.mxu0 %v24950_v42  ;;  %15641 = vmatpush3.bf16.msra.mxu0 %v15638_v7  ;;  %v25002_v7 = vand.u32 4294901760, %v24913_v44  ;;  %v25007_v42 = vand.u32 4294901760, %v25006_v32  ;;  %v25014_v44 = vand.u32 4294901760, %v24919_v53  ;;  %v25025_v53 = vld [vmem:[#allocation38_spill] sm:$0xff]  ;;  %v25070_v32 = vld [vmem:[#allocation63_spill] sm:$0xff] }
 0x71e   : > { %15643 = vmatprep.subr.bf16.mxu0 %v24817_v16 }
 0x720   : > { %14939 = vmatmul.mubr.f32.gmra.mrb[80].mxu0 %v24951_v4  ;;  %v25009_v4 = vand.u32 4294901760, %v25008_v19  ;;  %v25072_v19 = vld [vmem:[#allocation75_spill] sm:$0xff] }
 0x721   : > { %14941 = vmatprep.mubr.f32.mxu0 %v24952_v49  ;;  %v25011_v49 = vand.u32 4294901760, %v25010_v1  ;;  %v25074_v1 = vld [vmem:[#allocation82_spill] sm:$0xff] }
 0x724   : > { %14942 = vmatmul.mubr.f32.gmra.mrb[82].mxu0 %v24953_v11  ;;  %v25013_v11 = vand.u32 4294901760, %v25012_v17  ;;  %v25076_v17 = vld [vmem:[#allocation92_spill] sm:$0xff] }
 0x725   : > { %14944 = vmatprep.mubr.f32.mxu0 %v24954_v48  ;;  %v25016_v48 = vand.u32 4294901760, %v25015_v54  ;;  %v25079_v54 = vld [vmem:[#allocation94_spill] sm:$0xff] }
 0x728   : > { %14945 = vmatmul.mubr.f32.gmra.mrb[84].mxu0 %v24955_v29  ;;  %v25017_v29 = vld [vmem:[#allocation137_spill] sm:$0xff] }
 0x729   : > { %14947 = vmatprep.mubr.f32.mxu0 %v24956_v40  ;;  %v25018_v40 = vand.u32 4294901760, %v25017_v29  ;;  %v25081_v29 = vld [vmem:[#allocation98_spill] sm:$0xff] }
 0x72c   : > { %14948 = vmatmul.mubr.f32.gmra.mrb[86].mxu0 %v24957_v10  ;;  %v25019_v10 = vld [vmem:[#allocation142_spill] sm:$0xff] }
 0x72d   : > { %14950 = vmatprep.mubr.f32.mxu0 %v24958_v36  ;;  %v25020_v36 = vand.u32 4294901760, %v25019_v10  ;;  %v25083_v10 = vld [vmem:[#allocation106_spill] sm:$0xff] }
 0x730   : > { %14951 = vmatmul.mubr.f32.gmra.mrb[88].mxu0 %v24959_v27  ;;  %v25021_v27 = vld [vmem:[#allocation141_spill] sm:$0xff] }
 0x731   : > { %14953 = vmatprep.mubr.f32.mxu0 %v24960_v5  ;;  %v25022_v5 = vand.u32 4294901760, %v25021_v27  ;;  %v25085_v27 = vld [vmem:[#allocation114_spill] sm:$0xff] }
 0x734   : > { %14954 = vmatmul.mubr.f32.gmra.mrb[90].mxu0 %v24961_v55  ;;  %v25023_v55 = vld [vmem:[#allocation58_spill] sm:$0xff] }
 0x735   : > { %14956 = vmatprep.mubr.f32.mxu0 %v24962_v21  ;;  %v25024_v21 = vld [vmem:[#allocation29_spill] sm:$0xff] }
 0x738   : > { %14957 = vmatmul.mubr.f32.gmra.mrb[92].mxu0 %v24963_v45  ;;  %v25026_v45 = vld [vmem:[#allocation9_spill] sm:$0xff] }
 0x739   : > { %14959 = vmatprep.mubr.f32.mxu0 %v24964_v51  ;;  %v25027_v51 = vld [vmem:[#allocation33_spill] sm:$0xff] }
 0x73c   : > { %14960 = vmatmul.mubr.f32.gmra.mrb[94].mxu0 %v24965_v25  ;;  %v25028_v25 = vld [vmem:[#allocation52_spill] sm:$0xff] }
 0x73d   : > { %14962 = vmatprep.mubr.f32.mxu0 %v24967_v61  ;;  %v25030_v61 = vld [vmem:[#allocation50_spill] sm:$0xff] }
 0x740   : > { %14963 = vmatmul.mubr.f32.gmra.mrb[96].mxu0 %v24969_v24  ;;  %v25032_v24 = vld [vmem:[#allocation14_spill] sm:$0xff] }
 0x741   : > { %14965 = vmatprep.mubr.f32.mxu0 %v24971_v33  ;;  %v25035_v33 = vld [vmem:[#allocation17_spill] sm:$0xff] }
 0x744   : > { %14966 = vmatmul.mubr.f32.gmra.mrb[98].mxu0 %v24973_v8  ;;  %v25037_v8 = vld [vmem:[#allocation115_spill] sm:$0xff] }
 0x745   : > { %14968 = vmatprep.mubr.f32.mxu0 %v24975_v31  ;;  %v25039_v31 = vld [vmem:[#allocation99_spill] sm:$0xff] }
 0x748   : > { %14969 = vmatmul.mubr.f32.gmra.mrb[100].mxu0 %v24977_v9  ;;  %v25041_v9 = vld [vmem:[#allocation21_spill] sm:$0xff] }
 0x749   : > { %14971 = vmatprep.mubr.f32.mxu0 %v24979_v60  ;;  %v25043_v60 = vld [vmem:[#allocation91_spill] sm:$0xff] }
 0x74c   : > { %14972 = vmatmul.mubr.f32.gmra.mrb[102].mxu0 %v24981_v2  ;;  %v25045_v2 = vld [vmem:[#allocation89_spill] sm:$0xff] }
 0x74d   : > { %14974 = vmatprep.mubr.f32.mxu0 %v24983_v57  ;;  %v25047_v57 = vld [vmem:[#allocation97_spill] sm:$0xff] }
 0x750   : > { %14975 = vmatmul.mubr.f32.gmra.mrb[104].mxu0 %v24985_v20  ;;  %v25049_v20 = vld [vmem:[#allocation105_spill] sm:$0xff] }
 0x751   : > { %14977 = vmatprep.mubr.f32.mxu0 %v24987_v56  ;;  %v25051_v56 = vld [vmem:[#allocation113_spill] sm:$0xff] }
 0x754   : > { %14978 = vmatmul.mubr.f32.gmra.mrb[106].mxu0 %v24989_v52  ;;  %v25053_v52 = vld [vmem:[#allocation127_spill] sm:$0xff] }
 0x755   : > { %14980 = vmatprep.mubr.f32.mxu0 %v24991_v58  ;;  %v25055_v58 = vld [vmem:[#allocation140_spill] sm:$0xff] }
 0x758   : > { %14981 = vmatmul.mubr.f32.gmra.mrb[108].mxu0 %v24993_v12  ;;  %v25057_v12 = vld [vmem:[#allocation84_spill] sm:$0xff] }
 0x759   : > { %14983 = vmatprep.mubr.f32.mxu0 %v24995_v28  ;;  %v25059_v28 = vld [vmem:[#allocation46_spill] sm:$0xff] }
 0x75c   : > { %14984 = vmatmul.mubr.f32.gmra.mrb[110].mxu0 %v24996_v41  ;;  %v25060_v41 = vld [vmem:[#allocation16_spill] sm:$0xff] }
 0x75d   : > { %14986 = vmatprep.mubr.f32.mxu0 %v24998_v18  ;;  %v25062_v18 = vld [vmem:[#allocation53_spill] sm:$0xff] }
 0x760   : > { %14987 = vmatmul.mubr.f32.gmra.mrb[112].mxu0 %v24999_v59  ;;  %v25063_v59 = vld [vmem:[#allocation20_spill] sm:$0xff] }
 0x761   : > { %14989 = vmatprep.mubr.f32.mxu0 %v25000_v14  ;;  %v25064_v14 = vld [vmem:[#allocation22_spill] sm:$0xff] }
 0x764   : > { %14990 = vmatmul.mubr.f32.gmra.mrb[114].mxu0 %v25001_v23  ;;  %v25065_v23 = vld [vmem:[#allocation54_spill] sm:$0xff] }
 0x765   : > { %14992 = vmatprep.mubr.f32.mxu0 %v25002_v7  ;;  %v25066_v7 = vld [vmem:[#allocation32_spill] sm:$0xff] }
 0x768   : > { %14993 = vmatmul.mubr.f32.gmra.mrb[116].mxu0 %v25003_v43  ;;  %v25067_v43 = vld [vmem:[#allocation26_spill] sm:$0xff] }
 0x769   : > { %14995 = vmatprep.mubr.f32.mxu0 %v25005_v26  ;;  %v25069_v26 = vld [vmem:[#allocation35_spill] sm:$0xff] }
 0x76c   : > { %14996 = vmatmul.mubr.f32.gmra.mrb[118].mxu0 %v25007_v42  ;;  %v25071_v42 = vld [vmem:[#allocation51_spill] sm:$0xff] }
 0x76d   : > { %14998 = vmatprep.mubr.f32.mxu0 %v25009_v4  ;;  %v25073_v4 = vld [vmem:[#allocation67_spill] sm:$0xff] }
 0x770   : > { %14999 = vmatmul.mubr.f32.gmra.mrb[120].mxu0 %v25011_v49  ;;  %v25075_v49 = vld [vmem:[#allocation79_spill] sm:$0xff] }
 0x771   : > { %15001 = vmatprep.mubr.f32.mxu0 %v25013_v11  ;;  %v25077_v11 = vld [vmem:[#allocation86_spill] sm:$0xff] }
 0x774   : > { %15002 = vmatmul.mubr.f32.gmra.mrb[122].mxu0 %v25014_v44  ;;  %v25078_v44 = vld [vmem:[#allocation41_spill] sm:$0xff] }
 0x775   : > { %15004 = vmatprep.mubr.f32.mxu0 %v25016_v48  ;;  %v25080_v48 = vld [vmem:[#allocation104_spill] sm:$0xff] }
 0x778   : > { %15005 = vmatmul.mubr.f32.gmra.mrb[124].mxu0 %v25018_v40  ;;  %v25082_v40 = vld [vmem:[#allocation112_spill] sm:$0xff] }
 0x779   : > { %15007 = vmatprep.mubr.f32.mxu0 %v25020_v36  ;;  %v25084_v36 = vld [vmem:[#allocation119_spill] sm:$0xff] }
 0x77c   : > { %15008 = vmatmul.mubr.f32.gmra.mrb[126].mxu0 %v25022_v5  ;;  %v25086_v5 = vld [vmem:[#allocation69_spill] sm:$0xff] }
 0x77d   : > { %15042 = vmatprep.mubr.f32.mxu0 %v25023_v55 }
 0x780   : > { %15043 = vmatmul.mubr.f32.vlgmr.msra.gmra.mrb[64].mxu0 %v25024_v21 }
 0x781   : > { %15645 = vmatpush3.bf16.msra.mxu0 %v24817_v16  ;;  %15045 = vmatprep.mubr.f32.mxu0 %v25025_v53  ;;  %v25033_v16 = vld [vmem:[#allocation64_spill] sm:$0xff] }
 0x782   : > { %15647 = vmatprep.subr.bf16.mxu0 %v25026_v45 }
 0x784   : > { %15046 = vmatmul.mubr.f32.gmra.mrb[66].mxu0 %v25027_v51 }
 0x785   : > { %15048 = vmatprep.mubr.f32.mxu0 %v25028_v25  ;;  %15649 = vmatpush3.bf16.msra.mxu0 %v25026_v45  ;;  %v25087_v45 = vld [vmem:[#allocation37_spill] sm:$0xff] }
 0x786   : > { %15651 = vmatprep.subr.bf16.mxu0 %v25029_v37 }
 0x788   : > { %15049 = vmatmul.mubr.f32.gmra.mrb[68].mxu0 %v25030_v61 }
 0x789   : > { %15051 = vmatprep.mubr.f32.mxu0 %v25031_v22  ;;  %15653 = vmatpush3.bf16.msra.mxu0 %v25029_v37  ;;  %v25088_v37 = vld [vmem:[#allocation130_spill] sm:$0xff] }
 0x78a   : > { %15655 = vmatprep.subr.bf16.mxu0 %v25032_v24 }
 0x78c   : > { %15052 = vmatmul.mubr.f32.gmra.mrb[70].mxu0 %v25033_v16 }
 0x78d   : > { %15054 = vmatprep.mubr.f32.mxu0 %v25034_v34  ;;  %15657 = vmatpush3.bf16.msra.mxu0 %v25032_v24  ;;  %v25089_v24 = vld [vmem:[#allocation124_spill] sm:$0xff] }
 0x78e   : > { %15659 = vmatprep.subr.bf16.mxu0 %v25035_v33 }
 0x790   : > { %15055 = vmatmul.mubr.f32.gmra.mrb[72].mxu0 %v25036_v3 }
 0x791   : > { %15057 = vmatprep.mubr.f32.mxu0 %v25037_v8  ;;  %15661 = vmatpush3.bf16.msra.mxu0 %v25035_v33  ;;  %v25090_v33 = vld [vmem:[#allocation138_spill] sm:$0xff] }
 0x792   : > { %15663 = vmatprep.subr.bf16.mxu0 %v25038_v6 }
 0x794   : > { %15058 = vmatmul.mubr.f32.gmra.mrb[74].mxu0 %v25039_v31 }
 0x795   : > { %15060 = vmatprep.mubr.f32.mxu0 %v25040_v62  ;;  %15665 = vmatpush3.bf16.msra.mxu0 %v25038_v6  ;;  %v25091_v6 = vld [vmem:[#allocation133_spill] sm:$0xff] }
 0x796   : > { %15667 = vmatprep.subr.bf16.mxu0 %v25041_v9 }
 0x798   : > { %15061 = vmatmul.mubr.f32.gmra.mrb[76].mxu0 %v25042_v46 }
 0x799   : > { %15063 = vmatprep.mubr.f32.mxu0 %v25043_v60  ;;  %15669 = vmatpush3.bf16.msra.mxu0 %v25041_v9  ;;  %v25092_v9 = vld [vmem:[#allocation10_spill] sm:$0xff] }
 0x79a   : > { %15671 = vmatprep.subr.bf16.mxu0 %v25044_v0 }
 0x79c   : > { %15064 = vmatmul.mubr.f32.gmra.mrb[78].mxu0 %v25045_v2 }
 0x79d   : > { %15066 = vmatprep.mubr.f32.mxu0 %v25046_v39  ;;  %15673 = vmatpush3.bf16.msra.mxu0 %v25044_v0  ;;  %v25093_v0 = vld [vmem:[#allocation5_spill] sm:$0xff] }
 0x7a0   : > { %15067 = vmatmul.mubr.f32.gmra.mrb[80].mxu0 %v25047_v57 }
 0x7a1   : > { %15069 = vmatprep.mubr.f32.mxu0 %v25048_v13 }
 0x7a4   : > { %15070 = vmatmul.mubr.f32.gmra.mrb[82].mxu0 %v25049_v20 }
 0x7a5   : > { %15072 = vmatprep.mubr.f32.mxu0 %v25050_v63 }
 0x7a8   : > { %15073 = vmatmul.mubr.f32.gmra.mrb[84].mxu0 %v25051_v56 }
 0x7a9   : > { %15075 = vmatprep.mubr.f32.mxu0 %v25052_v38 }
 0x7ac   : > { %15076 = vmatmul.mubr.f32.gmra.mrb[86].mxu0 %v25053_v52 }
 0x7ad   : > { %15078 = vmatprep.mubr.f32.mxu0 %v25054_v35 }
 0x7b0   : > { %15079 = vmatmul.mubr.f32.gmra.mrb[88].mxu0 %v25055_v58 }
 0x7b1   : > { %15081 = vmatprep.mubr.f32.mxu0 %v25056_v50 }
 0x7b4   : > { %15082 = vmatmul.mubr.f32.gmra.mrb[90].mxu0 %v25057_v12 }
 0x7b5   : > { %15084 = vmatprep.mubr.f32.mxu0 %v25058_v30 }
 0x7b8   : > { %15085 = vmatmul.mubr.f32.gmra.mrb[92].mxu0 %v25059_v28 }
 0x7b9   : > { %15087 = vmatprep.mubr.f32.mxu0 %v25060_v41 }
 0x7bc   : > { %15088 = vmatmul.mubr.f32.gmra.mrb[94].mxu0 %v25061_v15 }
 0x7bd   : > { %15090 = vmatprep.mubr.f32.mxu0 %v25062_v18 }
 0x7c0   : > { %15091 = vmatmul.mubr.f32.gmra.mrb[96].mxu0 %v25063_v59 }
 0x7c1   : > { %15093 = vmatprep.mubr.f32.mxu0 %v25064_v14 }
 0x7c4   : > { %15094 = vmatmul.mubr.f32.gmra.mrb[98].mxu0 %v25065_v23 }
 0x7c5   : > { %15096 = vmatprep.mubr.f32.mxu0 %v25066_v7 }
 0x7c8   : > { %15097 = vmatmul.mubr.f32.gmra.mrb[100].mxu0 %v25067_v43 }
 0x7c9   : > { %15099 = vmatprep.mubr.f32.mxu0 %v25068_v47 }
 0x7cc   : > { %15100 = vmatmul.mubr.f32.gmra.mrb[102].mxu0 %v25069_v26 }
 0x7cd   : > { %15102 = vmatprep.mubr.f32.mxu0 %v25070_v32 }
 0x7d0   : > { %15103 = vmatmul.mubr.f32.gmra.mrb[104].mxu0 %v25071_v42 }
 0x7d1   : > { %15105 = vmatprep.mubr.f32.mxu0 %v25072_v19 }
 0x7d4   : > { %15106 = vmatmul.mubr.f32.gmra.mrb[106].mxu0 %v25073_v4 }
 0x7d5   : > { %15108 = vmatprep.mubr.f32.mxu0 %v25074_v1 }
 0x7d8   : > { %15109 = vmatmul.mubr.f32.gmra.mrb[108].mxu0 %v25075_v49 }
 0x7d9   : > { %15111 = vmatprep.mubr.f32.mxu0 %v25076_v17 }
 0x7dc   : > { %15112 = vmatmul.mubr.f32.gmra.mrb[110].mxu0 %v25077_v11 }
 0x7dd   : > { %15114 = vmatprep.mubr.f32.mxu0 %v25078_v44 }
 0x7e0   : > { %15115 = vmatmul.mubr.f32.gmra.mrb[112].mxu0 %v25079_v54 }
 0x7e1   : > { %15117 = vmatprep.mubr.f32.mxu0 %v25080_v48 }
 0x7e4   : > { %15118 = vmatmul.mubr.f32.gmra.mrb[114].mxu0 %v25081_v29 }
 0x7e5   : > { %15120 = vmatprep.mubr.f32.mxu0 %v25082_v40 }
 0x7e8   : > { %15121 = vmatmul.mubr.f32.gmra.mrb[116].mxu0 %v25083_v10 }
 0x7e9   : > { %15123 = vmatprep.mubr.f32.mxu0 %v25084_v36 }
 0x7ec   : > { %15124 = vmatmul.mubr.f32.gmra.mrb[118].mxu0 %v25085_v27 }
 0x7ed   : > { %15126 = vmatprep.mubr.f32.mxu0 %v25086_v5 }
 0x7f0   : > { %15127 = vmatmul.mubr.f32.gmra.mrb[120].mxu0 %v25087_v45 }
 0x7f1   : > { %15129 = vmatprep.mubr.f32.mxu0 %v25088_v37 }
 0x7f4   : > { %15130 = vmatmul.mubr.f32.gmra.mrb[122].mxu0 %v25089_v24 }
 0x7f5   : > { %15132 = vmatprep.mubr.f32.mxu0 %v25090_v33 }
 0x7f8   : > { %15133 = vmatmul.mubr.f32.gmra.mrb[124].mxu0 %v25091_v6 }
 0x7f9   : > { %15135 = vmatprep.mubr.f32.mxu0 %v25092_v9 }
 0x7fc   : > { %15136 = vmatmul.mubr.f32.gmra.mrb[126].mxu0 %v25093_v0 }
 0x7fd   : > { %15170 = vmatprep.mubr.f32.mxu0 %v25023_v55  ;;  %v10588_v55 = vlaneseq }
 0x800   : > { %15171 = vmatmul.mubr.f32.vlgmr.msra.gmra.mrb[64].mxu0 %v25024_v21  ;;  %v21312_v21 = vand.u32 127, %v10588_v55 }
 0x801   : > { %15173 = vmatprep.mubr.f32.mxu0 %v25025_v53  ;;  %v21317_v53 = vld [vmem:[%s22959_s6] ss:$0 sm:$0xff] }
 0x802   : > { %25094 = vst [vmem:[#allocation66_spill] sm:$0xff] %v21312_v21  ;;  %vm10590_vm1 = vcmp.lt.s32.totalorder %v21312_v21, 4 }
 0x804   : > { %15174 = vmatmul.mubr.f32.gmra.mrb[66].mxu0 %v25027_v51 }
 0x805   : > { %15176 = vmatprep.mubr.f32.mxu0 %v25028_v25 }
 0x808   : > { %15177 = vmatmul.mubr.f32.gmra.mrb[68].mxu0 %v25030_v61 }
 0x809   : > { %15179 = vmatprep.mubr.f32.mxu0 %v25031_v22 }
 0x80c   : > { %15180 = vmatmul.mubr.f32.gmra.mrb[70].mxu0 %v25033_v16 }
 0x80d   : > { %15182 = vmatprep.mubr.f32.mxu0 %v25034_v34 }
 0x810   : > { %15183 = vmatmul.mubr.f32.gmra.mrb[72].mxu0 %v25036_v3 }
 0x811   : > { %15185 = vmatprep.mubr.f32.mxu0 %v25037_v8 }
 0x814   : > { %15186 = vmatmul.mubr.f32.gmra.mrb[74].mxu0 %v25039_v31 }
 0x815   : > { %15188 = vmatprep.mubr.f32.mxu0 %v25040_v62 }
 0x818   : > { %15189 = vmatmul.mubr.f32.gmra.mrb[76].mxu0 %v25042_v46 }
 0x819   : > { %15191 = vmatprep.mubr.f32.mxu0 %v25043_v60 }
 0x81c   : > { %15192 = vmatmul.mubr.f32.gmra.mrb[78].mxu0 %v25045_v2 }
 0x81d   : > { %15194 = vmatprep.mubr.f32.mxu0 %v25046_v39 }
 0x820   : > { %15195 = vmatmul.mubr.f32.gmra.mrb[80].mxu0 %v25047_v57 }
 0x821   : > { %15197 = vmatprep.mubr.f32.mxu0 %v25048_v13 }
 0x824   : > { %15198 = vmatmul.mubr.f32.gmra.mrb[82].mxu0 %v25049_v20 }
 0x825   : > { %15200 = vmatprep.mubr.f32.mxu0 %v25050_v63 }
 0x828   : > { %15201 = vmatmul.mubr.f32.gmra.mrb[84].mxu0 %v25051_v56 }
 0x829   : > { %15203 = vmatprep.mubr.f32.mxu0 %v25052_v38 }
 0x82c   : > { %15204 = vmatmul.mubr.f32.gmra.mrb[86].mxu0 %v25053_v52 }
 0x82d   : > { %15206 = vmatprep.mubr.f32.mxu0 %v25054_v35 }
 0x830   : > { %15207 = vmatmul.mubr.f32.gmra.mrb[88].mxu0 %v25055_v58 }
 0x831   : > { %15209 = vmatprep.mubr.f32.mxu0 %v25056_v50 }
 0x834   : > { %15210 = vmatmul.mubr.f32.gmra.mrb[90].mxu0 %v25057_v12 }
 0x835   : > { %15212 = vmatprep.mubr.f32.mxu0 %v25058_v30 }
 0x838   : > { %15213 = vmatmul.mubr.f32.gmra.mrb[92].mxu0 %v25059_v28 }
 0x839   : > { %15215 = vmatprep.mubr.f32.mxu0 %v25060_v41 }
 0x83c   : > { %15216 = vmatmul.mubr.f32.gmra.mrb[94].mxu0 %v25061_v15 }
 0x83d   : > { %15218 = vmatprep.mubr.f32.mxu0 %v25062_v18 }
 0x840   : > { %15219 = vmatmul.mubr.f32.gmra.mrb[96].mxu0 %v25063_v59 }
 0x841   : > { %15221 = vmatprep.mubr.f32.mxu0 %v25064_v14 }
 0x844   : > { %15222 = vmatmul.mubr.f32.gmra.mrb[98].mxu0 %v25065_v23 }
 0x845   : > { %15224 = vmatprep.mubr.f32.mxu0 %v25066_v7 }
 0x848   : > { %15225 = vmatmul.mubr.f32.gmra.mrb[100].mxu0 %v25067_v43 }
 0x849   : > { %15227 = vmatprep.mubr.f32.mxu0 %v25068_v47 }
 0x84c   : > { %15228 = vmatmul.mubr.f32.gmra.mrb[102].mxu0 %v25069_v26 }
 0x84d   : > { %15230 = vmatprep.mubr.f32.mxu0 %v25070_v32 }
 0x850   : > { %15231 = vmatmul.mubr.f32.gmra.mrb[104].mxu0 %v25071_v42 }
 0x851   : > { %15233 = vmatprep.mubr.f32.mxu0 %v25072_v19 }
 0x854   : > { %15234 = vmatmul.mubr.f32.gmra.mrb[106].mxu0 %v25073_v4 }
 0x855   : > { %15236 = vmatprep.mubr.f32.mxu0 %v25074_v1 }
 0x858   : > { %15237 = vmatmul.mubr.f32.gmra.mrb[108].mxu0 %v25075_v49 }
 0x859   : > { %15239 = vmatprep.mubr.f32.mxu0 %v25076_v17 }
 0x85c   : > { %15240 = vmatmul.mubr.f32.gmra.mrb[110].mxu0 %v25077_v11 }
 0x85d   : > { %15242 = vmatprep.mubr.f32.mxu0 %v25078_v44 }
 0x860   : > { %15243 = vmatmul.mubr.f32.gmra.mrb[112].mxu0 %v25079_v54 }
 0x861   : > { %15245 = vmatprep.mubr.f32.mxu0 %v25080_v48 }
 0x864   : > { %15246 = vmatmul.mubr.f32.gmra.mrb[114].mxu0 %v25081_v29 }
 0x865   : > { %15248 = vmatprep.mubr.f32.mxu0 %v25082_v40 }
 0x868   : > { %15249 = vmatmul.mubr.f32.gmra.mrb[116].mxu0 %v25083_v10 }
 0x869   : > { %15251 = vmatprep.mubr.f32.mxu0 %v25084_v36 }
 0x86c   : > { %15252 = vmatmul.mubr.f32.gmra.mrb[118].mxu0 %v25085_v27 }
 0x86d   : > { %15254 = vmatprep.mubr.f32.mxu0 %v25086_v5 }
 0x870   : > { %15255 = vmatmul.mubr.f32.gmra.mrb[120].mxu0 %v25087_v45 }
 0x871   : > { %15257 = vmatprep.mubr.f32.mxu0 %v25088_v37 }
 0x874   : > { %15258 = vmatmul.mubr.f32.gmra.mrb[122].mxu0 %v25089_v24 }
 0x875   : > { %15260 = vmatprep.mubr.f32.mxu0 %v25090_v33 }
 0x878   : > { %15261 = vmatmul.mubr.f32.gmra.mrb[124].mxu0 %v25091_v6 }
 0x879   : > { %15263 = vmatprep.mubr.f32.mxu0 %v25092_v9 }
 0x87c   : > { %15264 = vmatmul.mubr.f32.gmra.mrb[126].mxu0 %v25093_v0 }
 0x8d3   : > { %v15172_v51 = vpop.f32.mrb[64].mxu0 }
 0x8d4   : > { %v21321_v25 = vadd.f32 %v15172_v51, %v21317_v53  ;;  %v10206_v61 = vpop.f32.mrb[65].mxu0 }
 0x8d5   : > { %v21324_v22 = vadd.f32 %v21317_v53, %v10206_v61 }
 0x8d6   : > { %25095 = vst [vmem:[#allocation31_spill] sm:$0xff] %v21321_v25  ;;  %v21329_v16 = vsel %vm10590_vm1, %v21321_v25, -inf }
 0x8d7   : > { %25096 = vst [vmem:[#allocation59_spill] sm:$0xff] %v21324_v22  ;;  %10660 = vmax.xlane.f32.xlu0 %v21329_v16  ;;  %v15175_v34 = vpop.f32.mrb[66].mxu0  ;;  %v21346_v46 = vsel %vm10590_vm1, %v21324_v22, -inf }
 0x8d8   : > { %v21333_v3 = vadd.f32 %v15175_v34, %v21317_v53  ;;  %v10218_v8 = vpop.f32.mrb[67].mxu0 }
 0x8d9   : > { %v21336_v31 = vadd.f32 %v21317_v53, %v10218_v8 }
 0x8da   : > { %25097 = vst [vmem:[#allocation45_spill] sm:$0xff] %v21333_v3  ;;  %v21341_v62 = vsel %vm10590_vm1, %v21333_v3, -inf }
 0x8db   : > { %25098 = vst [vmem:[#allocation40_spill] sm:$0xff] %v21336_v31  ;;  %10664 = vmax.xlane.f32.xlu1 %v21341_v62  ;;  %v15178_v60 = vpop.f32.mrb[68].mxu0  ;;  %10658 = vmax.xlane.f32.xlu0 %v21346_v46  ;;  %v21359_v13 = vsel %vm10590_vm1, %v21336_v31, -inf }
 0x8dc   : > { %v10230_v2 = vpop.f32.mrb[69].mxu0  ;;  %v21354_v57 = vadd.f32 %v15178_v60, %v21317_v53 }
 0x8dd   : > { %v21351_v39 = vadd.f32 %v21317_v53, %v10230_v2 }
 0x8de   : > { %25100 = vst [vmem:[#allocation57_spill] sm:$0xff] %v21354_v57  ;;  %v21377_v35 = vsel %vm10590_vm1, %v21354_v57, -inf }
 0x8df   : > { %25099 = vst [vmem:[#allocation62_spill] sm:$0xff] %v21351_v39  ;;  %v15181_v20 = vpop.f32.mrb[70].mxu0  ;;  %10662 = vmax.xlane.f32.xlu1 %v21359_v13  ;;  %v21365_v63 = vsel %vm10590_vm1, %v21351_v39, -inf }
 0x8e0   : > { %v10242_v56 = vpop.f32.mrb[71].mxu0  ;;  %10666 = vmax.xlane.f32.xlu0 %v21365_v63  ;;  %v21372_v52 = vadd.f32 %v15181_v20, %v21317_v53 }
 0x8e1   : > { %v21369_v38 = vadd.f32 %v21317_v53, %v10242_v56 }
 0x8e2   : > { %25102 = vst [vmem:[#allocation71_spill] sm:$0xff] %v21372_v52  ;;  %v21395_v41 = vsel %vm10590_vm1, %v21372_v52, -inf }
 0x8e3   : > { %25101 = vst [vmem:[#allocation74_spill] sm:$0xff] %v21369_v38  ;;  %v15184_v58 = vpop.f32.mrb[72].mxu0  ;;  %10668 = vmax.xlane.f32.xlu1 %v21377_v35  ;;  %v21383_v50 = vsel %vm10590_vm1, %v21369_v38, -inf }
 0x8e4   : > { %v10254_v12 = vpop.f32.mrb[73].mxu0  ;;  %10670 = vmax.xlane.f32.xlu0 %v21383_v50  ;;  %v21390_v28 = vadd.f32 %v15184_v58, %v21317_v53 }
 0x8e5   : > { %v21387_v30 = vadd.f32 %v21317_v53, %v10254_v12 }
 0x8e6   : > { %25104 = vst [vmem:[#allocation78_spill] sm:$0xff] %v21390_v28  ;;  %v21413_v7 = vsel %vm10590_vm1, %v21390_v28, -inf }
 0x8e7   : > { %25103 = vst [vmem:[#allocation42_spill] sm:$0xff] %v21387_v30  ;;  %v15187_v15 = vpop.f32.mrb[74].mxu0  ;;  %10672 = vmax.xlane.f32.xlu1 %v21395_v41  ;;  %v21401_v18 = vsel %vm10590_vm1, %v21387_v30, -inf }
 0x8e8   : > { %v10266_v59 = vpop.f32.mrb[75].mxu0  ;;  %10674 = vmax.xlane.f32.xlu0 %v21401_v18  ;;  %v21408_v23 = vadd.f32 %v15187_v15, %v21317_v53 }
 0x8e9   : > { %v21405_v14 = vadd.f32 %v21317_v53, %v10266_v59 }
 0x8ea   : > { %25106 = vst [vmem:[#allocation117_spill] sm:$0xff] %v21408_v23  ;;  %v21431_v19 = vsel %vm10590_vm1, %v21408_v23, -inf }
 0x8eb   : > { %25105 = vst [vmem:[#allocation121_spill] sm:$0xff] %v21405_v14  ;;  %v15190_v43 = vpop.f32.mrb[76].mxu0  ;;  %10676 = vmax.xlane.f32.xlu1 %v21413_v7  ;;  %v21419_v47 = vsel %vm10590_vm1, %v21405_v14, -inf }
 0x8ec   : > { %v10278_v26 = vpop.f32.mrb[77].mxu0  ;;  %10678 = vmax.xlane.f32.xlu0 %v21419_v47  ;;  %v21426_v42 = vadd.f32 %v15190_v43, %v21317_v53 }
 0x8ed   : > { %v21423_v32 = vadd.f32 %v21317_v53, %v10278_v26 }
 0x8ee   : > { %25108 = vst [vmem:[#allocation85_spill] sm:$0xff] %v21426_v42  ;;  %v21449_v44 = vsel %vm10590_vm1, %v21426_v42, -inf }
 0x8ef   : > { %25107 = vst [vmem:[#allocation87_spill] sm:$0xff] %v21423_v32  ;;  %v15193_v4 = vpop.f32.mrb[78].mxu0  ;;  %10680 = vmax.xlane.f32.xlu1 %v21431_v19  ;;  %v21437_v1 = vsel %vm10590_vm1, %v21423_v32, -inf }
 0x8f0   : > { %v10290_v49 = vpop.f32.mrb[79].mxu0  ;;  %10682 = vmax.xlane.f32.xlu0 %v21437_v1  ;;  %v21444_v11 = vadd.f32 %v15193_v4, %v21317_v53 }
 0x8f1   : > { %v21441_v17 = vadd.f32 %v21317_v53, %v10290_v49 }
 0x8f2   : > { %25110 = vst [vmem:[#allocation25_spill] sm:$0xff] %v21444_v11  ;;  %v21467_v36 = vsel %vm10590_vm1, %v21444_v11, -inf }
 0x8f3   : > { %25109 = vst [vmem:[#allocation95_spill] sm:$0xff] %v21441_v17  ;;  %v15196_v54 = vpop.f32.mrb[80].mxu0  ;;  %10684 = vmax.xlane.f32.xlu1 %v21449_v44  ;;  %v21455_v48 = vsel %vm10590_vm1, %v21441_v17, -inf }
 0x8f4   : > { %v10302_v29 = vpop.f32.mrb[81].mxu0  ;;  %10686 = vmax.xlane.f32.xlu0 %v21455_v48  ;;  %v21462_v10 = vadd.f32 %v15196_v54, %v21317_v53 }
 0x8f5   : > { %v21459_v40 = vadd.f32 %v21317_v53, %v10302_v29 }
 0x8f6   : > { %25112 = vst [vmem:[#allocation93_spill] sm:$0xff] %v21462_v10  ;;  %v21485_v33 = vsel %vm10590_vm1, %v21462_v10, -inf }
 0x8f7   : > { %25111 = vst [vmem:[#allocation27_spill] sm:$0xff] %v21459_v40  ;;  %v15199_v27 = vpop.f32.mrb[82].mxu0  ;;  %10688 = vmax.xlane.f32.xlu1 %v21467_v36  ;;  %v21473_v5 = vsel %vm10590_vm1, %v21459_v40, -inf }
 0x8f8   : > { %v10314_v45 = vpop.f32.mrb[83].mxu0  ;;  %10690 = vmax.xlane.f32.xlu0 %v21473_v5  ;;  %v21480_v24 = vadd.f32 %v15199_v27, %v21317_v53 }
 0x8f9   : > { %v21477_v37 = vadd.f32 %v21317_v53, %v10314_v45 }
 0x8fa   : > { %25114 = vst [vmem:[#allocation101_spill] sm:$0xff] %v21480_v24  ;;  %v21503_v61 = vsel %vm10590_vm1, %v21480_v24, -inf }
 0x8fb   : > { %25113 = vst [vmem:[#allocation103_spill] sm:$0xff] %v21477_v37  ;;  %v15202_v6 = vpop.f32.mrb[84].mxu0  ;;  %10692 = vmax.xlane.f32.xlu1 %v21485_v33  ;;  %v21491_v9 = vsel %vm10590_vm1, %v21477_v37, -inf }
 0x8fc   : > { %v10326_v0 = vpop.f32.mrb[85].mxu0  ;;  %10694 = vmax.xlane.f32.xlu0 %v21491_v9  ;;  %v21498_v51 = vadd.f32 %v15202_v6, %v21317_v53 }
 0x8fd   : > { %v21495_v55 = vadd.f32 %v21317_v53, %v10326_v0 }
 0x8fe   : > { %25116 = vst [vmem:[#allocation109_spill] sm:$0xff] %v21498_v51  ;;  %v21521_v56 = vsel %vm10590_vm1, %v21498_v51, -inf }
 0x8ff   : > { %25115 = vst [vmem:[#allocation111_spill] sm:$0xff] %v21495_v55  ;;  %v15205_v34 = vpop.f32.mrb[86].mxu0  ;;  %10696 = vmax.xlane.f32.xlu1 %v21503_v61  ;;  %v21509_v8 = vsel %vm10590_vm1, %v21495_v55, -inf }
 0x900   : > { %v10338_v60 = vpop.f32.mrb[87].mxu0  ;;  %10698 = vmax.xlane.f32.xlu0 %v21509_v8  ;;  %v21516_v20 = vadd.f32 %v15205_v34, %v21317_v53 }
 0x901   : > { %v21513_v2 = vadd.f32 %v21317_v53, %v10338_v60 }
 0x902   : > { %25118 = vst [vmem:[#allocation125_spill] sm:$0xff] %v21516_v20  ;;  %v21539_v26 = vsel %vm10590_vm1, %v21516_v20, -inf }
 0x903   : > { %25117 = vst [vmem:[#allocation128_spill] sm:$0xff] %v21513_v2  ;;  %v15208_v58 = vpop.f32.mrb[88].mxu0  ;;  %10700 = vmax.xlane.f32.xlu1 %v21521_v56  ;;  %v21527_v12 = vsel %vm10590_vm1, %v21513_v2, -inf }
 0x904   : > { %v10350_v15 = vpop.f32.mrb[89].mxu0  ;;  %10702 = vmax.xlane.f32.xlu0 %v21527_v12  ;;  %v21534_v43 = vadd.f32 %v15208_v58, %v21317_v53 }
 0x905   : > { %v21531_v59 = vadd.f32 %v21317_v53, %v10350_v15 }
 0x906   : > { %25120 = vst [vmem:[#allocation136_spill] sm:$0xff] %v21534_v43  ;;  %v21557_v45 = vsel %vm10590_vm1, %v21534_v43, -inf }
 0x907   : > { %25119 = vst [vmem:[#allocation135_spill] sm:$0xff] %v21531_v59  ;;  %v15211_v4 = vpop.f32.mrb[90].mxu0  ;;  %10704 = vmax.xlane.f32.xlu1 %v21539_v26  ;;  %v21545_v49 = vsel %vm10590_vm1, %v21531_v59, -inf }
 0x908   : > { %v10362_v54 = vpop.f32.mrb[91].mxu0  ;;  %10706 = vmax.xlane.f32.xlu0 %v21545_v49  ;;  %v21552_v27 = vadd.f32 %v15211_v4, %v21317_v53 }
 0x909   : > { %v21549_v29 = vadd.f32 %v21317_v53, %v10362_v54 }
 0x90a   : > { %25122 = vst [vmem:[#allocation65_spill] sm:$0xff] %v21552_v27  ;;  %v21575_v15 = vsel %vm10590_vm1, %v21552_v27, -inf }
 0x90b   : > { %25121 = vst [vmem:[#allocation60_spill] sm:$0xff] %v21549_v29  ;;  %v15214_v6 = vpop.f32.mrb[92].mxu0  ;;  %10708 = vmax.xlane.f32.xlu1 %v21557_v45  ;;  %v21563_v0 = vsel %vm10590_vm1, %v21549_v29, -inf }
 0x90c   : > { %v10374_v34 = vpop.f32.mrb[93].mxu0  ;;  %10710 = vmax.xlane.f32.xlu0 %v21563_v0  ;;  %v21570_v58 = vadd.f32 %v15214_v6, %v21317_v53 }
 0x90d   : > { %v21567_v60 = vadd.f32 %v21317_v53, %v10374_v34 }
 0x90e   : > { %25124 = vst [vmem:[#allocation72_spill] sm:$0xff] %v21570_v58  ;;  %v21593_v27 = vsel %vm10590_vm1, %v21570_v58, -inf }
 0x90f   : > { %25123 = vst [vmem:[#allocation8_spill] sm:$0xff] %v21567_v60  ;;  %v15217_v4 = vpop.f32.mrb[94].mxu0  ;;  %10712 = vmax.xlane.f32.xlu1 %v21575_v15  ;;  %v21581_v54 = vsel %vm10590_vm1, %v21567_v60, -inf }
 0x910   : > { %v10386_v29 = vpop.f32.mrb[95].mxu0  ;;  %10714 = vmax.xlane.f32.xlu0 %v21581_v54  ;;  %v21588_v6 = vadd.f32 %v15217_v4, %v21317_v53 }
 0x911   : > { %v21585_v34 = vadd.f32 %v21317_v53, %v10386_v29 }
 0x912   : > { %25126 = vst [vmem:[#allocation12_spill] sm:$0xff] %v21588_v6  ;;  %v21611_v58 = vsel %vm10590_vm1, %v21588_v6, -inf }
 0x913   : > { %25125 = vst [vmem:[#allocation48_spill] sm:$0xff] %v21585_v34  ;;  %v15220_v59 = vpop.f32.mrb[96].mxu0  ;;  %10716 = vmax.xlane.f32.xlu1 %v21593_v27  ;;  %v21599_v60 = vsel %vm10590_vm1, %v21585_v34, -inf }
 0x914   : > { %v10398_v43 = vpop.f32.mrb[97].mxu0  ;;  %10718 = vmax.xlane.f32.xlu0 %v21599_v60  ;;  %v21606_v4 = vadd.f32 %v15220_v59, %v21317_v53 }
 0x915   : > { %v21603_v29 = vadd.f32 %v21317_v53, %v10398_v43 }
 0x916   : > { %25128 = vst [vmem:[#allocation49_spill] sm:$0xff] %v21606_v4  ;;  %v21629_v6 = vsel %vm10590_vm1, %v21606_v4, -inf }
 0x917   : > { %25127 = vst [vmem:[#allocation15_spill] sm:$0xff] %v21603_v29  ;;  %v15223_v2 = vpop.f32.mrb[98].mxu0  ;;  %10720 = vmax.xlane.f32.xlu1 %v21611_v58  ;;  %v21617_v34 = vsel %vm10590_vm1, %v21603_v29, -inf }
 0x918   : > { %v10410_v20 = vpop.f32.mrb[99].mxu0  ;;  %10722 = vmax.xlane.f32.xlu0 %v21617_v34  ;;  %v21624_v59 = vadd.f32 %v15223_v2, %v21317_v53 }
 0x919   : > { %v21621_v43 = vadd.f32 %v21317_v53, %v10410_v20 }
 0x91a   : > { %25130 = vst [vmem:[#allocation34_spill] sm:$0xff] %v21624_v59  ;;  %v21647_v4 = vsel %vm10590_vm1, %v21624_v59, -inf }
 0x91b   : > { %25129 = vst [vmem:[#allocation90_spill] sm:$0xff] %v21621_v43  ;;  %v15226_v55 = vpop.f32.mrb[100].mxu0  ;;  %10724 = vmax.xlane.f32.xlu1 %v21629_v6  ;;  %v21635_v29 = vsel %vm10590_vm1, %v21621_v43, -inf }
 0x91c   : > { %v10422_v51 = vpop.f32.mrb[101].mxu0  ;;  %10726 = vmax.xlane.f32.xlu0 %v21635_v29  ;;  %v21642_v2 = vadd.f32 %v15226_v55, %v21317_v53 }
 0x91d   : > { %v21639_v20 = vadd.f32 %v21317_v53, %v10422_v51 }
 0x91e   : > { %25132 = vst [vmem:[#allocation102_spill] sm:$0xff] %v21642_v2  ;;  %v21665_v59 = vsel %vm10590_vm1, %v21642_v2, -inf }
 0x91f   : > { %25131 = vst [vmem:[#allocation108_spill] sm:$0xff] %v21639_v20  ;;  %v15229_v37 = vpop.f32.mrb[102].mxu0  ;;  %10728 = vmax.xlane.f32.xlu1 %v21647_v4  ;;  %v21653_v43 = vsel %vm10590_vm1, %v21639_v20, -inf }
 0x920   : > { %v10434_v24 = vpop.f32.mrb[103].mxu0  ;;  %10730 = vmax.xlane.f32.xlu0 %v21653_v43  ;;  %v21660_v55 = vadd.f32 %v15229_v37, %v21317_v53 }
 0x921   : > { %v21657_v51 = vadd.f32 %v21317_v53, %v10434_v24 }
 0x922   : > { %25134 = vst [vmem:[#allocation110_spill] sm:$0xff] %v21660_v55  ;;  %v21683_v2 = vsel %vm10590_vm1, %v21660_v55, -inf }
 0x923   : > { %25133 = vst [vmem:[#allocation116_spill] sm:$0xff] %v21657_v51  ;;  %v15232_v40 = vpop.f32.mrb[104].mxu0  ;;  %10732 = vmax.xlane.f32.xlu1 %v21665_v59  ;;  %v21671_v20 = vsel %vm10590_vm1, %v21657_v51, -inf }
 0x924   : > { %v10446_v10 = vpop.f32.mrb[105].mxu0  ;;  %10734 = vmax.xlane.f32.xlu0 %v21671_v20  ;;  %v21678_v37 = vadd.f32 %v15232_v40, %v21317_v53 }
 0x925   : > { %v21675_v24 = vadd.f32 %v21317_v53, %v10446_v10 }
 0x926   : > { %25136 = vst [vmem:[#allocation24_spill] sm:$0xff] %v21678_v37  ;;  %v21701_v55 = vsel %vm10590_vm1, %v21678_v37, -inf }
 0x927   : > { %25135 = vst [vmem:[#allocation129_spill] sm:$0xff] %v21675_v24  ;;  %v15235_v17 = vpop.f32.mrb[106].mxu0  ;;  %10736 = vmax.xlane.f32.xlu1 %v21683_v2  ;;  %v21689_v51 = vsel %vm10590_vm1, %v21675_v24, -inf }
 0x928   : > { %v10458_v11 = vpop.f32.mrb[107].mxu0  ;;  %10738 = vmax.xlane.f32.xlu0 %v21689_v51  ;;  %v21696_v40 = vadd.f32 %v15235_v17, %v21317_v53 }
 0x929   : > { %v21693_v10 = vadd.f32 %v21317_v53, %v10458_v11 }
 0x92a   : > { %25138 = vst [vmem:[#allocation56_spill] sm:$0xff] %v21696_v40  ;;  %v21719_v37 = vsel %vm10590_vm1, %v21696_v40, -inf }
 0x92b   : > { %25137 = vst [vmem:[#allocation19_spill] sm:$0xff] %v21693_v10  ;;  %v15238_v32 = vpop.f32.mrb[108].mxu0  ;;  %10740 = vmax.xlane.f32.xlu1 %v21701_v55  ;;  %v21707_v24 = vsel %vm10590_vm1, %v21693_v10, -inf }
 0x92c   : > { %v10470_v42 = vpop.f32.mrb[109].mxu0  ;;  %10742 = vmax.xlane.f32.xlu0 %v21707_v24  ;;  %v21714_v17 = vadd.f32 %v15238_v32, %v21317_v53 }
 0x92d   : > { %v21711_v11 = vadd.f32 %v21317_v53, %v10470_v42 }
 0x92e   : > { %25140 = vst [vmem:[#allocation39_spill] sm:$0xff] %v21714_v17  ;;  %v21737_v40 = vsel %vm10590_vm1, %v21714_v17, -inf }
 0x92f   : > { %25139 = vst [vmem:[#allocation28_spill] sm:$0xff] %v21711_v11  ;;  %v15241_v14 = vpop.f32.mrb[110].mxu0  ;;  %10744 = vmax.xlane.f32.xlu1 %v21719_v37  ;;  %v21725_v10 = vsel %vm10590_vm1, %v21711_v11, -inf }
 0x930   : > { %v10482_v23 = vpop.f32.mrb[111].mxu0  ;;  %10746 = vmax.xlane.f32.xlu0 %v21725_v10  ;;  %v21732_v32 = vadd.f32 %v15241_v14, %v21317_v53 }
 0x931   : > { %v21729_v42 = vadd.f32 %v21317_v53, %v10482_v23 }
 0x932   : > { %25142 = vst [vmem:[#allocation55_spill] sm:$0xff] %v21732_v32  ;;  %v21755_v17 = vsel %vm10590_vm1, %v21732_v32, -inf }
 0x933   : > { %25141 = vst [vmem:[#allocation30_spill] sm:$0xff] %v21729_v42  ;;  %v15244_v30 = vpop.f32.mrb[112].mxu0  ;;  %10748 = vmax.xlane.f32.xlu1 %v21737_v40  ;;  %v21743_v11 = vsel %vm10590_vm1, %v21729_v42, -inf }
 0x934   : > { %v10494_v28 = vpop.f32.mrb[113].mxu0  ;;  %10750 = vmax.xlane.f32.xlu0 %v21743_v11  ;;  %v21750_v14 = vadd.f32 %v15244_v30, %v21317_v53 }
 0x935   : > { %v21747_v23 = vadd.f32 %v21317_v53, %v10494_v28 }
 0x936   : > { %25144 = vst [vmem:[#allocation70_spill] sm:$0xff] %v21750_v14  ;;  %v21773_v32 = vsel %vm10590_vm1, %v21750_v14, -inf }
 0x937   : > { %25143 = vst [vmem:[#allocation44_spill] sm:$0xff] %v21747_v23  ;;  %v15247_v38 = vpop.f32.mrb[114].mxu0  ;;  %10752 = vmax.xlane.f32.xlu1 %v21755_v17  ;;  %v21761_v42 = vsel %vm10590_vm1, %v21747_v23, -inf }
 0x938   : > { %v10506_v52 = vpop.f32.mrb[115].mxu0  ;;  %10754 = vmax.xlane.f32.xlu0 %v21761_v42  ;;  %v21768_v30 = vadd.f32 %v15247_v38, %v21317_v53 }
 0x939   : > { %v21765_v28 = vadd.f32 %v21317_v53, %v10506_v52 }
 0x93a   : > { %25146 = vst [vmem:[#allocation80_spill] sm:$0xff] %v21768_v30  ;;  %v21791_v14 = vsel %vm10590_vm1, %v21768_v30, -inf }
 0x93b   : > { %25145 = vst [vmem:[#allocation61_spill] sm:$0xff] %v21765_v28  ;;  %v15250_v39 = vpop.f32.mrb[116].mxu0  ;;  %10756 = vmax.xlane.f32.xlu1 %v21773_v32  ;;  %v21779_v23 = vsel %vm10590_vm1, %v21765_v28, -inf }
 0x93c   : > { %v10518_v57 = vpop.f32.mrb[117].mxu0  ;;  %10758 = vmax.xlane.f32.xlu0 %v21779_v23  ;;  %v21786_v38 = vadd.f32 %v15250_v39, %v21317_v53 }
 0x93d   : > { %v21783_v52 = vadd.f32 %v21317_v53, %v10518_v57 }
 0x93e   : > { %25148 = vst [vmem:[#allocation88_spill] sm:$0xff] %v21786_v38  ;;  %v21809_v30 = vsel %vm10590_vm1, %v21786_v38, -inf }
 0x93f   : > { %25147 = vst [vmem:[#allocation73_spill] sm:$0xff] %v21783_v52  ;;  %v15253_v31 = vpop.f32.mrb[118].mxu0  ;;  %10760 = vmax.xlane.f32.xlu1 %v21791_v14  ;;  %v21797_v28 = vsel %vm10590_vm1, %v21783_v52, -inf  ;;  %25151 = vst [vmem:[#allocation100_spill] sm:$0xff] %v21809_v30 }
 0x940   : > { %v10530_v3 = vpop.f32.mrb[119].mxu0  ;;  %10762 = vmax.xlane.f32.xlu0 %v21797_v28  ;;  %v21804_v39 = vadd.f32 %v15253_v31, %v21317_v53 }
 0x941   : > { %v21801_v57 = vadd.f32 %v21317_v53, %v10530_v3 }
 0x942   : > { %25150 = vst [vmem:[#allocation96_spill] sm:$0xff] %v21804_v39  ;;  %v21827_v38 = vsel %vm10590_vm1, %v21804_v39, -inf }
 0x943   : > { %25149 = vst [vmem:[#allocation81_spill] sm:$0xff] %v21801_v57  ;;  %v15256_v22 = vpop.f32.mrb[120].mxu0  ;;  %10764 = vmax.xlane.f32.xlu1 %v21809_v30  ;;  %v21815_v52 = vsel %vm10590_vm1, %v21801_v57, -inf  ;;  %25155 = vst [vmem:[#allocation120_spill] sm:$0xff] %v21827_v38 }
 0x944   : > { %25152 = vst [vmem:[#allocation122_spill] sm:$0xff] %v21815_v52  ;;  %v10542_v25 = vpop.f32.mrb[121].mxu0  ;;  %10766 = vmax.xlane.f32.xlu0 %v21815_v52  ;;  %v21822_v31 = vadd.f32 %v15256_v22, %v21317_v53 }
 0x945   : > { %v21819_v3 = vadd.f32 %v21317_v53, %v10542_v25 }
 0x946   : > { %25154 = vst [vmem:[#allocation126_spill] sm:$0xff] %v21822_v31  ;;  %v21845_v39 = vsel %vm10590_vm1, %v21822_v31, -inf }
 0x947   : > { %25153 = vst [vmem:[#allocation118_spill] sm:$0xff] %v21819_v3  ;;  %v15259_v30 = vpop.f32.mrb[122].mxu0  ;;  %10768 = vmax.xlane.f32.xlu1 %v21827_v38  ;;  %v21833_v57 = vsel %vm10590_vm1, %v21819_v3, -inf  ;;  %25159 = vst [vmem:[#allocation142_spill] sm:$0xff] %v21845_v39 }
 0x948   : > { %25156 = vst [vmem:[#allocation134_spill] sm:$0xff] %v21833_v57  ;;  %v10554_v52 = vpop.f32.mrb[123].mxu0  ;;  %10770 = vmax.xlane.f32.xlu0 %v21833_v57  ;;  %v21840_v22 = vadd.f32 %v15259_v30, %v21317_v53 }
 0x949   : > { %v21837_v25 = vadd.f32 %v21317_v53, %v10554_v52 }
 0x94a   : > { %25158 = vst [vmem:[#allocation137_spill] sm:$0xff] %v21840_v22  ;;  %v21863_v31 = vsel %vm10590_vm1, %v21840_v22, -inf }
 0x94b   : > { %25157 = vst [vmem:[#allocation6_spill] sm:$0xff] %v21837_v25  ;;  %v15262_v38 = vpop.f32.mrb[124].mxu0  ;;  %10772 = vmax.xlane.f32.xlu1 %v21845_v39  ;;  %v21851_v3 = vsel %vm10590_vm1, %v21837_v25, -inf  ;;  %25163 = vst [vmem:[#allocation38_spill] sm:$0xff] %v21863_v31 }
 0x94c   : > { %25160 = vst [vmem:[#allocation141_spill] sm:$0xff] %v21851_v3  ;;  %v10566_v57 = vpop.f32.mrb[125].mxu0  ;;  %10774 = vmax.xlane.f32.xlu0 %v21851_v3  ;;  %v21858_v30 = vadd.f32 %v15262_v38, %v21317_v53 }
 0x94d   : > { %v21855_v52 = vadd.f32 %v21317_v53, %v10566_v57 }
 0x94e   : > { %25162 = vst [vmem:[#allocation29_spill] sm:$0xff] %v21858_v30  ;;  %v21881_v22 = vsel %vm10590_vm1, %v21858_v30, -inf }
 0x94f   : > { %25161 = vst [vmem:[#allocation58_spill] sm:$0xff] %v21855_v52  ;;  %v15265_v39 = vpop.f32.mrb[126].mxu0  ;;  %10776 = vmax.xlane.f32.xlu1 %v21863_v31  ;;  %v21869_v25 = vsel %vm10590_vm1, %v21855_v52, -inf  ;;  %25167 = vst [vmem:[#allocation13_spill] sm:$0xff] %v21881_v22 }
 0x950   : > { %25164 = vst [vmem:[#allocation9_spill] sm:$0xff] %v21869_v25  ;;  %v10578_v3 = vpop.f32.mrb[127].mxu0  ;;  %10778 = vmax.xlane.f32.xlu0 %v21869_v25  ;;  %v21876_v38 = vadd.f32 %v15265_v39, %v21317_v53 }
 0x951   : > { %v21873_v57 = vadd.f32 %v21317_v53, %v10578_v3 }
 0x952   : > { %25166 = vst [vmem:[#allocation52_spill] sm:$0xff] %v21876_v38  ;;  %v21893_v3 = vsel %vm10590_vm1, %v21876_v38, -inf }
 0x953   : > { %25165 = vst [vmem:[#allocation33_spill] sm:$0xff] %v21873_v57  ;;  %10780 = vmax.xlane.f32.xlu1 %v21881_v22  ;;  %v21887_v52 = vsel %vm10590_vm1, %v21873_v57, -inf  ;;  %25169 = vst [vmem:[#allocation68_spill] sm:$0xff] %v21893_v3 }
 0x954   : > { %25168 = vst [vmem:[#allocation50_spill] sm:$0xff] %v21887_v52  ;;  %10782 = vmax.xlane.f32.xlu0 %v21887_v52 }
 0x957   : > { %10784 = vmax.xlane.f32.xlu1 %v21893_v3 }
 0x964   : > { %v21896_v53 = vpop.xlane.xlu0 %10660 }
 0x965   : > { %25170 = vst [vmem:[#allocation14_spill] sm:$0xff] %v21896_v53  ;;  %v10787_v39 = vsub.f32 %v21329_v16, %v21896_v53 }
 0x967   : > { %v10852_v30 = vmul.f32 1.442695, %v10787_v39 }
 0x968   : > { %v21900_v22 = vpop.xlane.xlu1 %10664  ;;  %v21902_v25 = vpop.xlane.xlu0 %10658 }
 0x969   : > { %16995 = vpow2.f32 %v10852_v30  ;;  %v10789_v57 = vsub.f32 %v21341_v62, %v21900_v22  ;;  %v10786_v38 = vsub.f32 %v21346_v46, %v21902_v25 }
 0x96b   : > { %v10856_v21 = vmul.f32 1.442695, %v10789_v57  ;;  %v10850_v52 = vmul.f32 1.442695, %v10786_v38 }
 0x96c   : > { %v21908_v3 = vpop.xlane.xlu1 %10662 }
 0x96d   : > { %16997 = vpow2.f32 %v10856_v21  ;;  %v10788_v16 = vsub.f32 %v21359_v13, %v21908_v3  ;;  %v21912_v39 = vpop.xlane.xlu0 %10666 }
 0x96e   : > { %25171 = vst [vmem:[#allocation64_spill] sm:$0xff] %v21912_v39  ;;  %16999 = vpow2.f32 %v10850_v52  ;;  %v10790_v30 = vsub.f32 %v21365_v63, %v21912_v39 }
 0x96f   : > { %v10854_v53 = vmul.f32 1.442695, %v10788_v16 }
 0x970   : > { %v21916_v31 = vpop.xlane.xlu1 %10668  ;;  %v10858_v57 = vmul.f32 1.442695, %v10790_v30 }
 0x971   : > { %25172 = vst [vmem:[#allocation77_spill] sm:$0xff] %v21916_v31  ;;  %17001 = vpow2.f32 %v10854_v53  ;;  %v10791_v62 = vsub.f32 %v21377_v35, %v21916_v31  ;;  %v21920_v46 = vpop.xlane.xlu0 %10670 }
 0x972   : > { %v10792_v21 = vsub.f32 %v21383_v50, %v21920_v46 }
 0x973   : > { %v16996_v13 = vpop.eup %16995  ;;  %v10860_v38 = vmul.f32 1.442695, %v10791_v62 }
 0x974   : > { %10980 = vadd.xlane.f32.xlu1 %v16996_v13  ;;  %v21924_v52 = vpop.xlane.xlu1 %10672  ;;  %v10862_v53 = vmul.f32 1.442695, %v10792_v21 }
 0x975   : > { %17003 = vpow2.f32 %v10860_v38  ;;  %v10793_v63 = vsub.f32 %v21395_v41, %v21924_v52  ;;  %v21928_v16 = vpop.xlane.xlu0 %10674 }
 0x976   : > { %17005 = vpow2.f32 %v10858_v57  ;;  %v10794_v35 = vsub.f32 %v21401_v18, %v21928_v16 }
 0x977   : > { %v16998_v30 = vpop.eup %16997  ;;  %v10864_v39 = vmul.f32 1.442695, %v10793_v63 }
 0x978   : > { %v17000_v31 = vpop.eup %16999  ;;  %10984 = vadd.xlane.f32.xlu1 %v16998_v30  ;;  %v21932_v50 = vpop.xlane.xlu1 %10676  ;;  %v10866_v41 = vmul.f32 1.442695, %v10794_v35 }
 0x979   : > { %17007 = vpow2.f32 %v10864_v39  ;;  %v10795_v62 = vsub.f32 %v21413_v7, %v21932_v50  ;;  %10978 = vadd.xlane.f32.xlu0 %v17000_v31  ;;  %v21936_v13 = vpop.xlane.xlu0 %10678 }
 0x97a   : > { %17009 = vpow2.f32 %v10862_v53  ;;  %v10796_v57 = vsub.f32 %v21419_v47, %v21936_v13 }
 0x97b   : > { %v17002_v21 = vpop.eup %17001  ;;  %v10868_v18 = vmul.f32 1.442695, %v10795_v62 }
 0x97c   : > { %v21940_v38 = vpop.xlane.xlu1 %10680  ;;  %v10870_v7 = vmul.f32 1.442695, %v10796_v57 }
 0x97d   : > { %17011 = vpow2.f32 %v10868_v18  ;;  %v10797_v63 = vsub.f32 %v21431_v19, %v21940_v38  ;;  %10982 = vadd.xlane.f32.xlu0 %v17002_v21  ;;  %v21944_v39 = vpop.xlane.xlu0 %10682 }
 0x97e   : > { %17013 = vpow2.f32 %v10866_v41  ;;  %v10798_v31 = vsub.f32 %v21437_v1, %v21944_v39 }
 0x97f   : > { %v17004_v53 = vpop.eup %17003  ;;  %v10872_v35 = vmul.f32 1.442695, %v10797_v63 }
 0x980   : > { %v17006_v30 = vpop.eup %17005  ;;  %10988 = vadd.xlane.f32.xlu1 %v17004_v53  ;;  %v21948_v47 = vpop.xlane.xlu1 %10684  ;;  %v10874_v21 = vmul.f32 1.442695, %v10798_v31 }
 0x981   : > { %17015 = vpow2.f32 %v10872_v35  ;;  %v10799_v62 = vsub.f32 %v21449_v44, %v21948_v47  ;;  %10986 = vadd.xlane.f32.xlu0 %v17006_v30  ;;  %v21952_v19 = vpop.xlane.xlu0 %10686 }
 0x982   : > { %17017 = vpow2.f32 %v10870_v7  ;;  %v10800_v41 = vsub.f32 %v21455_v48, %v21952_v19 }
 0x983   : > { %v17008_v57 = vpop.eup %17007  ;;  %v10876_v1 = vmul.f32 1.442695, %v10799_v62 }
 0x984   : > { %v17010_v18 = vpop.eup %17009  ;;  %10992 = vadd.xlane.f32.xlu1 %v17008_v57  ;;  %v21956_v63 = vpop.xlane.xlu1 %10688  ;;  %v10878_v35 = vmul.f32 1.442695, %v10800_v41 }
 0x985   : > { %17019 = vpow2.f32 %v10876_v1  ;;  %v10801_v53 = vsub.f32 %v21467_v36, %v21956_v63  ;;  %10990 = vadd.xlane.f32.xlu0 %v17010_v18  ;;  %v21960_v44 = vpop.xlane.xlu0 %10690 }
 0x986   : > { %17021 = vpow2.f32 %v10874_v21  ;;  %v10802_v7 = vsub.f32 %v21473_v5, %v21960_v44 }
 0x987   : > { %v17012_v31 = vpop.eup %17011  ;;  %v10880_v48 = vmul.f32 1.442695, %v10801_v53 }
 0x988   : > { %v17014_v30 = vpop.eup %17013  ;;  %10996 = vadd.xlane.f32.xlu1 %v17012_v31  ;;  %v21964_v62 = vpop.xlane.xlu1 %10692  ;;  %v10882_v1 = vmul.f32 1.442695, %v10802_v7 }
 0x989   : > { %17023 = vpow2.f32 %v10880_v48  ;;  %v10803_v57 = vsub.f32 %v21485_v33, %v21964_v62  ;;  %10994 = vadd.xlane.f32.xlu0 %v17014_v30  ;;  %v21968_v36 = vpop.xlane.xlu0 %10694 }
 0x98a   : > { %25173 = vst [vmem:[#allocation17_spill] sm:$0xff] %v21968_v36  ;;  %17025 = vpow2.f32 %v10878_v35  ;;  %v10804_v21 = vsub.f32 %v21491_v9, %v21968_v36 }
 0x98b   : > { %v17016_v41 = vpop.eup %17015  ;;  %v10884_v5 = vmul.f32 1.442695, %v10803_v57 }
 0x98c   : > { %v17018_v18 = vpop.eup %17017  ;;  %11000 = vadd.xlane.f32.xlu1 %v17016_v41  ;;  %v21972_v53 = vpop.xlane.xlu1 %10696  ;;  %v10886_v48 = vmul.f32 1.442695, %v10804_v21 }
 0x98d   : > { %25174 = vst [vmem:[#allocation76_spill] sm:$0xff] %v21972_v53  ;;  %17027 = vpow2.f32 %v10884_v5  ;;  %v10805_v31 = vsub.f32 %v21503_v61, %v21972_v53  ;;  %10998 = vadd.xlane.f32.xlu0 %v17018_v18  ;;  %v21976_v33 = vpop.xlane.xlu0 %10698 }
 0x98e   : > { %25175 = vst [vmem:[#allocation115_spill] sm:$0xff] %v21976_v33  ;;  %17029 = vpow2.f32 %v10882_v1  ;;  %v10806_v35 = vsub.f32 %v21509_v8, %v21976_v33 }
 0x98f   : > { %v17020_v7 = vpop.eup %17019  ;;  %v10888_v9 = vmul.f32 1.442695, %v10805_v31 }
 0x990   : > { %v17022_v30 = vpop.eup %17021  ;;  %11004 = vadd.xlane.f32.xlu1 %v17020_v7  ;;  %v21980_v57 = vpop.xlane.xlu1 %10700  ;;  %v10890_v5 = vmul.f32 1.442695, %v10806_v35 }
 0x991   : > { %25176 = vst [vmem:[#allocation18_spill] sm:$0xff] %v21980_v57  ;;  %17031 = vpow2.f32 %v10888_v9  ;;  %v10807_v41 = vsub.f32 %v21521_v56, %v21980_v57  ;;  %11002 = vadd.xlane.f32.xlu0 %v17022_v30  ;;  %v21984_v61 = vpop.xlane.xlu0 %10702 }
 0x992   : > { %25177 = vst [vmem:[#allocation99_spill] sm:$0xff] %v21984_v61  ;;  %17033 = vpow2.f32 %v10886_v48  ;;  %v10808_v1 = vsub.f32 %v21527_v12, %v21984_v61 }
 0x993   : > { %v17024_v21 = vpop.eup %17023  ;;  %v10892_v8 = vmul.f32 1.442695, %v10807_v41 }
 0x994   : > { %v17026_v18 = vpop.eup %17025  ;;  %11008 = vadd.xlane.f32.xlu1 %v17024_v21  ;;  %v21988_v31 = vpop.xlane.xlu1 %10704  ;;  %v10894_v9 = vmul.f32 1.442695, %v10808_v1 }
 0x995   : > { %25178 = vst [vmem:[#allocation83_spill] sm:$0xff] %v21988_v31  ;;  %17035 = vpow2.f32 %v10892_v8  ;;  %v10809_v7 = vsub.f32 %v21539_v26, %v21988_v31  ;;  %11006 = vadd.xlane.f32.xlu0 %v17026_v18  ;;  %v21992_v56 = vpop.xlane.xlu0 %10706 }
 0x996   : > { %25179 = vst [vmem:[#allocation21_spill] sm:$0xff] %v21992_v56  ;;  %17037 = vpow2.f32 %v10890_v5  ;;  %v10810_v48 = vsub.f32 %v21545_v49, %v21992_v56 }
 0x997   : > { %v17028_v35 = vpop.eup %17027  ;;  %v10896_v12 = vmul.f32 1.442695, %v10809_v7 }
 0x998   : > { %v17030_v30 = vpop.eup %17029  ;;  %11012 = vadd.xlane.f32.xlu1 %v17028_v35  ;;  %v21996_v41 = vpop.xlane.xlu1 %10708  ;;  %v10898_v8 = vmul.f32 1.442695, %v10810_v48 }
 0x999   : > { %25180 = vst [vmem:[#allocation131_spill] sm:$0xff] %v21996_v41  ;;  %17039 = vpow2.f32 %v10896_v12  ;;  %v10811_v21 = vsub.f32 %v21557_v45, %v21996_v41  ;;  %11010 = vadd.xlane.f32.xlu0 %v17030_v30  ;;  %v22000_v26 = vpop.xlane.xlu0 %10710 }
 0x99a   : > { %25181 = vst [vmem:[#allocation91_spill] sm:$0xff] %v22000_v26  ;;  %17041 = vpow2.f32 %v10894_v9  ;;  %v10812_v5 = vsub.f32 %v21563_v0, %v22000_v26 }
 0x99b   : > { %v17032_v1 = vpop.eup %17031  ;;  %v10900_v49 = vmul.f32 1.442695, %v10811_v21 }
 0x99c   : > { %v17034_v18 = vpop.eup %17033  ;;  %11016 = vadd.xlane.f32.xlu1 %v17032_v1  ;;  %v22004_v7 = vpop.xlane.xlu1 %10712  ;;  %v10902_v12 = vmul.f32 1.442695, %v10812_v5 }
 0x99d   : > { %25182 = vst [vmem:[#allocation23_spill] sm:$0xff] %v22004_v7  ;;  %17043 = vpow2.f32 %v10900_v49  ;;  %v10813_v35 = vsub.f32 %v21575_v15, %v22004_v7  ;;  %11014 = vadd.xlane.f32.xlu0 %v17034_v18  ;;  %v22008_v45 = vpop.xlane.xlu0 %10714  ;;  %v25253_v7 = vld [vmem:[#allocation14_spill] sm:$0xff] }
 0x99e   : > { %25183 = vst [vmem:[#allocation89_spill] sm:$0xff] %v22008_v45  ;;  %17045 = vpow2.f32 %v10898_v8  ;;  %v10814_v9 = vsub.f32 %v21581_v54, %v22008_v45  ;;  %v25250_v45 = vld [vmem:[#allocation103_spill] sm:$0xff] }
 0x99f   : > { %v17036_v48 = vpop.eup %17035  ;;  %v10904_v0 = vmul.f32 1.442695, %v10813_v35 }
 0x9a0   : > { %v17038_v30 = vpop.eup %17037  ;;  %11020 = vadd.xlane.f32.xlu1 %v17036_v48  ;;  %v22012_v21 = vpop.xlane.xlu1 %10716  ;;  %v10906_v49 = vmul.f32 1.442695, %v10814_v9 }
 0x9a1   : > { %25184 = vst [vmem:[#allocation36_spill] sm:$0xff] %v22012_v21  ;;  %17047 = vpow2.f32 %v10904_v0  ;;  %v10815_v1 = vsub.f32 %v21593_v27, %v22012_v21  ;;  %11018 = vadd.xlane.f32.xlu0 %v17038_v30  ;;  %v22016_v15 = vpop.xlane.xlu0 %10718  ;;  %v11398_v21 = vmul.f32 1.442695, %v25250_v45 }
 0x9a2   : > { %25185 = vst [vmem:[#allocation97_spill] sm:$0xff] %v22016_v15  ;;  %17049 = vpow2.f32 %v10902_v12  ;;  %v10816_v8 = vsub.f32 %v21599_v60, %v22016_v15 }
 0x9a3   : > { %v17040_v5 = vpop.eup %17039  ;;  %v10908_v54 = vmul.f32 1.442695, %v10815_v1 }
 0x9a4   : > { %v17042_v18 = vpop.eup %17041  ;;  %11024 = vadd.xlane.f32.xlu1 %v17040_v5  ;;  %v22020_v35 = vpop.xlane.xlu1 %10720  ;;  %v10910_v0 = vmul.f32 1.442695, %v10816_v8 }
 0x9a5   : > { %25186 = vst [vmem:[#allocation107_spill] sm:$0xff] %v22020_v35  ;;  %17051 = vpow2.f32 %v10908_v54  ;;  %v10817_v48 = vsub.f32 %v21611_v58, %v22020_v35  ;;  %11022 = vadd.xlane.f32.xlu0 %v17042_v18  ;;  %v22024_v27 = vpop.xlane.xlu0 %10722  ;;  %v25249_v35 = vld [vmem:[#allocation66_spill] sm:$0xff] }
 0x9a6   : > { %25187 = vst [vmem:[#allocation105_spill] sm:$0xff] %v22024_v27  ;;  %17053 = vpow2.f32 %v10906_v49  ;;  %v10818_v12 = vsub.f32 %v21617_v34, %v22024_v27  ;;  %vm10591_vm2 = vcmp.ge.s32.totalorder %v25249_v35, 4  ;;  %vm10592_vm3 = vcmp.lt.s32.totalorder %v25249_v35, 16 }
 0x9a7   : > { %v17044_v9 = vpop.eup %17043  ;;  %v10912_v60 = vmul.f32 1.442695, %v10817_v48  ;;  %vm22199_vm4 = vmand %vm10591_vm2, %vm10592_vm3 }
 0x9a8   : > { %v17046_v30 = vpop.eup %17045  ;;  %11028 = vadd.xlane.f32.xlu1 %v17044_v9  ;;  %v22028_v1 = vpop.xlane.xlu1 %10724  ;;  %v10914_v54 = vmul.f32 1.442695, %v10818_v12 }
 0x9a9   : > { %25188 = vst [vmem:[#allocation123_spill] sm:$0xff] %v22028_v1  ;;  %17055 = vpow2.f32 %v10912_v60  ;;  %v10819_v5 = vsub.f32 %v21629_v6, %v22028_v1  ;;  %11026 = vadd.xlane.f32.xlu0 %v17046_v30  ;;  %v22032_v58 = vpop.xlane.xlu0 %10726 }
 0x9aa   : > { %25189 = vst [vmem:[#allocation113_spill] sm:$0xff] %v22032_v58  ;;  %17057 = vpow2.f32 %v10910_v0  ;;  %v10820_v49 = vsub.f32 %v21635_v29, %v22032_v58 }
 0x9ab   : > { %v17048_v8 = vpop.eup %17047  ;;  %v10916_v34 = vmul.f32 1.442695, %v10819_v5 }
 0x9ac   : > { %v17050_v18 = vpop.eup %17049  ;;  %11032 = vadd.xlane.f32.xlu1 %v17048_v8  ;;  %v22036_v48 = vpop.xlane.xlu1 %10728  ;;  %v10918_v60 = vmul.f32 1.442695, %v10820_v49 }
 0x9ad   : > { %25190 = vst [vmem:[#allocation132_spill] sm:$0xff] %v22036_v48  ;;  %17059 = vpow2.f32 %v10916_v34  ;;  %v10821_v9 = vsub.f32 %v21647_v4, %v22036_v48  ;;  %11030 = vadd.xlane.f32.xlu0 %v17050_v18  ;;  %v22040_v6 = vpop.xlane.xlu0 %10730 }
 0x9ae   : > { %25191 = vst [vmem:[#allocation127_spill] sm:$0xff] %v22040_v6  ;;  %17061 = vpow2.f32 %v10914_v54  ;;  %v10822_v0 = vsub.f32 %v21653_v43, %v22040_v6  ;;  %v25246_v6 = vld [vmem:[#allocation93_spill] sm:$0xff] }
 0x9af   : > { %v17052_v12 = vpop.eup %17051  ;;  %v10920_v29 = vmul.f32 1.442695, %v10821_v9 }
 0x9b0   : > { %v17054_v30 = vpop.eup %17053  ;;  %11036 = vadd.xlane.f32.xlu1 %v17052_v12  ;;  %v22044_v5 = vpop.xlane.xlu1 %10732  ;;  %v10922_v34 = vmul.f32 1.442695, %v10822_v0 }
 0x9b1   : > { %25192 = vst [vmem:[#allocation139_spill] sm:$0xff] %v22044_v5  ;;  %17063 = vpow2.f32 %v10920_v29  ;;  %v10823_v8 = vsub.f32 %v21665_v59, %v22044_v5  ;;  %11034 = vadd.xlane.f32.xlu0 %v17054_v30  ;;  %v22048_v4 = vpop.xlane.xlu0 %10734  ;;  %v11396_v5 = vmul.f32 1.442695, %v25246_v6 }
 0x9b2   : > { %25193 = vst [vmem:[#allocation140_spill] sm:$0xff] %v22048_v4  ;;  %17065 = vpow2.f32 %v10918_v60  ;;  %v10824_v54 = vsub.f32 %v21671_v20, %v22048_v4 }
 0x9b3   : > { %v17056_v49 = vpop.eup %17055  ;;  %v10924_v43 = vmul.f32 1.442695, %v10823_v8 }
 0x9b4   : > { %v17058_v18 = vpop.eup %17057  ;;  %11040 = vadd.xlane.f32.xlu1 %v17056_v49  ;;  %v22052_v9 = vpop.xlane.xlu1 %10736  ;;  %v10926_v29 = vmul.f32 1.442695, %v10824_v54 }
 0x9b5   : > { %25194 = vst [vmem:[#allocation43_spill] sm:$0xff] %v22052_v9  ;;  %17067 = vpow2.f32 %v10924_v43  ;;  %v10825_v12 = vsub.f32 %v21683_v2, %v22052_v9  ;;  %11038 = vadd.xlane.f32.xlu0 %v17058_v18  ;;  %v22056_v59 = vpop.xlane.xlu0 %10738 }
 0x9b6   : > { %25195 = vst [vmem:[#allocation84_spill] sm:$0xff] %v22056_v59  ;;  %17069 = vpow2.f32 %v10922_v34  ;;  %v10826_v60 = vsub.f32 %v21689_v51, %v22056_v59 }
 0x9b7   : > { %v17060_v0 = vpop.eup %17059  ;;  %v10928_v20 = vmul.f32 1.442695, %v10825_v12 }
 0x9b8   : > { %v17062_v30 = vpop.eup %17061  ;;  %11044 = vadd.xlane.f32.xlu1 %v17060_v0  ;;  %v22060_v8 = vpop.xlane.xlu1 %10740  ;;  %v10930_v43 = vmul.f32 1.442695, %v10826_v60 }
 0x9b9   : > { %25196 = vst [vmem:[#allocation7_spill] sm:$0xff] %v22060_v8  ;;  %17071 = vpow2.f32 %v10928_v20  ;;  %v10827_v49 = vsub.f32 %v21701_v55, %v22060_v8  ;;  %11042 = vadd.xlane.f32.xlu0 %v17062_v30  ;;  %v22064_v2 = vpop.xlane.xlu0 %10742 }
 0x9ba   : > { %25197 = vst [vmem:[#allocation46_spill] sm:$0xff] %v22064_v2  ;;  %17073 = vpow2.f32 %v10926_v29  ;;  %v10828_v34 = vsub.f32 %v21707_v24, %v22064_v2 }
 0x9bb   : > { %v17064_v54 = vpop.eup %17063  ;;  %v10932_v51 = vmul.f32 1.442695, %v10827_v49 }
 0x9bc   : > { %v17066_v18 = vpop.eup %17065  ;;  %11048 = vadd.xlane.f32.xlu1 %v17064_v54  ;;  %v22068_v12 = vpop.xlane.xlu1 %10744  ;;  %v10934_v20 = vmul.f32 1.442695, %v10828_v34 }
 0x9bd   : > { %25198 = vst [vmem:[#allocation16_spill] sm:$0xff] %v22068_v12  ;;  %17075 = vpow2.f32 %v10932_v51  ;;  %v10829_v0 = vsub.f32 %v21719_v37, %v22068_v12  ;;  %11046 = vadd.xlane.f32.xlu0 %v17066_v18  ;;  %v22072_v55 = vpop.xlane.xlu0 %10746 }
 0x9be   : > { %25199 = vst [vmem:[#allocation11_spill] sm:$0xff] %v22072_v55  ;;  %17077 = vpow2.f32 %v10930_v43  ;;  %v10830_v29 = vsub.f32 %v21725_v10, %v22072_v55 }
 0x9bf   : > { %v17068_v60 = vpop.eup %17067  ;;  %v10936_v24 = vmul.f32 1.442695, %v10829_v0 }
 0x9c0   : > { %v17070_v30 = vpop.eup %17069  ;;  %11052 = vadd.xlane.f32.xlu1 %v17068_v60  ;;  %v22076_v49 = vpop.xlane.xlu1 %10748  ;;  %v10938_v51 = vmul.f32 1.442695, %v10830_v29 }
 0x9c1   : > { %25200 = vst [vmem:[#allocation53_spill] sm:$0xff] %v22076_v49  ;;  %17079 = vpow2.f32 %v10936_v24  ;;  %v10831_v54 = vsub.f32 %v21737_v40, %v22076_v49  ;;  %11050 = vadd.xlane.f32.xlu0 %v17070_v30  ;;  %v22080_v37 = vpop.xlane.xlu0 %10750 }
 0x9c2   : > { %25201 = vst [vmem:[#allocation20_spill] sm:$0xff] %v22080_v37  ;;  %17081 = vpow2.f32 %v10934_v20  ;;  %v10832_v43 = vsub.f32 %v21743_v11, %v22080_v37  ;;  %v25239_v37 = vld [vmem:[#allocation42_spill] sm:$0xff] }
 0x9c3   : > { %v17072_v34 = vpop.eup %17071  ;;  %v10940_v10 = vmul.f32 1.442695, %v10831_v54 }
 0x9c4   : > { %v17074_v18 = vpop.eup %17073  ;;  %11056 = vadd.xlane.f32.xlu1 %v17072_v34  ;;  %v22084_v0 = vpop.xlane.xlu1 %10752  ;;  %v10942_v24 = vmul.f32 1.442695, %v10832_v43 }
 0x9c5   : > { %25202 = vst [vmem:[#allocation22_spill] sm:$0xff] %v22084_v0  ;;  %17083 = vpow2.f32 %v10940_v10  ;;  %v10833_v60 = vsub.f32 %v21755_v17, %v22084_v0  ;;  %11054 = vadd.xlane.f32.xlu0 %v17074_v18  ;;  %v22088_v40 = vpop.xlane.xlu0 %10754  ;;  %v25240_v0 = vld [vmem:[#allocation117_spill] sm:$0xff] }
 0x9c6   : > { %25203 = vst [vmem:[#allocation54_spill] sm:$0xff] %v22088_v40  ;;  %17085 = vpow2.f32 %v10938_v51  ;;  %v10834_v20 = vsub.f32 %v21761_v42, %v22088_v40 }
 0x9c7   : > { %v17076_v29 = vpop.eup %17075  ;;  %v10944_v11 = vmul.f32 1.442695, %v10833_v60 }
 0x9c8   : > { %v17078_v30 = vpop.eup %17077  ;;  %11060 = vadd.xlane.f32.xlu1 %v17076_v29  ;;  %v22092_v54 = vpop.xlane.xlu1 %10756  ;;  %v10946_v10 = vmul.f32 1.442695, %v10834_v20 }
 0x9c9   : > { %25204 = vst [vmem:[#allocation32_spill] sm:$0xff] %v22092_v54  ;;  %17087 = vpow2.f32 %v10944_v11  ;;  %v10835_v34 = vsub.f32 %v21773_v32, %v22092_v54  ;;  %11058 = vadd.xlane.f32.xlu0 %v17078_v30  ;;  %v22096_v17 = vpop.xlane.xlu0 %10758  ;;  %v25238_v54 = vld [vmem:[#allocation78_spill] sm:$0xff] }
 0x9ca   : > { %25205 = vst [vmem:[#allocation26_spill] sm:$0xff] %v22096_v17  ;;  %17089 = vpow2.f32 %v10942_v24  ;;  %v10836_v51 = vsub.f32 %v21779_v23, %v22096_v17 }
 0x9cb   : > { %v17080_v43 = vpop.eup %17079  ;;  %v10948_v42 = vmul.f32 1.442695, %v10835_v34 }
 0x9cc   : > { %v17082_v18 = vpop.eup %17081  ;;  %11064 = vadd.xlane.f32.xlu1 %v17080_v43  ;;  %v22100_v60 = vpop.xlane.xlu1 %10760  ;;  %v10950_v11 = vmul.f32 1.442695, %v10836_v51  ;;  %v25209_v43 = vld [vmem:[#allocation100_spill] sm:$0xff] }
 0x9cd   : > { %25206 = vst [vmem:[#allocation47_spill] sm:$0xff] %v22100_v60  ;;  %17091 = vpow2.f32 %v10948_v42  ;;  %v10837_v29 = vsub.f32 %v21791_v14, %v22100_v60  ;;  %11062 = vadd.xlane.f32.xlu0 %v17082_v18  ;;  %v22104_v32 = vpop.xlane.xlu0 %10762  ;;  %v25237_v60 = vld [vmem:[#allocation74_spill] sm:$0xff] }
 0x9ce   : > { %25207 = vst [vmem:[#allocation35_spill] sm:$0xff] %v22104_v32  ;;  %17093 = vpow2.f32 %v10946_v10  ;;  %v10838_v24 = vsub.f32 %v21797_v28, %v22104_v32  ;;  %v25211_v10 = vld [vmem:[#allocation122_spill] sm:$0xff]  ;;  %v11374_v40 = vmul.f32 1.442695, %v25237_v60 }
 0x9cf   : > { %v17084_v20 = vpop.eup %17083  ;;  %v10952_v23 = vmul.f32 1.442695, %v10837_v29 }
 0x9d0   : > { %v17086_v30 = vpop.eup %17085  ;;  %11068 = vadd.xlane.f32.xlu1 %v17084_v20  ;;  %v22108_v34 = vpop.xlane.xlu1 %10764  ;;  %v10954_v18 = vmul.f32 1.442695, %v10838_v24  ;;  %v25213_v20 = vld [vmem:[#allocation120_spill] sm:$0xff] }
 0x9d1   : > { %25208 = vst [vmem:[#allocation63_spill] sm:$0xff] %v22108_v34  ;;  %17095 = vpow2.f32 %v10952_v23  ;;  %v10839_v42 = vsub.f32 %v25209_v43, %v22108_v34  ;;  %11066 = vadd.xlane.f32.xlu0 %v17086_v30  ;;  %v22112_v14 = vpop.xlane.xlu0 %10766 }
 0x9d2   : > { %25210 = vst [vmem:[#allocation51_spill] sm:$0xff] %v22112_v14  ;;  %17097 = vpow2.f32 %v10950_v11  ;;  %v10840_v51 = vsub.f32 %v25211_v10, %v22112_v14  ;;  %v25215_v11 = vld [vmem:[#allocation134_spill] sm:$0xff] }
 0x9d3   : > { %v17088_v17 = vpop.eup %17087  ;;  %v10956_v28 = vmul.f32 1.442695, %v10839_v42 }
 0x9d4   : > { %v17090_v32 = vpop.eup %17089  ;;  %11072 = vadd.xlane.f32.xlu1 %v17088_v17  ;;  %v22116_v29 = vpop.xlane.xlu1 %10768  ;;  %v10958_v30 = vmul.f32 1.442695, %v10840_v51  ;;  %v25217_v17 = vld [vmem:[#allocation142_spill] sm:$0xff] }
 0x9d5   : > { %25212 = vst [vmem:[#allocation75_spill] sm:$0xff] %v22116_v29  ;;  %17099 = vpow2.f32 %v10956_v28  ;;  %v10841_v23 = vsub.f32 %v25213_v20, %v22116_v29  ;;  %11070 = vadd.xlane.f32.xlu0 %v17090_v32  ;;  %v22120_v43 = vpop.xlane.xlu0 %10770 }
 0x9d6   : > { %25214 = vst [vmem:[#allocation67_spill] sm:$0xff] %v22120_v43  ;;  %17101 = vpow2.f32 %v10954_v18  ;;  %v10842_v24 = vsub.f32 %v25215_v11, %v22120_v43  ;;  %v25219_v18 = vld [vmem:[#allocation141_spill] sm:$0xff] }
 0x9d7   : > { %v17092_v34 = vpop.eup %17091  ;;  %v10960_v10 = vmul.f32 1.442695, %v10841_v23 }
 0x9d8   : > { %v17094_v14 = vpop.eup %17093  ;;  %11076 = vadd.xlane.f32.xlu1 %v17092_v34  ;;  %v22124_v42 = vpop.xlane.xlu1 %10772  ;;  %v10962_v32 = vmul.f32 1.442695, %v10842_v24  ;;  %v25221_v34 = vld [vmem:[#allocation38_spill] sm:$0xff] }
 0x9d9   : > { %25216 = vst [vmem:[#allocation82_spill] sm:$0xff] %v22124_v42  ;;  %17103 = vpow2.f32 %v10960_v10  ;;  %v10843_v28 = vsub.f32 %v25217_v17, %v22124_v42  ;;  %11074 = vadd.xlane.f32.xlu0 %v17094_v14  ;;  %v22128_v20 = vpop.xlane.xlu0 %10774 }
 0x9da   : > { %25218 = vst [vmem:[#allocation79_spill] sm:$0xff] %v22128_v20  ;;  %17105 = vpow2.f32 %v10958_v30  ;;  %v10844_v51 = vsub.f32 %v25219_v18, %v22128_v20  ;;  %v25223_v30 = vld [vmem:[#allocation9_spill] sm:$0xff] }
 0x9db   : > { %v17096_v29 = vpop.eup %17095  ;;  %v10964_v11 = vmul.f32 1.442695, %v10843_v28 }
 0x9dc   : > { %v17098_v43 = vpop.eup %17097  ;;  %11080 = vadd.xlane.f32.xlu1 %v17096_v29  ;;  %v22132_v23 = vpop.xlane.xlu1 %10776  ;;  %v10966_v14 = vmul.f32 1.442695, %v10844_v51  ;;  %v25225_v29 = vld [vmem:[#allocation13_spill] sm:$0xff] }
 0x9dd   : > { %25220 = vst [vmem:[#allocation92_spill] sm:$0xff] %v22132_v23  ;;  %17107 = vpow2.f32 %v10964_v11  ;;  %v10845_v10 = vsub.f32 %v25221_v34, %v22132_v23  ;;  %11078 = vadd.xlane.f32.xlu0 %v17098_v43  ;;  %v22136_v17 = vpop.xlane.xlu0 %10778 }
 0x9de   : > { %25222 = vst [vmem:[#allocation86_spill] sm:$0xff] %v22136_v17  ;;  %17109 = vpow2.f32 %v10962_v32  ;;  %v10846_v24 = vsub.f32 %v25223_v30, %v22136_v17  ;;  %v25227_v32 = vld [vmem:[#allocation50_spill] sm:$0xff] }
 0x9df   : > { %v17100_v42 = vpop.eup %17099  ;;  %v10968_v18 = vmul.f32 1.442695, %v10845_v10 }
 0x9e0   : > { %v17102_v20 = vpop.eup %17101  ;;  %11084 = vadd.xlane.f32.xlu1 %v17100_v42  ;;  %v22140_v28 = vpop.xlane.xlu1 %10780  ;;  %v10970_v43 = vmul.f32 1.442695, %v10846_v24  ;;  %v25229_v42 = vld [vmem:[#allocation68_spill] sm:$0xff] }
 0x9e1   : > { %25224 = vst [vmem:[#allocation41_spill] sm:$0xff] %v22140_v28  ;;  %17111 = vpow2.f32 %v10968_v18  ;;  %v10847_v11 = vsub.f32 %v25225_v29, %v22140_v28  ;;  %11082 = vadd.xlane.f32.xlu0 %v17102_v20  ;;  %v22144_v34 = vpop.xlane.xlu0 %10782 }
 0x9e2   : > { %25226 = vst [vmem:[#allocation94_spill] sm:$0xff] %v22144_v34  ;;  %17113 = vpow2.f32 %v10966_v14  ;;  %v10848_v51 = vsub.f32 %v25227_v32, %v22144_v34 }
 0x9e3   : > { %v17104_v23 = vpop.eup %17103  ;;  %v10972_v30 = vmul.f32 1.442695, %v10847_v11 }
 0x9e4   : > { %v17106_v17 = vpop.eup %17105  ;;  %11088 = vadd.xlane.f32.xlu1 %v17104_v23  ;;  %v22148_v10 = vpop.xlane.xlu1 %10784  ;;  %v10974_v20 = vmul.f32 1.442695, %v10848_v51  ;;  %v25231_v51 = vld [vmem:[#allocation59_spill] sm:$0xff] }
 0x9e5   : > { %25228 = vst [vmem:[#allocation104_spill] sm:$0xff] %v22148_v10  ;;  %17115 = vpow2.f32 %v10972_v30  ;;  %v10849_v18 = vsub.f32 %v25229_v42, %v22148_v10  ;;  %11086 = vadd.xlane.f32.xlu0 %v17106_v17  ;;  %v25230_v42 = vld [vmem:[#allocation31_spill] sm:$0xff]  ;;  %v11362_v34 = vmul.f32 1.442695, %v25231_v51 }
 0x9e6   : > { %17117 = vpow2.f32 %v10970_v43  ;;  %v11364_v17 = vmul.f32 1.442695, %v25230_v42 }
 0x9e7   : > { %v17108_v29 = vpop.eup %17107  ;;  %v10976_v28 = vmul.f32 1.442695, %v10849_v18  ;;  %v25232_v18 = vld [vmem:[#allocation45_spill] sm:$0xff] }
 0x9e8   : > { %v17110_v14 = vpop.eup %17109  ;;  %11092 = vadd.xlane.f32.xlu1 %v17108_v29  ;;  %v11368_v29 = vmul.f32 1.442695, %v25232_v18 }
 0x9e9   : > { %17119 = vpow2.f32 %v10976_v28  ;;  %11090 = vadd.xlane.f32.xlu0 %v17110_v14  ;;  %v25233_v28 = vld [vmem:[#allocation40_spill] sm:$0xff]  ;;  %v25234_v14 = vld [vmem:[#allocation57_spill] sm:$0xff] }
 0x9ea   : > { %17121 = vpow2.f32 %v10974_v20  ;;  %v11366_v20 = vmul.f32 1.442695, %v25233_v28 }
 0x9eb   : > { %v17112_v24 = vpop.eup %17111  ;;  %17123 = vpow2.f32 %v11364_v17  ;;  %v11384_v17 = vmul.f32 1.442695, %v25240_v0 }
 0x9ec   : > { %v17114_v11 = vpop.eup %17113  ;;  %11096 = vadd.xlane.f32.xlu1 %v17112_v24  ;;  %v11372_v24 = vmul.f32 1.442695, %v25234_v14  ;;  %17125 = vpow2.f32 %v11362_v34  ;;  %v25241_v34 = vld [vmem:[#allocation121_spill] sm:$0xff] }
 0x9ed   : > { %11094 = vadd.xlane.f32.xlu0 %v17114_v11  ;;  %v25235_v11 = vld [vmem:[#allocation62_spill] sm:$0xff]  ;;  %17127 = vpow2.f32 %v11368_v29  ;;  %v11382_v55 = vmul.f32 1.442695, %v25241_v34  ;;  %v25242_v29 = vld [vmem:[#allocation85_spill] sm:$0xff] }
 0x9ee   : > { %v11370_v10 = vmul.f32 1.442695, %v25235_v11  ;;  %17129 = vpow2.f32 %v11366_v20  ;;  %v11388_v49 = vmul.f32 1.442695, %v25242_v29  ;;  %v25243_v20 = vld [vmem:[#allocation87_spill] sm:$0xff] }
 0x9ef   : > { %v17116_v23 = vpop.eup %17115  ;;  %17131 = vpow2.f32 %v11372_v24  ;;  %v11386_v12 = vmul.f32 1.442695, %v25243_v20 }
 0x9f0   : > { %v17118_v32 = vpop.eup %17117  ;;  %11100 = vadd.xlane.f32.xlu1 %v17116_v23  ;;  %v25236_v23 = vld [vmem:[#allocation71_spill] sm:$0xff]  ;;  %17133 = vpow2.f32 %v11370_v10 }
 0x9f1   : > { %11098 = vadd.xlane.f32.xlu0 %v17118_v32  ;;  %v11376_v32 = vmul.f32 1.442695, %v25236_v23 }
 0x9f3   : > { %v17120_v30 = vpop.eup %17119  ;;  %17135 = vpow2.f32 %v11376_v32 }
 0x9f4   : > { %v17122_v43 = vpop.eup %17121  ;;  %11104 = vadd.xlane.f32.xlu1 %v17120_v30  ;;  %v11380_v30 = vmul.f32 1.442695, %v25238_v54  ;;  %17137 = vpow2.f32 %v11374_v40  ;;  %v25244_v40 = vld [vmem:[#allocation25_spill] sm:$0xff] }
 0x9f5   : > { %11102 = vadd.xlane.f32.xlu0 %v17122_v43  ;;  %v11378_v43 = vmul.f32 1.442695, %v25239_v37  ;;  %v17124_v2 = vpop.eup %17123 }
 0x9f6   : > { %17139 = vpow2.f32 %v11380_v30  ;;  %v22166_v59 = vpop.eup %17125  ;;  %v11392_v30 = vmul.f32 1.442695, %v25244_v40  ;;  %v11491_v57 = vsel %vm22199_vm4, %v25230_v42, %v17124_v2 }
 0x9f7   : > { %17141 = vpow2.f32 %v11378_v43  ;;  %v22168_v10 = vpop.eup %17127  ;;  %v25245_v43 = vld [vmem:[#allocation95_spill] sm:$0xff] }
 0x9f8   : > { %17143 = vpow2.f32 %v11384_v17  ;;  %v22170_v32 = vpop.eup %17129  ;;  %v11390_v17 = vmul.f32 1.442695, %v25245_v43 }
 0x9f9   : > { %v22173_v8 = vpop.eup %17131 }
 0x9fa   : > { %v22176_v9 = vpop.eup %17133 }
 0x9fd   : > { %v22179_v58 = vpop.eup %17135 }
 0xa01   : > { %v10981_v24 = vpop.xlane.xlu1 %10980 }
 0xa02   : > { %17145 = vlog2.f32 %v10981_v24 }
 0xa03   : > { %17147 = vpow2.f32 %v11382_v55  ;;  %v22181_v55 = vpop.eup %17137 }
 0xa04   : > { %17149 = vpow2.f32 %v11388_v49  ;;  %v25247_v49 = vld [vmem:[#allocation27_spill] sm:$0xff]  ;;  %v22184_v27 = vpop.eup %17139 }
 0xa05   : > { %17151 = vpow2.f32 %v11386_v12  ;;  %v10985_v4 = vpop.xlane.xlu1 %10984  ;;  %v11394_v48 = vmul.f32 1.442695, %v25247_v49  ;;  %v25248_v12 = vld [vmem:[#allocation101_spill] sm:$0xff]  ;;  %v22188_v15 = vpop.eup %17141 }
 0xa06   : > { %17153 = vlog2.f32 %v10985_v4  ;;  %v10979_v24 = vpop.xlane.xlu0 %10978  ;;  %v11400_v1 = vmul.f32 1.442695, %v25248_v12  ;;  %v11237_v12 = vsub.f32 %v25232_v18, %v21900_v22 }
 0xa07   : > { %17155 = vlog2.f32 %v10979_v24  ;;  %v22192_v24 = vpop.eup %17143 }
 0xa08   : > { %17157 = vpow2.f32 %v11392_v30 }
 0xa09   : > { %17159 = vpow2.f32 %v11390_v17 }
 0xa0a   : > { %17161 = vpow2.f32 %v11396_v5  ;;  %v10983_v4 = vpop.xlane.xlu0 %10982  ;;  %v11235_v5 = vsub.f32 %v25230_v42, %v25253_v7  ;;  %v25255_v7 = vld [vmem:[#allocation111_spill] sm:$0xff] }
 0xa0b   : > { %17163 = vlog2.f32 %v10983_v4 }
 0xa0c   : > { %v17146_v30 = vpop.eup %17145  ;;  %17165 = vpow2.f32 %v11394_v48 }
 0xa0d   : > { %v22197_v17 = vpop.eup %17147  ;;  %17167 = vpow2.f32 %v11400_v1  ;;  %v11109_v56 = vmul.f32 0.6931472, %v17146_v30  ;;  %v10989_v41 = vpop.xlane.xlu1 %10988  ;;  %v25254_v1 = vld [vmem:[#allocation109_spill] sm:$0xff]  ;;  %v11402_v30 = vmul.f32 1.442695, %v25255_v7 }
 0xa0e   : > { %v22205_v61 = vpop.eup %17149  ;;  %17169 = vlog2.f32 %v10989_v41  ;;  %v10987_v48 = vpop.xlane.xlu0 %10986  ;;  %v11404_v45 = vmul.f32 1.442695, %v25254_v1 }
 0xa0f   : > { %v22207_v4 = vpop.eup %17151  ;;  %v11299_v31 = vsub.f32 %v11235_v5, %v11109_v56  ;;  %17171 = vlog2.f32 %v10987_v48  ;;  %v11234_v48 = vsub.f32 %v25231_v51, %v21902_v25  ;;  %v25256_v25 = vld [vmem:[#allocation125_spill] sm:$0xff] }
 0xa10   : > { %v17154_v33 = vpop.eup %17153  ;;  %17173 = vpow2.f32 %v11398_v21 }
 0xa11   : > { %v17156_v36 = vpop.eup %17155  ;;  %v11555_v41 = vsel %vm10590_vm1, %v11299_v31, %v11491_v57  ;;  %v11113_v53 = vmul.f32 0.6931472, %v17154_v33  ;;  %v10993_v56 = vpop.xlane.xlu1 %10992  ;;  %v11493_v33 = vsel %vm22199_vm4, %v25232_v18, %v22168_v10  ;;  %v11408_v31 = vmul.f32 1.442695, %v25256_v25 }
 0xa12   : > { %v22218_v5 = vpop.eup %17157  ;;  %11619 = vst [vmem:[%s22222_s14 + $0x8] sm:$0xff] %v11555_v41  ;;  %v11107_v21 = vmul.f32 0.6931472, %v17156_v36  ;;  %17175 = vlog2.f32 %v10993_v56  ;;  %v10991_v2 = vpop.xlane.xlu0 %10990  ;;  %v11490_v56 = vsel %vm22199_vm4, %v25231_v51, %v22166_v59 }
 0xa13   : > { %v22225_v42 = vpop.eup %17159  ;;  %v11301_v22 = vsub.f32 %v11237_v12, %v11113_v53  ;;  %17177 = vlog2.f32 %v10991_v2  ;;  %v25257_v53 = vld [vmem:[#allocation128_spill] sm:$0xff] }
 0xa14   : > { %v22227_v57 = vpop.eup %17161  ;;  %17179 = vpow2.f32 %v11404_v45  ;;  %v11298_v41 = vsub.f32 %v11234_v48, %v11107_v21  ;;  %v11406_v12 = vmul.f32 1.442695, %v25257_v53  ;;  %v11236_v45 = vsub.f32 %v25233_v28, %v21908_v3 }
 0xa15   : > { %v17164_v36 = vpop.eup %17163  ;;  %17181 = vpow2.f32 %v11402_v30  ;;  %v11557_v2 = vsel %vm10590_vm1, %v11301_v22, %v11493_v33  ;;  %v10997_v7 = vpop.xlane.xlu1 %10996  ;;  %v25258_v30 = vld [vmem:[#allocation136_spill] sm:$0xff]  ;;  %v11492_v3 = vsel %vm22199_vm4, %v25233_v28, %v22170_v32  ;;  %v11495_v28 = vsel %vm22199_vm4, %v25234_v14, %v22173_v8 }
 0xa16   : > { %v22241_v1 = vpop.eup %17165  ;;  %11621 = vst [vmem:[%s22222_s14 + $0x18] sm:$0xff] %v11557_v2  ;;  %v11554_v18 = vsel %vm10590_vm1, %v11298_v41, %v11490_v56  ;;  %v11111_v10 = vmul.f32 0.6931472, %v17164_v36  ;;  %17183 = vlog2.f32 %v10997_v7  ;;  %v10995_v48 = vpop.xlane.xlu0 %10994  ;;  %v11412_v21 = vmul.f32 1.442695, %v25258_v30  ;;  %v25259_v41 = vld [vmem:[#allocation77_spill] sm:$0xff] }
 0xa17   : > { %v22248_v59 = vpop.eup %17167  ;;  %11618 = vst [vmem:[%s22222_s14] sm:$0xff] %v11554_v18  ;;  %17185 = vlog2.f32 %v10995_v48  ;;  %v11239_v7 = vsub.f32 %v25234_v14, %v25259_v41  ;;  %v25260_v18 = vld [vmem:[#allocation64_spill] sm:$0xff]  ;;  %v11241_v8 = vsub.f32 %v25236_v23, %v21924_v52  ;;  %v11497_v52 = vsel %vm22199_vm4, %v25236_v23, %v22179_v58 }
 0xa18   : > { %v17170_v51 = vpop.eup %17169  ;;  %17187 = vpow2.f32 %v11408_v31  ;;  %v11300_v22 = vsub.f32 %v11236_v45, %v11111_v10  ;;  %v11238_v31 = vsub.f32 %v25235_v11, %v25260_v18  ;;  %v11243_v58 = vsub.f32 %v25238_v54, %v21932_v50 }
 0xa19   : > { %v17172_v33 = vpop.eup %17171  ;;  %17189 = vpow2.f32 %v11406_v12  ;;  %v11117_v36 = vmul.f32 0.6931472, %v17170_v51  ;;  %v11001_v56 = vpop.xlane.xlu1 %11000  ;;  %v11494_v51 = vsel %vm22199_vm4, %v25235_v11, %v22176_v9  ;;  %v11240_v9 = vsub.f32 %v25237_v60, %v21920_v46 }
 0xa1a   : > { %v22258_v2 = vpop.eup %17173  ;;  %v11556_v45 = vsel %vm10590_vm1, %v11300_v22, %v11492_v3  ;;  %v11115_v10 = vmul.f32 0.6931472, %v17172_v33  ;;  %17191 = vlog2.f32 %v11001_v56  ;;  %v10999_v48 = vpop.xlane.xlu0 %10998  ;;  %v25261_v22 = vld [vmem:[#allocation135_spill] sm:$0xff]  ;;  %v25262_v56 = vld [vmem:[#allocation65_spill] sm:$0xff]  ;;  %v11496_v46 = vsel %vm22199_vm4, %v25237_v60, %v22181_v55 }
 0xa1b   : > { %11620 = vst [vmem:[%s22222_s14 + $0x10] sm:$0xff] %v11556_v45  ;;  %v11303_v32 = vsub.f32 %v11239_v7, %v11117_v36  ;;  %17193 = vlog2.f32 %v10999_v48  ;;  %v11410_v33 = vmul.f32 1.442695, %v25261_v22  ;;  %v11416_v18 = vmul.f32 1.442695, %v25262_v56 }
 0xa1c   : > { %v17176_v12 = vpop.eup %17175  ;;  %17195 = vpow2.f32 %v11412_v21  ;;  %v11302_v3 = vsub.f32 %v11238_v31, %v11115_v10  ;;  %v11242_v60 = vsub.f32 %v25239_v37, %v21928_v16  ;;  %v11499_v50 = vsel %vm22199_vm4, %v25238_v54, %v22184_v27 }
 0xa1d   : > { %v17178_v41 = vpop.eup %17177  ;;  %v11559_v14 = vsel %vm10590_vm1, %v11303_v32, %v11495_v28  ;;  %v11121_v7 = vmul.f32 0.6931472, %v17176_v12  ;;  %v11005_v36 = vpop.xlane.xlu1 %11004  ;;  %v25263_v32 = vld [vmem:[#allocation60_spill] sm:$0xff]  ;;  %v11498_v16 = vsel %vm22199_vm4, %v25239_v37, %v22188_v15  ;;  %v11245_v27 = vsub.f32 %v25240_v0, %v21940_v38 }
 0xa1e   : > { %v22279_v45 = vpop.eup %17179  ;;  %11623 = vst [vmem:[%s22222_s14 + $0x28] sm:$0xff] %v11559_v14  ;;  %v11558_v11 = vsel %vm10590_vm1, %v11302_v3, %v11494_v51  ;;  %v11119_v21 = vmul.f32 0.6931472, %v17178_v41  ;;  %17197 = vlog2.f32 %v11005_v36  ;;  %v11003_v31 = vpop.xlane.xlu0 %11002  ;;  %v11414_v12 = vmul.f32 1.442695, %v25263_v32 }
 0xa1f   : > { %v22286_v10 = vpop.eup %17181  ;;  %11622 = vst [vmem:[%s22222_s14 + $0x20] sm:$0xff] %v11558_v11  ;;  %v11305_v48 = vsub.f32 %v11241_v8, %v11121_v7  ;;  %17199 = vlog2.f32 %v11003_v31  ;;  %v25264_v11 = vld [vmem:[#allocation72_spill] sm:$0xff]  ;;  %v11244_v15 = vsub.f32 %v25241_v34, %v21936_v13  ;;  %v11501_v38 = vsel %vm22199_vm4, %v25240_v0, %v22192_v24 }
 0xa20   : > { %v17184_v28 = vpop.eup %17183  ;;  %17201 = vpow2.f32 %v11410_v33  ;;  %v11304_v51 = vsub.f32 %v11240_v9, %v11119_v21  ;;  %v11420_v21 = vmul.f32 1.442695, %v25264_v11  ;;  %v11500_v13 = vsel %vm22199_vm4, %v25241_v34, %v22197_v17 }
 0xa21   : > { %v17186_v3 = vpop.eup %17185  ;;  %17203 = vpow2.f32 %v11416_v18  ;;  %v11561_v23 = vsel %vm10590_vm1, %v11305_v48, %v11497_v52  ;;  %v11125_v41 = vmul.f32 0.6931472, %v17184_v28  ;;  %v11009_v8 = vpop.xlane.xlu1 %11008  ;;  %v25265_v48 = vld [vmem:[#allocation8_spill] sm:$0xff]  ;;  %v11247_v0 = vsub.f32 %v25242_v29, %v21948_v47 }
 0xa22   : > { %v22302_v14 = vpop.eup %17187  ;;  %11625 = vst [vmem:[%s22222_s14 + $0x38] sm:$0xff] %v11561_v23  ;;  %v11560_v55 = vsel %vm10590_vm1, %v11304_v51, %v11496_v46  ;;  %v11123_v33 = vmul.f32 0.6931472, %v17186_v3  ;;  %17205 = vlog2.f32 %v11009_v8  ;;  %v11007_v18 = vpop.xlane.xlu0 %11006  ;;  %v11418_v28 = vmul.f32 1.442695, %v25265_v48  ;;  %v25266_v8 = vld [vmem:[#allocation12_spill] sm:$0xff] }
 0xa23   : > { %v22309_v7 = vpop.eup %17189  ;;  %11624 = vst [vmem:[%s22222_s14 + $0x30] sm:$0xff] %v11560_v55  ;;  %v11307_v36 = vsub.f32 %v11243_v58, %v11125_v41  ;;  %17207 = vlog2.f32 %v11007_v18  ;;  %v11246_v34 = vsub.f32 %v25243_v20, %v21944_v39  ;;  %v11503_v47 = vsel %vm22199_vm4, %v25242_v29, %v22205_v61 }
 0xa24   : > { %v17192_v9 = vpop.eup %17191  ;;  %17209 = vpow2.f32 %v11414_v12  ;;  %v11306_v31 = vsub.f32 %v11242_v60, %v11123_v33  ;;  %v11424_v60 = vmul.f32 1.442695, %v25266_v8  ;;  %v11502_v39 = vsel %vm22199_vm4, %v25243_v20, %v22207_v4 }
 0xa25   : > { %v17194_v52 = vpop.eup %17193  ;;  %v11563_v54 = vsel %vm10590_vm1, %v11307_v36, %v11499_v50  ;;  %v11129_v46 = vmul.f32 0.6931472, %v17192_v9  ;;  %v11013_v51 = vpop.xlane.xlu1 %11012  ;;  %v11249_v61 = vsub.f32 %v25244_v40, %v21956_v63  ;;  %v11248_v20 = vsub.f32 %v25245_v43, %v21952_v19 }
 0xa26   : > { %v22326_v3 = vpop.eup %17195  ;;  %11627 = vst [vmem:[%s22222_s14 + $0x48] sm:$0xff] %v11563_v54  ;;  %v11562_v37 = vsel %vm10590_vm1, %v11306_v31, %v11498_v16  ;;  %v11127_v12 = vmul.f32 0.6931472, %v17194_v52  ;;  %17211 = vlog2.f32 %v11013_v51  ;;  %v11011_v58 = vpop.xlane.xlu0 %11010  ;;  %v25268_v51 = vld [vmem:[#allocation49_spill] sm:$0xff]  ;;  %v11505_v63 = vsel %vm22199_vm4, %v25244_v40, %v22218_v5 }
 0xa27   : > { %11626 = vst [vmem:[%s22222_s14 + $0x40] sm:$0xff] %v11562_v37  ;;  %v11309_v23 = vsub.f32 %v11245_v27, %v11129_v46  ;;  %17213 = vlog2.f32 %v11011_v58  ;;  %v11504_v19 = vsel %vm22199_vm4, %v25245_v43, %v22225_v42  ;;  %v11251_v40 = vsub.f32 %v25246_v6, %v21964_v62 }
 0xa28   : > { %v17198_v41 = vpop.eup %17197  ;;  %17215 = vpow2.f32 %v11420_v21  ;;  %v11308_v55 = vsub.f32 %v11244_v15, %v11127_v12  ;;  %v11428_v15 = vmul.f32 1.442695, %v25268_v51  ;;  %v11250_v43 = vsub.f32 %v25247_v49, %v21960_v44 }
 0xa29   : > { %v17200_v33 = vpop.eup %17199  ;;  %17217 = vpow2.f32 %v11418_v28  ;;  %v11565_v24 = vsel %vm10590_vm1, %v11309_v23, %v11501_v38  ;;  %v11133_v18 = vmul.f32 0.6931472, %v17198_v41  ;;  %v11017_v50 = vpop.xlane.xlu1 %11016  ;;  %v25267_v28 = vld [vmem:[#allocation48_spill] sm:$0xff]  ;;  %v11507_v62 = vsel %vm22199_vm4, %v25246_v6, %v22227_v57  ;;  %v25273_v6 = vld [vmem:[#allocation101_spill] sm:$0xff] }
 0xa2a   : > { %v22347_v36 = vpop.eup %17201  ;;  %11629 = vst [vmem:[%s22222_s14 + $0x58] sm:$0xff] %v11565_v24  ;;  %v11564_v17 = vsel %vm10590_vm1, %v11308_v55, %v11500_v13  ;;  %v11131_v9 = vmul.f32 0.6931472, %v17200_v33  ;;  %17219 = vlog2.f32 %v11017_v50  ;;  %v11015_v16 = vpop.xlane.xlu0 %11014  ;;  %v11422_v27 = vmul.f32 1.442695, %v25267_v28 }
 0xa2b   : > { %v22354_v21 = vpop.eup %17203  ;;  %11628 = vst [vmem:[%s22222_s14 + $0x50] sm:$0xff] %v11564_v17  ;;  %v11311_v31 = vsub.f32 %v11247_v0, %v11133_v18  ;;  %17221 = vlog2.f32 %v11015_v16  ;;  %v11506_v44 = vsel %vm22199_vm4, %v25247_v49, %v22241_v1  ;;  %v25275_v49 = vld [vmem:[#allocation103_spill] sm:$0xff] }
 0xa2c   : > { %v17206_v52 = vpop.eup %17205  ;;  %17223 = vpow2.f32 %v11424_v60  ;;  %v11310_v54 = vsub.f32 %v11246_v34, %v11131_v9  ;;  %v25269_v60 = vld [vmem:[#allocation15_spill] sm:$0xff] }
 0xa2d   : > { %v17208_v46 = vpop.eup %17207  ;;  %v11567_v29 = vsel %vm10590_vm1, %v11311_v31, %v11503_v47  ;;  %v11137_v37 = vmul.f32 0.6931472, %v17206_v52  ;;  %v11021_v12 = vpop.xlane.xlu1 %11020  ;;  %v11426_v55 = vmul.f32 1.442695, %v25269_v60  ;;  %v25270_v31 = vld [vmem:[#allocation34_spill] sm:$0xff] }
 0xa2e   : > { %v22371_v58 = vpop.eup %17209  ;;  %11631 = vst [vmem:[%s22222_s14 + $0x68] sm:$0xff] %v11567_v29  ;;  %v11566_v4 = vsel %vm10590_vm1, %v11310_v54, %v11502_v39  ;;  %v11135_v38 = vmul.f32 0.6931472, %v17208_v46  ;;  %17225 = vlog2.f32 %v11021_v12  ;;  %v11019_v23 = vpop.xlane.xlu0 %11018  ;;  %v11432_v52 = vmul.f32 1.442695, %v25270_v31  ;;  %v25271_v54 = vld [vmem:[#allocation90_spill] sm:$0xff] }
 0xa2f   : > { %11630 = vst [vmem:[%s22222_s14 + $0x60] sm:$0xff] %v11566_v4  ;;  %v11313_v41 = vsub.f32 %v11249_v61, %v11137_v37  ;;  %17227 = vlog2.f32 %v11019_v23  ;;  %v11430_v46 = vmul.f32 1.442695, %v25271_v54 }
 0xa30   : > { %v17212_v13 = vpop.eup %17211  ;;  %17229 = vpow2.f32 %v11422_v27  ;;  %v11312_v33 = vsub.f32 %v11248_v20, %v11135_v38  ;;  %v25274_v20 = vld [vmem:[#allocation17_spill] sm:$0xff] }
 0xa31   : > { %v17214_v0 = vpop.eup %17213  ;;  %17231 = vpow2.f32 %v11428_v15  ;;  %v11569_v5 = vsel %vm10590_vm1, %v11313_v41, %v11505_v63  ;;  %v11141_v24 = vmul.f32 0.6931472, %v17212_v13  ;;  %v11025_v18 = vpop.xlane.xlu1 %11024  ;;  %v25272_v15 = vld [vmem:[#allocation76_spill] sm:$0xff]  ;;  %v11252_v1 = vsub.f32 %v25275_v49, %v25274_v20 }
 0xa32   : > { %v22392_v50 = vpop.eup %17215  ;;  %11633 = vst [vmem:[%s22222_s14 + $0x78] sm:$0xff] %v11569_v5  ;;  %v11568_v42 = vsel %vm10590_vm1, %v11312_v33, %v11504_v19  ;;  %v11139_v34 = vmul.f32 0.6931472, %v17214_v0  ;;  %17233 = vlog2.f32 %v11025_v18  ;;  %v11023_v17 = vpop.xlane.xlu0 %11022  ;;  %v11253_v57 = vsub.f32 %v25273_v6, %v25272_v15  ;;  %v25277_v5 = vld [vmem:[#allocation18_spill] sm:$0xff] }
 0xa33   : > { %v22399_v9 = vpop.eup %17217  ;;  %11632 = vst [vmem:[%s22222_s14 + $0x70] sm:$0xff] %v11568_v42  ;;  %v11315_v16 = vsub.f32 %v11251_v40, %v11141_v24  ;;  %17235 = vlog2.f32 %v11023_v17  ;;  %v11509_v63 = vsel %vm22199_vm4, %v25273_v6, %v22248_v59  ;;  %v11508_v19 = vsel %vm22199_vm4, %v25275_v49, %v22258_v2  ;;  %v25278_v24 = vld [vmem:[#allocation109_spill] sm:$0xff]  ;;  %v25279_v17 = vld [vmem:[#allocation115_spill] sm:$0xff]  ;;  %v25281_v6 = vld [vmem:[#allocation108_spill] sm:$0xff] }
 0xa34   : > { %v17220_v47 = vpop.eup %17219  ;;  %17237 = vpow2.f32 %v11426_v55  ;;  %v11314_v39 = vsub.f32 %v11250_v43, %v11139_v34  ;;  %v25276_v55 = vld [vmem:[#allocation102_spill] sm:$0xff]  ;;  %v11255_v59 = vsub.f32 %v25278_v24, %v25277_v5  ;;  %v25283_v49 = vld [vmem:[#allocation83_spill] sm:$0xff]  ;;  %v11512_v5 = vsel %vm22199_vm4, %v25257_v53, %v22309_v7 }
 0xa35   : > { %v17222_v27 = vpop.eup %17221  ;;  %v11571_v61 = vsel %vm10590_vm1, %v11315_v16, %v11507_v62  ;;  %v11145_v29 = vmul.f32 0.6931472, %v17220_v47  ;;  %v11029_v37 = vpop.xlane.xlu1 %11028  ;;  %v11436_v33 = vmul.f32 1.442695, %v25276_v55  ;;  %v25280_v62 = vld [vmem:[#allocation111_spill] sm:$0xff] }
 0xa36   : > { %v22416_v12 = vpop.eup %17223  ;;  %11635 = vst [vmem:[%s22222_s14 + $0x88] sm:$0xff] %v11571_v61  ;;  %v11570_v4 = vsel %vm10590_vm1, %v11314_v39, %v11506_v44  ;;  %v11143_v38 = vmul.f32 0.6931472, %v17222_v27  ;;  %17239 = vlog2.f32 %v11029_v37  ;;  %v11027_v23 = vpop.xlane.xlu0 %11026  ;;  %v11254_v2 = vsub.f32 %v25280_v62, %v25279_v17  ;;  %v25282_v37 = vld [vmem:[#allocation110_spill] sm:$0xff] }
 0xa37   : > { %11634 = vst [vmem:[%s22222_s14 + $0x80] sm:$0xff] %v11570_v4  ;;  %v11317_v41 = vsub.f32 %v11253_v57, %v11145_v29  ;;  %17241 = vlog2.f32 %v11027_v23  ;;  %v11511_v39 = vsel %vm22199_vm4, %v25278_v24, %v22279_v45  ;;  %v11510_v15 = vsel %vm22199_vm4, %v25280_v62, %v22286_v10  ;;  %v25285_v24 = vld [vmem:[#allocation116_spill] sm:$0xff] }
 0xa38   : > { %v17226_v13 = vpop.eup %17225  ;;  %17243 = vpow2.f32 %v11432_v52  ;;  %v11316_v0 = vsub.f32 %v11252_v1, %v11143_v38  ;;  %v11434_v57 = vmul.f32 1.442695, %v25281_v6  ;;  %v11440_v20 = vmul.f32 1.442695, %v25282_v37 }
 0xa39   : > { %v17228_v40 = vpop.eup %17227  ;;  %17245 = vpow2.f32 %v11430_v46  ;;  %v11573_v18 = vsel %vm10590_vm1, %v11317_v41, %v11509_v63  ;;  %v11149_v43 = vmul.f32 0.6931472, %v17226_v13  ;;  %v11033_v42 = vpop.xlane.xlu1 %11032  ;;  %v11257_v45 = vsub.f32 %v25256_v25, %v25283_v49  ;;  %v25284_v63 = vld [vmem:[#allocation99_spill] sm:$0xff] }
 0xa3a   : > { %v22437_v34 = vpop.eup %17229  ;;  %11637 = vst [vmem:[%s22222_s14 + $0x98] sm:$0xff] %v11573_v18  ;;  %v11572_v16 = vsel %vm10590_vm1, %v11316_v0, %v11508_v19  ;;  %v11147_v47 = vmul.f32 0.6931472, %v17228_v40  ;;  %17247 = vlog2.f32 %v11033_v42  ;;  %v11031_v44 = vpop.xlane.xlu0 %11030  ;;  %v11256_v10 = vsub.f32 %v25257_v53, %v25284_v63  ;;  %v25286_v42 = vld [vmem:[#allocation131_spill] sm:$0xff] }
 0xa3b   : > { %v22444_v52 = vpop.eup %17231  ;;  %11636 = vst [vmem:[%s22222_s14 + $0x90] sm:$0xff] %v11572_v16  ;;  %v11319_v27 = vsub.f32 %v11255_v59, %v11149_v43  ;;  %17249 = vlog2.f32 %v11031_v44  ;;  %v11438_v59 = vmul.f32 1.442695, %v25285_v24  ;;  %v25287_v16 = vld [vmem:[#allocation21_spill] sm:$0xff] }
 0xa3c   : > { %v17234_v46 = vpop.eup %17233  ;;  %17251 = vpow2.f32 %v11436_v33  ;;  %v11318_v61 = vsub.f32 %v11254_v2, %v11147_v47  ;;  %v11513_v33 = vsel %vm22199_vm4, %v25256_v25, %v22302_v14  ;;  %v11259_v25 = vsub.f32 %v25258_v30, %v25286_v42 }
 0xa3d   : > { %v17236_v29 = vpop.eup %17235  ;;  %v11575_v1 = vsel %vm10590_vm1, %v11319_v27, %v11511_v39  ;;  %v11153_v4 = vmul.f32 0.6931472, %v17234_v46  ;;  %v11037_v38 = vpop.xlane.xlu1 %11036  ;;  %v11258_v53 = vsub.f32 %v25261_v22, %v25287_v16  ;;  %v11515_v27 = vsel %vm22199_vm4, %v25258_v30, %v22326_v3  ;;  %v25294_v16 = vld [vmem:[#allocation89_spill] sm:$0xff] }
 0xa3e   : > { %v22461_v23 = vpop.eup %17237  ;;  %11639 = vst [vmem:[%s22222_s14 + $0xa8] sm:$0xff] %v11575_v1  ;;  %v11574_v41 = vsel %vm10590_vm1, %v11318_v61, %v11510_v15  ;;  %v11151_v13 = vmul.f32 0.6931472, %v17236_v29  ;;  %17253 = vlog2.f32 %v11037_v38  ;;  %v11035_v19 = vpop.xlane.xlu0 %11034  ;;  %v25288_v61 = vld [vmem:[#allocation24_spill] sm:$0xff] }
 0xa3f   : > { %11638 = vst [vmem:[%s22222_s14 + $0xa0] sm:$0xff] %v11574_v41  ;;  %v11321_v0 = vsub.f32 %v11257_v45, %v11153_v4  ;;  %17255 = vlog2.f32 %v11035_v19  ;;  %v11444_v29 = vmul.f32 1.442695, %v25288_v61  ;;  %v25289_v45 = vld [vmem:[#allocation129_spill] sm:$0xff]  ;;  %v25290_v4 = vld [vmem:[#allocation23_spill] sm:$0xff] }
 0xa40   : > { %v17240_v40 = vpop.eup %17239  ;;  %17257 = vpow2.f32 %v11434_v57  ;;  %v11320_v18 = vsub.f32 %v11256_v10, %v11151_v13  ;;  %v11514_v57 = vsel %vm22199_vm4, %v25261_v22, %v22347_v36  ;;  %v11442_v1 = vmul.f32 1.442695, %v25289_v45  ;;  %v25291_v41 = vld [vmem:[#allocation91_spill] sm:$0xff] }
 0xa41   : > { %v17242_v43 = vpop.eup %17241  ;;  %17259 = vpow2.f32 %v11440_v20  ;;  %v11577_v14 = vsel %vm10590_vm1, %v11321_v0, %v11513_v33  ;;  %v11157_v17 = vmul.f32 0.6931472, %v17240_v40  ;;  %v11041_v62 = vpop.xlane.xlu1 %11040  ;;  %v11261_v30 = vsub.f32 %v25262_v56, %v25290_v4 }
 0xa42   : > { %v22482_v2 = vpop.eup %17243  ;;  %11641 = vst [vmem:[%s22222_s14 + $0xb8] sm:$0xff] %v11577_v14  ;;  %v11576_v7 = vsel %vm10590_vm1, %v11320_v18, %v11512_v5  ;;  %v11155_v47 = vmul.f32 0.6931472, %v17242_v43  ;;  %17261 = vlog2.f32 %v11041_v62  ;;  %v11039_v44 = vpop.xlane.xlu0 %11038  ;;  %v11260_v22 = vsub.f32 %v25263_v32, %v25291_v41  ;;  %v25298_v41 = vld [vmem:[#allocation97_spill] sm:$0xff] }
 0xa43   : > { %v22489_v39 = vpop.eup %17245  ;;  %11640 = vst [vmem:[%s22222_s14 + $0xb0] sm:$0xff] %v11576_v7  ;;  %v11323_v46 = vsub.f32 %v11259_v25, %v11157_v17  ;;  %17263 = vlog2.f32 %v11039_v44  ;;  %v11517_v33 = vsel %vm22199_vm4, %v25262_v56, %v22354_v21  ;;  %v11516_v5 = vsel %vm22199_vm4, %v25263_v32, %v22371_v58  ;;  %v25293_v25 = vld [vmem:[#allocation36_spill] sm:$0xff] }
 0xa44   : > { %v17248_v15 = vpop.eup %17247  ;;  %17265 = vpow2.f32 %v11438_v59  ;;  %v11322_v20 = vsub.f32 %v11258_v53, %v11155_v47  ;;  %v25292_v59 = vld [vmem:[#allocation56_spill] sm:$0xff]  ;;  %v11263_v56 = vsub.f32 %v25264_v11, %v25293_v25  ;;  %v11262_v32 = vsub.f32 %v25265_v48, %v25294_v16 }
 0xa45   : > { %v17250_v49 = vpop.eup %17249  ;;  %v11579_v3 = vsel %vm10590_vm1, %v11323_v46, %v11515_v27  ;;  %v11161_v38 = vmul.f32 0.6931472, %v17248_v15  ;;  %v11045_v63 = vpop.xlane.xlu1 %11044  ;;  %v11448_v18 = vmul.f32 1.442695, %v25292_v59  ;;  %v11519_v44 = vsel %vm22199_vm4, %v25264_v11, %v22392_v50 }
 0xa46   : > { %v22506_v10 = vpop.eup %17251  ;;  %11643 = vst [vmem:[%s22222_s14 + $0xc8] sm:$0xff] %v11579_v3  ;;  %v11578_v36 = vsel %vm10590_vm1, %v11322_v20, %v11514_v57  ;;  %v11159_v13 = vmul.f32 0.6931472, %v17250_v49  ;;  %17267 = vlog2.f32 %v11045_v63  ;;  %v11043_v19 = vpop.xlane.xlu0 %11042  ;;  %v11518_v15 = vsel %vm22199_vm4, %v25265_v48, %v22399_v9  ;;  %v25295_v57 = vld [vmem:[#allocation19_spill] sm:$0xff] }
 0xa47   : > { %11642 = vst [vmem:[%s22222_s14 + $0xc0] sm:$0xff] %v11578_v36  ;;  %v11325_v0 = vsub.f32 %v11261_v30, %v11161_v38  ;;  %17269 = vlog2.f32 %v11043_v19  ;;  %v25297_v30 = vld [vmem:[#allocation107_spill] sm:$0xff]  ;;  %v11264_v48 = vsub.f32 %v25267_v28, %v25298_v41 }
 0xa48   : > { %v17254_v40 = vpop.eup %17253  ;;  %17271 = vpow2.f32 %v11444_v29  ;;  %v11324_v43 = vsub.f32 %v11260_v22, %v11159_v13  ;;  %v11446_v29 = vmul.f32 1.442695, %v25295_v57  ;;  %v11265_v11 = vsub.f32 %v25266_v8, %v25297_v30 }
 0xa49   : > { %v17256_v42 = vpop.eup %17255  ;;  %17273 = vpow2.f32 %v11442_v1  ;;  %v11581_v21 = vsel %vm10590_vm1, %v11325_v0, %v11517_v33  ;;  %v11165_v14 = vmul.f32 0.6931472, %v17254_v40  ;;  %v11049_v17 = vpop.xlane.xlu1 %11048  ;;  %v25296_v1 = vld [vmem:[#allocation39_spill] sm:$0xff]  ;;  %v11521_v13 = vsel %vm22199_vm4, %v25266_v8, %v22416_v12  ;;  %v25299_v40 = vld [vmem:[#allocation28_spill] sm:$0xff] }
 0xa4a   : > { %v22527_v62 = vpop.eup %17257  ;;  %11645 = vst [vmem:[%s22222_s14 + $0xd8] sm:$0xff] %v11581_v21  ;;  %v11580_v58 = vsel %vm10590_vm1, %v11324_v43, %v11516_v5  ;;  %v11163_v53 = vmul.f32 0.6931472, %v17256_v42  ;;  %17275 = vlog2.f32 %v11049_v17  ;;  %v11047_v7 = vpop.xlane.xlu0 %11046  ;;  %v11452_v4 = vmul.f32 1.442695, %v25296_v1  ;;  %v25300_v42 = vld [vmem:[#allocation123_spill] sm:$0xff] }
 0xa4b   : > { %v22534_v47 = vpop.eup %17259  ;;  %11644 = vst [vmem:[%s22222_s14 + $0xd0] sm:$0xff] %v11580_v58  ;;  %v11327_v27 = vsub.f32 %v11263_v56, %v11165_v14  ;;  %17277 = vlog2.f32 %v11047_v7  ;;  %v11520_v0 = vsel %vm22199_vm4, %v25267_v28, %v22437_v34  ;;  %v11450_v5 = vmul.f32 1.442695, %v25299_v40  ;;  %v25301_v14 = vld [vmem:[#allocation105_spill] sm:$0xff] }
 0xa4c   : > { %v17262_v46 = vpop.eup %17261  ;;  %17279 = vpow2.f32 %v11448_v18  ;;  %v11326_v20 = vsub.f32 %v11262_v32, %v11163_v53  ;;  %v11267_v8 = vsub.f32 %v25268_v51, %v25300_v42  ;;  %v11266_v28 = vsub.f32 %v25269_v60, %v25301_v14 }
 0xa4d   : > { %v17264_v49 = vpop.eup %17263  ;;  %v11583_v50 = vsel %vm10590_vm1, %v11327_v27, %v11519_v44  ;;  %v11169_v3 = vmul.f32 0.6931472, %v17262_v46  ;;  %v11053_v38 = vpop.xlane.xlu1 %11052  ;;  %v11523_v58 = vsel %vm22199_vm4, %v25268_v51, %v22444_v52  ;;  %v11522_v44 = vsel %vm22199_vm4, %v25269_v60, %v22461_v23  ;;  %v25302_v27 = vld [vmem:[#allocation55_spill] sm:$0xff] }
 0xa4e   : > { %v22551_v63 = vpop.eup %17265  ;;  %11647 = vst [vmem:[%s22222_s14 + $0xe8] sm:$0xff] %v11583_v50  ;;  %v11582_v9 = vsel %vm10590_vm1, %v11326_v20, %v11518_v15  ;;  %v11167_v22 = vmul.f32 0.6931472, %v17264_v49  ;;  %17281 = vlog2.f32 %v11053_v38  ;;  %v11051_v36 = vpop.xlane.xlu0 %11050  ;;  %v11456_v46 = vmul.f32 1.442695, %v25302_v27  ;;  %v25303_v20 = vld [vmem:[#allocation30_spill] sm:$0xff] }
 0xa4f   : > { %11646 = vst [vmem:[%s22222_s14 + $0xe0] sm:$0xff] %v11582_v9  ;;  %v11329_v19 = vsub.f32 %v11265_v11, %v11169_v3  ;;  %17283 = vlog2.f32 %v11051_v36  ;;  %v11454_v49 = vmul.f32 1.442695, %v25303_v20  ;;  %v25305_v3 = vld [vmem:[#allocation113_spill] sm:$0xff]  ;;  %v11524_v36 = vsel %vm22199_vm4, %v25271_v54, %v22489_v39 }
 0xa50   : > { %v17268_v33 = vpop.eup %17267  ;;  %17285 = vpow2.f32 %v11446_v29  ;;  %v11328_v18 = vsub.f32 %v11264_v48, %v11167_v22  ;;  %v11268_v60 = vsub.f32 %v25271_v54, %v25305_v3  ;;  %v11525_v48 = vsel %vm22199_vm4, %v25270_v31, %v22482_v2 }
 0xa51   : > { %v17270_v43 = vpop.eup %17269  ;;  %17287 = vpow2.f32 %v11452_v4  ;;  %v11585_v12 = vsel %vm10590_vm1, %v11329_v19, %v11521_v13  ;;  %v11173_v25 = vmul.f32 0.6931472, %v17268_v33  ;;  %v11057_v56 = vpop.xlane.xlu1 %11056  ;;  %v25304_v4 = vld [vmem:[#allocation132_spill] sm:$0xff]  ;;  %v25306_v13 = vld [vmem:[#allocation70_spill] sm:$0xff]  ;;  %v11527_v14 = vsel %vm22199_vm4, %v25276_v55, %v22506_v10 }
 0xa52   : > { %v22572_v21 = vpop.eup %17271  ;;  %11649 = vst [vmem:[%s22222_s14 + $0xf8] sm:$0xff] %v11585_v12  ;;  %v11584_v34 = vsel %vm10590_vm1, %v11328_v18, %v11520_v0  ;;  %v11171_v17 = vmul.f32 0.6931472, %v17270_v43  ;;  %17289 = vlog2.f32 %v11057_v56  ;;  %v11055_v16 = vpop.xlane.xlu0 %11054  ;;  %v11269_v51 = vsub.f32 %v25270_v31, %v25304_v4 }
 0xa53   : > { %v22579_v32 = vpop.eup %17273  ;;  %11648 = vst [vmem:[%s22222_s14 + $0xf0] sm:$0xff] %v11584_v34  ;;  %v11331_v53 = vsub.f32 %v11267_v8, %v11173_v25  ;;  %17291 = vlog2.f32 %v11055_v16  ;;  %v11460_v19 = vmul.f32 1.442695, %v25306_v13  ;;  %v25308_v8 = vld [vmem:[#allocation127_spill] sm:$0xff]  ;;  %v25309_v16 = vld [vmem:[#allocation44_spill] sm:$0xff] }
 0xa54   : > { %v17276_v7 = vpop.eup %17275  ;;  %17293 = vpow2.f32 %v11450_v5  ;;  %v11330_v15 = vsub.f32 %v11266_v28, %v11171_v17  ;;  %v25307_v5 = vld [vmem:[#allocation139_spill] sm:$0xff]  ;;  %v11270_v54 = vsub.f32 %v25281_v6, %v25308_v8  ;;  %v11526_v17 = vsel %vm22199_vm4, %v25281_v6, %v22527_v62 }
 0xa55   : > { %v17278_v29 = vpop.eup %17277  ;;  %v11587_v52 = vsel %vm10590_vm1, %v11331_v53, %v11523_v58  ;;  %v11177_v30 = vmul.f32 0.6931472, %v17276_v7  ;;  %v11061_v11 = vpop.xlane.xlu1 %11060  ;;  %v11271_v31 = vsub.f32 %v25276_v55, %v25307_v5  ;;  %v11458_v58 = vmul.f32 1.442695, %v25309_v16 }
 0xa56   : > { %v22596_v50 = vpop.eup %17279  ;;  %11651 = vst [vmem:[%s22222_s14 + $0x108] sm:$0xff] %v11587_v52  ;;  %v11586_v23 = vsel %vm10590_vm1, %v11330_v15, %v11522_v44  ;;  %v11175_v38 = vmul.f32 0.6931472, %v17278_v29  ;;  %17295 = vlog2.f32 %v11061_v11  ;;  %v11059_v41 = vpop.xlane.xlu0 %11058  ;;  %v25310_v44 = vld [vmem:[#allocation80_spill] sm:$0xff]  ;;  %v25311_v15 = vld [vmem:[#allocation43_spill] sm:$0xff]  ;;  %v11529_v11 = vsel %vm22199_vm4, %v25282_v37, %v22534_v47 }
 0xa57   : > { %11650 = vst [vmem:[%s22222_s14 + $0x100] sm:$0xff] %v11586_v23  ;;  %v11333_v9 = vsub.f32 %v11269_v51, %v11177_v30  ;;  %17297 = vlog2.f32 %v11059_v41  ;;  %v11273_v55 = vsub.f32 %v25282_v37, %v25311_v15  ;;  %v25312_v51 = vld [vmem:[#allocation140_spill] sm:$0xff]  ;;  %v11528_v23 = vsel %vm22199_vm4, %v25285_v24, %v22551_v63 }
 0xa58   : > { %v17282_v22 = vpop.eup %17281  ;;  %17299 = vpow2.f32 %v11456_v46  ;;  %v11332_v33 = vsub.f32 %v11268_v60, %v11175_v38  ;;  %v11464_v46 = vmul.f32 1.442695, %v25310_v44  ;;  %v11272_v6 = vsub.f32 %v25285_v24, %v25312_v51  ;;  %v25313_v38 = vld [vmem:[#allocation61_spill] sm:$0xff] }
 0xa59   : > { %v17284_v0 = vpop.eup %17283  ;;  %17301 = vpow2.f32 %v11454_v49  ;;  %v11589_v2 = vsel %vm10590_vm1, %v11333_v9, %v11525_v48  ;;  %v11181_v18 = vmul.f32 0.6931472, %v17282_v22  ;;  %v11065_v43 = vpop.xlane.xlu1 %11064  ;;  %v11462_v41 = vmul.f32 1.442695, %v25313_v38  ;;  %v25314_v22 = vld [vmem:[#allocation7_spill] sm:$0xff] }
 0xa5a   : > { %v22617_v42 = vpop.eup %17285  ;;  %11653 = vst [vmem:[%s22222_s14 + $0x118] sm:$0xff] %v11589_v2  ;;  %v11588_v39 = vsel %vm10590_vm1, %v11332_v33, %v11524_v36  ;;  %v11179_v12 = vmul.f32 0.6931472, %v17284_v0  ;;  %17303 = vlog2.f32 %v11065_v43  ;;  %v11063_v25 = vpop.xlane.xlu0 %11062  ;;  %v11275_v37 = vsub.f32 %v25288_v61, %v25314_v22  ;;  %v25315_v0 = vld [vmem:[#allocation84_spill] sm:$0xff] }
 0xa5b   : > { %v22624_v56 = vpop.eup %17287  ;;  %11652 = vst [vmem:[%s22222_s14 + $0x110] sm:$0xff] %v11588_v39  ;;  %v11335_v28 = vsub.f32 %v11271_v31, %v11181_v18  ;;  %17305 = vlog2.f32 %v11063_v25  ;;  %v11274_v24 = vsub.f32 %v25289_v45, %v25315_v0  ;;  %v11531_v18 = vsel %vm22199_vm4, %v25288_v61, %v22572_v21  ;;  %v25316_v39 = vld [vmem:[#allocation88_spill] sm:$0xff]  ;;  %v25323_v0 = vld [vmem:[#allocation81_spill] sm:$0xff] }
 0xa5c   : > { %v17290_v34 = vpop.eup %17289  ;;  %17307 = vpow2.f32 %v11460_v19  ;;  %v11334_v53 = vsub.f32 %v11270_v54, %v11179_v12  ;;  %v11530_v54 = vsel %vm22199_vm4, %v25289_v45, %v22579_v32  ;;  %v11468_v12 = vmul.f32 1.442695, %v25316_v39 }
 0xa5d   : > { %v17292_v7 = vpop.eup %17291  ;;  %v11591_v10 = vsel %vm10590_vm1, %v11335_v28, %v11527_v14  ;;  %v11185_v29 = vmul.f32 0.6931472, %v17290_v34  ;;  %v11069_v49 = vpop.xlane.xlu1 %11068  ;;  %v25317_v28 = vld [vmem:[#allocation73_spill] sm:$0xff]  ;;  %v11532_v51 = vsel %vm22199_vm4, %v25295_v57, %v22617_v42 }
 0xa5e   : > { %v22641_v4 = vpop.eup %17293  ;;  %11655 = vst [vmem:[%s22222_s14 + $0x128] sm:$0xff] %v11591_v10  ;;  %v11590_v62 = vsel %vm10590_vm1, %v11334_v53, %v11526_v17  ;;  %v11183_v52 = vmul.f32 0.6931472, %v17292_v7  ;;  %17309 = vlog2.f32 %v11069_v49  ;;  %v11067_v30 = vpop.xlane.xlu0 %11066  ;;  %v11466_v34 = vmul.f32 1.442695, %v25317_v28  ;;  %v25318_v17 = vld [vmem:[#allocation16_spill] sm:$0xff] }
 0xa5f   : > { %11654 = vst [vmem:[%s22222_s14 + $0x120] sm:$0xff] %v11590_v62  ;;  %v11337_v3 = vsub.f32 %v11273_v55, %v11185_v29  ;;  %17311 = vlog2.f32 %v11067_v30  ;;  %v11277_v61 = vsub.f32 %v25292_v59, %v25318_v17  ;;  %v11533_v10 = vsel %vm22199_vm4, %v25292_v59, %v22596_v50 }
 0xa60   : > { %v17296_v60 = vpop.eup %17295  ;;  %17313 = vpow2.f32 %v11458_v58  ;;  %v11336_v48 = vsub.f32 %v11272_v6, %v11183_v52  ;;  %v25320_v6 = vld [vmem:[#allocation96_spill] sm:$0xff] }
 0xa61   : > { %v17298_v9 = vpop.eup %17297  ;;  %17315 = vpow2.f32 %v11464_v46  ;;  %v11593_v47 = vsel %vm10590_vm1, %v11337_v3, %v11529_v11  ;;  %v11189_v36 = vmul.f32 0.6931472, %v17296_v60  ;;  %v11073_v19 = vpop.xlane.xlu1 %11072  ;;  %v25319_v46 = vld [vmem:[#allocation46_spill] sm:$0xff]  ;;  %v11472_v62 = vmul.f32 1.442695, %v25320_v6  ;;  %v25321_v11 = vld [vmem:[#allocation53_spill] sm:$0xff] }
 0xa62   : > { %v22662_v33 = vpop.eup %17299  ;;  %11657 = vst [vmem:[%s22222_s14 + $0x138] sm:$0xff] %v11593_v47  ;;  %v11592_v63 = vsel %vm10590_vm1, %v11336_v48, %v11528_v23  ;;  %v11187_v5 = vmul.f32 0.6931472, %v17298_v9  ;;  %17317 = vlog2.f32 %v11073_v19  ;;  %v11071_v31 = vpop.xlane.xlu0 %11070  ;;  %v11276_v45 = vsub.f32 %v25295_v57, %v25319_v46 }
 0xa63   : > { %v22669_v2 = vpop.eup %17301  ;;  %11656 = vst [vmem:[%s22222_s14 + $0x130] sm:$0xff] %v11592_v63  ;;  %v11339_v43 = vsub.f32 %v11275_v37, %v11189_v36  ;;  %17319 = vlog2.f32 %v11071_v31  ;;  %v11279_v59 = vsub.f32 %v25296_v1, %v25321_v11  ;;  %v11535_v37 = vsel %vm22199_vm4, %v25296_v1, %v22624_v56  ;;  %v25324_v31 = vld [vmem:[#allocation126_spill] sm:$0xff] }
 0xa64   : > { %v17304_v8 = vpop.eup %17303  ;;  %17321 = vpow2.f32 %v11462_v41  ;;  %v11338_v25 = vsub.f32 %v11274_v24, %v11187_v5  ;;  %v25322_v41 = vld [vmem:[#allocation11_spill] sm:$0xff]  ;;  %v11534_v19 = vsel %vm22199_vm4, %v25299_v40, %v22641_v4  ;;  %v11470_v24 = vmul.f32 1.442695, %v25323_v0 }
 0xa65   : > { %v17306_v14 = vpop.eup %17305  ;;  %v11595_v21 = vsel %vm10590_vm1, %v11339_v43, %v11531_v18  ;;  %v11193_v58 = vmul.f32 0.6931472, %v17304_v8  ;;  %v11077_v53 = vpop.xlane.xlu1 %11076  ;;  %v11278_v57 = vsub.f32 %v25299_v40, %v25322_v41  ;;  %v11476_v18 = vmul.f32 1.442695, %v25324_v31  ;;  %v25325_v43 = vld [vmem:[#allocation22_spill] sm:$0xff] }
 0xa66   : > { %v22686_v7 = vpop.eup %17307  ;;  %11659 = vst [vmem:[%s22222_s14 + $0x148] sm:$0xff] %v11595_v21  ;;  %v11594_v32 = vsel %vm10590_vm1, %v11338_v25, %v11530_v54  ;;  %v11191_v15 = vmul.f32 0.6931472, %v17306_v14  ;;  %17323 = vlog2.f32 %v11077_v53  ;;  %v11075_v55 = vpop.xlane.xlu0 %11074  ;;  %v11281_v1 = vsub.f32 %v25302_v27, %v25325_v43  ;;  %v25326_v25 = vld [vmem:[#allocation20_spill] sm:$0xff]  ;;  %v25327_v53 = vld [vmem:[#allocation118_spill] sm:$0xff] }
 0xa67   : > { %11658 = vst [vmem:[%s22222_s14 + $0x140] sm:$0xff] %v11594_v32  ;;  %v11341_v29 = vsub.f32 %v11277_v61, %v11193_v58  ;;  %17325 = vlog2.f32 %v11075_v55  ;;  %v11280_v40 = vsub.f32 %v25303_v20, %v25326_v25  ;;  %v11537_v17 = vsel %vm22199_vm4, %v25302_v27, %v22662_v33 }
 0xa68   : > { %v17310_v49 = vpop.eup %17309  ;;  %17327 = vpow2.f32 %v11468_v12  ;;  %v11340_v52 = vsub.f32 %v11276_v45, %v11191_v15  ;;  %v11536_v58 = vsel %vm22199_vm4, %v25303_v20, %v22669_v2  ;;  %v11474_v46 = vmul.f32 1.442695, %v25327_v53  ;;  %v25328_v15 = vld [vmem:[#allocation32_spill] sm:$0xff] }
 0xa69   : > { %v17312_v30 = vpop.eup %17311  ;;  %17329 = vpow2.f32 %v11466_v34  ;;  %v11597_v50 = vsel %vm10590_vm1, %v11341_v29, %v11533_v10  ;;  %v11197_v3 = vmul.f32 0.6931472, %v17310_v49  ;;  %v11081_v60 = vpop.xlane.xlu1 %11080  ;;  %v11283_v27 = vsub.f32 %v25306_v13, %v25328_v15  ;;  %v25329_v49 = vld [vmem:[#allocation54_spill] sm:$0xff] }
 0xa6a   : > { %v22707_v23 = vpop.eup %17313  ;;  %11661 = vst [vmem:[%s22222_s14 + $0x158] sm:$0xff] %v11597_v50  ;;  %v11596_v42 = vsel %vm10590_vm1, %v11340_v52, %v11532_v51  ;;  %v11195_v48 = vmul.f32 0.6931472, %v17312_v30  ;;  %17331 = vlog2.f32 %v11081_v60  ;;  %v11079_v9 = vpop.xlane.xlu0 %11078  ;;  %v11282_v20 = vsub.f32 %v25309_v16, %v25329_v49  ;;  %v25338_v49 = vld [vmem:[#allocation52_spill] sm:$0xff] }
 0xa6b   : > { %v22714_v22 = vpop.eup %17315  ;;  %11660 = vst [vmem:[%s22222_s14 + $0x150] sm:$0xff] %v11596_v42  ;;  %v11343_v47 = vsub.f32 %v11279_v59, %v11197_v3  ;;  %17333 = vlog2.f32 %v11079_v9  ;;  %v11539_v30 = vsel %vm22199_vm4, %v25306_v13, %v22686_v7  ;;  %v11538_v50 = vsel %vm22199_vm4, %v25309_v16, %v22707_v23  ;;  %v25330_v3 = vld [vmem:[#allocation137_spill] sm:$0xff]  ;;  %v25331_v42 = vld [vmem:[#allocation6_spill] sm:$0xff]  ;;  %v25332_v9 = vld [vmem:[#allocation47_spill] sm:$0xff] }
 0xa6c   : > { %v17318_v36 = vpop.eup %17317  ;;  %17335 = vpow2.f32 %v11472_v62  ;;  %v11342_v63 = vsub.f32 %v11278_v57, %v11195_v48  ;;  %v11480_v60 = vmul.f32 1.442695, %v25330_v3  ;;  %v11478_v48 = vmul.f32 1.442695, %v25331_v42 }
 0xa6d   : > { %v17320_v5 = vpop.eup %17319  ;;  %v11599_v56 = vsel %vm10590_vm1, %v11343_v47, %v11535_v37  ;;  %v11201_v8 = vmul.f32 0.6931472, %v17318_v36  ;;  %v11085_v54 = vpop.xlane.xlu1 %11084  ;;  %v11285_v13 = vsub.f32 %v25310_v44, %v25332_v9  ;;  %v25341_v9 = vld [vmem:[#allocation33_spill] sm:$0xff] }
 0xa6e   : > { %v22731_v12 = vpop.eup %17321  ;;  %11663 = vst [vmem:[%s22222_s14 + $0x168] sm:$0xff] %v11599_v56  ;;  %v11598_v4 = vsel %vm10590_vm1, %v11342_v63, %v11534_v19  ;;  %v11199_v14 = vmul.f32 0.6931472, %v17320_v5  ;;  %17337 = vlog2.f32 %v11085_v54  ;;  %v11083_v34 = vpop.xlane.xlu0 %11082  ;;  %v25333_v19 = vld [vmem:[#allocation26_spill] sm:$0xff]  ;;  %v11541_v5 = vsel %vm22199_vm4, %v25310_v44, %v22714_v22  ;;  %v25334_v56 = vld [vmem:[#allocation29_spill] sm:$0xff] }
 0xa6f   : > { %11662 = vst [vmem:[%s22222_s14 + $0x160] sm:$0xff] %v11598_v4  ;;  %v11345_v61 = vsub.f32 %v11281_v1, %v11201_v8  ;;  %17339 = vlog2.f32 %v11083_v34  ;;  %v11284_v16 = vsub.f32 %v25313_v38, %v25333_v19  ;;  %v11540_v1 = vsel %vm22199_vm4, %v25313_v38, %v22731_v12 }
 0xa70   : > { %v17324_v21 = vpop.eup %17323  ;;  %17341 = vpow2.f32 %v11470_v24  ;;  %v11344_v45 = vsub.f32 %v11280_v40, %v11199_v14  ;;  %v11484_v8 = vmul.f32 1.442695, %v25334_v56  ;;  %v25335_v40 = vld [vmem:[#allocation63_spill] sm:$0xff] }
 0xa71   : > { %v17326_v32 = vpop.eup %17325  ;;  %17343 = vpow2.f32 %v11476_v18  ;;  %v11601_v33 = vsel %vm10590_vm1, %v11345_v61, %v11537_v17  ;;  %v11205_v55 = vmul.f32 0.6931472, %v17324_v21  ;;  %v11089_v10 = vpop.xlane.xlu1 %11088  ;;  %v11287_v44 = vsub.f32 %v25316_v39, %v25335_v40  ;;  %v25336_v17 = vld [vmem:[#allocation35_spill] sm:$0xff] }
 0xa72   : > { %v22752_v29 = vpop.eup %17327  ;;  %11665 = vst [vmem:[%s22222_s14 + $0x178] sm:$0xff] %v11601_v33  ;;  %v11600_v2 = vsel %vm10590_vm1, %v11344_v45, %v11536_v58  ;;  %v11203_v51 = vmul.f32 0.6931472, %v17326_v32  ;;  %17345 = vlog2.f32 %v11089_v10  ;;  %v11087_v62 = vpop.xlane.xlu0 %11086  ;;  %v11286_v61 = vsub.f32 %v25317_v28, %v25336_v17 }
 0xa73   : > { %v22759_v52 = vpop.eup %17329  ;;  %11664 = vst [vmem:[%s22222_s14 + $0x170] sm:$0xff] %v11600_v2  ;;  %v11347_v11 = vsub.f32 %v11283_v27, %v11205_v55  ;;  %17347 = vlog2.f32 %v11087_v62  ;;  %v25337_v27 = vld [vmem:[#allocation58_spill] sm:$0xff]  ;;  %v25339_v2 = vld [vmem:[#allocation75_spill] sm:$0xff] }
 0xa74   : > { %v17332_v59 = vpop.eup %17331  ;;  %17349 = vpow2.f32 %v11474_v46  ;;  %v11346_v41 = vsub.f32 %v11282_v20, %v11203_v51  ;;  %v11543_v46 = vsel %vm22199_vm4, %v25316_v39, %v22752_v29  ;;  %v11542_v15 = vsel %vm22199_vm4, %v25317_v28, %v22759_v52 }
 0xa75   : > { %v17334_v57 = vpop.eup %17333  ;;  %v11603_v7 = vsel %vm10590_vm1, %v11347_v11, %v11539_v30  ;;  %v11209_v37 = vmul.f32 0.6931472, %v17332_v59  ;;  %v11093_v47 = vpop.xlane.xlu1 %11092  ;;  %v11482_v33 = vmul.f32 1.442695, %v25337_v27  ;;  %v11488_v20 = vmul.f32 1.442695, %v25338_v49 }
 0xa76   : > { %v22776_v36 = vpop.eup %17335  ;;  %11667 = vst [vmem:[%s22222_s14 + $0x188] sm:$0xff] %v11603_v7  ;;  %v11602_v23 = vsel %vm10590_vm1, %v11346_v41, %v11538_v50  ;;  %v11207_v24 = vmul.f32 0.6931472, %v17334_v57  ;;  %17351 = vlog2.f32 %v11093_v47  ;;  %v11091_v63 = vpop.xlane.xlu0 %11090  ;;  %v11289_v39 = vsub.f32 %v25320_v6, %v25339_v2  ;;  %v25340_v11 = vld [vmem:[#allocation51_spill] sm:$0xff]  ;;  %v25342_v47 = vld [vmem:[#allocation82_spill] sm:$0xff] }
 0xa77   : > { %11666 = vst [vmem:[%s22222_s14 + $0x180] sm:$0xff] %v11602_v23  ;;  %v11349_v18 = vsub.f32 %v11285_v13, %v11209_v37  ;;  %17353 = vlog2.f32 %v11091_v63  ;;  %v11288_v28 = vsub.f32 %v25323_v0, %v25340_v11  ;;  %v11486_v13 = vmul.f32 1.442695, %v25341_v9  ;;  %v25347_v2 = vld [vmem:[#allocation86_spill] sm:$0xff] }
 0xa78   : > { %v17338_v43 = vpop.eup %17337  ;;  %17355 = vpow2.f32 %v11480_v60  ;;  %v11348_v54 = vsub.f32 %v11284_v16, %v11207_v24  ;;  %v11545_v60 = vsel %vm22199_vm4, %v25320_v6, %v22776_v36  ;;  %v11291_v19 = vsub.f32 %v25324_v31, %v25342_v47  ;;  %v25343_v24 = vld [vmem:[#allocation67_spill] sm:$0xff] }
 0xa79   : > { %v17340_v25 = vpop.eup %17339  ;;  %17357 = vpow2.f32 %v11478_v48  ;;  %v11605_v22 = vsel %vm10590_vm1, %v11349_v18, %v11541_v5  ;;  %v11213_v4 = vmul.f32 0.6931472, %v17338_v43  ;;  %v11097_v14 = vpop.xlane.xlu1 %11096  ;;  %v11290_v63 = vsub.f32 %v25327_v53, %v25343_v24 }
 0xa7a   : > { %v17342_v34 = vpop.eup %17341  ;;  %11669 = vst [vmem:[%s22222_s14 + $0x198] sm:$0xff] %v11605_v22  ;;  %v11604_v38 = vsel %vm10590_vm1, %v11348_v54, %v11540_v1  ;;  %v11211_v12 = vmul.f32 0.6931472, %v17340_v25  ;;  %17359 = vlog2.f32 %v11097_v14  ;;  %v11095_v21 = vpop.xlane.xlu0 %11094  ;;  %v25344_v22 = vld [vmem:[#allocation92_spill] sm:$0xff] }
 0xa7b   : > { %v17344_v58 = vpop.eup %17343  ;;  %11668 = vst [vmem:[%s22222_s14 + $0x190] sm:$0xff] %v11604_v38  ;;  %v11351_v45 = vsub.f32 %v11287_v44, %v11213_v4  ;;  %17361 = vlog2.f32 %v11095_v21  ;;  %v11544_v48 = vsel %vm22199_vm4, %v25323_v0, %v17342_v34  ;;  %v11293_v4 = vsub.f32 %v25330_v3, %v25344_v22 }
 0xa7c   : > { %v17346_v32 = vpop.eup %17345  ;;  %17363 = vpow2.f32 %v11484_v8  ;;  %v11350_v55 = vsub.f32 %v11286_v61, %v11211_v12  ;;  %v11547_v54 = vsel %vm22199_vm4, %v25324_v31, %v17344_v58  ;;  %v25345_v61 = vld [vmem:[#allocation79_spill] sm:$0xff] }
 0xa7d   : > { %v17348_v10 = vpop.eup %17347  ;;  %v11607_v29 = vsel %vm10590_vm1, %v11351_v45, %v11543_v46  ;;  %v11217_v51 = vmul.f32 0.6931472, %v17346_v32  ;;  %v11101_v62 = vpop.xlane.xlu1 %11100  ;;  %v11292_v38 = vsub.f32 %v25331_v42, %v25345_v61 }
 0xa7e   : > { %v17350_v30 = vpop.eup %17349  ;;  %11671 = vst [vmem:[%s22222_s14 + $0x1a8] sm:$0xff] %v11607_v29  ;;  %v11606_v52 = vsel %vm10590_vm1, %v11350_v55, %v11542_v15  ;;  %v11215_v59 = vmul.f32 0.6931472, %v17348_v10  ;;  %17365 = vlog2.f32 %v11101_v62  ;;  %v11099_v50 = vpop.xlane.xlu0 %11098  ;;  %v25346_v15 = vld [vmem:[#allocation41_spill] sm:$0xff] }
 0xa7f   : > { %11670 = vst [vmem:[%s22222_s14 + $0x1a0] sm:$0xff] %v11606_v52  ;;  %v11353_v41 = vsub.f32 %v11289_v39, %v11217_v51  ;;  %17367 = vlog2.f32 %v11099_v50  ;;  %v11546_v44 = vsel %vm22199_vm4, %v25327_v53, %v17350_v30  ;;  %v11294_v39 = vsub.f32 %v25337_v27, %v25347_v2 }
 0xa80   : > { %v17352_v57 = vpop.eup %17351  ;;  %17369 = vpow2.f32 %v11482_v33  ;;  %v11352_v7 = vsub.f32 %v11288_v28, %v11215_v59  ;;  %v11295_v33 = vsub.f32 %v25334_v56, %v25346_v15  ;;  %v25348_v59 = vld [vmem:[#allocation104_spill] sm:$0xff] }
 0xa81   : > { %v17354_v37 = vpop.eup %17353  ;;  %17371 = vpow2.f32 %v11488_v20  ;;  %v11609_v6 = vsel %vm10590_vm1, %v11353_v41, %v11545_v60  ;;  %v11221_v36 = vmul.f32 0.6931472, %v17352_v57  ;;  %v11105_v16 = vpop.xlane.xlu1 %11104  ;;  %v11297_v50 = vsub.f32 %v25338_v49, %v25348_v59 }
 0xa82   : > { %v17356_v23 = vpop.eup %17355  ;;  %11673 = vst [vmem:[%s22222_s14 + $0x1b8] sm:$0xff] %v11609_v6  ;;  %v11608_v0 = vsel %vm10590_vm1, %v11352_v7, %v11544_v48  ;;  %v11219_v5 = vmul.f32 0.6931472, %v17354_v37  ;;  %17373 = vlog2.f32 %v11105_v16  ;;  %v11103_v18 = vpop.xlane.xlu0 %11102  ;;  %v25349_v48 = vld [vmem:[#allocation94_spill] sm:$0xff] }
 0xa83   : > { %v17358_v43 = vpop.eup %17357  ;;  %11672 = vst [vmem:[%s22222_s14 + $0x1b0] sm:$0xff] %v11608_v0  ;;  %v11355_v1 = vsub.f32 %v11291_v19, %v11221_v36  ;;  %17375 = vlog2.f32 %v11103_v18  ;;  %v11549_v58 = vsel %vm22199_vm4, %v25330_v3, %v17356_v23 }
 0xa84   : > { %v17360_v8 = vpop.eup %17359  ;;  %17377 = vpow2.f32 %v11486_v13  ;;  %v11354_v25 = vsub.f32 %v11290_v63, %v11219_v5  ;;  %v11548_v32 = vsel %vm22199_vm4, %v25331_v42, %v17358_v43 }
 0xa85   : > { %v17362_v40 = vpop.eup %17361  ;;  %v11611_v14 = vsel %vm10590_vm1, %v11355_v1, %v11547_v54  ;;  %v11225_v34 = vmul.f32 0.6931472, %v17360_v8 }
 0xa86   : > { %v17364_v17 = vpop.eup %17363  ;;  %11675 = vst [vmem:[%s22222_s14 + $0x1c8] sm:$0xff] %v11611_v14  ;;  %v11610_v31 = vsel %vm10590_vm1, %v11354_v25, %v11546_v44  ;;  %v11223_v12 = vmul.f32 0.6931472, %v17362_v40 }
 0xa87   : > { %11674 = vst [vmem:[%s22222_s14 + $0x1c0] sm:$0xff] %v11610_v31  ;;  %v11357_v53 = vsub.f32 %v11293_v4, %v11225_v34  ;;  %v11551_v30 = vsel %vm22199_vm4, %v25334_v56, %v17364_v17  ;;  %v11296_v56 = vsub.f32 %v25341_v9, %v25349_v48 }
 0xa88   : > { %v17366_v21 = vpop.eup %17365  ;;  %v11356_v46 = vsub.f32 %v11292_v38, %v11223_v12 }
 0xa89   : > { %v17368_v45 = vpop.eup %17367  ;;  %v11613_v55 = vsel %vm10590_vm1, %v11357_v53, %v11549_v58  ;;  %v11229_v10 = vmul.f32 0.6931472, %v17366_v21 }
 0xa8a   : > { %v17370_v20 = vpop.eup %17369  ;;  %11677 = vst [vmem:[%s22222_s14 + $0x1d8] sm:$0xff] %v11613_v55  ;;  %v11612_v3 = vsel %vm10590_vm1, %v11356_v46, %v11548_v32  ;;  %v11227_v29 = vmul.f32 0.6931472, %v17368_v45 }
 0xa8b   : > { %v17372_v42 = vpop.eup %17371  ;;  %11676 = vst [vmem:[%s22222_s14 + $0x1d0] sm:$0xff] %v11612_v3  ;;  %v11359_v51 = vsub.f32 %v11295_v33, %v11229_v10  ;;  %v11550_v52 = vsel %vm22199_vm4, %v25337_v27, %v17370_v20 }
 0xa8c   : > { %v17374_v62 = vpop.eup %17373  ;;  %v11358_v11 = vsub.f32 %v11294_v39, %v11227_v29  ;;  %v11553_v37 = vsel %vm22199_vm4, %v25338_v49, %v17372_v42 }
 0xa8d   : > { %v17376_v28 = vpop.eup %17375  ;;  %v11615_v60 = vsel %vm10590_vm1, %v11359_v51, %v11551_v30  ;;  %v11233_v41 = vmul.f32 0.6931472, %v17374_v62 }
 0xa8e   : > { %v17378_v57 = vpop.eup %17377  ;;  %11679 = vst [vmem:[%s22222_s14 + $0x1e8] sm:$0xff] %v11615_v60  ;;  %v11614_v27 = vsel %vm10590_vm1, %v11358_v11, %v11550_v52  ;;  %v11231_v13 = vmul.f32 0.6931472, %v17376_v28 }
 0xa8f   : > { %11678 = vst [vmem:[%s22222_s14 + $0x1e0] sm:$0xff] %v11614_v27  ;;  %v11361_v7 = vsub.f32 %v11297_v50, %v11233_v41  ;;  %v11552_v19 = vsel %vm22199_vm4, %v25341_v9, %v17378_v57 }
 0xa90   : > { %v11360_v47 = vsub.f32 %v11296_v56, %v11231_v13 }
 0xa91   : > { %v11617_v6 = vsel %vm10590_vm1, %v11361_v7, %v11553_v37 }
 0xa92   : > { %11681 = vst [vmem:[%s22222_s14 + $0x1f8] sm:$0xff] %v11617_v6  ;;  %v11616_v49 = vsel %vm10590_vm1, %v11360_v47, %v11552_v19 }
 0xa93   : > { %11680 = vst [vmem:[%s22222_s14 + $0x1f0] sm:$0xff] %v11616_v49 }
 0xa94   : > { %17394 = shalt.err (!%p17391_p3)
}
 0xa95   : > { %s17395_s29 = scalar_lea.hbm %s22897_s18, 8192  ;;  %s17399_s13 = scalar_lea.hbm %s22960_s7, 32768 }
 0xa96   : > { %p17396_p4 = scmp.ne.s32.totalorder %s22897_s18, %s17395_s29  ;;  %p17400_p9 = scmp.lt.u32.totalorder %s22897_s18, %s22960_s7 }
 0xa97   : > { %p17401_p10 = scmp.lt.u32.totalorder %s17399_s13, %s17395_s29  ;;  %p17403_p12 = scmp.lt.u32.totalorder %s17395_s29, %s22897_s18 }
 0xa98   : > { %p17397_p7 = pnand %p17396_p4, %p17526_p5 }
 0xa99   : > { %p17402_p11 = por %p17401_p10, %p17400_p9 }
 0xa9a   : > { %p17398_p8 = pneg %p17397_p7 }
 0xa9b   : > { %p17404_p13 = por %p17403_p12, %p17402_p11 }
 0xa9d   : > { %p17405_p0 = pnand %p17404_p13, %p17398_p8 }
 0xa9f   : > { %17408 = shalt.err (!%p17405_p0)
}
 0xaa0   : > { %s17446_s28 = smov 128   ;;  %s17447_s17 = smov 8  }
 0xaa1   : > { %16826 = dma.vmem_to_hbm [thread:$0]  (%p17526_p5), %s22899_s16, 8192, %s22897_s18, %s22912_s19, %s17446_s28, %s17446_s28, %s17447_s17  }
 0xaa2 PF: > { %p16832_p1 = scmp.ge.s32.totalorder %s17443_s27, 2  ;;  %s11711_s20 = sand.u32 1, %s17431_s24  }
 0xaa3   : > { %s11712_s21 = scalar_lea.sflag [#allocation3], %s11711_s20 }
 0xaa4   : > { %p16829_p2 = pnand %p16832_p1, %p17530_p6 }
 0xaa6   : > { %17426 = dma.done.wait (!%p16829_p2), %s11712_s21, 8192  }
 0xaa7   : > { %17428 = vsyncadd (!%p16829_p2), %s11712_s21, 4294959104  ;;  %p17_p3 = scmp.ge.s32.totalorder %s17513_s30, 6   ;;  %s25350_s24 = smov %s17435_s25 }
 0xaa8   : > { %s25351_s25 = smov %s17439_s26  ;;  %s25352_s26 = smov %s17524_s10 }
 0xaa9   : > { %s25353_s27 = smov %s17513_s30  ;;  %19 = sbr.rel (!%p17_p3) target bundleno = 3 (0x3), region = 83 }
 0xab0   :  { %11717 = vsyncpa [#allocation3], 1 }
 0xab1   :  { %11719 = vsyncpa [#allocation3 + $0x1], 1 }

</bundles_post_ra>
